<compile_context>
chip_gen: v7x
topology: tpu7x:2x2x1
jax: 0.10.0
libtpu: 0.0.40
codegen_flags: <defaults>
</compile_context>

<pallas_src>
import functools

import jax
import jax.numpy as jnp
from jax.experimental import pallas as pl
from jax.experimental.pallas import tpu as pltpu

CHANNELS = 3
LRELU_SLOPE = 0.2
BN_EPS = 1e-5
KH = KW = 4
LANE = 128
VMEM_LIMIT = 32 * 1024 * 1024   # safe on v5e/v6e/v7x


def _round_up(x, m):
    return ((x + m - 1) // m) * m


def _pad_axis(x, axis, target):
    pad = target - x.shape[axis]
    if pad == 0:
        return x
    cfg = [(0, 0)] * x.ndim
    cfg[axis] = (0, pad)
    return jnp.pad(x, cfg)


def _apply_act(y, act):
    if act == "leaky_relu":
        return jnp.where(y > 0, y, LRELU_SLOPE * y)
    if act == "relu":
        return jnp.maximum(y, 0.0)
    if act == "tanh":
        return jnp.tanh(y)
    return y


# ----------------------------------------------------------------------------
# Pallas kernels
# ----------------------------------------------------------------------------
def _phase_mm_stats_kernel(a_ref, b_ref, o_ref, st_ref, *, m_total, tm):
    """One (phase, m-block) step: full-K matmul on the MXU, bf16 store of the
    activation block, and fused per-channel sum / sumsq partials for BN
    (padded boundary rows masked out of the reduction)."""
    acc = jnp.dot(a_ref[...], b_ref[...], preferred_element_type=jnp.float32)
    o_ref[...] = acc.astype(o_ref.dtype)

    rows = jax.lax.broadcasted_iota(jnp.int32, acc.shape, 0)
    valid = (pl.program_id(1) * tm + rows) < m_total
    accm = jnp.where(valid, acc, 0.0)
    s = jnp.sum(accm, axis=0, keepdims=True)               # (1, Npad)
    ss = jnp.sum(accm * accm, axis=0, keepdims=True)       # (1, Npad)

    srow = jax.lax.broadcasted_iota(jnp.int32, st_ref.shape, 0)   # (8, Npad)
    st_ref[...] = jnp.where(srow == 0, s, 0.0) + jnp.where(srow == 1, ss, 0.0)


def _phase_mm_bias_act_kernel(a_ref, b_ref, bias_ref, o_ref, *, act):
    """Full-K matmul with fused bias + activation epilogue (no-BN path)."""
    acc = jnp.dot(a_ref[...], b_ref[...], preferred_element_type=jnp.float32)
    o_ref[...] = _apply_act(acc + bias_ref[...], act).astype(o_ref.dtype)


def _affine_act_kernel(x_ref, s_ref, t_ref, o_ref, *, act):
    y = x_ref[...].astype(jnp.float32) * s_ref[...] + t_ref[...]   # f32 math
    o_ref[...] = _apply_act(y, act).astype(o_ref.dtype)


# ----------------------------------------------------------------------------
# Pallas wrappers
# ----------------------------------------------------------------------------
def _mm_tiles(M):
    tm = min(512, _round_up(M, 16))
    return tm, pl.cdiv(M, tm)


def pallas_phase_matmul_stats(a, b):
    """a: (P, M, K) bf16, b: (P, K, Npad) bf16 (Npad, K multiples of 128).

    Returns
      y:  (P, M, Npad) bf16 activations,
      st: (P, Mb, 8, Npad) f32 partials — row 0 = sum over rows, row 1 = sumsq.
    The full (K, Npad) weight slab of the current phase stays VMEM-resident
    across all m-blocks (index_map ignores m); no K grid axis.
    """
    P, M, K = a.shape
    _, _, Npad = b.shape
    tm, Mb = _mm_tiles(M)
    kernel = functools.partial(_phase_mm_stats_kernel, m_total=M, tm=tm)
    return pl.pallas_call(
        kernel,
        out_shape=(jax.ShapeDtypeStruct((P, M, Npad), jnp.bfloat16),
                   jax.ShapeDtypeStruct((P, Mb, 8, Npad), jnp.float32)),
        grid=(P, Mb),
        in_specs=[pl.BlockSpec((None, tm, K), lambda p, m: (p, m, 0)),
                  pl.BlockSpec((None, K, Npad), lambda p, m: (p, 0, 0))],
        out_specs=(pl.BlockSpec((None, tm, Npad), lambda p, m: (p, m, 0)),
                   pl.BlockSpec((None, None, 8, Npad),
                                lambda p, m: (p, m, 0, 0))),
        compiler_params=pltpu.CompilerParams(
            dimension_semantics=("parallel", "parallel"),
            vmem_limit_bytes=VMEM_LIMIT),
    )(a, b)


def pallas_phase_matmul_bias_act(a, b, bias, act):
    """Matmul with fused bias + activation (the final, no-BN decode block)."""
    P, M, K = a.shape
    _, _, Npad = b.shape
    tm, Mb = _mm_tiles(M)
    kernel = functools.partial(_phase_mm_bias_act_kernel, act=act)
    return pl.pallas_call(
        kernel,
        out_shape=jax.ShapeDtypeStruct((P, M, Npad), jnp.bfloat16),
        grid=(P, Mb),
        in_specs=[pl.BlockSpec((None, tm, K), lambda p, m: (p, m, 0)),
                  pl.BlockSpec((None, K, Npad), lambda p, m: (p, 0, 0)),
                  pl.BlockSpec((1, Npad), lambda p, m: (0, 0))],
        out_specs=pl.BlockSpec((None, tm, Npad), lambda p, m: (p, m, 0)),
        compiler_params=pltpu.CompilerParams(
            dimension_semantics=("parallel", "parallel"),
            vmem_limit_bytes=VMEM_LIMIT),
    )(a, b, bias.reshape(1, Npad).astype(jnp.float32))


def pallas_affine_act(x, scale, shift, act, out_dtype=jnp.bfloat16):
    """x: (P, M, Cpad) bf16 -> act(x*scale + shift) per channel, bf16 store.
    Cpad is a multiple of 128 (lane-dense stores); f32 math in vregs."""
    P, M, C = x.shape
    tm = min(1024, _round_up(M, 16))
    return pl.pallas_call(
        functools.partial(_affine_act_kernel, act=act),
        out_shape=jax.ShapeDtypeStruct((P, M, C), out_dtype),
        grid=(P, pl.cdiv(M, tm)),
        in_specs=[pl.BlockSpec((None, tm, C), lambda p, m: (p, m, 0)),
                  pl.BlockSpec((1, C), lambda p, m: (0, 0)),
                  pl.BlockSpec((1, C), lambda p, m: (0, 0))],
        out_specs=pl.BlockSpec((None, tm, C), lambda p, m: (p, m, 0)),
        compiler_params=pltpu.CompilerParams(
            dimension_semantics=("parallel", "parallel"),
            vmem_limit_bytes=VMEM_LIMIT),
    )(x, scale.reshape(1, C).astype(jnp.float32),
      shift.reshape(1, C).astype(jnp.float32))


# ----------------------------------------------------------------------------
# Plain-JAX glue: patch formation + BN scale/shift from fused partial sums
# ----------------------------------------------------------------------------
def im2col_conv_s2p1(x):
    """Conv2d(k=4, s=2, p=1) patches. x: (N,H,W,C) -> ((N*OH*OW, 16*C), dims)."""
    # TODO(synk): move im2col into the matmul kernel (spatial BlockSpec with a
    # 1-pixel halo, taps built in VMEM) to avoid materializing the 4x-inflated
    # patches array in HBM.
    N, H, W, C = x.shape
    OH, OW = H // 2, W // 2
    xp = jnp.pad(x, ((0, 0), (1, 1), (1, 1), (0, 0)))
    cols = []
    for kh in range(KH):
        for kw in range(KW):
            cols.append(xp[:, kh:kh + 2 * OH:2, kw:kw + 2 * OW:2, :])
    patches = jnp.stack(cols, axis=3)                 # (N, OH, OW, 16, C)
    return patches.reshape(N * OH * OW, KH * KW * C), (N, OH, OW)


def _bn_scale_shift(st, cout, count, gamma, beta):
    """st: (P, Mb, 8, Npad) kernel partials (row 0 = sum, row 1 = sumsq).
    Training-mode BatchNorm2d (biased variance); conv bias cancels."""
    s = jnp.sum(st[:, :, 0, :cout], axis=(0, 1))
    ss = jnp.sum(st[:, :, 1, :cout], axis=(0, 1))
    mean = s / count
    var = jnp.maximum(ss / count - mean * mean, 0.0)
    inv_std = jax.lax.rsqrt(var + BN_EPS)
    scale = gamma * inv_std
    return scale, beta - scale * mean


# ----------------------------------------------------------------------------
# Generator blocks / forward
# ----------------------------------------------------------------------------
def encode_block(x, W, b, gamma, beta):
    # W: (Cout, Cin, 4, 4) (PyTorch Conv2d layout). Conv bias cancels in BN.
    patches, (Nb, OH, OW) = im2col_conv_s2p1(x)
    M, K = patches.shape
    cout = W.shape[0]
    Kp = _round_up(K, LANE)          # first layer K=48 -> 128 (lane-aligned)
    Np = _round_up(cout, LANE)       # cout=64 -> 128 (lane-dense stores)

    a = _pad_axis(patches.astype(jnp.bfloat16), 1, Kp)[None]           # (1,M,Kp)
    w_mat = jnp.transpose(W, (2, 3, 1, 0)).reshape(K, cout)
    bmat = _pad_axis(_pad_axis(w_mat, 0, Kp), 1, Np)[None]             # (1,Kp,Np)
    bmat = bmat.astype(jnp.bfloat16)

    y, st = pallas_phase_matmul_stats(a, bmat)          # y bf16, stats fused
    scale, shift = _bn_scale_shift(st, cout, M, gamma, beta)
    out = pallas_affine_act(y, _pad_axis(scale, 0, Np), _pad_axis(shift, 0, Np),
                            act="leaky_relu")
    return out[0, :, :cout].reshape(Nb, OH, OW, cout)


def _convT_phase_taps(p):
    """For output parity p: kernel tap indices and padded-input slice starts."""
    return ((1, 3), (1, 0)) if p == 0 else ((0, 2), (2, 1))


def decode_block(x, W, b, gamma, beta, use_bn, act):
    # W: (Cin, Cout, 4, 4) (PyTorch ConvTranspose2d layout).
    # ConvTranspose(4, s=2, p=1) decomposed into 4 output phases (oy%2, ox%2);
    # each phase is a dense 2x2-tap matmul with K = 4*Cin. All 4 phases are
    # batched into ONE pallas_call (leading "parallel" grid axis).
    Nb, H, Wsp, Cin = x.shape
    cout = W.shape[1]
    Np = _round_up(cout, LANE)
    xp = jnp.pad(x, ((0, 0), (1, 1), (1, 1), (0, 0)))

    patch_list, wmat_list = [], []
    for py in (0, 1):
        kys, rstarts = _convT_phase_taps(py)
        for px in (0, 1):
            kxs, cstarts = _convT_phase_taps(px)
            cols = [xp[:, rs:rs + H, cs:cs + Wsp, :]
                    for rs in rstarts for cs in cstarts]
            patch_list.append(
                jnp.stack(cols, axis=3).reshape(Nb * H * Wsp, 4 * Cin))
            w_taps = W[:, :, jnp.array(kys), :][:, :, :, jnp.array(kxs)]
            wmat_list.append(
                jnp.transpose(w_taps, (2, 3, 0, 1)).reshape(4 * Cin, cout))

    M = Nb * H * Wsp
    a = jnp.stack(patch_list).astype(jnp.bfloat16)                    # (4,M,K)
    bmat = _pad_axis(jnp.stack(wmat_list), 2, Np).astype(jnp.bfloat16)  # (4,K,Np)

    if use_bn:
        y, st = pallas_phase_matmul_stats(a, bmat)       # bias cancels in BN
        scale, shift = _bn_scale_shift(st, cout, 4 * M, gamma, beta)
        yact = pallas_affine_act(y, _pad_axis(scale, 0, Np),
                                 _pad_axis(shift, 0, Np), act=act)
    else:
        bias_p = _pad_axis(b.astype(jnp.float32), 0, Np)
        yact = pallas_phase_matmul_bias_act(a, bmat, bias_p, act=act)

    # Interleave the 4 phases: (4, M, Np) -> (Nb, 2H, 2W, cout) with a single
    # transpose/reshape (no stride-2 scatters).
    ph = yact[:, :, :cout].reshape(2, 2, Nb, H, Wsp, cout)
    return jnp.transpose(ph, (2, 3, 0, 4, 1, 5)).reshape(Nb, 2 * H, 2 * Wsp, cout)


def init_params(key):
    ech = [CHANNELS, 64, 128, 256, 512]
    dch = [512, 256, 128, 64, CHANNELS]
    params = {"enc": [], "dec": []}
    for i in range(len(ech) - 1):
        key, kw, kb = jax.random.split(key, 3)
        cin, cout = ech[i], ech[i + 1]
        params["enc"].append(dict(
            W=jax.random.normal(kw, (cout, cin, KH, KW), jnp.float32) * 0.05,
            b=jax.random.normal(kb, (cout,), jnp.float32) * 0.01,
            gamma=jnp.ones((cout,), jnp.float32),
            beta=jnp.zeros((cout,), jnp.float32)))
    for i in range(len(dch) - 1):
        key, kw, kb = jax.random.split(key, 3)
        cin, cout = dch[i], dch[i + 1]
        params["dec"].append(dict(
            W=jax.random.normal(kw, (cin, cout, KH, KW), jnp.float32) * 0.05,
            b=jax.random.normal(kb, (cout,), jnp.float32) * 0.01,
            gamma=jnp.ones((cout,), jnp.float32),
            beta=jnp.zeros((cout,), jnp.float32)))
    return params


def generator_forward(params, x_nchw):
    x = jnp.transpose(x_nchw, (0, 2, 3, 1)).astype(jnp.bfloat16)   # NCHW -> NHWC
    for p in params["enc"]:
        x = encode_block(x, p["W"], p["b"], p["gamma"], p["beta"])
    n_dec = len(params["dec"])
    for i, p in enumerate(params["dec"]):
        last = (i == n_dec - 1)
        x = decode_block(x, p["W"], p["b"], p["gamma"], p["beta"],
                         use_bn=not last, act="tanh" if last else "relu")
    return jnp.transpose(x.astype(jnp.float32), (0, 3, 1, 2))       # NHWC -> NCHW


if __name__ == "__main__":
    key = jax.random.PRNGKey(0)
    key_x, key_p = jax.random.split(key)
    # Small but architecture-consistent shape: 16x16 -> (8,4,2,1) -> 16x16.
    x = jax.random.normal(key_x, (2, CHANNELS, 16, 16), jnp.float32)
    params = init_params(key_p)

    fwd = jax.jit(generator_forward)
    out = jax.block_until_ready(fwd(params, x))

    assert out.shape == (2, CHANNELS, 16, 16), out.shape
    assert bool(jnp.all(jnp.isfinite(out)))
    assert bool(jnp.all(jnp.abs(out) <= 1.0 + 1e-6))   # final tanh range
    print("KERNEL_OK")
</pallas_src>

<mosaic_0001>
module attributes {stable_mosaic.version = 11 : i64} {
  func.func @_affine_act_kernel(%arg0: i32, %arg1: i32, %arg2: memref<1x128x128xbf16, #tpu.memory_space<vmem>>, %arg3: memref<1x128xf32, #tpu.memory_space<vmem>>, %arg4: memref<1x128xf32, #tpu.memory_space<vmem>>, %arg5: memref<1x128x128xbf16, #tpu.memory_space<vmem>>) attributes {dimension_semantics = [#tpu.dimension_semantics<parallel>, #tpu.dimension_semantics<parallel>], iteration_bounds = array<i64: 1, 1>, scalar_prefetch = 0 : i64, scratch_operands = 0 : i64, tpu.core_type = #tpu.core_type<tc>, window_params = [{transform_indices = @transform_0, window_bounds = array<i64: 1, 128, 128>}, {pipeline_mode = #tpu.pipeline_mode<synchronous>, transform_indices = @transform_1, window_bounds = array<i64: 1, 128>}, {pipeline_mode = #tpu.pipeline_mode<synchronous>, transform_indices = @transform_2, window_bounds = array<i64: 1, 128>}, {transform_indices = @transform_3, window_bounds = array<i64: 1, 128, 128>}]} {
    %c0 = arith.constant 0 : index
    %c0_0 = arith.constant 0 : index
    %c0_1 = arith.constant 0 : index
    %0 = vector.load %arg2[%c0, %c0_0, %c0_1] : memref<1x128x128xbf16, #tpu.memory_space<vmem>>, vector<1x128x128xbf16>
    %1 = vector.shape_cast %0 : vector<1x128x128xbf16> to vector<128x128xbf16>
    %2 = arith.extf %1 : vector<128x128xbf16> to vector<128x128xf32>
    %c0_2 = arith.constant 0 : index
    %c0_3 = arith.constant 0 : index
    %3 = vector.load %arg3[%c0_2, %c0_3] : memref<1x128xf32, #tpu.memory_space<vmem>>, vector<1x128xf32>
    %4 = vector.broadcast %3 : vector<1x128xf32> to vector<128x128xf32>
    %5 = arith.mulf %2, %4 : vector<128x128xf32>
    %c0_4 = arith.constant 0 : index
    %c0_5 = arith.constant 0 : index
    %6 = vector.load %arg4[%c0_4, %c0_5] : memref<1x128xf32, #tpu.memory_space<vmem>>, vector<1x128xf32>
    %7 = vector.broadcast %6 : vector<1x128xf32> to vector<128x128xf32>
    %8 = arith.addf %5, %7 : vector<128x128xf32>
    %cst = arith.constant 0.000000e+00 : f32
    %9 = vector.broadcast %cst : f32 to vector<128x128xf32>
    %10 = arith.cmpf ogt, %8, %9 : vector<128x128xf32>
    %cst_6 = arith.constant 2.000000e-01 : f32
    %11 = vector.broadcast %cst_6 : f32 to vector<128x128xf32>
    %12 = arith.mulf %11, %8 : vector<128x128xf32>
    %13 = arith.select %10, %8, %12 : vector<128x128xi1>, vector<128x128xf32>
    %14 = arith.truncf %13 : vector<128x128xf32> to vector<128x128xbf16>
    %c0_7 = arith.constant 0 : index
    %c0_8 = arith.constant 0 : index
    %c0_9 = arith.constant 0 : index
    %15 = vector.load %arg5[%c0_7, %c0_8, %c0_9] : memref<1x128x128xbf16, #tpu.memory_space<vmem>>, vector<1x128x128xbf16>
    %16 = vector.shape_cast %15 : vector<1x128x128xbf16> to vector<128x128xbf16>
    %17 = vector.shape_cast %14 : vector<128x128xbf16> to vector<1x128x128xbf16>
    tpu.vector_store %arg5[%c0_7, %c0_8, %c0_9], %17 {strides = array<i32>} : memref<1x128x128xbf16, #tpu.memory_space<vmem>>, vector<1x128x128xbf16>,
    return
  }
  func.func @transform_0(%arg0: i32, %arg1: i32) -> (i32, i32, i32) {
    %c0_i32 = arith.constant 0 : i32
    %c0_i32_0 = arith.constant 0 : i32
    return %arg0, %arg1, %c0_i32 : i32, i32, i32
  }
  func.func @transform_1(%arg0: i32, %arg1: i32) -> (i32, i32) {
    %c0_i32 = arith.constant 0 : i32
    %c0_i32_0 = arith.constant 0 : i32
    %c0_i32_1 = arith.constant 0 : i32
    return %c0_i32, %c0_i32_0 : i32, i32
  }
  func.func @transform_2(%arg0: i32, %arg1: i32) -> (i32, i32) {
    %c0_i32 = arith.constant 0 : i32
    %c0_i32_0 = arith.constant 0 : i32
    %c0_i32_1 = arith.constant 0 : i32
    return %c0_i32, %c0_i32_0 : i32, i32
  }
  func.func @transform_3(%arg0: i32, %arg1: i32) -> (i32, i32, i32) {
    %c0_i32 = arith.constant 0 : i32
    %c0_i32_0 = arith.constant 0 : i32
    return %arg0, %arg1, %c0_i32 : i32, i32, i32
  }
}

module attributes {stable_mosaic.version = 11 : i64} {
  func.func @_phase_mm_stats_kernel(%arg0: i32, %arg1: i32, %arg2: memref<1x128x128xbf16, #tpu.memory_space<vmem>>, %arg3: memref<1x128x128xbf16, #tpu.memory_space<vmem>>, %arg4: memref<1x128x128xbf16, #tpu.memory_space<vmem>>, %arg5: memref<1x1x8x128xf32, #tpu.memory_space<vmem>>) attributes {dimension_semantics = [#tpu.dimension_semantics<parallel>, #tpu.dimension_semantics<parallel>], iteration_bounds = array<i64: 1, 1>, scalar_prefetch = 0 : i64, scratch_operands = 0 : i64, tpu.core_type = #tpu.core_type<tc>, window_params = [{transform_indices = @transform_0, window_bounds = array<i64: 1, 128, 128>}, {transform_indices = @transform_1, window_bounds = array<i64: 1, 128, 128>}, {transform_indices = @transform_2, window_bounds = array<i64: 1, 128, 128>}, {transform_indices = @transform_3, window_bounds = array<i64: 1, 1, 8, 128>}]} {
    %c0 = arith.constant 0 : index
    %c0_0 = arith.constant 0 : index
    %c0_1 = arith.constant 0 : index
    %0 = vector.load %arg2[%c0, %c0_0, %c0_1] : memref<1x128x128xbf16, #tpu.memory_space<vmem>>, vector<1x128x128xbf16>
    %1 = vector.shape_cast %0 : vector<1x128x128xbf16> to vector<128x128xbf16>
    %c0_2 = arith.constant 0 : index
    %c0_3 = arith.constant 0 : index
    %c0_4 = arith.constant 0 : index
    %2 = vector.load %arg3[%c0_2, %c0_3, %c0_4] : memref<1x128x128xbf16, #tpu.memory_space<vmem>>, vector<1x128x128xbf16>
    %3 = vector.shape_cast %2 : vector<1x128x128xbf16> to vector<128x128xbf16>
    %cst = arith.constant dense<0.000000e+00> : vector<128x128xf32>
    %4 = tpu.matmul %1, %3, %cst {dimension_numbers = #tpu.dot_dimension_numbers<[1], [0], [0], [1], [0, 0, 1, 1], [], []>} : vector<128x128xbf16>, vector<128x128xbf16>, vector<128x128xf32> -> vector<128x128xf32>
    %5 = arith.truncf %4 : vector<128x128xf32> to vector<128x128xbf16>
    %c0_5 = arith.constant 0 : index
    %c0_6 = arith.constant 0 : index
    %c0_7 = arith.constant 0 : index
    %6 = vector.load %arg4[%c0_5, %c0_6, %c0_7] : memref<1x128x128xbf16, #tpu.memory_space<vmem>>, vector<1x128x128xbf16>
    %7 = vector.shape_cast %6 : vector<1x128x128xbf16> to vector<128x128xbf16>
    %8 = vector.shape_cast %5 : vector<128x128xbf16> to vector<1x128x128xbf16>
    tpu.vector_store %arg4[%c0_5, %c0_6, %c0_7], %8 {strides = array<i32>} : memref<1x128x128xbf16, #tpu.memory_space<vmem>>, vector<1x128x128xbf16>,
    %9 = tpu.iota {dimensions = array<i32: 0>} : vector<128x128xi32>
    %c128_i32 = arith.constant 128 : i32
    %10 = arith.muli %arg1, %c128_i32 : i32
    %11 = vector.broadcast %10 : i32 to vector<128x128xi32>
    %12 = arith.addi %11, %9 : vector<128x128xi32>
    %c128_i32_8 = arith.constant 128 : i32
    %13 = vector.broadcast %c128_i32_8 : i32 to vector<128x128xi32>
    %14 = arith.cmpi slt, %12, %13 : vector<128x128xi32>
    %cst_9 = arith.constant 0.000000e+00 : f32
    %15 = vector.broadcast %cst_9 : f32 to vector<128x128xf32>
    %16 = arith.select %14, %4, %15 : vector<128x128xi1>, vector<128x128xf32>
    %cst_10 = arith.constant dense<0.000000e+00> : vector<128xf32>
    %17 = vector.multi_reduction <add>, %16, %cst_10 [0] : vector<128x128xf32> to vector<128xf32>
    %18 = vector.shape_cast %17 : vector<128xf32> to vector<1x128xf32>
    %19 = arith.mulf %16, %16 : vector<128x128xf32>
    %cst_11 = arith.constant dense<0.000000e+00> : vector<128xf32>
    %20 = vector.multi_reduction <add>, %19, %cst_11 [0] : vector<128x128xf32> to vector<128xf32>
    %21 = vector.shape_cast %20 : vector<128xf32> to vector<1x128xf32>
    %22 = tpu.iota {dimensions = array<i32: 0>} : vector<8x128xi32>
    %c0_i32 = arith.constant 0 : i32
    %23 = vector.broadcast %c0_i32 : i32 to vector<8x128xi32>
    %24 = arith.cmpi eq, %22, %23 : vector<8x128xi32>
    %cst_12 = arith.constant 0.000000e+00 : f32
    %25 = vector.shape_cast %18 : vector<1x128xf32> to vector<1x128xf32>
    %26 = vector.broadcast %25 : vector<1x128xf32> to vector<8x128xf32>
    %27 = vector.broadcast %cst_12 : f32 to vector<8x128xf32>
    %28 = arith.select %24, %26, %27 : vector<8x128xi1>, vector<8x128xf32>
    %c1_i32 = arith.constant 1 : i32
    %29 = vector.broadcast %c1_i32 : i32 to vector<8x128xi32>
    %30 = arith.cmpi eq, %22, %29 : vector<8x128xi32>
    %cst_13 = arith.constant 0.000000e+00 : f32
    %31 = vector.shape_cast %21 : vector<1x128xf32> to vector<1x128xf32>
    %32 = vector.broadcast %31 : vector<1x128xf32> to vector<8x128xf32>
    %33 = vector.broadcast %cst_13 : f32 to vector<8x128xf32>
    %34 = arith.select %30, %32, %33 : vector<8x128xi1>, vector<8x128xf32>
    %35 = arith.addf %28, %34 : vector<8x128xf32>
    %c0_14 = arith.constant 0 : index
    %c0_15 = arith.constant 0 : index
    %c0_16 = arith.constant 0 : index
    %c0_17 = arith.constant 0 : index
    %36 = vector.load %arg5[%c0_14, %c0_15, %c0_16, %c0_17] : memref<1x1x8x128xf32, #tpu.memory_space<vmem>>, vector<1x1x8x128xf32>
    %37 = vector.shape_cast %36 : vector<1x1x8x128xf32> to vector<8x128xf32>
    %38 = vector.shape_cast %35 : vector<8x128xf32> to vector<1x1x8x128xf32>
    tpu.vector_store %arg5[%c0_14, %c0_15, %c0_16, %c0_17], %38 {strides = array<i32>} : memref<1x1x8x128xf32, #tpu.memory_space<vmem>>, vector<1x1x8x128xf32>,
    return
  }
  func.func @transform_0(%arg0: i32, %arg1: i32) -> (i32, i32, i32) {
    %c0_i32 = arith.constant 0 : i32
    %c0_i32_0 = arith.constant 0 : i32
    return %arg0, %arg1, %c0_i32 : i32, i32, i32
  }
  func.func @transform_1(%arg0: i32, %arg1: i32) -> (i32, i32, i32) {
    %c0_i32 = arith.constant 0 : i32
    %c0_i32_0 = arith.constant 0 : i32
    %c0_i32_1 = arith.constant 0 : i32
    return %arg0, %c0_i32, %c0_i32_0 : i32, i32, i32
  }
  func.func @transform_2(%arg0: i32, %arg1: i32) -> (i32, i32, i32) {
    %c0_i32 = arith.constant 0 : i32
    %c0_i32_0 = arith.constant 0 : i32
    return %arg0, %arg1, %c0_i32 : i32, i32, i32
  }
  func.func @transform_3(%arg0: i32, %arg1: i32) -> (i32, i32, i32, i32) {
    %c0_i32 = arith.constant 0 : i32
    %c0_i32_0 = arith.constant 0 : i32
    %c0_i32_1 = arith.constant 0 : i32
    return %arg0, %arg1, %c0_i32, %c0_i32_0 : i32, i32, i32, i32
  }
}

module attributes {stable_mosaic.version = 11 : i64} {
  func.func @_affine_act_kernel(%arg0: i32, %arg1: i32, %arg2: memref<1x32x128xbf16, #tpu.memory_space<vmem>>, %arg3: memref<1x128xf32, #tpu.memory_space<vmem>>, %arg4: memref<1x128xf32, #tpu.memory_space<vmem>>, %arg5: memref<1x32x128xbf16, #tpu.memory_space<vmem>>) attributes {dimension_semantics = [#tpu.dimension_semantics<parallel>, #tpu.dimension_semantics<parallel>], iteration_bounds = array<i64: 1, 1>, scalar_prefetch = 0 : i64, scratch_operands = 0 : i64, tpu.core_type = #tpu.core_type<tc>, window_params = [{transform_indices = @transform_0, window_bounds = array<i64: 1, 32, 128>}, {pipeline_mode = #tpu.pipeline_mode<synchronous>, transform_indices = @transform_1, window_bounds = array<i64: 1, 128>}, {pipeline_mode = #tpu.pipeline_mode<synchronous>, transform_indices = @transform_2, window_bounds = array<i64: 1, 128>}, {transform_indices = @transform_3, window_bounds = array<i64: 1, 32, 128>}]} {
    %c0 = arith.constant 0 : index
    %c0_0 = arith.constant 0 : index
    %c0_1 = arith.constant 0 : index
    %0 = vector.load %arg2[%c0, %c0_0, %c0_1] : memref<1x32x128xbf16, #tpu.memory_space<vmem>>, vector<1x32x128xbf16>
    %1 = vector.shape_cast %0 : vector<1x32x128xbf16> to vector<32x128xbf16>
    %2 = arith.extf %1 : vector<32x128xbf16> to vector<32x128xf32>
    %c0_2 = arith.constant 0 : index
    %c0_3 = arith.constant 0 : index
    %3 = vector.load %arg3[%c0_2, %c0_3] : memref<1x128xf32, #tpu.memory_space<vmem>>, vector<1x128xf32>
    %4 = vector.broadcast %3 : vector<1x128xf32> to vector<32x128xf32>
    %5 = arith.mulf %2, %4 : vector<32x128xf32>
    %c0_4 = arith.constant 0 : index
    %c0_5 = arith.constant 0 : index
    %6 = vector.load %arg4[%c0_4, %c0_5] : memref<1x128xf32, #tpu.memory_space<vmem>>, vector<1x128xf32>
    %7 = vector.broadcast %6 : vector<1x128xf32> to vector<32x128xf32>
    %8 = arith.addf %5, %7 : vector<32x128xf32>
    %cst = arith.constant 0.000000e+00 : f32
    %9 = vector.broadcast %cst : f32 to vector<32x128xf32>
    %10 = arith.cmpf ogt, %8, %9 : vector<32x128xf32>
    %cst_6 = arith.constant 2.000000e-01 : f32
    %11 = vector.broadcast %cst_6 : f32 to vector<32x128xf32>
    %12 = arith.mulf %11, %8 : vector<32x128xf32>
    %13 = arith.select %10, %8, %12 : vector<32x128xi1>, vector<32x128xf32>
    %14 = arith.truncf %13 : vector<32x128xf32> to vector<32x128xbf16>
    %c0_7 = arith.constant 0 : index
    %c0_8 = arith.constant 0 : index
    %c0_9 = arith.constant 0 : index
    %15 = vector.load %arg5[%c0_7, %c0_8, %c0_9] : memref<1x32x128xbf16, #tpu.memory_space<vmem>>, vector<1x32x128xbf16>
    %16 = vector.shape_cast %15 : vector<1x32x128xbf16> to vector<32x128xbf16>
    %17 = vector.shape_cast %14 : vector<32x128xbf16> to vector<1x32x128xbf16>
    tpu.vector_store %arg5[%c0_7, %c0_8, %c0_9], %17 {strides = array<i32>} : memref<1x32x128xbf16, #tpu.memory_space<vmem>>, vector<1x32x128xbf16>,
    return
  }
  func.func @transform_0(%arg0: i32, %arg1: i32) -> (i32, i32, i32) {
    %c0_i32 = arith.constant 0 : i32
    %c0_i32_0 = arith.constant 0 : i32
    return %arg0, %arg1, %c0_i32 : i32, i32, i32
  }
  func.func @transform_1(%arg0: i32, %arg1: i32) -> (i32, i32) {
    %c0_i32 = arith.constant 0 : i32
    %c0_i32_0 = arith.constant 0 : i32
    %c0_i32_1 = arith.constant 0 : i32
    return %c0_i32, %c0_i32_0 : i32, i32
  }
  func.func @transform_2(%arg0: i32, %arg1: i32) -> (i32, i32) {
    %c0_i32 = arith.constant 0 : i32
    %c0_i32_0 = arith.constant 0 : i32
    %c0_i32_1 = arith.constant 0 : i32
    return %c0_i32, %c0_i32_0 : i32, i32
  }
  func.func @transform_3(%arg0: i32, %arg1: i32) -> (i32, i32, i32) {
    %c0_i32 = arith.constant 0 : i32
    %c0_i32_0 = arith.constant 0 : i32
    return %arg0, %arg1, %c0_i32 : i32, i32, i32
  }
}

module attributes {stable_mosaic.version = 11 : i64} {
  func.func @_phase_mm_stats_kernel(%arg0: i32, %arg1: i32, %arg2: memref<1x32x1024xbf16, #tpu.memory_space<vmem>>, %arg3: memref<1x1024x128xbf16, #tpu.memory_space<vmem>>, %arg4: memref<1x32x128xbf16, #tpu.memory_space<vmem>>, %arg5: memref<1x1x8x128xf32, #tpu.memory_space<vmem>>) attributes {dimension_semantics = [#tpu.dimension_semantics<parallel>, #tpu.dimension_semantics<parallel>], iteration_bounds = array<i64: 1, 1>, scalar_prefetch = 0 : i64, scratch_operands = 0 : i64, tpu.core_type = #tpu.core_type<tc>, window_params = [{transform_indices = @transform_0, window_bounds = array<i64: 1, 32, 1024>}, {transform_indices = @transform_1, window_bounds = array<i64: 1, 1024, 128>}, {transform_indices = @transform_2, window_bounds = array<i64: 1, 32, 128>}, {transform_indices = @transform_3, window_bounds = array<i64: 1, 1, 8, 128>}]} {
    %c0 = arith.constant 0 : index
    %c0_0 = arith.constant 0 : index
    %c0_1 = arith.constant 0 : index
    %0 = vector.load %arg2[%c0, %c0_0, %c0_1] : memref<1x32x1024xbf16, #tpu.memory_space<vmem>>, vector<1x32x1024xbf16>
    %1 = vector.shape_cast %0 : vector<1x32x1024xbf16> to vector<32x1024xbf16>
    %c0_2 = arith.constant 0 : index
    %c0_3 = arith.constant 0 : index
    %c0_4 = arith.constant 0 : index
    %2 = vector.load %arg3[%c0_2, %c0_3, %c0_4] : memref<1x1024x128xbf16, #tpu.memory_space<vmem>>, vector<1x1024x128xbf16>
    %3 = vector.shape_cast %2 : vector<1x1024x128xbf16> to vector<1024x128xbf16>
    %cst = arith.constant dense<0.000000e+00> : vector<32x128xf32>
    %4 = tpu.matmul %1, %3, %cst {dimension_numbers = #tpu.dot_dimension_numbers<[1], [0], [0], [1], [0, 0, 1, 1], [], []>} : vector<32x1024xbf16>, vector<1024x128xbf16>, vector<32x128xf32> -> vector<32x128xf32>
    %5 = arith.truncf %4 : vector<32x128xf32> to vector<32x128xbf16>
    %c0_5 = arith.constant 0 : index
    %c0_6 = arith.constant 0 : index
    %c0_7 = arith.constant 0 : index
    %6 = vector.load %arg4[%c0_5, %c0_6, %c0_7] : memref<1x32x128xbf16, #tpu.memory_space<vmem>>, vector<1x32x128xbf16>
    %7 = vector.shape_cast %6 : vector<1x32x128xbf16> to vector<32x128xbf16>
    %8 = vector.shape_cast %5 : vector<32x128xbf16> to vector<1x32x128xbf16>
    tpu.vector_store %arg4[%c0_5, %c0_6, %c0_7], %8 {strides = array<i32>} : memref<1x32x128xbf16, #tpu.memory_space<vmem>>, vector<1x32x128xbf16>,
    %9 = tpu.iota {dimensions = array<i32: 0>} : vector<32x128xi32>
    %c32_i32 = arith.constant 32 : i32
    %10 = arith.muli %arg1, %c32_i32 : i32
    %11 = vector.broadcast %10 : i32 to vector<32x128xi32>
    %12 = arith.addi %11, %9 : vector<32x128xi32>
    %c32_i32_8 = arith.constant 32 : i32
    %13 = vector.broadcast %c32_i32_8 : i32 to vector<32x128xi32>
    %14 = arith.cmpi slt, %12, %13 : vector<32x128xi32>
    %cst_9 = arith.constant 0.000000e+00 : f32
    %15 = vector.broadcast %cst_9 : f32 to vector<32x128xf32>
    %16 = arith.select %14, %4, %15 : vector<32x128xi1>, vector<32x128xf32>
    %cst_10 = arith.constant dense<0.000000e+00> : vector<128xf32>
    %17 = vector.multi_reduction <add>, %16, %cst_10 [0] : vector<32x128xf32> to vector<128xf32>
    %18 = vector.shape_cast %17 : vector<128xf32> to vector<1x128xf32>
    %19 = arith.mulf %16, %16 : vector<32x128xf32>
    %cst_11 = arith.constant dense<0.000000e+00> : vector<128xf32>
    %20 = vector.multi_reduction <add>, %19, %cst_11 [0] : vector<32x128xf32> to vector<128xf32>
    %21 = vector.shape_cast %20 : vector<128xf32> to vector<1x128xf32>
    %22 = tpu.iota {dimensions = array<i32: 0>} : vector<8x128xi32>
    %c0_i32 = arith.constant 0 : i32
    %23 = vector.broadcast %c0_i32 : i32 to vector<8x128xi32>
    %24 = arith.cmpi eq, %22, %23 : vector<8x128xi32>
    %cst_12 = arith.constant 0.000000e+00 : f32
    %25 = vector.shape_cast %18 : vector<1x128xf32> to vector<1x128xf32>
    %26 = vector.broadcast %25 : vector<1x128xf32> to vector<8x128xf32>
    %27 = vector.broadcast %cst_12 : f32 to vector<8x128xf32>
    %28 = arith.select %24, %26, %27 : vector<8x128xi1>, vector<8x128xf32>
    %c1_i32 = arith.constant 1 : i32
    %29 = vector.broadcast %c1_i32 : i32 to vector<8x128xi32>
    %30 = arith.cmpi eq, %22, %29 : vector<8x128xi32>
    %cst_13 = arith.constant 0.000000e+00 : f32
    %31 = vector.shape_cast %21 : vector<1x128xf32> to vector<1x128xf32>
    %32 = vector.broadcast %31 : vector<1x128xf32> to vector<8x128xf32>
    %33 = vector.broadcast %cst_13 : f32 to vector<8x128xf32>
    %34 = arith.select %30, %32, %33 : vector<8x128xi1>, vector<8x128xf32>
    %35 = arith.addf %28, %34 : vector<8x128xf32>
    %c0_14 = arith.constant 0 : index
    %c0_15 = arith.constant 0 : index
    %c0_16 = arith.constant 0 : index
    %c0_17 = arith.constant 0 : index
    %36 = vector.load %arg5[%c0_14, %c0_15, %c0_16, %c0_17] : memref<1x1x8x128xf32, #tpu.memory_space<vmem>>, vector<1x1x8x128xf32>
    %37 = vector.shape_cast %36 : vector<1x1x8x128xf32> to vector<8x128xf32>
    %38 = vector.shape_cast %35 : vector<8x128xf32> to vector<1x1x8x128xf32>
    tpu.vector_store %arg5[%c0_14, %c0_15, %c0_16, %c0_17], %38 {strides = array<i32>} : memref<1x1x8x128xf32, #tpu.memory_space<vmem>>, vector<1x1x8x128xf32>,
    return
  }
  func.func @transform_0(%arg0: i32, %arg1: i32) -> (i32, i32, i32) {
    %c0_i32 = arith.constant 0 : i32
    %c0_i32_0 = arith.constant 0 : i32
    return %arg0, %arg1, %c0_i32 : i32, i32, i32
  }
  func.func @transform_1(%arg0: i32, %arg1: i32) -> (i32, i32, i32) {
    %c0_i32 = arith.constant 0 : i32
    %c0_i32_0 = arith.constant 0 : i32
    %c0_i32_1 = arith.constant 0 : i32
    return %arg0, %c0_i32, %c0_i32_0 : i32, i32, i32
  }
  func.func @transform_2(%arg0: i32, %arg1: i32) -> (i32, i32, i32) {
    %c0_i32 = arith.constant 0 : i32
    %c0_i32_0 = arith.constant 0 : i32
    return %arg0, %arg1, %c0_i32 : i32, i32, i32
  }
  func.func @transform_3(%arg0: i32, %arg1: i32) -> (i32, i32, i32, i32) {
    %c0_i32 = arith.constant 0 : i32
    %c0_i32_0 = arith.constant 0 : i32
    %c0_i32_1 = arith.constant 0 : i32
    return %arg0, %arg1, %c0_i32, %c0_i32_0 : i32, i32, i32, i32
  }
}

module attributes {stable_mosaic.version = 11 : i64} {
  func.func @_affine_act_kernel(%arg0: i32, %arg1: i32, %arg2: memref<1x16x256xbf16, #tpu.memory_space<vmem>>, %arg3: memref<1x256xf32, #tpu.memory_space<vmem>>, %arg4: memref<1x256xf32, #tpu.memory_space<vmem>>, %arg5: memref<1x16x256xbf16, #tpu.memory_space<vmem>>) attributes {dimension_semantics = [#tpu.dimension_semantics<parallel>, #tpu.dimension_semantics<parallel>], iteration_bounds = array<i64: 1, 1>, scalar_prefetch = 0 : i64, scratch_operands = 0 : i64, tpu.core_type = #tpu.core_type<tc>, window_params = [{transform_indices = @transform_0, window_bounds = array<i64: 1, 16, 256>}, {pipeline_mode = #tpu.pipeline_mode<synchronous>, transform_indices = @transform_1, window_bounds = array<i64: 1, 256>}, {pipeline_mode = #tpu.pipeline_mode<synchronous>, transform_indices = @transform_2, window_bounds = array<i64: 1, 256>}, {transform_indices = @transform_3, window_bounds = array<i64: 1, 16, 256>}]} {
    %c0 = arith.constant 0 : index
    %c0_0 = arith.constant 0 : index
    %c0_1 = arith.constant 0 : index
    %0 = vector.load %arg2[%c0, %c0_0, %c0_1] : memref<1x16x256xbf16, #tpu.memory_space<vmem>>, vector<1x16x256xbf16>
    %1 = vector.shape_cast %0 : vector<1x16x256xbf16> to vector<16x256xbf16>
    %2 = arith.extf %1 : vector<16x256xbf16> to vector<16x256xf32>
    %c0_2 = arith.constant 0 : index
    %c0_3 = arith.constant 0 : index
    %3 = vector.load %arg3[%c0_2, %c0_3] : memref<1x256xf32, #tpu.memory_space<vmem>>, vector<1x256xf32>
    %4 = vector.broadcast %3 : vector<1x256xf32> to vector<16x256xf32>
    %5 = arith.mulf %2, %4 : vector<16x256xf32>
    %c0_4 = arith.constant 0 : index
    %c0_5 = arith.constant 0 : index
    %6 = vector.load %arg4[%c0_4, %c0_5] : memref<1x256xf32, #tpu.memory_space<vmem>>, vector<1x256xf32>
    %7 = vector.broadcast %6 : vector<1x256xf32> to vector<16x256xf32>
    %8 = arith.addf %5, %7 : vector<16x256xf32>
    %cst = arith.constant 0.000000e+00 : f32
    %9 = vector.broadcast %cst : f32 to vector<16x256xf32>
    %10 = arith.cmpf ogt, %8, %9 : vector<16x256xf32>
    %cst_6 = arith.constant 2.000000e-01 : f32
    %11 = vector.broadcast %cst_6 : f32 to vector<16x256xf32>
    %12 = arith.mulf %11, %8 : vector<16x256xf32>
    %13 = arith.select %10, %8, %12 : vector<16x256xi1>, vector<16x256xf32>
    %14 = arith.truncf %13 : vector<16x256xf32> to vector<16x256xbf16>
    %c0_7 = arith.constant 0 : index
    %c0_8 = arith.constant 0 : index
    %c0_9 = arith.constant 0 : index
    %15 = vector.load %arg5[%c0_7, %c0_8, %c0_9] : memref<1x16x256xbf16, #tpu.memory_space<vmem>>, vector<1x16x256xbf16>
    %16 = vector.shape_cast %15 : vector<1x16x256xbf16> to vector<16x256xbf16>
    %17 = vector.shape_cast %14 : vector<16x256xbf16> to vector<1x16x256xbf16>
    tpu.vector_store %arg5[%c0_7, %c0_8, %c0_9], %17 {strides = array<i32>} : memref<1x16x256xbf16, #tpu.memory_space<vmem>>, vector<1x16x256xbf16>,
    return
  }
  func.func @transform_0(%arg0: i32, %arg1: i32) -> (i32, i32, i32) {
    %c0_i32 = arith.constant 0 : i32
    %c0_i32_0 = arith.constant 0 : i32
    return %arg0, %arg1, %c0_i32 : i32, i32, i32
  }
  func.func @transform_1(%arg0: i32, %arg1: i32) -> (i32, i32) {
    %c0_i32 = arith.constant 0 : i32
    %c0_i32_0 = arith.constant 0 : i32
    %c0_i32_1 = arith.constant 0 : i32
    return %c0_i32, %c0_i32_0 : i32, i32
  }
  func.func @transform_2(%arg0: i32, %arg1: i32) -> (i32, i32) {
    %c0_i32 = arith.constant 0 : i32
    %c0_i32_0 = arith.constant 0 : i32
    %c0_i32_1 = arith.constant 0 : i32
    return %c0_i32, %c0_i32_0 : i32, i32
  }
  func.func @transform_3(%arg0: i32, %arg1: i32) -> (i32, i32, i32) {
    %c0_i32 = arith.constant 0 : i32
    %c0_i32_0 = arith.constant 0 : i32
    return %arg0, %arg1, %c0_i32 : i32, i32, i32
  }
}

module attributes {stable_mosaic.version = 11 : i64} {
  func.func @_phase_mm_stats_kernel(%arg0: i32, %arg1: i32, %arg2: memref<1x16x2048xbf16, #tpu.memory_space<vmem>>, %arg3: memref<1x2048x256xbf16, #tpu.memory_space<vmem>>, %arg4: memref<1x16x256xbf16, #tpu.memory_space<vmem>>, %arg5: memref<1x1x8x256xf32, #tpu.memory_space<vmem>>) attributes {dimension_semantics = [#tpu.dimension_semantics<parallel>, #tpu.dimension_semantics<parallel>], iteration_bounds = array<i64: 1, 1>, scalar_prefetch = 0 : i64, scratch_operands = 0 : i64, tpu.core_type = #tpu.core_type<tc>, window_params = [{transform_indices = @transform_0, window_bounds = array<i64: 1, 16, 2048>}, {transform_indices = @transform_1, window_bounds = array<i64: 1, 2048, 256>}, {transform_indices = @transform_2, window_bounds = array<i64: 1, 16, 256>}, {transform_indices = @transform_3, window_bounds = array<i64: 1, 1, 8, 256>}]} {
    %c0 = arith.constant 0 : index
    %c0_0 = arith.constant 0 : index
    %c0_1 = arith.constant 0 : index
    %0 = vector.load %arg2[%c0, %c0_0, %c0_1] : memref<1x16x2048xbf16, #tpu.memory_space<vmem>>, vector<1x16x2048xbf16>
    %1 = vector.shape_cast %0 : vector<1x16x2048xbf16> to vector<16x2048xbf16>
    %c0_2 = arith.constant 0 : index
    %c0_3 = arith.constant 0 : index
    %c0_4 = arith.constant 0 : index
    %2 = vector.load %arg3[%c0_2, %c0_3, %c0_4] : memref<1x2048x256xbf16, #tpu.memory_space<vmem>>, vector<1x2048x256xbf16>
    %3 = vector.shape_cast %2 : vector<1x2048x256xbf16> to vector<2048x256xbf16>
    %cst = arith.constant dense<0.000000e+00> : vector<16x256xf32>
    %4 = tpu.matmul %1, %3, %cst {dimension_numbers = #tpu.dot_dimension_numbers<[1], [0], [0], [1], [0, 0, 1, 1], [], []>} : vector<16x2048xbf16>, vector<2048x256xbf16>, vector<16x256xf32> -> vector<16x256xf32>
    %5 = arith.truncf %4 : vector<16x256xf32> to vector<16x256xbf16>
    %c0_5 = arith.constant 0 : index
    %c0_6 = arith.constant 0 : index
    %c0_7 = arith.constant 0 : index
    %6 = vector.load %arg4[%c0_5, %c0_6, %c0_7] : memref<1x16x256xbf16, #tpu.memory_space<vmem>>, vector<1x16x256xbf16>
    %7 = vector.shape_cast %6 : vector<1x16x256xbf16> to vector<16x256xbf16>
    %8 = vector.shape_cast %5 : vector<16x256xbf16> to vector<1x16x256xbf16>
    tpu.vector_store %arg4[%c0_5, %c0_6, %c0_7], %8 {strides = array<i32>} : memref<1x16x256xbf16, #tpu.memory_space<vmem>>, vector<1x16x256xbf16>,
    %9 = tpu.iota {dimensions = array<i32: 0>} : vector<16x256xi32>
    %c16_i32 = arith.constant 16 : i32
    %10 = arith.muli %arg1, %c16_i32 : i32
    %11 = vector.broadcast %10 : i32 to vector<16x256xi32>
    %12 = arith.addi %11, %9 : vector<16x256xi32>
    %c8_i32 = arith.constant 8 : i32
    %13 = vector.broadcast %c8_i32 : i32 to vector<16x256xi32>
    %14 = arith.cmpi slt, %12, %13 : vector<16x256xi32>
    %cst_8 = arith.constant 0.000000e+00 : f32
    %15 = vector.broadcast %cst_8 : f32 to vector<16x256xf32>
    %16 = arith.select %14, %4, %15 : vector<16x256xi1>, vector<16x256xf32>
    %cst_9 = arith.constant dense<0.000000e+00> : vector<256xf32>
    %17 = vector.multi_reduction <add>, %16, %cst_9 [0] : vector<16x256xf32> to vector<256xf32>
    %18 = vector.shape_cast %17 : vector<256xf32> to vector<1x256xf32>
    %19 = arith.mulf %16, %16 : vector<16x256xf32>
    %cst_10 = arith.constant dense<0.000000e+00> : vector<256xf32>
    %20 = vector.multi_reduction <add>, %19, %cst_10 [0] : vector<16x256xf32> to vector<256xf32>
    %21 = vector.shape_cast %20 : vector<256xf32> to vector<1x256xf32>
    %22 = tpu.iota {dimensions = array<i32: 0>} : vector<8x256xi32>
    %c0_i32 = arith.constant 0 : i32
    %23 = vector.broadcast %c0_i32 : i32 to vector<8x256xi32>
    %24 = arith.cmpi eq, %22, %23 : vector<8x256xi32>
    %cst_11 = arith.constant 0.000000e+00 : f32
    %25 = vector.shape_cast %18 : vector<1x256xf32> to vector<1x256xf32>
    %26 = vector.broadcast %25 : vector<1x256xf32> to vector<8x256xf32>
    %27 = vector.broadcast %cst_11 : f32 to vector<8x256xf32>
    %28 = arith.select %24, %26, %27 : vector<8x256xi1>, vector<8x256xf32>
    %c1_i32 = arith.constant 1 : i32
    %29 = vector.broadcast %c1_i32 : i32 to vector<8x256xi32>
    %30 = arith.cmpi eq, %22, %29 : vector<8x256xi32>
    %cst_12 = arith.constant 0.000000e+00 : f32
    %31 = vector.shape_cast %21 : vector<1x256xf32> to vector<1x256xf32>
    %32 = vector.broadcast %31 : vector<1x256xf32> to vector<8x256xf32>
    %33 = vector.broadcast %cst_12 : f32 to vector<8x256xf32>
    %34 = arith.select %30, %32, %33 : vector<8x256xi1>, vector<8x256xf32>
    %35 = arith.addf %28, %34 : vector<8x256xf32>
    %c0_13 = arith.constant 0 : index
    %c0_14 = arith.constant 0 : index
    %c0_15 = arith.constant 0 : index
    %c0_16 = arith.constant 0 : index
    %36 = vector.load %arg5[%c0_13, %c0_14, %c0_15, %c0_16] : memref<1x1x8x256xf32, #tpu.memory_space<vmem>>, vector<1x1x8x256xf32>
    %37 = vector.shape_cast %36 : vector<1x1x8x256xf32> to vector<8x256xf32>
    %38 = vector.shape_cast %35 : vector<8x256xf32> to vector<1x1x8x256xf32>
    tpu.vector_store %arg5[%c0_13, %c0_14, %c0_15, %c0_16], %38 {strides = array<i32>} : memref<1x1x8x256xf32, #tpu.memory_space<vmem>>, vector<1x1x8x256xf32>,
    return
  }
  func.func @transform_0(%arg0: i32, %arg1: i32) -> (i32, i32, i32) {
    %c0_i32 = arith.constant 0 : i32
    %c0_i32_0 = arith.constant 0 : i32
    return %arg0, %arg1, %c0_i32 : i32, i32, i32
  }
  func.func @transform_1(%arg0: i32, %arg1: i32) -> (i32, i32, i32) {
    %c0_i32 = arith.constant 0 : i32
    %c0_i32_0 = arith.constant 0 : i32
    %c0_i32_1 = arith.constant 0 : i32
    return %arg0, %c0_i32, %c0_i32_0 : i32, i32, i32
  }
  func.func @transform_2(%arg0: i32, %arg1: i32) -> (i32, i32, i32) {
    %c0_i32 = arith.constant 0 : i32
    %c0_i32_0 = arith.constant 0 : i32
    return %arg0, %arg1, %c0_i32 : i32, i32, i32
  }
  func.func @transform_3(%arg0: i32, %arg1: i32) -> (i32, i32, i32, i32) {
    %c0_i32 = arith.constant 0 : i32
    %c0_i32_0 = arith.constant 0 : i32
    %c0_i32_1 = arith.constant 0 : i32
    return %arg0, %arg1, %c0_i32, %c0_i32_0 : i32, i32, i32, i32
  }
}

module attributes {stable_mosaic.version = 11 : i64} {
  func.func @_phase_mm_stats_kernel(%arg0: i32, %arg1: i32, %arg2: memref<1x16x4096xbf16, #tpu.memory_space<vmem>>, %arg3: memref<1x4096x512xbf16, #tpu.memory_space<vmem>>, %arg4: memref<1x16x512xbf16, #tpu.memory_space<vmem>>, %arg5: memref<1x1x8x512xf32, #tpu.memory_space<vmem>>) attributes {dimension_semantics = [#tpu.dimension_semantics<parallel>, #tpu.dimension_semantics<parallel>], iteration_bounds = array<i64: 1, 1>, scalar_prefetch = 0 : i64, scratch_operands = 0 : i64, tpu.core_type = #tpu.core_type<tc>, window_params = [{transform_indices = @transform_0, window_bounds = array<i64: 1, 16, 4096>}, {transform_indices = @transform_1, window_bounds = array<i64: 1, 4096, 512>}, {transform_indices = @transform_2, window_bounds = array<i64: 1, 16, 512>}, {transform_indices = @transform_3, window_bounds = array<i64: 1, 1, 8, 512>}]} {
    %c0 = arith.constant 0 : index
    %c0_0 = arith.constant 0 : index
    %c0_1 = arith.constant 0 : index
    %0 = vector.load %arg2[%c0, %c0_0, %c0_1] : memref<1x16x4096xbf16, #tpu.memory_space<vmem>>, vector<1x16x4096xbf16>
    %1 = vector.shape_cast %0 : vector<1x16x4096xbf16> to vector<16x4096xbf16>
    %c0_2 = arith.constant 0 : index
    %c0_3 = arith.constant 0 : index
    %c0_4 = arith.constant 0 : index
    %2 = vector.load %arg3[%c0_2, %c0_3, %c0_4] : memref<1x4096x512xbf16, #tpu.memory_space<vmem>>, vector<1x4096x512xbf16>
    %3 = vector.shape_cast %2 : vector<1x4096x512xbf16> to vector<4096x512xbf16>
    %cst = arith.constant dense<0.000000e+00> : vector<16x512xf32>
    %4 = tpu.matmul %1, %3, %cst {dimension_numbers = #tpu.dot_dimension_numbers<[1], [0], [0], [1], [0, 0, 1, 1], [], []>} : vector<16x4096xbf16>, vector<4096x512xbf16>, vector<16x512xf32> -> vector<16x512xf32>
    %5 = arith.truncf %4 : vector<16x512xf32> to vector<16x512xbf16>
    %c0_5 = arith.constant 0 : index
    %c0_6 = arith.constant 0 : index
    %c0_7 = arith.constant 0 : index
    %6 = vector.load %arg4[%c0_5, %c0_6, %c0_7] : memref<1x16x512xbf16, #tpu.memory_space<vmem>>, vector<1x16x512xbf16>
    %7 = vector.shape_cast %6 : vector<1x16x512xbf16> to vector<16x512xbf16>
    %8 = vector.shape_cast %5 : vector<16x512xbf16> to vector<1x16x512xbf16>
    tpu.vector_store %arg4[%c0_5, %c0_6, %c0_7], %8 {strides = array<i32>} : memref<1x16x512xbf16, #tpu.memory_space<vmem>>, vector<1x16x512xbf16>,
    %9 = tpu.iota {dimensions = array<i32: 0>} : vector<16x512xi32>
    %c16_i32 = arith.constant 16 : i32
    %10 = arith.muli %arg1, %c16_i32 : i32
    %11 = vector.broadcast %10 : i32 to vector<16x512xi32>
    %12 = arith.addi %11, %9 : vector<16x512xi32>
    %c2_i32 = arith.constant 2 : i32
    %13 = vector.broadcast %c2_i32 : i32 to vector<16x512xi32>
    %14 = arith.cmpi slt, %12, %13 : vector<16x512xi32>
    %cst_8 = arith.constant 0.000000e+00 : f32
    %15 = vector.broadcast %cst_8 : f32 to vector<16x512xf32>
    %16 = arith.select %14, %4, %15 : vector<16x512xi1>, vector<16x512xf32>
    %cst_9 = arith.constant dense<0.000000e+00> : vector<512xf32>
    %17 = vector.multi_reduction <add>, %16, %cst_9 [0] : vector<16x512xf32> to vector<512xf32>
    %18 = vector.shape_cast %17 : vector<512xf32> to vector<1x512xf32>
    %19 = arith.mulf %16, %16 : vector<16x512xf32>
    %cst_10 = arith.constant dense<0.000000e+00> : vector<512xf32>
    %20 = vector.multi_reduction <add>, %19, %cst_10 [0] : vector<16x512xf32> to vector<512xf32>
    %21 = vector.shape_cast %20 : vector<512xf32> to vector<1x512xf32>
    %22 = tpu.iota {dimensions = array<i32: 0>} : vector<8x512xi32>
    %c0_i32 = arith.constant 0 : i32
    %23 = vector.broadcast %c0_i32 : i32 to vector<8x512xi32>
    %24 = arith.cmpi eq, %22, %23 : vector<8x512xi32>
    %cst_11 = arith.constant 0.000000e+00 : f32
    %25 = vector.shape_cast %18 : vector<1x512xf32> to vector<1x512xf32>
    %26 = vector.broadcast %25 : vector<1x512xf32> to vector<8x512xf32>
    %27 = vector.broadcast %cst_11 : f32 to vector<8x512xf32>
    %28 = arith.select %24, %26, %27 : vector<8x512xi1>, vector<8x512xf32>
    %c1_i32 = arith.constant 1 : i32
    %29 = vector.broadcast %c1_i32 : i32 to vector<8x512xi32>
    %30 = arith.cmpi eq, %22, %29 : vector<8x512xi32>
    %cst_12 = arith.constant 0.000000e+00 : f32
    %31 = vector.shape_cast %21 : vector<1x512xf32> to vector<1x512xf32>
    %32 = vector.broadcast %31 : vector<1x512xf32> to vector<8x512xf32>
    %33 = vector.broadcast %cst_12 : f32 to vector<8x512xf32>
    %34 = arith.select %30, %32, %33 : vector<8x512xi1>, vector<8x512xf32>
    %35 = arith.addf %28, %34 : vector<8x512xf32>
    %c0_13 = arith.constant 0 : index
    %c0_14 = arith.constant 0 : index
    %c0_15 = arith.constant 0 : index
    %c0_16 = arith.constant 0 : index
    %36 = vector.load %arg5[%c0_13, %c0_14, %c0_15, %c0_16] : memref<1x1x8x512xf32, #tpu.memory_space<vmem>>, vector<1x1x8x512xf32>
    %37 = vector.shape_cast %36 : vector<1x1x8x512xf32> to vector<8x512xf32>
    %38 = vector.shape_cast %35 : vector<8x512xf32> to vector<1x1x8x512xf32>
    tpu.vector_store %arg5[%c0_13, %c0_14, %c0_15, %c0_16], %38 {strides = array<i32>} : memref<1x1x8x512xf32, #tpu.memory_space<vmem>>, vector<1x1x8x512xf32>,
    return
  }
  func.func @transform_0(%arg0: i32, %arg1: i32) -> (i32, i32, i32) {
    %c0_i32 = arith.constant 0 : i32
    %c0_i32_0 = arith.constant 0 : i32
    return %arg0, %arg1, %c0_i32 : i32, i32, i32
  }
  func.func @transform_1(%arg0: i32, %arg1: i32) -> (i32, i32, i32) {
    %c0_i32 = arith.constant 0 : i32
    %c0_i32_0 = arith.constant 0 : i32
    %c0_i32_1 = arith.constant 0 : i32
    return %arg0, %c0_i32, %c0_i32_0 : i32, i32, i32
  }
  func.func @transform_2(%arg0: i32, %arg1: i32) -> (i32, i32, i32) {
    %c0_i32 = arith.constant 0 : i32
    %c0_i32_0 = arith.constant 0 : i32
    return %arg0, %arg1, %c0_i32 : i32, i32, i32
  }
  func.func @transform_3(%arg0: i32, %arg1: i32) -> (i32, i32, i32, i32) {
    %c0_i32 = arith.constant 0 : i32
    %c0_i32_0 = arith.constant 0 : i32
    %c0_i32_1 = arith.constant 0 : i32
    return %arg0, %arg1, %c0_i32, %c0_i32_0 : i32, i32, i32, i32
  }
}

module attributes {stable_mosaic.version = 11 : i64} {
  func.func @_affine_act_kernel(%arg0: i32, %arg1: i32, %arg2: memref<1x16x512xbf16, #tpu.memory_space<vmem>>, %arg3: memref<1x512xf32, #tpu.memory_space<vmem>>, %arg4: memref<1x512xf32, #tpu.memory_space<vmem>>, %arg5: memref<1x16x512xbf16, #tpu.memory_space<vmem>>) attributes {dimension_semantics = [#tpu.dimension_semantics<parallel>, #tpu.dimension_semantics<parallel>], iteration_bounds = array<i64: 1, 1>, scalar_prefetch = 0 : i64, scratch_operands = 0 : i64, tpu.core_type = #tpu.core_type<tc>, window_params = [{transform_indices = @transform_0, window_bounds = array<i64: 1, 16, 512>}, {pipeline_mode = #tpu.pipeline_mode<synchronous>, transform_indices = @transform_1, window_bounds = array<i64: 1, 512>}, {pipeline_mode = #tpu.pipeline_mode<synchronous>, transform_indices = @transform_2, window_bounds = array<i64: 1, 512>}, {transform_indices = @transform_3, window_bounds = array<i64: 1, 16, 512>}]} {
    %c0 = arith.constant 0 : index
    %c0_0 = arith.constant 0 : index
    %c0_1 = arith.constant 0 : index
    %0 = vector.load %arg2[%c0, %c0_0, %c0_1] : memref<1x16x512xbf16, #tpu.memory_space<vmem>>, vector<1x16x512xbf16>
    %1 = vector.shape_cast %0 : vector<1x16x512xbf16> to vector<16x512xbf16>
    %2 = arith.extf %1 : vector<16x512xbf16> to vector<16x512xf32>
    %c0_2 = arith.constant 0 : index
    %c0_3 = arith.constant 0 : index
    %3 = vector.load %arg3[%c0_2, %c0_3] : memref<1x512xf32, #tpu.memory_space<vmem>>, vector<1x512xf32>
    %4 = vector.broadcast %3 : vector<1x512xf32> to vector<16x512xf32>
    %5 = arith.mulf %2, %4 : vector<16x512xf32>
    %c0_4 = arith.constant 0 : index
    %c0_5 = arith.constant 0 : index
    %6 = vector.load %arg4[%c0_4, %c0_5] : memref<1x512xf32, #tpu.memory_space<vmem>>, vector<1x512xf32>
    %7 = vector.broadcast %6 : vector<1x512xf32> to vector<16x512xf32>
    %8 = arith.addf %5, %7 : vector<16x512xf32>
    %cst = arith.constant 0.000000e+00 : f32
    %9 = vector.broadcast %cst : f32 to vector<16x512xf32>
    %10 = arith.cmpf ogt, %8, %9 : vector<16x512xf32>
    %cst_6 = arith.constant 2.000000e-01 : f32
    %11 = vector.broadcast %cst_6 : f32 to vector<16x512xf32>
    %12 = arith.mulf %11, %8 : vector<16x512xf32>
    %13 = arith.select %10, %8, %12 : vector<16x512xi1>, vector<16x512xf32>
    %14 = arith.truncf %13 : vector<16x512xf32> to vector<16x512xbf16>
    %c0_7 = arith.constant 0 : index
    %c0_8 = arith.constant 0 : index
    %c0_9 = arith.constant 0 : index
    %15 = vector.load %arg5[%c0_7, %c0_8, %c0_9] : memref<1x16x512xbf16, #tpu.memory_space<vmem>>, vector<1x16x512xbf16>
    %16 = vector.shape_cast %15 : vector<1x16x512xbf16> to vector<16x512xbf16>
    %17 = vector.shape_cast %14 : vector<16x512xbf16> to vector<1x16x512xbf16>
    tpu.vector_store %arg5[%c0_7, %c0_8, %c0_9], %17 {strides = array<i32>} : memref<1x16x512xbf16, #tpu.memory_space<vmem>>, vector<1x16x512xbf16>,
    return
  }
  func.func @transform_0(%arg0: i32, %arg1: i32) -> (i32, i32, i32) {
    %c0_i32 = arith.constant 0 : i32
    %c0_i32_0 = arith.constant 0 : i32
    return %arg0, %arg1, %c0_i32 : i32, i32, i32
  }
  func.func @transform_1(%arg0: i32, %arg1: i32) -> (i32, i32) {
    %c0_i32 = arith.constant 0 : i32
    %c0_i32_0 = arith.constant 0 : i32
    %c0_i32_1 = arith.constant 0 : i32
    return %c0_i32, %c0_i32_0 : i32, i32
  }
  func.func @transform_2(%arg0: i32, %arg1: i32) -> (i32, i32) {
    %c0_i32 = arith.constant 0 : i32
    %c0_i32_0 = arith.constant 0 : i32
    %c0_i32_1 = arith.constant 0 : i32
    return %c0_i32, %c0_i32_0 : i32, i32
  }
  func.func @transform_3(%arg0: i32, %arg1: i32) -> (i32, i32, i32) {
    %c0_i32 = arith.constant 0 : i32
    %c0_i32_0 = arith.constant 0 : i32
    return %arg0, %arg1, %c0_i32 : i32, i32, i32
  }
}

module attributes {stable_mosaic.version = 11 : i64} {
  func.func @_phase_mm_stats_kernel(%arg0: i32, %arg1: i32, %arg2: memref<1x16x2048xbf16, #tpu.memory_space<vmem>>, %arg3: memref<1x2048x256xbf16, #tpu.memory_space<vmem>>, %arg4: memref<1x16x256xbf16, #tpu.memory_space<vmem>>, %arg5: memref<1x1x8x256xf32, #tpu.memory_space<vmem>>) attributes {dimension_semantics = [#tpu.dimension_semantics<parallel>, #tpu.dimension_semantics<parallel>], iteration_bounds = array<i64: 4, 1>, scalar_prefetch = 0 : i64, scratch_operands = 0 : i64, tpu.core_type = #tpu.core_type<tc>, window_params = [{transform_indices = @transform_0, window_bounds = array<i64: 1, 16, 2048>}, {transform_indices = @transform_1, window_bounds = array<i64: 1, 2048, 256>}, {transform_indices = @transform_2, window_bounds = array<i64: 1, 16, 256>}, {transform_indices = @transform_3, window_bounds = array<i64: 1, 1, 8, 256>}]} {
    %c0 = arith.constant 0 : index
    %c0_0 = arith.constant 0 : index
    %c0_1 = arith.constant 0 : index
    %0 = vector.load %arg2[%c0, %c0_0, %c0_1] : memref<1x16x2048xbf16, #tpu.memory_space<vmem>>, vector<1x16x2048xbf16>
    %1 = vector.shape_cast %0 : vector<1x16x2048xbf16> to vector<16x2048xbf16>
    %c0_2 = arith.constant 0 : index
    %c0_3 = arith.constant 0 : index
    %c0_4 = arith.constant 0 : index
    %2 = vector.load %arg3[%c0_2, %c0_3, %c0_4] : memref<1x2048x256xbf16, #tpu.memory_space<vmem>>, vector<1x2048x256xbf16>
    %3 = vector.shape_cast %2 : vector<1x2048x256xbf16> to vector<2048x256xbf16>
    %cst = arith.constant dense<0.000000e+00> : vector<16x256xf32>
    %4 = tpu.matmul %1, %3, %cst {dimension_numbers = #tpu.dot_dimension_numbers<[1], [0], [0], [1], [0, 0, 1, 1], [], []>} : vector<16x2048xbf16>, vector<2048x256xbf16>, vector<16x256xf32> -> vector<16x256xf32>
    %5 = arith.truncf %4 : vector<16x256xf32> to vector<16x256xbf16>
    %c0_5 = arith.constant 0 : index
    %c0_6 = arith.constant 0 : index
    %c0_7 = arith.constant 0 : index
    %6 = vector.load %arg4[%c0_5, %c0_6, %c0_7] : memref<1x16x256xbf16, #tpu.memory_space<vmem>>, vector<1x16x256xbf16>
    %7 = vector.shape_cast %6 : vector<1x16x256xbf16> to vector<16x256xbf16>
    %8 = vector.shape_cast %5 : vector<16x256xbf16> to vector<1x16x256xbf16>
    tpu.vector_store %arg4[%c0_5, %c0_6, %c0_7], %8 {strides = array<i32>} : memref<1x16x256xbf16, #tpu.memory_space<vmem>>, vector<1x16x256xbf16>,
    %9 = tpu.iota {dimensions = array<i32: 0>} : vector<16x256xi32>
    %c16_i32 = arith.constant 16 : i32
    %10 = arith.muli %arg1, %c16_i32 : i32
    %11 = vector.broadcast %10 : i32 to vector<16x256xi32>
    %12 = arith.addi %11, %9 : vector<16x256xi32>
    %c2_i32 = arith.constant 2 : i32
    %13 = vector.broadcast %c2_i32 : i32 to vector<16x256xi32>
    %14 = arith.cmpi slt, %12, %13 : vector<16x256xi32>
    %cst_8 = arith.constant 0.000000e+00 : f32
    %15 = vector.broadcast %cst_8 : f32 to vector<16x256xf32>
    %16 = arith.select %14, %4, %15 : vector<16x256xi1>, vector<16x256xf32>
    %cst_9 = arith.constant dense<0.000000e+00> : vector<256xf32>
    %17 = vector.multi_reduction <add>, %16, %cst_9 [0] : vector<16x256xf32> to vector<256xf32>
    %18 = vector.shape_cast %17 : vector<256xf32> to vector<1x256xf32>
    %19 = arith.mulf %16, %16 : vector<16x256xf32>
    %cst_10 = arith.constant dense<0.000000e+00> : vector<256xf32>
    %20 = vector.multi_reduction <add>, %19, %cst_10 [0] : vector<16x256xf32> to vector<256xf32>
    %21 = vector.shape_cast %20 : vector<256xf32> to vector<1x256xf32>
    %22 = tpu.iota {dimensions = array<i32: 0>} : vector<8x256xi32>
    %c0_i32 = arith.constant 0 : i32
    %23 = vector.broadcast %c0_i32 : i32 to vector<8x256xi32>
    %24 = arith.cmpi eq, %22, %23 : vector<8x256xi32>
    %cst_11 = arith.constant 0.000000e+00 : f32
    %25 = vector.shape_cast %18 : vector<1x256xf32> to vector<1x256xf32>
    %26 = vector.broadcast %25 : vector<1x256xf32> to vector<8x256xf32>
    %27 = vector.broadcast %cst_11 : f32 to vector<8x256xf32>
    %28 = arith.select %24, %26, %27 : vector<8x256xi1>, vector<8x256xf32>
    %c1_i32 = arith.constant 1 : i32
    %29 = vector.broadcast %c1_i32 : i32 to vector<8x256xi32>
    %30 = arith.cmpi eq, %22, %29 : vector<8x256xi32>
    %cst_12 = arith.constant 0.000000e+00 : f32
    %31 = vector.shape_cast %21 : vector<1x256xf32> to vector<1x256xf32>
    %32 = vector.broadcast %31 : vector<1x256xf32> to vector<8x256xf32>
    %33 = vector.broadcast %cst_12 : f32 to vector<8x256xf32>
    %34 = arith.select %30, %32, %33 : vector<8x256xi1>, vector<8x256xf32>
    %35 = arith.addf %28, %34 : vector<8x256xf32>
    %c0_13 = arith.constant 0 : index
    %c0_14 = arith.constant 0 : index
    %c0_15 = arith.constant 0 : index
    %c0_16 = arith.constant 0 : index
    %36 = vector.load %arg5[%c0_13, %c0_14, %c0_15, %c0_16] : memref<1x1x8x256xf32, #tpu.memory_space<vmem>>, vector<1x1x8x256xf32>
    %37 = vector.shape_cast %36 : vector<1x1x8x256xf32> to vector<8x256xf32>
    %38 = vector.shape_cast %35 : vector<8x256xf32> to vector<1x1x8x256xf32>
    tpu.vector_store %arg5[%c0_13, %c0_14, %c0_15, %c0_16], %38 {strides = array<i32>} : memref<1x1x8x256xf32, #tpu.memory_space<vmem>>, vector<1x1x8x256xf32>,
    return
  }
  func.func @transform_0(%arg0: i32, %arg1: i32) -> (i32, i32, i32) {
    %c0_i32 = arith.constant 0 : i32
    %c0_i32_0 = arith.constant 0 : i32
    return %arg0, %arg1, %c0_i32 : i32, i32, i32
  }
  func.func @transform_1(%arg0: i32, %arg1: i32) -> (i32, i32, i32) {
    %c0_i32 = arith.constant 0 : i32
    %c0_i32_0 = arith.constant 0 : i32
    %c0_i32_1 = arith.constant 0 : i32
    return %arg0, %c0_i32, %c0_i32_0 : i32, i32, i32
  }
  func.func @transform_2(%arg0: i32, %arg1: i32) -> (i32, i32, i32) {
    %c0_i32 = arith.constant 0 : i32
    %c0_i32_0 = arith.constant 0 : i32
    return %arg0, %arg1, %c0_i32 : i32, i32, i32
  }
  func.func @transform_3(%arg0: i32, %arg1: i32) -> (i32, i32, i32, i32) {
    %c0_i32 = arith.constant 0 : i32
    %c0_i32_0 = arith.constant 0 : i32
    %c0_i32_1 = arith.constant 0 : i32
    return %arg0, %arg1, %c0_i32, %c0_i32_0 : i32, i32, i32, i32
  }
}

module attributes {stable_mosaic.version = 11 : i64} {
  func.func @_affine_act_kernel(%arg0: i32, %arg1: i32, %arg2: memref<1x16x256xbf16, #tpu.memory_space<vmem>>, %arg3: memref<1x256xf32, #tpu.memory_space<vmem>>, %arg4: memref<1x256xf32, #tpu.memory_space<vmem>>, %arg5: memref<1x16x256xbf16, #tpu.memory_space<vmem>>) attributes {dimension_semantics = [#tpu.dimension_semantics<parallel>, #tpu.dimension_semantics<parallel>], iteration_bounds = array<i64: 4, 1>, scalar_prefetch = 0 : i64, scratch_operands = 0 : i64, tpu.core_type = #tpu.core_type<tc>, window_params = [{transform_indices = @transform_0, window_bounds = array<i64: 1, 16, 256>}, {pipeline_mode = #tpu.pipeline_mode<synchronous>, transform_indices = @transform_1, window_bounds = array<i64: 1, 256>}, {pipeline_mode = #tpu.pipeline_mode<synchronous>, transform_indices = @transform_2, window_bounds = array<i64: 1, 256>}, {transform_indices = @transform_3, window_bounds = array<i64: 1, 16, 256>}]} {
    %c0 = arith.constant 0 : index
    %c0_0 = arith.constant 0 : index
    %c0_1 = arith.constant 0 : index
    %0 = vector.load %arg2[%c0, %c0_0, %c0_1] : memref<1x16x256xbf16, #tpu.memory_space<vmem>>, vector<1x16x256xbf16>
    %1 = vector.shape_cast %0 : vector<1x16x256xbf16> to vector<16x256xbf16>
    %2 = arith.extf %1 : vector<16x256xbf16> to vector<16x256xf32>
    %c0_2 = arith.constant 0 : index
    %c0_3 = arith.constant 0 : index
    %3 = vector.load %arg3[%c0_2, %c0_3] : memref<1x256xf32, #tpu.memory_space<vmem>>, vector<1x256xf32>
    %4 = vector.broadcast %3 : vector<1x256xf32> to vector<16x256xf32>
    %5 = arith.mulf %2, %4 : vector<16x256xf32>
    %c0_4 = arith.constant 0 : index
    %c0_5 = arith.constant 0 : index
    %6 = vector.load %arg4[%c0_4, %c0_5] : memref<1x256xf32, #tpu.memory_space<vmem>>, vector<1x256xf32>
    %7 = vector.broadcast %6 : vector<1x256xf32> to vector<16x256xf32>
    %8 = arith.addf %5, %7 : vector<16x256xf32>
    %cst = arith.constant 0.000000e+00 : f32
    %9 = vector.broadcast %cst : f32 to vector<16x256xf32>
    %10 = arith.maximumf %8, %9 : vector<16x256xf32>
    %11 = arith.truncf %10 : vector<16x256xf32> to vector<16x256xbf16>
    %c0_6 = arith.constant 0 : index
    %c0_7 = arith.constant 0 : index
    %c0_8 = arith.constant 0 : index
    %12 = vector.load %arg5[%c0_6, %c0_7, %c0_8] : memref<1x16x256xbf16, #tpu.memory_space<vmem>>, vector<1x16x256xbf16>
    %13 = vector.shape_cast %12 : vector<1x16x256xbf16> to vector<16x256xbf16>
    %14 = vector.shape_cast %11 : vector<16x256xbf16> to vector<1x16x256xbf16>
    tpu.vector_store %arg5[%c0_6, %c0_7, %c0_8], %14 {strides = array<i32>} : memref<1x16x256xbf16, #tpu.memory_space<vmem>>, vector<1x16x256xbf16>,
    return
  }
  func.func @transform_0(%arg0: i32, %arg1: i32) -> (i32, i32, i32) {
    %c0_i32 = arith.constant 0 : i32
    %c0_i32_0 = arith.constant 0 : i32
    return %arg0, %arg1, %c0_i32 : i32, i32, i32
  }
  func.func @transform_1(%arg0: i32, %arg1: i32) -> (i32, i32) {
    %c0_i32 = arith.constant 0 : i32
    %c0_i32_0 = arith.constant 0 : i32
    %c0_i32_1 = arith.constant 0 : i32
    return %c0_i32, %c0_i32_0 : i32, i32
  }
  func.func @transform_2(%arg0: i32, %arg1: i32) -> (i32, i32) {
    %c0_i32 = arith.constant 0 : i32
    %c0_i32_0 = arith.constant 0 : i32
    %c0_i32_1 = arith.constant 0 : i32
    return %c0_i32, %c0_i32_0 : i32, i32
  }
  func.func @transform_3(%arg0: i32, %arg1: i32) -> (i32, i32, i32) {
    %c0_i32 = arith.constant 0 : i32
    %c0_i32_0 = arith.constant 0 : i32
    return %arg0, %arg1, %c0_i32 : i32, i32, i32
  }
}

module attributes {stable_mosaic.version = 11 : i64} {
  func.func @_phase_mm_stats_kernel(%arg0: i32, %arg1: i32, %arg2: memref<1x16x1024xbf16, #tpu.memory_space<vmem>>, %arg3: memref<1x1024x128xbf16, #tpu.memory_space<vmem>>, %arg4: memref<1x16x128xbf16, #tpu.memory_space<vmem>>, %arg5: memref<1x1x8x128xf32, #tpu.memory_space<vmem>>) attributes {dimension_semantics = [#tpu.dimension_semantics<parallel>, #tpu.dimension_semantics<parallel>], iteration_bounds = array<i64: 4, 1>, scalar_prefetch = 0 : i64, scratch_operands = 0 : i64, tpu.core_type = #tpu.core_type<tc>, window_params = [{transform_indices = @transform_0, window_bounds = array<i64: 1, 16, 1024>}, {transform_indices = @transform_1, window_bounds = array<i64: 1, 1024, 128>}, {transform_indices = @transform_2, window_bounds = array<i64: 1, 16, 128>}, {transform_indices = @transform_3, window_bounds = array<i64: 1, 1, 8, 128>}]} {
    %c0 = arith.constant 0 : index
    %c0_0 = arith.constant 0 : index
    %c0_1 = arith.constant 0 : index
    %0 = vector.load %arg2[%c0, %c0_0, %c0_1] : memref<1x16x1024xbf16, #tpu.memory_space<vmem>>, vector<1x16x1024xbf16>
    %1 = vector.shape_cast %0 : vector<1x16x1024xbf16> to vector<16x1024xbf16>
    %c0_2 = arith.constant 0 : index
    %c0_3 = arith.constant 0 : index
    %c0_4 = arith.constant 0 : index
    %2 = vector.load %arg3[%c0_2, %c0_3, %c0_4] : memref<1x1024x128xbf16, #tpu.memory_space<vmem>>, vector<1x1024x128xbf16>
    %3 = vector.shape_cast %2 : vector<1x1024x128xbf16> to vector<1024x128xbf16>
    %cst = arith.constant dense<0.000000e+00> : vector<16x128xf32>
    %4 = tpu.matmul %1, %3, %cst {dimension_numbers = #tpu.dot_dimension_numbers<[1], [0], [0], [1], [0, 0, 1, 1], [], []>} : vector<16x1024xbf16>, vector<1024x128xbf16>, vector<16x128xf32> -> vector<16x128xf32>
    %5 = arith.truncf %4 : vector<16x128xf32> to vector<16x128xbf16>
    %c0_5 = arith.constant 0 : index
    %c0_6 = arith.constant 0 : index
    %c0_7 = arith.constant 0 : index
    %6 = vector.load %arg4[%c0_5, %c0_6, %c0_7] : memref<1x16x128xbf16, #tpu.memory_space<vmem>>, vector<1x16x128xbf16>
    %7 = vector.shape_cast %6 : vector<1x16x128xbf16> to vector<16x128xbf16>
    %8 = vector.shape_cast %5 : vector<16x128xbf16> to vector<1x16x128xbf16>
    tpu.vector_store %arg4[%c0_5, %c0_6, %c0_7], %8 {strides = array<i32>} : memref<1x16x128xbf16, #tpu.memory_space<vmem>>, vector<1x16x128xbf16>,
    %9 = tpu.iota {dimensions = array<i32: 0>} : vector<16x128xi32>
    %c16_i32 = arith.constant 16 : i32
    %10 = arith.muli %arg1, %c16_i32 : i32
    %11 = vector.broadcast %10 : i32 to vector<16x128xi32>
    %12 = arith.addi %11, %9 : vector<16x128xi32>
    %c8_i32 = arith.constant 8 : i32
    %13 = vector.broadcast %c8_i32 : i32 to vector<16x128xi32>
    %14 = arith.cmpi slt, %12, %13 : vector<16x128xi32>
    %cst_8 = arith.constant 0.000000e+00 : f32
    %15 = vector.broadcast %cst_8 : f32 to vector<16x128xf32>
    %16 = arith.select %14, %4, %15 : vector<16x128xi1>, vector<16x128xf32>
    %cst_9 = arith.constant dense<0.000000e+00> : vector<128xf32>
    %17 = vector.multi_reduction <add>, %16, %cst_9 [0] : vector<16x128xf32> to vector<128xf32>
    %18 = vector.shape_cast %17 : vector<128xf32> to vector<1x128xf32>
    %19 = arith.mulf %16, %16 : vector<16x128xf32>
    %cst_10 = arith.constant dense<0.000000e+00> : vector<128xf32>
    %20 = vector.multi_reduction <add>, %19, %cst_10 [0] : vector<16x128xf32> to vector<128xf32>
    %21 = vector.shape_cast %20 : vector<128xf32> to vector<1x128xf32>
    %22 = tpu.iota {dimensions = array<i32: 0>} : vector<8x128xi32>
    %c0_i32 = arith.constant 0 : i32
    %23 = vector.broadcast %c0_i32 : i32 to vector<8x128xi32>
    %24 = arith.cmpi eq, %22, %23 : vector<8x128xi32>
    %cst_11 = arith.constant 0.000000e+00 : f32
    %25 = vector.shape_cast %18 : vector<1x128xf32> to vector<1x128xf32>
    %26 = vector.broadcast %25 : vector<1x128xf32> to vector<8x128xf32>
    %27 = vector.broadcast %cst_11 : f32 to vector<8x128xf32>
    %28 = arith.select %24, %26, %27 : vector<8x128xi1>, vector<8x128xf32>
    %c1_i32 = arith.constant 1 : i32
    %29 = vector.broadcast %c1_i32 : i32 to vector<8x128xi32>
    %30 = arith.cmpi eq, %22, %29 : vector<8x128xi32>
    %cst_12 = arith.constant 0.000000e+00 : f32
    %31 = vector.shape_cast %21 : vector<1x128xf32> to vector<1x128xf32>
    %32 = vector.broadcast %31 : vector<1x128xf32> to vector<8x128xf32>
    %33 = vector.broadcast %cst_12 : f32 to vector<8x128xf32>
    %34 = arith.select %30, %32, %33 : vector<8x128xi1>, vector<8x128xf32>
    %35 = arith.addf %28, %34 : vector<8x128xf32>
    %c0_13 = arith.constant 0 : index
    %c0_14 = arith.constant 0 : index
    %c0_15 = arith.constant 0 : index
    %c0_16 = arith.constant 0 : index
    %36 = vector.load %arg5[%c0_13, %c0_14, %c0_15, %c0_16] : memref<1x1x8x128xf32, #tpu.memory_space<vmem>>, vector<1x1x8x128xf32>
    %37 = vector.shape_cast %36 : vector<1x1x8x128xf32> to vector<8x128xf32>
    %38 = vector.shape_cast %35 : vector<8x128xf32> to vector<1x1x8x128xf32>
    tpu.vector_store %arg5[%c0_13, %c0_14, %c0_15, %c0_16], %38 {strides = array<i32>} : memref<1x1x8x128xf32, #tpu.memory_space<vmem>>, vector<1x1x8x128xf32>,
    return
  }
  func.func @transform_0(%arg0: i32, %arg1: i32) -> (i32, i32, i32) {
    %c0_i32 = arith.constant 0 : i32
    %c0_i32_0 = arith.constant 0 : i32
    return %arg0, %arg1, %c0_i32 : i32, i32, i32
  }
  func.func @transform_1(%arg0: i32, %arg1: i32) -> (i32, i32, i32) {
    %c0_i32 = arith.constant 0 : i32
    %c0_i32_0 = arith.constant 0 : i32
    %c0_i32_1 = arith.constant 0 : i32
    return %arg0, %c0_i32, %c0_i32_0 : i32, i32, i32
  }
  func.func @transform_2(%arg0: i32, %arg1: i32) -> (i32, i32, i32) {
    %c0_i32 = arith.constant 0 : i32
    %c0_i32_0 = arith.constant 0 : i32
    return %arg0, %arg1, %c0_i32 : i32, i32, i32
  }
  func.func @transform_3(%arg0: i32, %arg1: i32) -> (i32, i32, i32, i32) {
    %c0_i32 = arith.constant 0 : i32
    %c0_i32_0 = arith.constant 0 : i32
    %c0_i32_1 = arith.constant 0 : i32
    return %arg0, %arg1, %c0_i32, %c0_i32_0 : i32, i32, i32, i32
  }
}

module attributes {stable_mosaic.version = 11 : i64} {
  func.func @_affine_act_kernel(%arg0: i32, %arg1: i32, %arg2: memref<1x16x128xbf16, #tpu.memory_space<vmem>>, %arg3: memref<1x128xf32, #tpu.memory_space<vmem>>, %arg4: memref<1x128xf32, #tpu.memory_space<vmem>>, %arg5: memref<1x16x128xbf16, #tpu.memory_space<vmem>>) attributes {dimension_semantics = [#tpu.dimension_semantics<parallel>, #tpu.dimension_semantics<parallel>], iteration_bounds = array<i64: 4, 1>, scalar_prefetch = 0 : i64, scratch_operands = 0 : i64, tpu.core_type = #tpu.core_type<tc>, window_params = [{transform_indices = @transform_0, window_bounds = array<i64: 1, 16, 128>}, {pipeline_mode = #tpu.pipeline_mode<synchronous>, transform_indices = @transform_1, window_bounds = array<i64: 1, 128>}, {pipeline_mode = #tpu.pipeline_mode<synchronous>, transform_indices = @transform_2, window_bounds = array<i64: 1, 128>}, {transform_indices = @transform_3, window_bounds = array<i64: 1, 16, 128>}]} {
    %c0 = arith.constant 0 : index
    %c0_0 = arith.constant 0 : index
    %c0_1 = arith.constant 0 : index
    %0 = vector.load %arg2[%c0, %c0_0, %c0_1] : memref<1x16x128xbf16, #tpu.memory_space<vmem>>, vector<1x16x128xbf16>
    %1 = vector.shape_cast %0 : vector<1x16x128xbf16> to vector<16x128xbf16>
    %2 = arith.extf %1 : vector<16x128xbf16> to vector<16x128xf32>
    %c0_2 = arith.constant 0 : index
    %c0_3 = arith.constant 0 : index
    %3 = vector.load %arg3[%c0_2, %c0_3] : memref<1x128xf32, #tpu.memory_space<vmem>>, vector<1x128xf32>
    %4 = vector.broadcast %3 : vector<1x128xf32> to vector<16x128xf32>
    %5 = arith.mulf %2, %4 : vector<16x128xf32>
    %c0_4 = arith.constant 0 : index
    %c0_5 = arith.constant 0 : index
    %6 = vector.load %arg4[%c0_4, %c0_5] : memref<1x128xf32, #tpu.memory_space<vmem>>, vector<1x128xf32>
    %7 = vector.broadcast %6 : vector<1x128xf32> to vector<16x128xf32>
    %8 = arith.addf %5, %7 : vector<16x128xf32>
    %cst = arith.constant 0.000000e+00 : f32
    %9 = vector.broadcast %cst : f32 to vector<16x128xf32>
    %10 = arith.maximumf %8, %9 : vector<16x128xf32>
    %11 = arith.truncf %10 : vector<16x128xf32> to vector<16x128xbf16>
    %c0_6 = arith.constant 0 : index
    %c0_7 = arith.constant 0 : index
    %c0_8 = arith.constant 0 : index
    %12 = vector.load %arg5[%c0_6, %c0_7, %c0_8] : memref<1x16x128xbf16, #tpu.memory_space<vmem>>, vector<1x16x128xbf16>
    %13 = vector.shape_cast %12 : vector<1x16x128xbf16> to vector<16x128xbf16>
    %14 = vector.shape_cast %11 : vector<16x128xbf16> to vector<1x16x128xbf16>
    tpu.vector_store %arg5[%c0_6, %c0_7, %c0_8], %14 {strides = array<i32>} : memref<1x16x128xbf16, #tpu.memory_space<vmem>>, vector<1x16x128xbf16>,
    return
  }
  func.func @transform_0(%arg0: i32, %arg1: i32) -> (i32, i32, i32) {
    %c0_i32 = arith.constant 0 : i32
    %c0_i32_0 = arith.constant 0 : i32
    return %arg0, %arg1, %c0_i32 : i32, i32, i32
  }
  func.func @transform_1(%arg0: i32, %arg1: i32) -> (i32, i32) {
    %c0_i32 = arith.constant 0 : i32
    %c0_i32_0 = arith.constant 0 : i32
    %c0_i32_1 = arith.constant 0 : i32
    return %c0_i32, %c0_i32_0 : i32, i32
  }
  func.func @transform_2(%arg0: i32, %arg1: i32) -> (i32, i32) {
    %c0_i32 = arith.constant 0 : i32
    %c0_i32_0 = arith.constant 0 : i32
    %c0_i32_1 = arith.constant 0 : i32
    return %c0_i32, %c0_i32_0 : i32, i32
  }
  func.func @transform_3(%arg0: i32, %arg1: i32) -> (i32, i32, i32) {
    %c0_i32 = arith.constant 0 : i32
    %c0_i32_0 = arith.constant 0 : i32
    return %arg0, %arg1, %c0_i32 : i32, i32, i32
  }
}

module attributes {stable_mosaic.version = 11 : i64} {
  func.func @_phase_mm_stats_kernel(%arg0: i32, %arg1: i32, %arg2: memref<1x32x512xbf16, #tpu.memory_space<vmem>>, %arg3: memref<1x512x128xbf16, #tpu.memory_space<vmem>>, %arg4: memref<1x32x128xbf16, #tpu.memory_space<vmem>>, %arg5: memref<1x1x8x128xf32, #tpu.memory_space<vmem>>) attributes {dimension_semantics = [#tpu.dimension_semantics<parallel>, #tpu.dimension_semantics<parallel>], iteration_bounds = array<i64: 4, 1>, scalar_prefetch = 0 : i64, scratch_operands = 0 : i64, tpu.core_type = #tpu.core_type<tc>, window_params = [{transform_indices = @transform_0, window_bounds = array<i64: 1, 32, 512>}, {transform_indices = @transform_1, window_bounds = array<i64: 1, 512, 128>}, {transform_indices = @transform_2, window_bounds = array<i64: 1, 32, 128>}, {transform_indices = @transform_3, window_bounds = array<i64: 1, 1, 8, 128>}]} {
    %c0 = arith.constant 0 : index
    %c0_0 = arith.constant 0 : index
    %c0_1 = arith.constant 0 : index
    %0 = vector.load %arg2[%c0, %c0_0, %c0_1] : memref<1x32x512xbf16, #tpu.memory_space<vmem>>, vector<1x32x512xbf16>
    %1 = vector.shape_cast %0 : vector<1x32x512xbf16> to vector<32x512xbf16>
    %c0_2 = arith.constant 0 : index
    %c0_3 = arith.constant 0 : index
    %c0_4 = arith.constant 0 : index
    %2 = vector.load %arg3[%c0_2, %c0_3, %c0_4] : memref<1x512x128xbf16, #tpu.memory_space<vmem>>, vector<1x512x128xbf16>
    %3 = vector.shape_cast %2 : vector<1x512x128xbf16> to vector<512x128xbf16>
    %cst = arith.constant dense<0.000000e+00> : vector<32x128xf32>
    %4 = tpu.matmul %1, %3, %cst {dimension_numbers = #tpu.dot_dimension_numbers<[1], [0], [0], [1], [0, 0, 1, 1], [], []>} : vector<32x512xbf16>, vector<512x128xbf16>, vector<32x128xf32> -> vector<32x128xf32>
    %5 = arith.truncf %4 : vector<32x128xf32> to vector<32x128xbf16>
    %c0_5 = arith.constant 0 : index
    %c0_6 = arith.constant 0 : index
    %c0_7 = arith.constant 0 : index
    %6 = vector.load %arg4[%c0_5, %c0_6, %c0_7] : memref<1x32x128xbf16, #tpu.memory_space<vmem>>, vector<1x32x128xbf16>
    %7 = vector.shape_cast %6 : vector<1x32x128xbf16> to vector<32x128xbf16>
    %8 = vector.shape_cast %5 : vector<32x128xbf16> to vector<1x32x128xbf16>
    tpu.vector_store %arg4[%c0_5, %c0_6, %c0_7], %8 {strides = array<i32>} : memref<1x32x128xbf16, #tpu.memory_space<vmem>>, vector<1x32x128xbf16>,
    %9 = tpu.iota {dimensions = array<i32: 0>} : vector<32x128xi32>
    %c32_i32 = arith.constant 32 : i32
    %10 = arith.muli %arg1, %c32_i32 : i32
    %11 = vector.broadcast %10 : i32 to vector<32x128xi32>
    %12 = arith.addi %11, %9 : vector<32x128xi32>
    %c32_i32_8 = arith.constant 32 : i32
    %13 = vector.broadcast %c32_i32_8 : i32 to vector<32x128xi32>
    %14 = arith.cmpi slt, %12, %13 : vector<32x128xi32>
    %cst_9 = arith.constant 0.000000e+00 : f32
    %15 = vector.broadcast %cst_9 : f32 to vector<32x128xf32>
    %16 = arith.select %14, %4, %15 : vector<32x128xi1>, vector<32x128xf32>
    %cst_10 = arith.constant dense<0.000000e+00> : vector<128xf32>
    %17 = vector.multi_reduction <add>, %16, %cst_10 [0] : vector<32x128xf32> to vector<128xf32>
    %18 = vector.shape_cast %17 : vector<128xf32> to vector<1x128xf32>
    %19 = arith.mulf %16, %16 : vector<32x128xf32>
    %cst_11 = arith.constant dense<0.000000e+00> : vector<128xf32>
    %20 = vector.multi_reduction <add>, %19, %cst_11 [0] : vector<32x128xf32> to vector<128xf32>
    %21 = vector.shape_cast %20 : vector<128xf32> to vector<1x128xf32>
    %22 = tpu.iota {dimensions = array<i32: 0>} : vector<8x128xi32>
    %c0_i32 = arith.constant 0 : i32
    %23 = vector.broadcast %c0_i32 : i32 to vector<8x128xi32>
    %24 = arith.cmpi eq, %22, %23 : vector<8x128xi32>
    %cst_12 = arith.constant 0.000000e+00 : f32
    %25 = vector.shape_cast %18 : vector<1x128xf32> to vector<1x128xf32>
    %26 = vector.broadcast %25 : vector<1x128xf32> to vector<8x128xf32>
    %27 = vector.broadcast %cst_12 : f32 to vector<8x128xf32>
    %28 = arith.select %24, %26, %27 : vector<8x128xi1>, vector<8x128xf32>
    %c1_i32 = arith.constant 1 : i32
    %29 = vector.broadcast %c1_i32 : i32 to vector<8x128xi32>
    %30 = arith.cmpi eq, %22, %29 : vector<8x128xi32>
    %cst_13 = arith.constant 0.000000e+00 : f32
    %31 = vector.shape_cast %21 : vector<1x128xf32> to vector<1x128xf32>
    %32 = vector.broadcast %31 : vector<1x128xf32> to vector<8x128xf32>
    %33 = vector.broadcast %cst_13 : f32 to vector<8x128xf32>
    %34 = arith.select %30, %32, %33 : vector<8x128xi1>, vector<8x128xf32>
    %35 = arith.addf %28, %34 : vector<8x128xf32>
    %c0_14 = arith.constant 0 : index
    %c0_15 = arith.constant 0 : index
    %c0_16 = arith.constant 0 : index
    %c0_17 = arith.constant 0 : index
    %36 = vector.load %arg5[%c0_14, %c0_15, %c0_16, %c0_17] : memref<1x1x8x128xf32, #tpu.memory_space<vmem>>, vector<1x1x8x128xf32>
    %37 = vector.shape_cast %36 : vector<1x1x8x128xf32> to vector<8x128xf32>
    %38 = vector.shape_cast %35 : vector<8x128xf32> to vector<1x1x8x128xf32>
    tpu.vector_store %arg5[%c0_14, %c0_15, %c0_16, %c0_17], %38 {strides = array<i32>} : memref<1x1x8x128xf32, #tpu.memory_space<vmem>>, vector<1x1x8x128xf32>,
    return
  }
  func.func @transform_0(%arg0: i32, %arg1: i32) -> (i32, i32, i32) {
    %c0_i32 = arith.constant 0 : i32
    %c0_i32_0 = arith.constant 0 : i32
    return %arg0, %arg1, %c0_i32 : i32, i32, i32
  }
  func.func @transform_1(%arg0: i32, %arg1: i32) -> (i32, i32, i32) {
    %c0_i32 = arith.constant 0 : i32
    %c0_i32_0 = arith.constant 0 : i32
    %c0_i32_1 = arith.constant 0 : i32
    return %arg0, %c0_i32, %c0_i32_0 : i32, i32, i32
  }
  func.func @transform_2(%arg0: i32, %arg1: i32) -> (i32, i32, i32) {
    %c0_i32 = arith.constant 0 : i32
    %c0_i32_0 = arith.constant 0 : i32
    return %arg0, %arg1, %c0_i32 : i32, i32, i32
  }
  func.func @transform_3(%arg0: i32, %arg1: i32) -> (i32, i32, i32, i32) {
    %c0_i32 = arith.constant 0 : i32
    %c0_i32_0 = arith.constant 0 : i32
    %c0_i32_1 = arith.constant 0 : i32
    return %arg0, %arg1, %c0_i32, %c0_i32_0 : i32, i32, i32, i32
  }
}

module attributes {stable_mosaic.version = 11 : i64} {
  func.func @_affine_act_kernel(%arg0: i32, %arg1: i32, %arg2: memref<1x32x128xbf16, #tpu.memory_space<vmem>>, %arg3: memref<1x128xf32, #tpu.memory_space<vmem>>, %arg4: memref<1x128xf32, #tpu.memory_space<vmem>>, %arg5: memref<1x32x128xbf16, #tpu.memory_space<vmem>>) attributes {dimension_semantics = [#tpu.dimension_semantics<parallel>, #tpu.dimension_semantics<parallel>], iteration_bounds = array<i64: 4, 1>, scalar_prefetch = 0 : i64, scratch_operands = 0 : i64, tpu.core_type = #tpu.core_type<tc>, window_params = [{transform_indices = @transform_0, window_bounds = array<i64: 1, 32, 128>}, {pipeline_mode = #tpu.pipeline_mode<synchronous>, transform_indices = @transform_1, window_bounds = array<i64: 1, 128>}, {pipeline_mode = #tpu.pipeline_mode<synchronous>, transform_indices = @transform_2, window_bounds = array<i64: 1, 128>}, {transform_indices = @transform_3, window_bounds = array<i64: 1, 32, 128>}]} {
    %c0 = arith.constant 0 : index
    %c0_0 = arith.constant 0 : index
    %c0_1 = arith.constant 0 : index
    %0 = vector.load %arg2[%c0, %c0_0, %c0_1] : memref<1x32x128xbf16, #tpu.memory_space<vmem>>, vector<1x32x128xbf16>
    %1 = vector.shape_cast %0 : vector<1x32x128xbf16> to vector<32x128xbf16>
    %2 = arith.extf %1 : vector<32x128xbf16> to vector<32x128xf32>
    %c0_2 = arith.constant 0 : index
    %c0_3 = arith.constant 0 : index
    %3 = vector.load %arg3[%c0_2, %c0_3] : memref<1x128xf32, #tpu.memory_space<vmem>>, vector<1x128xf32>
    %4 = vector.broadcast %3 : vector<1x128xf32> to vector<32x128xf32>
    %5 = arith.mulf %2, %4 : vector<32x128xf32>
    %c0_4 = arith.constant 0 : index
    %c0_5 = arith.constant 0 : index
    %6 = vector.load %arg4[%c0_4, %c0_5] : memref<1x128xf32, #tpu.memory_space<vmem>>, vector<1x128xf32>
    %7 = vector.broadcast %6 : vector<1x128xf32> to vector<32x128xf32>
    %8 = arith.addf %5, %7 : vector<32x128xf32>
    %cst = arith.constant 0.000000e+00 : f32
    %9 = vector.broadcast %cst : f32 to vector<32x128xf32>
    %10 = arith.maximumf %8, %9 : vector<32x128xf32>
    %11 = arith.truncf %10 : vector<32x128xf32> to vector<32x128xbf16>
    %c0_6 = arith.constant 0 : index
    %c0_7 = arith.constant 0 : index
    %c0_8 = arith.constant 0 : index
    %12 = vector.load %arg5[%c0_6, %c0_7, %c0_8] : memref<1x32x128xbf16, #tpu.memory_space<vmem>>, vector<1x32x128xbf16>
    %13 = vector.shape_cast %12 : vector<1x32x128xbf16> to vector<32x128xbf16>
    %14 = vector.shape_cast %11 : vector<32x128xbf16> to vector<1x32x128xbf16>
    tpu.vector_store %arg5[%c0_6, %c0_7, %c0_8], %14 {strides = array<i32>} : memref<1x32x128xbf16, #tpu.memory_space<vmem>>, vector<1x32x128xbf16>,
    return
  }
  func.func @transform_0(%arg0: i32, %arg1: i32) -> (i32, i32, i32) {
    %c0_i32 = arith.constant 0 : i32
    %c0_i32_0 = arith.constant 0 : i32
    return %arg0, %arg1, %c0_i32 : i32, i32, i32
  }
  func.func @transform_1(%arg0: i32, %arg1: i32) -> (i32, i32) {
    %c0_i32 = arith.constant 0 : i32
    %c0_i32_0 = arith.constant 0 : i32
    %c0_i32_1 = arith.constant 0 : i32
    return %c0_i32, %c0_i32_0 : i32, i32
  }
  func.func @transform_2(%arg0: i32, %arg1: i32) -> (i32, i32) {
    %c0_i32 = arith.constant 0 : i32
    %c0_i32_0 = arith.constant 0 : i32
    %c0_i32_1 = arith.constant 0 : i32
    return %c0_i32, %c0_i32_0 : i32, i32
  }
  func.func @transform_3(%arg0: i32, %arg1: i32) -> (i32, i32, i32) {
    %c0_i32 = arith.constant 0 : i32
    %c0_i32_0 = arith.constant 0 : i32
    return %arg0, %arg1, %c0_i32 : i32, i32, i32
  }
}

module attributes {stable_mosaic.version = 11 : i64} {
  func.func @_phase_mm_bias_act_kernel(%arg0: i32, %arg1: i32, %arg2: memref<1x128x256xbf16, #tpu.memory_space<vmem>>, %arg3: memref<1x256x128xbf16, #tpu.memory_space<vmem>>, %arg4: memref<1x128xf32, #tpu.memory_space<vmem>>, %arg5: memref<1x128x128xbf16, #tpu.memory_space<vmem>>) attributes {dimension_semantics = [#tpu.dimension_semantics<parallel>, #tpu.dimension_semantics<parallel>], iteration_bounds = array<i64: 4, 1>, scalar_prefetch = 0 : i64, scratch_operands = 0 : i64, tpu.core_type = #tpu.core_type<tc>, window_params = [{transform_indices = @transform_0, window_bounds = array<i64: 1, 128, 256>}, {transform_indices = @transform_1, window_bounds = array<i64: 1, 256, 128>}, {pipeline_mode = #tpu.pipeline_mode<synchronous>, transform_indices = @transform_2, window_bounds = array<i64: 1, 128>}, {transform_indices = @transform_3, window_bounds = array<i64: 1, 128, 128>}]} {
    %c0 = arith.constant 0 : index
    %c0_0 = arith.constant 0 : index
    %c0_1 = arith.constant 0 : index
    %0 = vector.load %arg2[%c0, %c0_0, %c0_1] : memref<1x128x256xbf16, #tpu.memory_space<vmem>>, vector<1x128x256xbf16>
    %1 = vector.shape_cast %0 : vector<1x128x256xbf16> to vector<128x256xbf16>
    %c0_2 = arith.constant 0 : index
    %c0_3 = arith.constant 0 : index
    %c0_4 = arith.constant 0 : index
    %2 = vector.load %arg3[%c0_2, %c0_3, %c0_4] : memref<1x256x128xbf16, #tpu.memory_space<vmem>>, vector<1x256x128xbf16>
    %3 = vector.shape_cast %2 : vector<1x256x128xbf16> to vector<256x128xbf16>
    %cst = arith.constant dense<0.000000e+00> : vector<128x128xf32>
    %4 = tpu.matmul %1, %3, %cst {dimension_numbers = #tpu.dot_dimension_numbers<[1], [0], [0], [1], [0, 0, 1, 1], [], []>} : vector<128x256xbf16>, vector<256x128xbf16>, vector<128x128xf32> -> vector<128x128xf32>
    %c0_5 = arith.constant 0 : index
    %c0_6 = arith.constant 0 : index
    %5 = vector.load %arg4[%c0_5, %c0_6] : memref<1x128xf32, #tpu.memory_space<vmem>>, vector<1x128xf32>
    %6 = vector.broadcast %5 : vector<1x128xf32> to vector<128x128xf32>
    %7 = arith.addf %4, %6 : vector<128x128xf32>
    %8 = math.tanh %7 : vector<128x128xf32>
    %9 = arith.truncf %8 : vector<128x128xf32> to vector<128x128xbf16>
    %c0_7 = arith.constant 0 : index
    %c0_8 = arith.constant 0 : index
    %c0_9 = arith.constant 0 : index
    %10 = vector.load %arg5[%c0_7, %c0_8, %c0_9] : memref<1x128x128xbf16, #tpu.memory_space<vmem>>, vector<1x128x128xbf16>
    %11 = vector.shape_cast %10 : vector<1x128x128xbf16> to vector<128x128xbf16>
    %12 = vector.shape_cast %9 : vector<128x128xbf16> to vector<1x128x128xbf16>
    tpu.vector_store %arg5[%c0_7, %c0_8, %c0_9], %12 {strides = array<i32>} : memref<1x128x128xbf16, #tpu.memory_space<vmem>>, vector<1x128x128xbf16>,
    return
  }
  func.func @transform_0(%arg0: i32, %arg1: i32) -> (i32, i32, i32) {
    %c0_i32 = arith.constant 0 : i32
    %c0_i32_0 = arith.constant 0 : i32
    return %arg0, %arg1, %c0_i32 : i32, i32, i32
  }
  func.func @transform_1(%arg0: i32, %arg1: i32) -> (i32, i32, i32) {
    %c0_i32 = arith.constant 0 : i32
    %c0_i32_0 = arith.constant 0 : i32
    %c0_i32_1 = arith.constant 0 : i32
    return %arg0, %c0_i32, %c0_i32_0 : i32, i32, i32
  }
  func.func @transform_2(%arg0: i32, %arg1: i32) -> (i32, i32) {
    %c0_i32 = arith.constant 0 : i32
    %c0_i32_0 = arith.constant 0 : i32
    %c0_i32_1 = arith.constant 0 : i32
    return %c0_i32, %c0_i32_0 : i32, i32
  }
  func.func @transform_3(%arg0: i32, %arg1: i32) -> (i32, i32, i32) {
    %c0_i32 = arith.constant 0 : i32
    %c0_i32_0 = arith.constant 0 : i32
    return %arg0, %arg1, %c0_i32 : i32, i32, i32
  }
}

</mosaic_0001>

<bundles_post_ra>
// kernel: generator_forward.16
= control target key start
LH: loop header
LB: loop body
LE: loop exit
PB: predicated region body
PF: predicated region fallthrough
CT: control target
= control target key end

     0   :  { %s455_s0 = inlined_call_operand.vmem [shape: bf16[1,128,128], index: 0, kind: input, shape index: {}]   ;;  %s456_s1 = inlined_call_operand.vmem [shape: f32[1,128], index: 1, kind: input, shape index: {}]   ;;  %s457_s2 = inlined_call_operand.vmem [shape: f32[1,128], index: 2, kind: input, shape index: {}]   ;;  %s458_s3 = inlined_call_operand.vmem [shape: bf16[1,128,128], index: 3, kind: output, shape index: {}]  }
   0x1   :  { %v259_v0 = vld [vmem:[%s455_s0] sm:$0xff]   ;;  %v330_v4 = vld [vmem:[%s455_s0 + $0x8] sm:$0xff]   ;;  %v331_v5 = vld [vmem:[%s455_s0 + $0x10] sm:$0xff]  }
   0x2   :  { %v370_v1 = vld [vmem:[%s456_s1] ss:$0 sm:$0xff]  ;;  %v260_v2 = vunpack.c.l.bf16 %v259_v0  ;;  %v261_v3 = vunpack.c.h.bf16 %v259_v0  ;;  %v332_v6 = vld [vmem:[%s455_s0 + $0x18] sm:$0xff]   ;;  %v264_v8 = vunpack.c.l.bf16 %v330_v4  ;;  %v265_v9 = vunpack.c.h.bf16 %v330_v4  ;;  %v334_v35 = vld [vmem:[%s455_s0 + $0x28] sm:$0xff]  }
   0x3   :  { %v384_v7 = vld [vmem:[%s457_s2] ss:$0 sm:$0xff]  ;;  %v268_v10 = vunpack.c.l.bf16 %v331_v5  ;;  %v269_v11 = vunpack.c.h.bf16 %v331_v5  ;;  %v272_v14 = vunpack.c.l.bf16 %v332_v6  ;;  %v273_v15 = vunpack.c.h.bf16 %v332_v6  ;;  %v335_v48 = vld [vmem:[%s455_s0 + $0x30] sm:$0xff]   ;;  %v336_v4 = vld [vmem:[%s455_s0 + $0x38] sm:$0xff]  }
   0x4   :  { %v53_v12 = vmul.f32 %v260_v2, %v370_v1  ;;  %v54_v13 = vmul.f32 %v261_v3, %v370_v1  ;;  %v55_v16 = vmul.f32 %v264_v8, %v370_v1  ;;  %v56_v17 = vmul.f32 %v265_v9, %v370_v1  ;;  %v333_v34 = vld [vmem:[%s455_s0 + $0x20] sm:$0xff]  }
   0x5   :  { %v57_v18 = vmul.f32 %v268_v10, %v370_v1  ;;  %v58_v19 = vmul.f32 %v269_v11, %v370_v1  ;;  %v59_v22 = vmul.f32 %v272_v14, %v370_v1  ;;  %v60_v23 = vmul.f32 %v273_v15, %v370_v1 }
   0x6   :  { %v76_v20 = vadd.f32 %v384_v7, %v53_v12  ;;  %v77_v21 = vadd.f32 %v384_v7, %v54_v13  ;;  %v78_v24 = vadd.f32 %v384_v7, %v55_v16  ;;  %v79_v25 = vadd.f32 %v384_v7, %v56_v17 }
   0x7   :  { %v80_v26 = vadd.f32 %v384_v7, %v57_v18  ;;  %v81_v27 = vadd.f32 %v384_v7, %v58_v19  ;;  %v82_v42 = vadd.f32 %v384_v7, %v59_v22  ;;  %v83_v43 = vadd.f32 %v384_v7, %v60_v23 }
   0x8   :  { %vm92_vm0 = vcmp.gt.f32.partialorder %v76_v20, 0.0  ;;  %vm93_vm1 = vcmp.gt.f32.partialorder %v77_v21, 0.0  ;;  %v108_v28 = vmul.f32 0.2, %v76_v20  ;;  %v109_v29 = vmul.f32 0.2, %v77_v21 }
   0x9   :  { %vm94_vm2 = vcmp.gt.f32.partialorder %v78_v24, 0.0  ;;  %vm95_vm3 = vcmp.gt.f32.partialorder %v79_v25, 0.0  ;;  %v110_v30 = vmul.f32 0.2, %v78_v24  ;;  %v111_v31 = vmul.f32 0.2, %v79_v25 }
   0xa   :  { %v124_v32 = vsel %vm92_vm0, %v76_v20, %v108_v28  ;;  %v125_v33 = vsel %vm93_vm1, %v77_v21, %v109_v29  ;;  %vm96_vm4 = vcmp.gt.f32.partialorder %v80_v26, 0.0  ;;  %vm97_vm5 = vcmp.gt.f32.partialorder %v81_v27, 0.0 }
   0xb   :  { %v293_v36 = vpack.c.bf16 %v125_v33, %v124_v32  ;;  %v126_v37 = vsel %vm94_vm2, %v78_v24, %v110_v30  ;;  %v127_v38 = vsel %vm95_vm3, %v79_v25, %v111_v31  ;;  %v112_v39 = vmul.f32 0.2, %v80_v26 }
   0xc   :  { %v298_v40 = vpack.c.bf16 %v127_v38, %v126_v37  ;;  %v113_v41 = vmul.f32 0.2, %v81_v27  ;;  %v276_v45 = vunpack.c.l.bf16 %v333_v34  ;;  %v277_v46 = vunpack.c.h.bf16 %v333_v34 }
   0xd   :  { %294 = vst [vmem:[%s458_s3] sm:$0xff] %v293_v36   ;;  %v128_v44 = vsel %vm96_vm4, %v80_v26, %v112_v39  ;;  %v280_v47 = vunpack.c.l.bf16 %v334_v35  ;;  %vm98_vm6 = vcmp.gt.f32.partialorder %v82_v42, 0.0  ;;  %vm99_vm7 = vcmp.gt.f32.partialorder %v83_v43, 0.0 }
   0xe   :  { %337 = vst [vmem:[%s458_s3 + $0x8] sm:$0xff] %v298_v40   ;;  %v129_v49 = vsel %vm97_vm5, %v81_v27, %v113_v41  ;;  %v114_v50 = vmul.f32 0.2, %v82_v42  ;;  %v115_v52 = vmul.f32 0.2, %v83_v43  ;;  %v61_v53 = vmul.f32 %v276_v45, %v370_v1 }
   0xf   :  { %v303_v51 = vpack.c.bf16 %v129_v49, %v128_v44  ;;  %v62_v54 = vmul.f32 %v277_v46, %v370_v1  ;;  %v281_v56 = vunpack.c.h.bf16 %v334_v35  ;;  %v63_v57 = vmul.f32 %v280_v47, %v370_v1 }
  0x10   :  { %v130_v55 = vsel %vm98_vm6, %v82_v42, %v114_v50  ;;  %v284_v58 = vunpack.c.l.bf16 %v335_v48  ;;  %v131_v59 = vsel %vm99_vm7, %v83_v43, %v115_v52  ;;  %v84_v60 = vadd.f32 %v384_v7, %v61_v53 }
  0x11   :  { %338 = vst [vmem:[%s458_s3 + $0x10] sm:$0xff] %v303_v51   ;;  %v85_v61 = vadd.f32 %v384_v7, %v62_v54  ;;  %v285_v62 = vunpack.c.h.bf16 %v335_v48  ;;  %v308_v63 = vpack.c.bf16 %v131_v59, %v130_v55  ;;  %v64_v0 = vmul.f32 %v281_v56, %v370_v1 }
  0x12   :  { %v86_v2 = vadd.f32 %v384_v7, %v63_v57  ;;  %v65_v3 = vmul.f32 %v284_v58, %v370_v1  ;;  %vm100_vm8 = vcmp.gt.f32.partialorder %v84_v60, 0.0  ;;  %v116_v5 = vmul.f32 0.2, %v84_v60 }
  0x13   :  { %vm101_vm9 = vcmp.gt.f32.partialorder %v85_v61, 0.0  ;;  %v117_v6 = vmul.f32 0.2, %v85_v61  ;;  %339 = vst [vmem:[%s458_s3 + $0x18] sm:$0xff] %v308_v63   ;;  %v87_v8 = vadd.f32 %v384_v7, %v64_v0  ;;  %v66_v10 = vmul.f32 %v285_v62, %v370_v1 }
  0x14   :  { %vm102_vm10 = vcmp.gt.f32.partialorder %v86_v2, 0.0  ;;  %v118_v9 = vmul.f32 0.2, %v86_v2  ;;  %v132_v11 = vsel %vm100_vm8, %v84_v60, %v116_v5  ;;  %v88_v13 = vadd.f32 %v384_v7, %v65_v3 }
  0x15   :  { %v133_v12 = vsel %vm101_vm9, %v85_v61, %v117_v6  ;;  %v288_v14 = vunpack.c.l.bf16 %v336_v4  ;;  %vm103_vm11 = vcmp.gt.f32.partialorder %v87_v8, 0.0  ;;  %v119_v16 = vmul.f32 0.2, %v87_v8 }
  0x16   :  { %v313_v15 = vpack.c.bf16 %v133_v12, %v132_v11  ;;  %v134_v17 = vsel %vm102_vm10, %v86_v2, %v118_v9  ;;  %v89_v18 = vadd.f32 %v384_v7, %v66_v10  ;;  %vm104_vm12 = vcmp.gt.f32.partialorder %v88_v13, 0.0 }
  0x17   :  { %v120_v19 = vmul.f32 0.2, %v88_v13  ;;  %v289_v20 = vunpack.c.h.bf16 %v336_v4  ;;  %v135_v21 = vsel %vm103_vm11, %v87_v8, %v119_v16  ;;  %v67_v22 = vmul.f32 %v288_v14, %v370_v1 }
  0x18   :  { %340 = vst [vmem:[%s458_s3 + $0x20] sm:$0xff] %v313_v15   ;;  %v318_v23 = vpack.c.bf16 %v135_v21, %v134_v17  ;;  %vm105_vm13 = vcmp.gt.f32.partialorder %v89_v18, 0.0  ;;  %v121_v24 = vmul.f32 0.2, %v89_v18 }
  0x19   :  { %v136_v25 = vsel %vm104_vm12, %v88_v13, %v120_v19  ;;  %v68_v26 = vmul.f32 %v289_v20, %v370_v1  ;;  %v90_v27 = vadd.f32 %v384_v7, %v67_v22 }
  0x1a   :  { %341 = vst [vmem:[%s458_s3 + $0x28] sm:$0xff] %v318_v23   ;;  %v137_v28 = vsel %vm105_vm13, %v89_v18, %v121_v24 }
  0x1b   :  { %v323_v29 = vpack.c.bf16 %v137_v28, %v136_v25  ;;  %v91_v30 = vadd.f32 %v384_v7, %v68_v26  ;;  %vm106_vm14 = vcmp.gt.f32.partialorder %v90_v27, 0.0  ;;  %v122_v31 = vmul.f32 0.2, %v90_v27 }
  0x1d   :  { %342 = vst [vmem:[%s458_s3 + $0x30] sm:$0xff] %v323_v29   ;;  %vm107_vm15 = vcmp.gt.f32.partialorder %v91_v30, 0.0  ;;  %v123_v32 = vmul.f32 0.2, %v91_v30  ;;  %v138_v33 = vsel %vm106_vm14, %v90_v27, %v122_v31 }
  0x1f   :  { %v139_v1 = vsel %vm107_vm15, %v91_v30, %v123_v32 }
  0x20   :  { %v328_v34 = vpack.c.bf16 %v139_v1, %v138_v33 }
  0x22   :  { %343 = vst [vmem:[%s458_s3 + $0x38] sm:$0xff] %v328_v34  }

// kernel: generator_forward.15
= control target key start
LH: loop header
LB: loop body
LE: loop exit
PB: predicated region body
PF: predicated region fallthrough
CT: control target
= control target key end

     0   :  { %s728_s1 = inlined_call_operand.vmem [shape: bf16[1,128,128], index: 1, kind: input, shape index: {}]   ;;  %s729_s0 = inlined_call_operand.vmem [shape: bf16[1,128,128], index: 0, kind: input, shape index: {}]   ;;  %s730_s2 = inlined_call_operand.vmem [shape: bf16[1,128,128], index: 2, kind: output, shape index: {0}]   ;;  %s731_s3 = inlined_call_operand.vmem [shape: f32[1,1,8,128], index: 3, kind: output, shape index: {1}]  }
   0x1   :  { %v617_v0 = vld [vmem:[%s728_s1] sm:$0xff]   ;;  %v618_v1 = vld [vmem:[%s728_s1 + $0x8] sm:$0xff]   ;;  %v619_v2 = vld [vmem:[%s728_s1 + $0x10] sm:$0xff]  }
   0x2   :  { %569 = vmatprep.subr.bf16.mxu0 %v617_v0  ;;  %601 = vmatprep.subr.bf16.mxu1 %v617_v0  ;;  %v620_v3 = vld [vmem:[%s728_s1 + $0x18] sm:$0xff]   ;;  %v625_v4 = vld [vmem:[%s729_s0] sm:$0xff]   ;;  %v622_v7 = vld [vmem:[%s728_s1 + $0x28] sm:$0xff]  }
   0x3   :  { %570 = vmatpush3.bf16.msra.mxu0 %v617_v0  ;;  %609 = vmatpush3.bf16.msra.mxu1 %v617_v0  ;;  %v621_v5 = vld [vmem:[%s728_s1 + $0x20] sm:$0xff]   ;;  %v623_v8 = vld [vmem:[%s728_s1 + $0x30] sm:$0xff]   ;;  %v624_v9 = vld [vmem:[%s728_s1 + $0x38] sm:$0xff]  }
   0x4   :  { %571 = vmatprep.subr.bf16.mxu0 %v618_v1  ;;  %602 = vmatprep.subr.bf16.mxu1 %v618_v1  ;;  %v629_v6 = vld [vmem:[%s729_s0 + $0x20] sm:$0xff]   ;;  %v626_v10 = vld [vmem:[%s729_s0 + $0x8] sm:$0xff]   ;;  %v627_v12 = vld [vmem:[%s729_s0 + $0x10] sm:$0xff]  }
   0x5   :  { %585 = vmatprep.mubr.bf16.mxu0 %v625_v4  ;;  %593 = vmatprep.mubr.bf16.mxu1 %v629_v6  ;;  %v630_v11 = vld [vmem:[%s729_s0 + $0x28] sm:$0xff]   ;;  %v631_v13 = vld [vmem:[%s729_s0 + $0x30] sm:$0xff]   ;;  %v628_v14 = vld [vmem:[%s729_s0 + $0x18] sm:$0xff]  }
   0x6   :  { %v632_v15 = vld [vmem:[%s729_s0 + $0x38] sm:$0xff]  }
   0x7   :  { %572 = vmatpush3.bf16.msra.mxu0 %v618_v1  ;;  %610 = vmatpush3.bf16.msra.mxu1 %v618_v1 }
   0x8   :  { %573 = vmatprep.subr.bf16.mxu0 %v619_v2  ;;  %603 = vmatprep.subr.bf16.mxu1 %v619_v2 }
   0xb   :  { %574 = vmatpush3.bf16.msra.mxu0 %v619_v2  ;;  %611 = vmatpush3.bf16.msra.mxu1 %v619_v2 }
   0xc   :  { %575 = vmatprep.subr.bf16.mxu0 %v620_v3  ;;  %604 = vmatprep.subr.bf16.mxu1 %v620_v3 }
   0xf   :  { %576 = vmatpush3.bf16.msra.mxu0 %v620_v3  ;;  %612 = vmatpush3.bf16.msra.mxu1 %v620_v3 }
  0x10   :  { %577 = vmatprep.subr.bf16.mxu0 %v621_v5  ;;  %605 = vmatprep.subr.bf16.mxu1 %v621_v5 }
  0x13   :  { %578 = vmatpush3.bf16.msra.mxu0 %v621_v5  ;;  %613 = vmatpush3.bf16.msra.mxu1 %v621_v5 }
  0x14   :  { %579 = vmatprep.subr.bf16.mxu0 %v622_v7  ;;  %606 = vmatprep.subr.bf16.mxu1 %v622_v7 }
  0x17   :  { %580 = vmatpush3.bf16.msra.mxu0 %v622_v7  ;;  %614 = vmatpush3.bf16.msra.mxu1 %v622_v7 }
  0x18   :  { %581 = vmatprep.subr.bf16.mxu0 %v623_v8  ;;  %607 = vmatprep.subr.bf16.mxu1 %v623_v8 }
  0x1b   :  { %582 = vmatpush3.bf16.msra.mxu0 %v623_v8  ;;  %615 = vmatpush3.bf16.msra.mxu1 %v623_v8 }
  0x1c   :  { %583 = vmatprep.subr.bf16.mxu0 %v624_v9  ;;  %608 = vmatprep.subr.bf16.mxu1 %v624_v9 }
  0x1f   :  { %584 = vmatpush3.bf16.msra.mxu0 %v624_v9  ;;  %616 = vmatpush3.bf16.msra.mxu1 %v624_v9 }
  0x22   :  { %586 = vmatmul.mubr.bf16.vlgmr.msra.gmra.mrb[0].mxu0 %v626_v10  ;;  %594 = vmatmul.mubr.bf16.vlgmr.msra.gmra.mrb[0].mxu1 %v630_v11 }
  0x23   :  { %589 = vmatprep.mubr.bf16.mxu0 %v627_v12  ;;  %597 = vmatprep.mubr.bf16.mxu1 %v631_v13 }
  0x2a   :  { %590 = vmatmul.mubr.bf16.gmra.mrb[4].mxu0 %v628_v14  ;;  %598 = vmatmul.mubr.bf16.gmra.mrb[4].mxu1 %v632_v15 }
  0xf5   :  { %v587_v16 = vpop.f32.mrb[0].mxu0  ;;  %v595_v17 = vpop.f32.mrb[0].mxu1 }
  0xf6   :  { %v176_v18 = vpop.f32.mrb[1].mxu0  ;;  %v208_v19 = vpop.f32.mrb[1].mxu1  ;;  %v409_v31 = vmul.f32 %v587_v16, %v587_v16  ;;  %v417_v3 = vmul.f32 %v595_v17, %v595_v17 }
  0xf7   :  { %v588_v20 = vpop.f32.mrb[2].mxu0  ;;  %v596_v21 = vpop.f32.mrb[2].mxu1  ;;  %v407_v22 = vmul.f32 %v176_v18, %v176_v18  ;;  %v415_v61 = vmul.f32 %v208_v19, %v208_v19 }
  0xf8   :  { %v514_v23 = vpack.c.bf16 %v588_v20, %v587_v16  ;;  %v179_v24 = vpop.f32.mrb[3].mxu0  ;;  %v534_v25 = vpack.c.bf16 %v596_v21, %v595_v17  ;;  %v211_v26 = vpop.f32.mrb[3].mxu1  ;;  %v410_v34 = vmul.f32 %v588_v20, %v588_v20  ;;  %v418_v6 = vmul.f32 %v596_v21, %v596_v21 }
  0xf9   :  { %v509_v27 = vpack.c.bf16 %v179_v24, %v176_v18  ;;  %v386_v28 = vadd.f32 %v179_v24, %v176_v18  ;;  %v408_v29 = vmul.f32 %v179_v24, %v179_v24  ;;  %v529_v30 = vpack.c.bf16 %v211_v26, %v208_v19 }
  0xfa   :  { %546 = vst [vmem:[%s730_s2 + $0x8] sm:$0xff] %v514_v23   ;;  %550 = vst [vmem:[%s730_s2 + $0x28] sm:$0xff] %v534_v25   ;;  %v416_v2 = vmul.f32 %v211_v26, %v211_v26 }
  0xfb   :  { %510 = vst [vmem:[%s730_s2] sm:$0xff] %v509_v27   ;;  %v387_v32 = vadd.f32 %v587_v16, %v386_v28  ;;  %v423_v33 = vadd.f32 %v408_v29, %v407_v22  ;;  %549 = vst [vmem:[%s730_s2 + $0x20] sm:$0xff] %v529_v30  }
  0xfd   :  { %v424_v35 = vadd.f32 %v423_v33, %v409_v31  ;;  %v591_v36 = vpop.f32.mrb[4].mxu0  ;;  %v388_v37 = vadd.f32 %v588_v20, %v387_v32  ;;  %v599_v38 = vpop.f32.mrb[4].mxu1 }
  0xfe   :  { %v192_v39 = vpop.f32.mrb[5].mxu0  ;;  %v224_v40 = vpop.f32.mrb[5].mxu1  ;;  %v413_v55 = vmul.f32 %v591_v36, %v591_v36  ;;  %v421_v15 = vmul.f32 %v599_v38, %v599_v38 }
  0xff   :  { %v389_v41 = vadd.f32 %v388_v37, %v192_v39  ;;  %v411_v42 = vmul.f32 %v192_v39, %v192_v39  ;;  %v425_v43 = vadd.f32 %v424_v35, %v410_v34  ;;  %v592_v44 = vpop.f32.mrb[6].mxu0  ;;  %v600_v45 = vpop.f32.mrb[6].mxu1  ;;  %v419_v9 = vmul.f32 %v224_v40, %v224_v40 }
 0x100   :  { %v524_v46 = vpack.c.bf16 %v592_v44, %v591_v36  ;;  %v195_v47 = vpop.f32.mrb[7].mxu0  ;;  %v544_v48 = vpack.c.bf16 %v600_v45, %v599_v38  ;;  %v227_v49 = vpop.f32.mrb[7].mxu1  ;;  %v414_v58 = vmul.f32 %v592_v44, %v592_v44 }
 0x101   :  { %v426_v50 = vadd.f32 %v425_v43, %v411_v42  ;;  %v519_v51 = vpack.c.bf16 %v195_v47, %v192_v39  ;;  %v390_v52 = vadd.f32 %v389_v41, %v195_v47  ;;  %v412_v53 = vmul.f32 %v195_v47, %v195_v47 }
 0x102   :  { %548 = vst [vmem:[%s730_s2 + $0x18] sm:$0xff] %v524_v46   ;;  %552 = vst [vmem:[%s730_s2 + $0x38] sm:$0xff] %v544_v48   ;;  %v539_v54 = vpack.c.bf16 %v227_v49, %v224_v40  ;;  %v420_v14 = vmul.f32 %v227_v49, %v227_v49 }
 0x103   :  { %547 = vst [vmem:[%s730_s2 + $0x10] sm:$0xff] %v519_v51   ;;  %v391_v56 = vadd.f32 %v591_v36, %v390_v52  ;;  %v427_v57 = vadd.f32 %v426_v50, %v412_v53 }
 0x104   :  { %551 = vst [vmem:[%s730_s2 + $0x30] sm:$0xff] %v539_v54  }
 0x105   :  { %v428_v59 = vadd.f32 %v427_v57, %v413_v55  ;;  %v392_v60 = vadd.f32 %v592_v44, %v391_v56 }
 0x107   :  { %v393_v62 = vadd.f32 %v392_v60, %v208_v19  ;;  %v429_v63 = vadd.f32 %v428_v59, %v414_v58  ;;  %v422_v19 = vmul.f32 %v600_v45, %v600_v45 }
 0x109   :  { %v430_v0 = vadd.f32 %v429_v63, %v415_v61  ;;  %v394_v1 = vadd.f32 %v393_v62, %v211_v26  ;;  %v319_v26 = vlaneseq }
 0x10b   :  { %v395_v4 = vadd.f32 %v595_v17, %v394_v1  ;;  %v431_v5 = vadd.f32 %v430_v0, %v416_v2  ;;  %v320_v30 = vshrl.u32 %v319_v26, 7 }
 0x10d   :  { %v432_v7 = vadd.f32 %v431_v5, %v417_v3  ;;  %v396_v8 = vadd.f32 %v596_v21, %v395_v4  ;;  %vm444_vm0 = vcmp.eq.s32.totalorder %v320_v30, 0  ;;  %vm446_vm1 = vcmp.eq.s32.totalorder %v320_v30, 1 }
 0x10f   :  { %v397_v10 = vadd.f32 %v396_v8, %v224_v40  ;;  %v433_v11 = vadd.f32 %v432_v7, %v418_v6 }
 0x111   :  { %v434_v12 = vadd.f32 %v433_v11, %v419_v9  ;;  %v398_v13 = vadd.f32 %v397_v10, %v227_v49 }
 0x113   :  { %v399_v16 = vadd.f32 %v599_v38, %v398_v13  ;;  %v435_v18 = vadd.f32 %v434_v12, %v420_v14 }
 0x115   :  { %v400_v20 = vadd.f32 %v600_v45, %v399_v16  ;;  %v436_v22 = vadd.f32 %v435_v18, %v421_v15 }
 0x117   :  { %v401_v23 = vrot.slane %v400_v20, 4  ;;  %v437_v24 = vadd.f32 %v436_v22, %v422_v19 }
 0x119   :  { %v402_v25 = vadd.f32 %v401_v23, %v400_v20  ;;  %v438_v17 = vrot.slane %v437_v24, 4 }
 0x11b   :  { %v403_v27 = vrot.slane %v402_v25, 2  ;;  %v439_v28 = vadd.f32 %v438_v17, %v437_v24 }
 0x11d   :  { %v404_v21 = vadd.f32 %v403_v27, %v402_v25  ;;  %v440_v29 = vrot.slane %v439_v28, 2 }
 0x11f   :  { %v405_v31 = vrot.slane %v404_v21, 1  ;;  %v441_v32 = vadd.f32 %v440_v29, %v439_v28 }
 0x121   :  { %v406_v33 = vadd.f32 %v405_v31, %v404_v21  ;;  %v442_v34 = vrot.slane %v441_v32, 1 }
 0x123   :  { %v443_v35 = vadd.f32 %v442_v34, %v441_v32  ;;  %v445_v36 = vsel %vm444_vm0, %v406_v33, 0.0 }
 0x125   :  { %v447_v37 = vsel %vm446_vm1, %v443_v35, 0.0 }
 0x126   :  { %v448_v38 = vadd.f32 %v447_v37, %v445_v36 }
 0x128   :  { %449 = vst [vmem:[%s731_s3] sm:$0xff] %v448_v38 }

// kernel: generator_forward.18
= control target key start
LH: loop header
LB: loop body
LE: loop exit
PB: predicated region body
PF: predicated region fallthrough
CT: control target
= control target key end

     0   :  { %s148_s0 = inlined_call_operand.vmem [shape: bf16[1,32,128], index: 0, kind: input, shape index: {}]   ;;  %s149_s1 = inlined_call_operand.vmem [shape: f32[1,128], index: 1, kind: input, shape index: {}]   ;;  %s150_s2 = inlined_call_operand.vmem [shape: f32[1,128], index: 2, kind: input, shape index: {}]   ;;  %s151_s3 = inlined_call_operand.vmem [shape: bf16[1,32,128], index: 3, kind: output, shape index: {}]  }
   0x1   :  { %v91_v0 = vld [vmem:[%s148_s0] sm:$0xff]   ;;  %v108_v4 = vld [vmem:[%s148_s0 + $0x8] sm:$0xff]  }
   0x2   :  { %v80_v1 = vld [vmem:[%s149_s1] ss:$0 sm:$0xff]  ;;  %v92_v2 = vunpack.c.l.bf16 %v91_v0  ;;  %v93_v3 = vunpack.c.h.bf16 %v91_v0  ;;  %v96_v6 = vunpack.c.l.bf16 %v108_v4  ;;  %v97_v7 = vunpack.c.h.bf16 %v108_v4 }
   0x3   :  { %v81_v5 = vld [vmem:[%s150_s2] ss:$0 sm:$0xff] }
   0x4   :  { %v29_v8 = vmul.f32 %v92_v2, %v80_v1  ;;  %v30_v9 = vmul.f32 %v93_v3, %v80_v1  ;;  %v31_v10 = vmul.f32 %v96_v6, %v80_v1  ;;  %v32_v11 = vmul.f32 %v97_v7, %v80_v1 }
   0x6   :  { %v40_v12 = vadd.f32 %v81_v5, %v29_v8  ;;  %v41_v13 = vadd.f32 %v81_v5, %v30_v9  ;;  %v42_v14 = vadd.f32 %v81_v5, %v31_v10  ;;  %v43_v15 = vadd.f32 %v81_v5, %v32_v11 }
   0x8   :  { %vm44_vm0 = vcmp.gt.f32.partialorder %v40_v12, 0.0  ;;  %vm45_vm1 = vcmp.gt.f32.partialorder %v41_v13, 0.0  ;;  %v48_v16 = vmul.f32 0.2, %v40_v12  ;;  %v49_v17 = vmul.f32 0.2, %v41_v13 }
   0x9   :  { %vm46_vm2 = vcmp.gt.f32.partialorder %v42_v14, 0.0  ;;  %vm47_vm3 = vcmp.gt.f32.partialorder %v43_v15, 0.0  ;;  %v50_v18 = vmul.f32 0.2, %v42_v14  ;;  %v51_v19 = vmul.f32 0.2, %v43_v15 }
   0xa   :  { %v52_v20 = vsel %vm44_vm0, %v40_v12, %v48_v16  ;;  %v53_v21 = vsel %vm45_vm1, %v41_v13, %v49_v17 }
   0xb   :  { %v101_v22 = vpack.c.bf16 %v53_v21, %v52_v20  ;;  %v54_v23 = vsel %vm46_vm2, %v42_v14, %v50_v18  ;;  %v55_v24 = vsel %vm47_vm3, %v43_v15, %v51_v19 }
   0xc   :  { %v106_v25 = vpack.c.bf16 %v55_v24, %v54_v23 }
   0xd   :  { %102 = vst [vmem:[%s151_s3] sm:$0xff] %v101_v22  }
   0xe   :  { %109 = vst [vmem:[%s151_s3 + $0x8] sm:$0xff] %v106_v25  }

// kernel: generator_forward.17
= control target key start
LH: loop header
LB: loop body
LE: loop exit
PB: predicated region body
PF: predicated region fallthrough
CT: control target
= control target key end

     0   :  { %s1437_s1 = inlined_call_operand.vmem [shape: bf16[1,1024,128], index: 1, kind: input, shape index: {}]   ;;  %s1438_s0 = inlined_call_operand.vmem [shape: bf16[1,32,1024], index: 0, kind: input, shape index: {}]   ;;  %s1439_s2 = inlined_call_operand.vmem [shape: bf16[1,32,128], index: 2, kind: output, shape index: {0}]   ;;  %s1440_s3 = inlined_call_operand.vmem [shape: f32[1,1,8,128], index: 3, kind: output, shape index: {1}]  }
   0x1   :  { %v1104_v0 = vld [vmem:[%s1437_s1 + $0x40] sm:$0xff]   ;;  %v1108_v4 = vld [vmem:[%s1437_s1 + $0x48] sm:$0xff]   ;;  %v1112_v8 = vld [vmem:[%s1437_s1 + $0x50] sm:$0xff]  }
   0x2   :  { %v1105_v1 = vld [vmem:[%s1437_s1 + $0xc0] sm:$0xff]   ;;  %992 = vmatprep.subr.bf16.mxu0 %v1104_v0  ;;  %v1109_v5 = vld [vmem:[%s1437_s1 + $0xc8] sm:$0xff]   ;;  %v1113_v9 = vld [vmem:[%s1437_s1 + $0xd0] sm:$0xff]  }
   0x3   :  { %v1106_v2 = vld [vmem:[%s1437_s1] sm:$0xff]   ;;  %1020 = vmatprep.subr.bf16.mxu1 %v1105_v1  ;;  %v1110_v6 = vld [vmem:[%s1437_s1 + $0x8] sm:$0xff]   ;;  %v1114_v10 = vld [vmem:[%s1437_s1 + $0x10] sm:$0xff]  }
   0x4   :  { %v1107_v3 = vld [vmem:[%s1437_s1 + $0x80] sm:$0xff]   ;;  %993 = vmatpush3.bf16.msra.mxu0 %v1106_v2  ;;  %v1111_v7 = vld [vmem:[%s1437_s1 + $0x88] sm:$0xff]   ;;  %v1115_v11 = vld [vmem:[%s1437_s1 + $0x90] sm:$0xff]  }
   0x5   :  { %1021 = vmatpush3.bf16.msra.mxu1 %v1107_v3  ;;  %994 = vmatprep.subr.bf16.mxu0 %v1108_v4  ;;  %v1116_v12 = vld [vmem:[%s1437_s1 + $0x58] sm:$0xff]   ;;  %v1120_v16 = vld [vmem:[%s1437_s1 + $0x60] sm:$0xff]   ;;  %v1124_v20 = vld [vmem:[%s1437_s1 + $0x68] sm:$0xff]  }
   0x6   :  { %1022 = vmatprep.subr.bf16.mxu1 %v1109_v5  ;;  %v1117_v13 = vld [vmem:[%s1437_s1 + $0xd8] sm:$0xff]   ;;  %v1121_v17 = vld [vmem:[%s1437_s1 + $0xe0] sm:$0xff]   ;;  %v1125_v21 = vld [vmem:[%s1437_s1 + $0xe8] sm:$0xff]  }
   0x7   :  { %v1118_v14 = vld [vmem:[%s1437_s1 + $0x18] sm:$0xff]   ;;  %v1122_v18 = vld [vmem:[%s1437_s1 + $0x20] sm:$0xff]   ;;  %v1126_v22 = vld [vmem:[%s1437_s1 + $0x28] sm:$0xff]  }
   0x8   :  { %995 = vmatpush3.bf16.msra.mxu0 %v1110_v6  ;;  %v1119_v15 = vld [vmem:[%s1437_s1 + $0x98] sm:$0xff]   ;;  %v1123_v19 = vld [vmem:[%s1437_s1 + $0xa0] sm:$0xff]   ;;  %v1127_v23 = vld [vmem:[%s1437_s1 + $0xa8] sm:$0xff]  }
   0x9   :  { %1023 = vmatpush3.bf16.msra.mxu1 %v1111_v7  ;;  %996 = vmatprep.subr.bf16.mxu0 %v1112_v8  ;;  %v1128_v24 = vld [vmem:[%s1437_s1 + $0x70] sm:$0xff]   ;;  %v1132_v28 = vld [vmem:[%s1437_s1 + $0x78] sm:$0xff]   ;;  %v14_v32 = vld [vmem:[%s1438_s0] sm:$0xff] }
   0xa   :  { %1024 = vmatprep.subr.bf16.mxu1 %v1113_v9  ;;  %v1129_v25 = vld [vmem:[%s1437_s1 + $0xf0] sm:$0xff]   ;;  %v1133_v29 = vld [vmem:[%s1437_s1 + $0xf8] sm:$0xff]   ;;  %v18_v33 = vld [vmem:[%s1438_s0 + $0x20] sm:$0xff] }
   0xb   :  { %v1130_v26 = vld [vmem:[%s1437_s1 + $0x30] sm:$0xff]   ;;  %v1134_v30 = vld [vmem:[%s1437_s1 + $0x38] sm:$0xff]   ;;  %v15_v34 = vld [vmem:[%s1438_s0 + $0x8] sm:$0xff]  ;;  %v893_v35 = vcombine.low %v14_v32, %v18_v33  ;;  %v894_v36 = vcombine.high %v14_v32, %v18_v33 }
   0xc   :  { %997 = vmatpush3.bf16.msra.mxu0 %v1114_v10  ;;  %v1131_v27 = vld [vmem:[%s1437_s1 + $0xb0] sm:$0xff]   ;;  %v1135_v31 = vld [vmem:[%s1437_s1 + $0xb8] sm:$0xff]   ;;  %v19_v37 = vld [vmem:[%s1438_s0 + $0x28] sm:$0xff] }
   0xd   :  { %1025 = vmatpush3.bf16.msra.mxu1 %v1115_v11  ;;  %998 = vmatprep.subr.bf16.mxu0 %v1116_v12  ;;  %v895_v38 = vcombine.low %v15_v34, %v19_v37  ;;  %v896_v39 = vcombine.high %v15_v34, %v19_v37  ;;  %v1136_v40 = vld [vmem:[%s1437_s1 + $0x140] sm:$0xff]   ;;  %v1140_v44 = vld [vmem:[%s1437_s1 + $0x148] sm:$0xff]   ;;  %v1144_v48 = vld [vmem:[%s1437_s1 + $0x150] sm:$0xff]  }
   0xe   :  { %1026 = vmatprep.subr.bf16.mxu1 %v1117_v13  ;;  %654 = vmatprep.mubr.bf16.mxu0 %v894_v36  ;;  %v1137_v41 = vld [vmem:[%s1437_s1 + $0x1c0] sm:$0xff]   ;;  %v1141_v45 = vld [vmem:[%s1437_s1 + $0x1c8] sm:$0xff]   ;;  %v1145_v49 = vld [vmem:[%s1437_s1 + $0x1d0] sm:$0xff]  }
   0xf   :  { %703 = vmatprep.mubr.bf16.mxu1 %v896_v39  ;;  %v1138_v42 = vld [vmem:[%s1437_s1 + $0x100] sm:$0xff]   ;;  %v1142_v46 = vld [vmem:[%s1437_s1 + $0x108] sm:$0xff]   ;;  %v1146_v50 = vld [vmem:[%s1437_s1 + $0x110] sm:$0xff]  }
  0x10   :  { %999 = vmatpush3.bf16.msra.mxu0 %v1118_v14  ;;  %v1139_v43 = vld [vmem:[%s1437_s1 + $0x180] sm:$0xff]   ;;  %v1143_v47 = vld [vmem:[%s1437_s1 + $0x188] sm:$0xff]   ;;  %v1147_v51 = vld [vmem:[%s1437_s1 + $0x190] sm:$0xff]  }
  0x11   :  { %1027 = vmatpush3.bf16.msra.mxu1 %v1119_v15  ;;  %1000 = vmatprep.subr.bf16.mxu0 %v1120_v16  ;;  %v1148_v52 = vld [vmem:[%s1437_s1 + $0x158] sm:$0xff]   ;;  %v1152_v56 = vld [vmem:[%s1437_s1 + $0x160] sm:$0xff]   ;;  %v23_v63 = vld [vmem:[%s1438_s0 + $0x48] sm:$0xff] }
  0x12   :  { %1028 = vmatprep.subr.bf16.mxu1 %v1121_v17  ;;  %v1149_v53 = vld [vmem:[%s1437_s1 + $0x1d8] sm:$0xff]   ;;  %v1153_v57 = vld [vmem:[%s1437_s1 + $0x1e0] sm:$0xff]   ;;  %v27_v0 = vld [vmem:[%s1438_s0 + $0x68] sm:$0xff] }
  0x13   :  { %v1150_v54 = vld [vmem:[%s1437_s1 + $0x118] sm:$0xff]   ;;  %v1154_v58 = vld [vmem:[%s1437_s1 + $0x120] sm:$0xff]   ;;  %v904_v2 = vcombine.high %v23_v63, %v27_v0  ;;  %v1156_v3 = vld [vmem:[%s1437_s1 + $0x168] sm:$0xff]   ;;  %v903_v4 = vcombine.low %v23_v63, %v27_v0 }
  0x14   :  { %1001 = vmatpush3.bf16.msra.mxu0 %v1122_v18  ;;  %v1151_v55 = vld [vmem:[%s1437_s1 + $0x198] sm:$0xff]   ;;  %v1155_v59 = vld [vmem:[%s1437_s1 + $0x1a0] sm:$0xff]   ;;  %v1157_v5 = vld [vmem:[%s1437_s1 + $0x1e8] sm:$0xff]  }
  0x15   :  { %1029 = vmatpush3.bf16.msra.mxu1 %v1123_v19  ;;  %1002 = vmatprep.subr.bf16.mxu0 %v1124_v20  ;;  %v22_v60 = vld [vmem:[%s1438_s0 + $0x40] sm:$0xff]  ;;  %v1158_v6 = vld [vmem:[%s1437_s1 + $0x128] sm:$0xff]   ;;  %v1160_v8 = vld [vmem:[%s1437_s1 + $0x170] sm:$0xff]  }
  0x16   :  { %1030 = vmatprep.subr.bf16.mxu1 %v1125_v21  ;;  %v26_v61 = vld [vmem:[%s1438_s0 + $0x60] sm:$0xff]  ;;  %v1159_v7 = vld [vmem:[%s1437_s1 + $0x1a8] sm:$0xff]   ;;  %v1161_v9 = vld [vmem:[%s1437_s1 + $0x1f0] sm:$0xff]  }
  0x17   :  { %v902_v62 = vcombine.high %v22_v60, %v26_v61  ;;  %v901_v1 = vcombine.low %v22_v60, %v26_v61  ;;  %v1162_v10 = vld [vmem:[%s1437_s1 + $0x130] sm:$0xff]   ;;  %v1164_v12 = vld [vmem:[%s1437_s1 + $0x178] sm:$0xff]  }
  0x18   :  { %1003 = vmatpush3.bf16.msra.mxu0 %v1126_v22  ;;  %v1163_v11 = vld [vmem:[%s1437_s1 + $0x1b0] sm:$0xff]   ;;  %v1165_v13 = vld [vmem:[%s1437_s1 + $0x1f8] sm:$0xff]  }
  0x19   :  { %1031 = vmatpush3.bf16.msra.mxu1 %v1127_v23  ;;  %1004 = vmatprep.subr.bf16.mxu0 %v1128_v24  ;;  %v1166_v14 = vld [vmem:[%s1437_s1 + $0x138] sm:$0xff]   ;;  %v16_v16 = vld [vmem:[%s1438_s0 + $0x10] sm:$0xff] }
  0x1a   :  { %1032 = vmatprep.subr.bf16.mxu1 %v1129_v25  ;;  %v1167_v15 = vld [vmem:[%s1437_s1 + $0x1b8] sm:$0xff]   ;;  %v20_v17 = vld [vmem:[%s1438_s0 + $0x30] sm:$0xff] }
  0x1b   :  { %v17_v18 = vld [vmem:[%s1438_s0 + $0x18] sm:$0xff]  ;;  %v897_v20 = vcombine.low %v16_v16, %v20_v17  ;;  %v898_v21 = vcombine.high %v16_v16, %v20_v17  ;;  %v24_v24 = vld [vmem:[%s1438_s0 + $0x50] sm:$0xff] }
  0x1c   :  { %1005 = vmatpush3.bf16.msra.mxu0 %v1130_v26  ;;  %v21_v19 = vld [vmem:[%s1438_s0 + $0x38] sm:$0xff]  ;;  %v28_v25 = vld [vmem:[%s1438_s0 + $0x70] sm:$0xff] }
  0x1d   :  { %1033 = vmatpush3.bf16.msra.mxu1 %v1131_v27  ;;  %1006 = vmatprep.subr.bf16.mxu0 %v1132_v28  ;;  %v899_v22 = vcombine.low %v17_v18, %v21_v19  ;;  %v900_v23 = vcombine.high %v17_v18, %v21_v19  ;;  %v25_v26 = vld [vmem:[%s1438_s0 + $0x58] sm:$0xff]  ;;  %v906_v27 = vcombine.high %v24_v24, %v28_v25 }
  0x1e   :  { %1034 = vmatprep.subr.bf16.mxu1 %v1133_v29  ;;  %v29_v28 = vld [vmem:[%s1438_s0 + $0x78] sm:$0xff] }
  0x1f   :  { %v908_v29 = vcombine.high %v25_v26, %v29_v28 }
  0x20   :  { %1007 = vmatpush3.bf16.msra.mxu0 %v1134_v30  ;;  %v905_v30 = vcombine.low %v24_v24, %v28_v25 }
  0x21   :  { %1035 = vmatpush3.bf16.msra.mxu1 %v1135_v31  ;;  %1048 = vmatprep.subr.bf16.mxu0 %v1136_v40  ;;  %v907_v31 = vcombine.low %v25_v26, %v29_v28 }
  0x22   :  { %1076 = vmatprep.subr.bf16.mxu1 %v1137_v41 }
  0x23   :  { %655 = vmatmul.mubr.bf16.vlgmr.msra.gmra.mrb[0].mxu0 %v893_v35 }
  0x24   :  { %704 = vmatmul.mubr.bf16.vlgmr.msra.gmra.mrb[0].mxu1 %v895_v38  ;;  %1049 = vmatpush3.bf16.msra.mxu0 %v1138_v42 }
  0x25   :  { %1077 = vmatpush3.bf16.msra.mxu1 %v1139_v43  ;;  %1050 = vmatprep.subr.bf16.mxu0 %v1140_v44 }
  0x26   :  { %1078 = vmatprep.subr.bf16.mxu1 %v1141_v45  ;;  %662 = vmatprep.mubr.bf16.mxu0 %v902_v62 }
  0x27   :  { %711 = vmatprep.mubr.bf16.mxu1 %v904_v2 }
  0x28   :  { %1051 = vmatpush3.bf16.msra.mxu0 %v1142_v46 }
  0x29   :  { %1079 = vmatpush3.bf16.msra.mxu1 %v1143_v47  ;;  %1052 = vmatprep.subr.bf16.mxu0 %v1144_v48 }
  0x2a   :  { %1080 = vmatprep.subr.bf16.mxu1 %v1145_v49 }
  0x2b   :  { %663 = vmatmul.mubr.bf16.gmra.mrb[4].mxu0 %v901_v1 }
  0x2c   :  { %1053 = vmatpush3.bf16.msra.mxu0 %v1146_v50  ;;  %712 = vmatmul.mubr.bf16.gmra.mrb[4].mxu1 %v903_v4 }
  0x2d   :  { %1081 = vmatpush3.bf16.msra.mxu1 %v1147_v51  ;;  %1054 = vmatprep.subr.bf16.mxu0 %v1148_v52 }
  0x2e   :  { %1082 = vmatprep.subr.bf16.mxu1 %v1149_v53  ;;  %752 = vmatprep.mubr.bf16.mxu0 %v898_v21 }
  0x2f   :  { %801 = vmatprep.mubr.bf16.mxu1 %v900_v23 }
  0x30   :  { %1055 = vmatpush3.bf16.msra.mxu0 %v1150_v54 }
  0x31   :  { %1083 = vmatpush3.bf16.msra.mxu1 %v1151_v55  ;;  %1056 = vmatprep.subr.bf16.mxu0 %v1152_v56 }
  0x32   :  { %1084 = vmatprep.subr.bf16.mxu1 %v1153_v57 }
  0x34   :  { %1057 = vmatpush3.bf16.msra.mxu0 %v1154_v58 }
  0x35   :  { %1085 = vmatpush3.bf16.msra.mxu1 %v1155_v59  ;;  %1058 = vmatprep.subr.bf16.mxu0 %v1156_v3 }
  0x36   :  { %1086 = vmatprep.subr.bf16.mxu1 %v1157_v5 }
  0x38   :  { %1059 = vmatpush3.bf16.msra.mxu0 %v1158_v6 }
  0x39   :  { %1087 = vmatpush3.bf16.msra.mxu1 %v1159_v7  ;;  %1060 = vmatprep.subr.bf16.mxu0 %v1160_v8 }
  0x3a   :  { %1088 = vmatprep.subr.bf16.mxu1 %v1161_v9 }
  0x3c   :  { %1061 = vmatpush3.bf16.msra.mxu0 %v1162_v10 }
  0x3d   :  { %1089 = vmatpush3.bf16.msra.mxu1 %v1163_v11  ;;  %1062 = vmatprep.subr.bf16.mxu0 %v1164_v12 }
  0x3e   :  { %1090 = vmatprep.subr.bf16.mxu1 %v1165_v13 }
  0x40   :  { %1063 = vmatpush3.bf16.msra.mxu0 %v1166_v14 }
  0x41   :  { %1091 = vmatpush3.bf16.msra.mxu1 %v1167_v15 }
  0x43   :  { %753 = vmatmul.mubr.bf16.vlgmr.msra.gmra.mrb[8].mxu0 %v897_v20 }
  0x44   :  { %802 = vmatmul.mubr.bf16.vlgmr.msra.gmra.mrb[8].mxu1 %v899_v22  ;;  %760 = vmatprep.mubr.bf16.mxu0 %v906_v27 }
  0x45   :  { %809 = vmatprep.mubr.bf16.mxu1 %v908_v29 }
  0x4b   :  { %761 = vmatmul.mubr.bf16.gmra.mrb[12].mxu0 %v905_v30 }
  0x4c   :  { %810 = vmatmul.mubr.bf16.gmra.mrb[12].mxu1 %v907_v31 }
  0xf6   :  { %v1008_v32 = vpop.f32.mrb[0].mxu0 }
  0xf7   :  { %v1036_v33 = vpop.f32.mrb[0].mxu1  ;;  %v1009_v34 = vpop.f32.mrb[1].mxu0 }
  0xf8   :  { %v1010_v35 = vadd.f32 %v1009_v34, %v1008_v32  ;;  %v1037_v36 = vpop.f32.mrb[1].mxu1  ;;  %v1011_v37 = vpop.f32.mrb[2].mxu0 }
  0xf9   :  { %v1038_v38 = vadd.f32 %v1037_v36, %v1036_v33  ;;  %v1039_v39 = vpop.f32.mrb[2].mxu1  ;;  %v1012_v40 = vpop.f32.mrb[3].mxu0 }
  0xfa   :  { %v1013_v41 = vadd.f32 %v1012_v40, %v1011_v37  ;;  %v1040_v42 = vpop.f32.mrb[3].mxu1 }
  0xfb   :  { %v706_v43 = vadd.f32 %v1038_v38, %v1010_v35  ;;  %v1041_v44 = vadd.f32 %v1040_v42, %v1039_v39 }
  0xfd   :  { %v709_v45 = vadd.f32 %v1041_v44, %v1013_v41 }
  0xfe   :  { %v1014_v46 = vpop.f32.mrb[4].mxu0 }
  0xff   :  { %v1042_v47 = vpop.f32.mrb[4].mxu1  ;;  %v1015_v48 = vpop.f32.mrb[5].mxu0 }
 0x100   :  { %v1016_v49 = vadd.f32 %v1015_v48, %v1014_v46  ;;  %v1043_v50 = vpop.f32.mrb[5].mxu1  ;;  %v1017_v51 = vpop.f32.mrb[6].mxu0 }
 0x101   :  { %v1044_v52 = vadd.f32 %v1043_v50, %v1042_v47  ;;  %v1045_v53 = vpop.f32.mrb[6].mxu1  ;;  %v1018_v54 = vpop.f32.mrb[7].mxu0 }
 0x102   :  { %v1019_v55 = vadd.f32 %v1018_v54, %v1017_v51  ;;  %v1046_v56 = vpop.f32.mrb[7].mxu1 }
 0x103   :  { %v714_v57 = vadd.f32 %v1044_v52, %v1016_v49  ;;  %v1047_v58 = vadd.f32 %v1046_v56, %v1045_v53 }
 0x105   :  { %v717_v59 = vadd.f32 %v1047_v58, %v1019_v55 }
 0x116   :  { %v1064_v60 = vpop.f32.mrb[8].mxu0 }
 0x117   :  { %v1092_v61 = vpop.f32.mrb[8].mxu1  ;;  %v1065_v62 = vpop.f32.mrb[9].mxu0 }
 0x118   :  { %v1093_v63 = vpop.f32.mrb[9].mxu1  ;;  %v1066_v0 = vadd.f32 %v1065_v62, %v1064_v60  ;;  %v1067_v2 = vpop.f32.mrb[10].mxu0 }
 0x119   :  { %v1094_v1 = vadd.f32 %v1093_v63, %v1092_v61  ;;  %v1095_v3 = vpop.f32.mrb[10].mxu1  ;;  %v1068_v4 = vpop.f32.mrb[11].mxu0 }
 0x11a   :  { %v1096_v5 = vpop.f32.mrb[11].mxu1  ;;  %v755_v6 = vadd.f32 %v1066_v0, %v706_v43  ;;  %v1069_v7 = vadd.f32 %v1068_v4, %v1067_v2  ;;  %v838_v43 = vlaneseq }
 0x11b   :  { %v1097_v8 = vadd.f32 %v1096_v5, %v1095_v3 }
 0x11c   :  { %v804_v9 = vadd.f32 %v1094_v1, %v755_v6  ;;  %v758_v10 = vadd.f32 %v1069_v7, %v709_v45  ;;  %v839_v48 = vshrl.u32 %v838_v43, 7 }
 0x11e   :  { %v807_v11 = vadd.f32 %v1097_v8, %v758_v10  ;;  %v1070_v12 = vpop.f32.mrb[12].mxu0  ;;  %v866_v14 = vmul.f32 %v804_v9, %v804_v9  ;;  %vm879_vm0 = vcmp.eq.s32.totalorder %v839_v48, 0  ;;  %vm881_vm1 = vcmp.eq.s32.totalorder %v839_v48, 1 }
 0x11f   :  { %v1098_v13 = vpop.f32.mrb[12].mxu1  ;;  %v1071_v15 = vpop.f32.mrb[13].mxu0 }
 0x120   :  { %v1099_v16 = vpop.f32.mrb[13].mxu1  ;;  %v984_v17 = vpack.c.bf16 %v807_v11, %v804_v9  ;;  %v857_v18 = vadd.f32 %v807_v11, %v804_v9  ;;  %v867_v19 = vmul.f32 %v807_v11, %v807_v11  ;;  %v1072_v20 = vadd.f32 %v1071_v15, %v1070_v12  ;;  %v1073_v21 = vpop.f32.mrb[14].mxu0 }
 0x121   :  { %v1101_v22 = vpop.f32.mrb[14].mxu1  ;;  %v1100_v23 = vadd.f32 %v1099_v16, %v1098_v13  ;;  %v1074_v24 = vpop.f32.mrb[15].mxu0 }
 0x122   :  { %v1102_v25 = vpop.f32.mrb[15].mxu1  ;;  %985 = vst [vmem:[%s1439_s2] sm:$0xff] %v984_v17   ;;  %v870_v26 = vadd.f32 %v867_v19, %v866_v14  ;;  %v763_v27 = vadd.f32 %v1072_v20, %v714_v57  ;;  %v1075_v28 = vadd.f32 %v1074_v24, %v1073_v21 }
 0x123   :  { %v1103_v29 = vadd.f32 %v1102_v25, %v1101_v22 }
 0x124   :  { %v812_v30 = vadd.f32 %v1100_v23, %v763_v27  ;;  %v766_v31 = vadd.f32 %v1075_v28, %v717_v59 }
 0x126   :  { %v858_v32 = vadd.f32 %v857_v18, %v812_v30  ;;  %v868_v33 = vmul.f32 %v812_v30, %v812_v30  ;;  %v815_v34 = vadd.f32 %v1103_v29, %v766_v31 }
 0x128   :  { %v871_v35 = vadd.f32 %v870_v26, %v868_v33  ;;  %v989_v36 = vpack.c.bf16 %v815_v34, %v812_v30  ;;  %v859_v37 = vadd.f32 %v858_v32, %v815_v34  ;;  %v869_v38 = vmul.f32 %v815_v34, %v815_v34 }
 0x12a   :  { %991 = vst [vmem:[%s1439_s2 + $0x8] sm:$0xff] %v989_v36   ;;  %v860_v39 = vrot.slane %v859_v37, 4  ;;  %v872_v40 = vadd.f32 %v871_v35, %v869_v38 }
 0x12c   :  { %v861_v41 = vadd.f32 %v860_v39, %v859_v37  ;;  %v873_v42 = vrot.slane %v872_v40, 4 }
 0x12e   :  { %v862_v44 = vrot.slane %v861_v41, 2  ;;  %v874_v45 = vadd.f32 %v873_v42, %v872_v40 }
 0x130   :  { %v863_v46 = vadd.f32 %v862_v44, %v861_v41  ;;  %v875_v47 = vrot.slane %v874_v45, 2 }
 0x132   :  { %v864_v49 = vrot.slane %v863_v46, 1  ;;  %v876_v50 = vadd.f32 %v875_v47, %v874_v45 }
 0x134   :  { %v865_v51 = vadd.f32 %v864_v49, %v863_v46  ;;  %v877_v52 = vrot.slane %v876_v50, 1 }
 0x136   :  { %v878_v53 = vadd.f32 %v877_v52, %v876_v50  ;;  %v880_v54 = vsel %vm879_vm0, %v865_v51, 0.0 }
 0x138   :  { %v882_v55 = vsel %vm881_vm1, %v878_v53, 0.0 }
 0x139   :  { %v883_v56 = vadd.f32 %v882_v55, %v880_v54 }
 0x13b   :  { %884 = vst [vmem:[%s1440_s3] sm:$0xff] %v883_v56 }

// kernel: generator_forward.20
= control target key start
LH: loop header
LB: loop body
LE: loop exit
PB: predicated region body
PF: predicated region fallthrough
CT: control target
= control target key end

     0   :  { %v22_v0 = vlaneseq  ;;  %s154_s0 = inlined_call_operand.vmem [shape: bf16[1,8,256], index: 0, kind: input, shape index: {}]   ;;  %s155_s1 = inlined_call_operand.vmem [shape: f32[1,256], index: 1, kind: input, shape index: {}]   ;;  %s156_s2 = inlined_call_operand.vmem [shape: f32[1,256], index: 2, kind: input, shape index: {}]   ;;  %s157_s3 = inlined_call_operand.vmem [shape: bf16[1,8,256], index: 3, kind: output, shape index: {}]  }
   0x1   :  { %v14_v1 = vld [vmem:[%s154_s0] sm:$0xff] }
   0x2   :  { %v23_v2 = vshrl.u32 %v22_v0, 7  ;;  %v20_v3 = vld [vmem:[%s155_s1] sm:$0x3]  ;;  %v16_v5 = vunpack.c.l.bf16 %v14_v1  ;;  %v17_v6 = vunpack.c.h.bf16 %v14_v1 }
   0x3   :  { %v36_v4 = vld [vmem:[%s156_s2] sm:$0x3] }
   0x4   :  { %v24_v7 = vsub.s32 0, %v23_v2  ;;  %v28_v8 = vsub.s32 1, %v23_v2 }
   0x6   :  { %v25_v9 = vrot.slane %v20_v3, %v24_v7  ;;  %v29_v10 = vrot.slane %v20_v3, %v28_v8  ;;  %v41_v11 = vrot.slane %v36_v4, %v24_v7  ;;  %v45_v12 = vrot.slane %v36_v4, %v28_v8 }
   0x8   :  { %v32_v13 = vmul.f32 %v25_v9, %v16_v5  ;;  %v33_v14 = vmul.f32 %v29_v10, %v17_v6 }
   0xa   :  { %v48_v15 = vadd.f32 %v41_v11, %v32_v13  ;;  %v49_v16 = vadd.f32 %v45_v12, %v33_v14 }
   0xc   :  { %vm52_vm0 = vcmp.gt.f32.partialorder %v48_v15, 0.0  ;;  %vm53_vm1 = vcmp.gt.f32.partialorder %v49_v16, 0.0  ;;  %v56_v17 = vmul.f32 0.2, %v48_v15  ;;  %v57_v18 = vmul.f32 0.2, %v49_v16 }
   0xe   :  { %v60_v19 = vsel %vm52_vm0, %v48_v15, %v56_v17  ;;  %v61_v20 = vsel %vm53_vm1, %v49_v16, %v57_v18 }
   0xf   :  { %v120_v21 = vpack.c.bf16 %v61_v20, %v60_v19 }
  0x11   :  { %108 = vst [vmem:[%s157_s3] sm:$0xff] %v120_v21 }

// kernel: squeeze.26
= control target key start
LH: loop header
LB: loop body
LE: loop exit
PB: predicated region body
PF: predicated region fallthrough
CT: control target
= control target key end

     0   :  { %v126_v6 = vmov 0.0   ;;  %s164_s0 = inlined_call_operand.vmem [shape: bf16[1,8,256], index: 0, kind: input, shape index: {}]   ;;  %s165_s1 = inlined_call_operand.vmem [shape: bf16[2,2,2,256], index: 1, kind: output, shape index: {}]  }
   0x1   :  { %v122_v0 = vld [vmem:[%s164_s0] sm:$0xff]  }
   0x2   :  { %v123_v1 = vunpack.c.l.bf16 %v122_v0  ;;  %v124_v2 = vunpack.c.h.bf16 %v122_v0 }
   0x4   :  { %34 = vst [vmem:[#allocation0] ss:$46 sps:$4 sm:$0xc3] %v123_v1   ;;  %36 = vst [vmem:[#allocation0 + $0xe] ss:$18 sps:$4 sm:$0x3c] %v123_v1  }
   0x5   :  { %44 = vst [vmem:[#allocation0 + $0x8] ss:$46 sps:$4 sm:$0xc3] %v124_v2   ;;  %46 = vst [vmem:[#allocation0 + $0x16] ss:$18 sps:$4 sm:$0x3c] %v124_v2  }
   0xb   :  { %v55_v3 = vld [vmem:[#allocation0] sm:$0x3]  ;;  %v66_v5 = vld [vmem:[#allocation0 + $0x10] sm:$0x3] }
   0xc   :  { %v60_v4 = vld [vmem:[#allocation0 + $0x8] sm:$0x3]  ;;  %v56_v7 = vpack.c.bf16 %v126_v6, %v55_v3  ;;  %v67_v9 = vpack.c.bf16 %v126_v6, %v66_v5  ;;  %v73_v10 = vld [vmem:[#allocation0 + $0x18] sm:$0x3]  ;;  %v80_v11 = vld [vmem:[#allocation0 + $0x20] sm:$0x3] }
   0xd   :  { %v61_v8 = vpack.c.bf16 %v126_v6, %v60_v4  ;;  %v87_v12 = vld [vmem:[#allocation0 + $0x28] sm:$0x3]  ;;  %v74_v13 = vpack.c.bf16 %v126_v6, %v73_v10  ;;  %v81_v14 = vpack.c.bf16 %v126_v6, %v80_v11  ;;  %v94_v16 = vld [vmem:[#allocation0 + $0x30] sm:$0x3]  ;;  %v101_v17 = vld [vmem:[#allocation0 + $0x38] sm:$0x3] }
   0xe   :  { %v88_v15 = vpack.c.bf16 %v126_v6, %v87_v12  ;;  %58 = vst [vmem:[%s165_s1] sm:$0x1] %v56_v7  ;;  %115 = vst [vmem:[%s165_s1 + $0x2] sm:$0x1] %v67_v9  ;;  %v95_v18 = vpack.c.bf16 %v126_v6, %v94_v16  ;;  %v102_v19 = vpack.c.bf16 %v126_v6, %v101_v17 }
   0xf   :  { %114 = vst [vmem:[%s165_s1 + $0x1] sm:$0x1] %v61_v8  ;;  %116 = vst [vmem:[%s165_s1 + $0x3] sm:$0x1] %v74_v13 }
  0x10   :  { %117 = vst [vmem:[%s165_s1 + $0x4] sm:$0x1] %v81_v14  ;;  %118 = vst [vmem:[%s165_s1 + $0x5] sm:$0x1] %v88_v15 }
  0x11   :  { %119 = vst [vmem:[%s165_s1 + $0x6] sm:$0x1] %v95_v18  ;;  %120 = vst [vmem:[%s165_s1 + $0x7] sm:$0x1] %v102_v19 }

// kernel: generator_forward.19
= control target key start
LH: loop header
LB: loop body
LE: loop exit
PB: predicated region body
PF: predicated region fallthrough
CT: control target
= control target key end

     0   :  { %s3681_s0 = inlined_call_operand.vmem [shape: bf16[1,8,2048], index: 0, kind: input, shape index: {}]   ;;  %s3682_s1 = inlined_call_operand.vmem [shape: bf16[1,2048,256], index: 1, kind: input, shape index: {}]   ;;  %s3683_s2 = inlined_call_operand.vmem [shape: bf16[1,8,256], index: 2, kind: output, shape index: {0}]   ;;  %s3684_s3 = inlined_call_operand.vmem [shape: f32[1,1,8,256], index: 3, kind: output, shape index: {1}]  }
   0x1   :  { %v2404_v0 = vld [vmem:[%s3682_s1 + $0x4] ss:$8 sps:$4 sm:$0xff]   ;;  %v2408_v2 = vld [vmem:[%s3682_s1] ss:$8 sps:$4 sm:$0xff]   ;;  %v2410_v4 = vld [vmem:[%s3682_s1 + $0x14] ss:$8 sps:$4 sm:$0xff]  }
   0x2   :  { %v2406_v1 = vld [vmem:[%s3682_s1 + $0x404] ss:$8 sps:$4 sm:$0xff]   ;;  %1645 = vmatprep.subr.bf16.mxu1 %v2404_v0  ;;  %v2409_v3 = vld [vmem:[%s3682_s1 + $0x400] ss:$8 sps:$4 sm:$0xff]   ;;  %v2412_v5 = vld [vmem:[%s3682_s1 + $0x414] ss:$8 sps:$4 sm:$0xff]  }
   0x3   :  { %1817 = vmatprep.subr.bf16.mxu0 %v2406_v1  ;;  %1646 = vmatpush1.bf16.msra.mxu1 %v2408_v2  ;;  %v2414_v6 = vld [vmem:[%s3682_s1 + $0x10] ss:$8 sps:$4 sm:$0xff]   ;;  %v2416_v8 = vld [vmem:[%s3682_s1 + $0x24] ss:$8 sps:$4 sm:$0xff]   ;;  %v2420_v10 = vld [vmem:[%s3682_s1 + $0x20] ss:$8 sps:$4 sm:$0xff]  }
   0x4   :  { %1818 = vmatpush1.bf16.msra.mxu0 %v2409_v3  ;;  %1647 = vmatprep.subr.bf16.mxu1 %v2410_v4  ;;  %v2415_v7 = vld [vmem:[%s3682_s1 + $0x410] ss:$8 sps:$4 sm:$0xff]   ;;  %v2418_v9 = vld [vmem:[%s3682_s1 + $0x424] ss:$8 sps:$4 sm:$0xff]   ;;  %v2421_v11 = vld [vmem:[%s3682_s1 + $0x420] ss:$8 sps:$4 sm:$0xff]  }
   0x5   :  { %1819 = vmatprep.subr.bf16.mxu0 %v2412_v5  ;;  %v2422_v12 = vld [vmem:[%s3682_s1 + $0x34] ss:$8 sps:$4 sm:$0xff]   ;;  %v2426_v14 = vld [vmem:[%s3682_s1 + $0x30] ss:$8 sps:$4 sm:$0xff]   ;;  %v2428_v16 = vld [vmem:[%s3682_s1 + $0x44] ss:$8 sps:$4 sm:$0xff]  }
   0x6   :  { %v2424_v13 = vld [vmem:[%s3682_s1 + $0x434] ss:$8 sps:$4 sm:$0xff]   ;;  %v2427_v15 = vld [vmem:[%s3682_s1 + $0x430] ss:$8 sps:$4 sm:$0xff]   ;;  %v2430_v17 = vld [vmem:[%s3682_s1 + $0x444] ss:$8 sps:$4 sm:$0xff]  }
   0x7   :  { %1648 = vmatpush1.bf16.msra.mxu1 %v2414_v6  ;;  %v2432_v18 = vld [vmem:[%s3682_s1 + $0x40] ss:$8 sps:$4 sm:$0xff]   ;;  %v2434_v20 = vld [vmem:[%s3682_s1 + $0x54] ss:$8 sps:$4 sm:$0xff]   ;;  %v2438_v22 = vld [vmem:[%s3682_s1 + $0x50] ss:$8 sps:$4 sm:$0xff]  }
   0x8   :  { %1820 = vmatpush1.bf16.msra.mxu0 %v2415_v7  ;;  %1649 = vmatprep.subr.bf16.mxu1 %v2416_v8  ;;  %v2433_v19 = vld [vmem:[%s3682_s1 + $0x440] ss:$8 sps:$4 sm:$0xff]   ;;  %v2436_v21 = vld [vmem:[%s3682_s1 + $0x454] ss:$8 sps:$4 sm:$0xff]   ;;  %v2439_v23 = vld [vmem:[%s3682_s1 + $0x450] ss:$8 sps:$4 sm:$0xff]  }
   0x9   :  { %1821 = vmatprep.subr.bf16.mxu0 %v2418_v9  ;;  %v2440_v24 = vld [vmem:[%s3682_s1 + $0x64] ss:$8 sps:$4 sm:$0xff]   ;;  %v2444_v26 = vld [vmem:[%s3682_s1 + $0x60] ss:$8 sps:$4 sm:$0xff]   ;;  %v2446_v28 = vld [vmem:[%s3682_s1 + $0x74] ss:$8 sps:$4 sm:$0xff]  }
   0xa   :  { %v2442_v25 = vld [vmem:[%s3682_s1 + $0x464] ss:$8 sps:$4 sm:$0xff]   ;;  %v2445_v27 = vld [vmem:[%s3682_s1 + $0x460] ss:$8 sps:$4 sm:$0xff]   ;;  %v2448_v29 = vld [vmem:[%s3682_s1 + $0x474] ss:$8 sps:$4 sm:$0xff]  }
   0xb   :  { %1650 = vmatpush1.bf16.msra.mxu1 %v2420_v10  ;;  %v2450_v30 = vld [vmem:[%s3682_s1 + $0x70] ss:$8 sps:$4 sm:$0xff]   ;;  %v2452_v32 = vld [vmem:[%s3682_s1 + $0x84] ss:$8 sps:$4 sm:$0xff]   ;;  %v2456_v34 = vld [vmem:[%s3682_s1 + $0x80] ss:$8 sps:$4 sm:$0xff]  }
   0xc   :  { %1822 = vmatpush1.bf16.msra.mxu0 %v2421_v11  ;;  %1651 = vmatprep.subr.bf16.mxu1 %v2422_v12  ;;  %v2451_v31 = vld [vmem:[%s3682_s1 + $0x470] ss:$8 sps:$4 sm:$0xff]   ;;  %v2454_v33 = vld [vmem:[%s3682_s1 + $0x484] ss:$8 sps:$4 sm:$0xff]   ;;  %v2457_v35 = vld [vmem:[%s3682_s1 + $0x480] ss:$8 sps:$4 sm:$0xff]  }
   0xd   :  { %1823 = vmatprep.subr.bf16.mxu0 %v2424_v13  ;;  %v2458_v36 = vld [vmem:[%s3682_s1 + $0x94] ss:$8 sps:$4 sm:$0xff]   ;;  %v2462_v38 = vld [vmem:[%s3682_s1 + $0x90] ss:$8 sps:$4 sm:$0xff]   ;;  %v2464_v40 = vld [vmem:[%s3682_s1 + $0xa4] ss:$8 sps:$4 sm:$0xff]  }
   0xe   :  { %v2460_v37 = vld [vmem:[%s3682_s1 + $0x494] ss:$8 sps:$4 sm:$0xff]   ;;  %v2463_v39 = vld [vmem:[%s3682_s1 + $0x490] ss:$8 sps:$4 sm:$0xff]   ;;  %v2466_v41 = vld [vmem:[%s3682_s1 + $0x4a4] ss:$8 sps:$4 sm:$0xff]  }
   0xf   :  { %1652 = vmatpush1.bf16.msra.mxu1 %v2426_v14  ;;  %v2468_v42 = vld [vmem:[%s3682_s1 + $0xa0] ss:$8 sps:$4 sm:$0xff]   ;;  %v2470_v44 = vld [vmem:[%s3682_s1 + $0xb4] ss:$8 sps:$4 sm:$0xff]   ;;  %v2474_v46 = vld [vmem:[%s3682_s1 + $0xb0] ss:$8 sps:$4 sm:$0xff]  }
  0x10   :  { %1824 = vmatpush1.bf16.msra.mxu0 %v2427_v15  ;;  %1653 = vmatprep.subr.bf16.mxu1 %v2428_v16  ;;  %v2469_v43 = vld [vmem:[%s3682_s1 + $0x4a0] ss:$8 sps:$4 sm:$0xff]   ;;  %v2472_v45 = vld [vmem:[%s3682_s1 + $0x4b4] ss:$8 sps:$4 sm:$0xff]   ;;  %v2475_v47 = vld [vmem:[%s3682_s1 + $0x4b0] ss:$8 sps:$4 sm:$0xff]  }
  0x11   :  { %1825 = vmatprep.subr.bf16.mxu0 %v2430_v17  ;;  %v13_v48 = vld [vmem:[%s3681_s0] sm:$0xff]  ;;  %v2482_v58 = vld [vmem:[%s3682_s1 + $0xd4] ss:$8 sps:$4 sm:$0xff]   ;;  %v2486_v60 = vld [vmem:[%s3682_s1 + $0xd0] ss:$8 sps:$4 sm:$0xff]  }
  0x12   :  { %v21_v49 = vld [vmem:[%s3681_s0 + $0x40] sm:$0xff]  ;;  %v2484_v59 = vld [vmem:[%s3682_s1 + $0x4d4] ss:$8 sps:$4 sm:$0xff]   ;;  %v2487_v61 = vld [vmem:[%s3682_s1 + $0x4d0] ss:$8 sps:$4 sm:$0xff]  }
  0x13   :  { %1654 = vmatpush1.bf16.msra.mxu1 %v2432_v18  ;;  %v2476_v50 = vld [vmem:[%s3682_s1 + $0xc4] ss:$8 sps:$4 sm:$0xff]   ;;  %v2103_v52 = vcombine.high %v13_v48, %v21_v49  ;;  %v2480_v56 = vld [vmem:[%s3682_s1 + $0xc0] ss:$8 sps:$4 sm:$0xff]   ;;  %v2494_v2 = vld [vmem:[%s3682_s1 + $0xf4] ss:$8 sps:$4 sm:$0xff]   ;;  %v2102_v8 = vcombine.low %v13_v48, %v21_v49 }
  0x14   :  { %1826 = vmatpush1.bf16.msra.mxu0 %v2433_v19  ;;  %1655 = vmatprep.subr.bf16.mxu1 %v2434_v20  ;;  %v2478_v51 = vld [vmem:[%s3682_s1 + $0x4c4] ss:$8 sps:$4 sm:$0xff]   ;;  %v2481_v57 = vld [vmem:[%s3682_s1 + $0x4c0] ss:$8 sps:$4 sm:$0xff]   ;;  %v2496_v3 = vld [vmem:[%s3682_s1 + $0x4f4] ss:$8 sps:$4 sm:$0xff]  }
  0x15   :  { %1827 = vmatprep.subr.bf16.mxu0 %v2436_v21  ;;  %v17_v53 = vld [vmem:[%s3681_s0 + $0x20] sm:$0xff]  ;;  %1677 = vmatprep.mubr.bf16.mxu1 %v2103_v52  ;;  %v2498_v4 = vld [vmem:[%s3682_s1 + $0xf0] ss:$8 sps:$4 sm:$0xff]   ;;  %v2508_v12 = vld [vmem:[%s3682_s1 + $0x114] ss:$8 sps:$4 sm:$0xff]  }
  0x16   :  { %v25_v54 = vld [vmem:[%s3681_s0 + $0x60] sm:$0xff]  ;;  %v2499_v5 = vld [vmem:[%s3682_s1 + $0x4f0] ss:$8 sps:$4 sm:$0xff]   ;;  %v2511_v13 = vld [vmem:[%s3682_s1 + $0x514] ss:$8 sps:$4 sm:$0xff]  }
  0x17   :  { %1656 = vmatpush1.bf16.msra.mxu1 %v2438_v22  ;;  %v2111_v55 = vcombine.high %v17_v53, %v25_v54  ;;  %v2488_v62 = vld [vmem:[%s3682_s1 + $0xe4] ss:$8 sps:$4 sm:$0xff]   ;;  %v2492_v0 = vld [vmem:[%s3682_s1 + $0xe0] ss:$8 sps:$4 sm:$0xff]   ;;  %v2110_v10 = vcombine.low %v17_v53, %v25_v54  ;;  %v2506_v14 = vld [vmem:[%s3682_s1 + $0x110] ss:$8 sps:$4 sm:$0xff]  }
  0x18   :  { %1828 = vmatpush1.bf16.msra.mxu0 %v2439_v23  ;;  %1657 = vmatprep.subr.bf16.mxu1 %v2440_v24  ;;  %v2490_v63 = vld [vmem:[%s3682_s1 + $0x4e4] ss:$8 sps:$4 sm:$0xff]   ;;  %v2493_v1 = vld [vmem:[%s3682_s1 + $0x4e0] ss:$8 sps:$4 sm:$0xff]   ;;  %v2509_v15 = vld [vmem:[%s3682_s1 + $0x510] ss:$8 sps:$4 sm:$0xff]  }
  0x19   :  { %1829 = vmatprep.subr.bf16.mxu0 %v2442_v25  ;;  %1849 = vmatprep.mubr.bf16.mxu0 %v2111_v55  ;;  %v2502_v6 = vld [vmem:[%s3682_s1 + $0x104] ss:$8 sps:$4 sm:$0xff]   ;;  %v2500_v9 = vld [vmem:[%s3682_s1 + $0x100] ss:$8 sps:$4 sm:$0xff]   ;;  %v2520_v20 = vld [vmem:[%s3682_s1 + $0x134] ss:$8 sps:$4 sm:$0xff]  }
  0x1a   :  { %v2505_v7 = vld [vmem:[%s3682_s1 + $0x504] ss:$8 sps:$4 sm:$0xff]   ;;  %v2503_v11 = vld [vmem:[%s3682_s1 + $0x500] ss:$8 sps:$4 sm:$0xff]   ;;  %v2523_v21 = vld [vmem:[%s3682_s1 + $0x534] ss:$8 sps:$4 sm:$0xff]  }
  0x1b   :  { %1658 = vmatpush1.bf16.msra.mxu1 %v2444_v26  ;;  %v2514_v16 = vld [vmem:[%s3682_s1 + $0x124] ss:$8 sps:$4 sm:$0xff]   ;;  %v2512_v18 = vld [vmem:[%s3682_s1 + $0x120] ss:$8 sps:$4 sm:$0xff]   ;;  %v2518_v22 = vld [vmem:[%s3682_s1 + $0x130] ss:$8 sps:$4 sm:$0xff]  }
  0x1c   :  { %1830 = vmatpush1.bf16.msra.mxu0 %v2445_v27  ;;  %1659 = vmatprep.subr.bf16.mxu1 %v2446_v28  ;;  %v2517_v17 = vld [vmem:[%s3682_s1 + $0x524] ss:$8 sps:$4 sm:$0xff]   ;;  %v2515_v19 = vld [vmem:[%s3682_s1 + $0x520] ss:$8 sps:$4 sm:$0xff]   ;;  %v2521_v23 = vld [vmem:[%s3682_s1 + $0x530] ss:$8 sps:$4 sm:$0xff]  }
  0x1d   :  { %1831 = vmatprep.subr.bf16.mxu0 %v2448_v29  ;;  %v2526_v24 = vld [vmem:[%s3682_s1 + $0x144] ss:$8 sps:$4 sm:$0xff]   ;;  %v2524_v26 = vld [vmem:[%s3682_s1 + $0x140] ss:$8 sps:$4 sm:$0xff]   ;;  %v2532_v28 = vld [vmem:[%s3682_s1 + $0x154] ss:$8 sps:$4 sm:$0xff]  }
  0x1e   :  { %v2529_v25 = vld [vmem:[%s3682_s1 + $0x544] ss:$8 sps:$4 sm:$0xff]   ;;  %v2527_v27 = vld [vmem:[%s3682_s1 + $0x540] ss:$8 sps:$4 sm:$0xff]   ;;  %v2535_v29 = vld [vmem:[%s3682_s1 + $0x554] ss:$8 sps:$4 sm:$0xff]  }
  0x1f   :  { %1660 = vmatpush1.bf16.msra.mxu1 %v2450_v30  ;;  %v2530_v30 = vld [vmem:[%s3682_s1 + $0x150] ss:$8 sps:$4 sm:$0xff]   ;;  %v2548_v48 = vld [vmem:[%s3682_s1 + $0x180] ss:$8 sps:$4 sm:$0xff]   ;;  %v2562_v54 = vld [vmem:[%s3682_s1 + $0x1a4] ss:$8 sps:$4 sm:$0xff]  }
  0x20   :  { %1832 = vmatpush1.bf16.msra.mxu0 %v2451_v31  ;;  %1661 = vmatprep.subr.bf16.mxu1 %v2452_v32  ;;  %v2533_v31 = vld [vmem:[%s3682_s1 + $0x550] ss:$8 sps:$4 sm:$0xff]   ;;  %v2538_v32 = vld [vmem:[%s3682_s1 + $0x164] ss:$8 sps:$4 sm:$0xff]   ;;  %v2551_v49 = vld [vmem:[%s3682_s1 + $0x580] ss:$8 sps:$4 sm:$0xff]  }
  0x21   :  { %1833 = vmatprep.subr.bf16.mxu0 %v2454_v33  ;;  %v2541_v33 = vld [vmem:[%s3682_s1 + $0x564] ss:$8 sps:$4 sm:$0xff]   ;;  %v2554_v52 = vld [vmem:[%s3682_s1 + $0x190] ss:$8 sps:$4 sm:$0xff]  }
  0x22   :  { %v2557_v53 = vld [vmem:[%s3682_s1 + $0x590] ss:$8 sps:$4 sm:$0xff]   ;;  %v2565_v55 = vld [vmem:[%s3682_s1 + $0x5a4] ss:$8 sps:$4 sm:$0xff]  }
  0x23   :  { %1662 = vmatpush1.bf16.msra.mxu1 %v2456_v34  ;;  %v2536_v34 = vld [vmem:[%s3682_s1 + $0x160] ss:$8 sps:$4 sm:$0xff]  }
  0x24   :  { %1834 = vmatpush1.bf16.msra.mxu0 %v2457_v35  ;;  %1663 = vmatprep.subr.bf16.mxu1 %v2458_v36  ;;  %v2539_v35 = vld [vmem:[%s3682_s1 + $0x560] ss:$8 sps:$4 sm:$0xff]  }
  0x25   :  { %1835 = vmatprep.subr.bf16.mxu0 %v2460_v37  ;;  %v3099_v36 = vld [vmem:[%s3681_s0 + $0x8] sm:$0xff] }
  0x26   :  { %v3104_v37 = vld [vmem:[%s3681_s0 + $0x48] sm:$0xff] }
  0x27   :  { %1664 = vmatpush1.bf16.msra.mxu1 %v2462_v38  ;;  %v2544_v38 = vld [vmem:[%s3682_s1 + $0x174] ss:$8 sps:$4 sm:$0xff]  }
  0x28   :  { %1836 = vmatpush1.bf16.msra.mxu0 %v2463_v39  ;;  %1665 = vmatprep.subr.bf16.mxu1 %v2464_v40  ;;  %v2547_v39 = vld [vmem:[%s3682_s1 + $0x574] ss:$8 sps:$4 sm:$0xff]   ;;  %v2105_v40 = vcombine.high %v3099_v36, %v3104_v37 }
  0x29   :  { %1837 = vmatprep.subr.bf16.mxu0 %v2466_v41  ;;  %v3117_v41 = vld [vmem:[%s3681_s0 + $0x28] sm:$0xff] }
  0x2b   :  { %1666 = vmatpush1.bf16.msra.mxu1 %v2468_v42  ;;  %v3122_v42 = vld [vmem:[%s3681_s0 + $0x68] sm:$0xff] }
  0x2c   :  { %1838 = vmatpush1.bf16.msra.mxu0 %v2469_v43  ;;  %1667 = vmatprep.subr.bf16.mxu1 %v2470_v44  ;;  %v2113_v43 = vcombine.high %v3117_v41, %v3122_v42  ;;  %v2542_v44 = vld [vmem:[%s3682_s1 + $0x170] ss:$8 sps:$4 sm:$0xff]  }
  0x2d   :  { %1839 = vmatprep.subr.bf16.mxu0 %v2472_v45  ;;  %v2545_v45 = vld [vmem:[%s3682_s1 + $0x570] ss:$8 sps:$4 sm:$0xff]  }
  0x2f   :  { %1668 = vmatpush1.bf16.msra.mxu1 %v2474_v46  ;;  %v2550_v46 = vld [vmem:[%s3682_s1 + $0x184] ss:$8 sps:$4 sm:$0xff]  }
  0x30   :  { %1840 = vmatpush1.bf16.msra.mxu0 %v2475_v47  ;;  %1669 = vmatprep.subr.bf16.mxu1 %v2476_v50  ;;  %v2553_v47 = vld [vmem:[%s3682_s1 + $0x584] ss:$8 sps:$4 sm:$0xff]   ;;  %v2556_v50 = vld [vmem:[%s3682_s1 + $0x194] ss:$8 sps:$4 sm:$0xff]  }
  0x31   :  { %1841 = vmatprep.subr.bf16.mxu0 %v2478_v51  ;;  %v2559_v51 = vld [vmem:[%s3682_s1 + $0x594] ss:$8 sps:$4 sm:$0xff]  }
  0x33   :  { %1670 = vmatpush1.bf16.msra.mxu1 %v2480_v56  ;;  %v2560_v56 = vld [vmem:[%s3682_s1 + $0x1a0] ss:$8 sps:$4 sm:$0xff]  }
  0x34   :  { %1842 = vmatpush1.bf16.msra.mxu0 %v2481_v57  ;;  %1671 = vmatprep.subr.bf16.mxu1 %v2482_v58  ;;  %v2563_v57 = vld [vmem:[%s3682_s1 + $0x5a0] ss:$8 sps:$4 sm:$0xff]   ;;  %v2568_v58 = vld [vmem:[%s3682_s1 + $0x1b4] ss:$8 sps:$4 sm:$0xff]  }
  0x35   :  { %1843 = vmatprep.subr.bf16.mxu0 %v2484_v59  ;;  %v2571_v59 = vld [vmem:[%s3682_s1 + $0x5b4] ss:$8 sps:$4 sm:$0xff]  }
  0x37   :  { %1672 = vmatpush1.bf16.msra.mxu1 %v2486_v60  ;;  %v2566_v60 = vld [vmem:[%s3682_s1 + $0x1b0] ss:$8 sps:$4 sm:$0xff]  }
  0x38   :  { %1844 = vmatpush1.bf16.msra.mxu0 %v2487_v61  ;;  %1673 = vmatprep.subr.bf16.mxu1 %v2488_v62  ;;  %v2569_v61 = vld [vmem:[%s3682_s1 + $0x5b0] ss:$8 sps:$4 sm:$0xff]   ;;  %v2574_v62 = vld [vmem:[%s3682_s1 + $0x1c4] ss:$8 sps:$4 sm:$0xff]  }
  0x39   :  { %1845 = vmatprep.subr.bf16.mxu0 %v2490_v63  ;;  %v2577_v63 = vld [vmem:[%s3682_s1 + $0x5c4] ss:$8 sps:$4 sm:$0xff]  }
  0x3b   :  { %1674 = vmatpush1.bf16.msra.mxu1 %v2492_v0  ;;  %v2572_v0 = vld [vmem:[%s3682_s1 + $0x1c0] ss:$8 sps:$4 sm:$0xff]  }
  0x3c   :  { %1846 = vmatpush1.bf16.msra.mxu0 %v2493_v1  ;;  %1675 = vmatprep.subr.bf16.mxu1 %v2494_v2  ;;  %v2575_v1 = vld [vmem:[%s3682_s1 + $0x5c0] ss:$8 sps:$4 sm:$0xff]   ;;  %v2580_v2 = vld [vmem:[%s3682_s1 + $0x1d4] ss:$8 sps:$4 sm:$0xff]  }
  0x3d   :  { %1847 = vmatprep.subr.bf16.mxu0 %v2496_v3  ;;  %v2583_v3 = vld [vmem:[%s3682_s1 + $0x5d4] ss:$8 sps:$4 sm:$0xff]  }
  0x3f   :  { %1676 = vmatpush1.bf16.msra.mxu1 %v2498_v4  ;;  %v2578_v4 = vld [vmem:[%s3682_s1 + $0x1d0] ss:$8 sps:$4 sm:$0xff]  }
  0x40   :  { %1848 = vmatpush1.bf16.msra.mxu0 %v2499_v5  ;;  %1688 = vmatprep.subr.bf16.mxu1 %v2502_v6  ;;  %v2581_v5 = vld [vmem:[%s3682_s1 + $0x5d0] ss:$8 sps:$4 sm:$0xff]   ;;  %v2586_v6 = vld [vmem:[%s3682_s1 + $0x1e4] ss:$8 sps:$4 sm:$0xff]  }
  0x41   :  { %1860 = vmatprep.subr.bf16.mxu0 %v2505_v7  ;;  %v2589_v7 = vld [vmem:[%s3682_s1 + $0x5e4] ss:$8 sps:$4 sm:$0xff]  }
  0x42   :  { %1678 = vmatmul.mubr.bf16.vlgmr.msra.gmra.mrb[0].mxu1 %v2102_v8  ;;  %v2584_v8 = vld [vmem:[%s3682_s1 + $0x1e0] ss:$8 sps:$4 sm:$0xff]  }
  0x43   :  { %1850 = vmatmul.mubr.bf16.vlgmr.msra.gmra.mrb[0].mxu0 %v2110_v10  ;;  %1689 = vmatpush1.bf16.msra.mxu1 %v2500_v9  ;;  %v2587_v9 = vld [vmem:[%s3682_s1 + $0x5e0] ss:$8 sps:$4 sm:$0xff]   ;;  %v2592_v10 = vld [vmem:[%s3682_s1 + $0x1f4] ss:$8 sps:$4 sm:$0xff]  }
  0x44   :  { %1861 = vmatpush1.bf16.msra.mxu0 %v2503_v11  ;;  %1690 = vmatprep.subr.bf16.mxu1 %v2508_v12  ;;  %v2595_v11 = vld [vmem:[%s3682_s1 + $0x5f4] ss:$8 sps:$4 sm:$0xff]   ;;  %v2590_v12 = vld [vmem:[%s3682_s1 + $0x1f0] ss:$8 sps:$4 sm:$0xff]  }
  0x45   :  { %1862 = vmatprep.subr.bf16.mxu0 %v2511_v13  ;;  %1720 = vmatprep.mubr.bf16.mxu1 %v2105_v40  ;;  %v2593_v13 = vld [vmem:[%s3682_s1 + $0x5f0] ss:$8 sps:$4 sm:$0xff]   ;;  %v2620_v40 = vld [vmem:[%s3682_s1 + $0x240] ss:$8 sps:$4 sm:$0xff]  }
  0x46   :  { %1892 = vmatprep.mubr.bf16.mxu0 %v2113_v43  ;;  %v2631_v43 = vld [vmem:[%s3682_s1 + $0x654] ss:$8 sps:$4 sm:$0xff]  }
  0x47   :  { %1691 = vmatpush1.bf16.msra.mxu1 %v2506_v14  ;;  %v2598_v14 = vld [vmem:[%s3682_s1 + $0x204] ss:$8 sps:$4 sm:$0xff]  }
  0x48   :  { %1863 = vmatpush1.bf16.msra.mxu0 %v2509_v15  ;;  %1692 = vmatprep.subr.bf16.mxu1 %v2514_v16  ;;  %v2601_v15 = vld [vmem:[%s3682_s1 + $0x604] ss:$8 sps:$4 sm:$0xff]   ;;  %v2104_v16 = vcombine.low %v3099_v36, %v3104_v37  ;;  %v2614_v36 = vld [vmem:[%s3682_s1 + $0x230] ss:$8 sps:$4 sm:$0xff]  }
  0x49   :  { %1864 = vmatprep.subr.bf16.mxu0 %v2517_v17  ;;  %v2596_v17 = vld [vmem:[%s3682_s1 + $0x200] ss:$8 sps:$4 sm:$0xff]   ;;  %v2617_v37 = vld [vmem:[%s3682_s1 + $0x630] ss:$8 sps:$4 sm:$0xff]  }
  0x4b   :  { %1693 = vmatpush1.bf16.msra.mxu1 %v2512_v18  ;;  %v2112_v18 = vcombine.low %v3117_v41, %v3122_v42  ;;  %v2623_v41 = vld [vmem:[%s3682_s1 + $0x640] ss:$8 sps:$4 sm:$0xff]   ;;  %v2628_v42 = vld [vmem:[%s3682_s1 + $0x254] ss:$8 sps:$4 sm:$0xff]  }
  0x4c   :  { %1865 = vmatpush1.bf16.msra.mxu0 %v2515_v19  ;;  %1694 = vmatprep.subr.bf16.mxu1 %v2520_v20  ;;  %v2599_v19 = vld [vmem:[%s3682_s1 + $0x600] ss:$8 sps:$4 sm:$0xff]   ;;  %v2604_v20 = vld [vmem:[%s3682_s1 + $0x214] ss:$8 sps:$4 sm:$0xff]  }
  0x4d   :  { %1866 = vmatprep.subr.bf16.mxu0 %v2523_v21  ;;  %v2607_v21 = vld [vmem:[%s3682_s1 + $0x614] ss:$8 sps:$4 sm:$0xff]  }
  0x4f   :  { %1695 = vmatpush1.bf16.msra.mxu1 %v2518_v22  ;;  %v2602_v22 = vld [vmem:[%s3682_s1 + $0x210] ss:$8 sps:$4 sm:$0xff]  }
  0x50   :  { %1867 = vmatpush1.bf16.msra.mxu0 %v2521_v23  ;;  %1696 = vmatprep.subr.bf16.mxu1 %v2526_v24  ;;  %v2605_v23 = vld [vmem:[%s3682_s1 + $0x610] ss:$8 sps:$4 sm:$0xff]  }
  0x51   :  { %1868 = vmatprep.subr.bf16.mxu0 %v2529_v25  ;;  %v3259_v24 = vld [vmem:[%s3681_s0 + $0x10] sm:$0xff] }
  0x52   :  { %v3264_v25 = vld [vmem:[%s3681_s0 + $0x50] sm:$0xff] }
  0x53   :  { %1697 = vmatpush1.bf16.msra.mxu1 %v2524_v26  ;;  %v2610_v26 = vld [vmem:[%s3682_s1 + $0x224] ss:$8 sps:$4 sm:$0xff]  }
  0x54   :  { %1869 = vmatpush1.bf16.msra.mxu0 %v2527_v27  ;;  %1698 = vmatprep.subr.bf16.mxu1 %v2532_v28  ;;  %v2613_v27 = vld [vmem:[%s3682_s1 + $0x624] ss:$8 sps:$4 sm:$0xff]   ;;  %v2107_v28 = vcombine.high %v3259_v24, %v3264_v25 }
  0x55   :  { %1870 = vmatprep.subr.bf16.mxu0 %v2535_v29  ;;  %v3277_v29 = vld [vmem:[%s3681_s0 + $0x30] sm:$0xff] }
  0x57   :  { %1699 = vmatpush1.bf16.msra.mxu1 %v2530_v30  ;;  %v3282_v30 = vld [vmem:[%s3681_s0 + $0x70] sm:$0xff] }
  0x58   :  { %1871 = vmatpush1.bf16.msra.mxu0 %v2533_v31  ;;  %1700 = vmatprep.subr.bf16.mxu1 %v2538_v32  ;;  %v2115_v31 = vcombine.high %v3277_v29, %v3282_v30  ;;  %v2608_v32 = vld [vmem:[%s3682_s1 + $0x220] ss:$8 sps:$4 sm:$0xff]  }
  0x59   :  { %1872 = vmatprep.subr.bf16.mxu0 %v2541_v33  ;;  %v2611_v33 = vld [vmem:[%s3682_s1 + $0x620] ss:$8 sps:$4 sm:$0xff]  }
  0x5b   :  { %1701 = vmatpush1.bf16.msra.mxu1 %v2536_v34  ;;  %v2616_v34 = vld [vmem:[%s3682_s1 + $0x234] ss:$8 sps:$4 sm:$0xff]  }
  0x5c   :  { %1873 = vmatpush1.bf16.msra.mxu0 %v2539_v35  ;;  %1702 = vmatprep.subr.bf16.mxu1 %v2544_v38  ;;  %v2619_v35 = vld [vmem:[%s3682_s1 + $0x634] ss:$8 sps:$4 sm:$0xff]   ;;  %v2622_v38 = vld [vmem:[%s3682_s1 + $0x244] ss:$8 sps:$4 sm:$0xff]  }
  0x5d   :  { %1874 = vmatprep.subr.bf16.mxu0 %v2547_v39  ;;  %v2625_v39 = vld [vmem:[%s3682_s1 + $0x644] ss:$8 sps:$4 sm:$0xff]  }
  0x5f   :  { %1703 = vmatpush1.bf16.msra.mxu1 %v2542_v44  ;;  %v2626_v44 = vld [vmem:[%s3682_s1 + $0x250] ss:$8 sps:$4 sm:$0xff]  }
  0x60   :  { %1875 = vmatpush1.bf16.msra.mxu0 %v2545_v45  ;;  %1704 = vmatprep.subr.bf16.mxu1 %v2550_v46  ;;  %v2629_v45 = vld [vmem:[%s3682_s1 + $0x650] ss:$8 sps:$4 sm:$0xff]   ;;  %v2634_v46 = vld [vmem:[%s3682_s1 + $0x264] ss:$8 sps:$4 sm:$0xff]  }
  0x61   :  { %1876 = vmatprep.subr.bf16.mxu0 %v2553_v47  ;;  %v2637_v47 = vld [vmem:[%s3682_s1 + $0x664] ss:$8 sps:$4 sm:$0xff]  }
  0x63   :  { %1705 = vmatpush1.bf16.msra.mxu1 %v2548_v48  ;;  %v2632_v48 = vld [vmem:[%s3682_s1 + $0x260] ss:$8 sps:$4 sm:$0xff]  }
  0x64   :  { %1877 = vmatpush1.bf16.msra.mxu0 %v2551_v49  ;;  %1706 = vmatprep.subr.bf16.mxu1 %v2556_v50  ;;  %v2635_v49 = vld [vmem:[%s3682_s1 + $0x660] ss:$8 sps:$4 sm:$0xff]   ;;  %v2640_v50 = vld [vmem:[%s3682_s1 + $0x274] ss:$8 sps:$4 sm:$0xff]  }
  0x65   :  { %1878 = vmatprep.subr.bf16.mxu0 %v2559_v51  ;;  %v2643_v51 = vld [vmem:[%s3682_s1 + $0x674] ss:$8 sps:$4 sm:$0xff]  }
  0x67   :  { %1707 = vmatpush1.bf16.msra.mxu1 %v2554_v52  ;;  %v2638_v52 = vld [vmem:[%s3682_s1 + $0x270] ss:$8 sps:$4 sm:$0xff]  }
  0x68   :  { %1879 = vmatpush1.bf16.msra.mxu0 %v2557_v53  ;;  %1708 = vmatprep.subr.bf16.mxu1 %v2562_v54  ;;  %v2641_v53 = vld [vmem:[%s3682_s1 + $0x670] ss:$8 sps:$4 sm:$0xff]   ;;  %v2646_v54 = vld [vmem:[%s3682_s1 + $0x284] ss:$8 sps:$4 sm:$0xff]  }
  0x69   :  { %1880 = vmatprep.subr.bf16.mxu0 %v2565_v55  ;;  %v2649_v55 = vld [vmem:[%s3682_s1 + $0x684] ss:$8 sps:$4 sm:$0xff]  }
  0x6b   :  { %1709 = vmatpush1.bf16.msra.mxu1 %v2560_v56  ;;  %v2644_v56 = vld [vmem:[%s3682_s1 + $0x280] ss:$8 sps:$4 sm:$0xff]  }
  0x6c   :  { %1881 = vmatpush1.bf16.msra.mxu0 %v2563_v57  ;;  %1710 = vmatprep.subr.bf16.mxu1 %v2568_v58  ;;  %v2647_v57 = vld [vmem:[%s3682_s1 + $0x680] ss:$8 sps:$4 sm:$0xff]   ;;  %v2652_v58 = vld [vmem:[%s3682_s1 + $0x294] ss:$8 sps:$4 sm:$0xff]  }
  0x6d   :  { %1882 = vmatprep.subr.bf16.mxu0 %v2571_v59  ;;  %v2655_v59 = vld [vmem:[%s3682_s1 + $0x694] ss:$8 sps:$4 sm:$0xff]  }
  0x6f   :  { %1711 = vmatpush1.bf16.msra.mxu1 %v2566_v60  ;;  %v2650_v60 = vld [vmem:[%s3682_s1 + $0x290] ss:$8 sps:$4 sm:$0xff]  }
  0x70   :  { %1883 = vmatpush1.bf16.msra.mxu0 %v2569_v61  ;;  %1712 = vmatprep.subr.bf16.mxu1 %v2574_v62  ;;  %v2653_v61 = vld [vmem:[%s3682_s1 + $0x690] ss:$8 sps:$4 sm:$0xff]   ;;  %v2658_v62 = vld [vmem:[%s3682_s1 + $0x2a4] ss:$8 sps:$4 sm:$0xff]  }
  0x71   :  { %1884 = vmatprep.subr.bf16.mxu0 %v2577_v63  ;;  %v2661_v63 = vld [vmem:[%s3682_s1 + $0x6a4] ss:$8 sps:$4 sm:$0xff]  }
  0x73   :  { %1713 = vmatpush1.bf16.msra.mxu1 %v2572_v0  ;;  %v2656_v0 = vld [vmem:[%s3682_s1 + $0x2a0] ss:$8 sps:$4 sm:$0xff]  }
  0x74   :  { %1885 = vmatpush1.bf16.msra.mxu0 %v2575_v1  ;;  %1714 = vmatprep.subr.bf16.mxu1 %v2580_v2  ;;  %v2659_v1 = vld [vmem:[%s3682_s1 + $0x6a0] ss:$8 sps:$4 sm:$0xff]   ;;  %v2664_v2 = vld [vmem:[%s3682_s1 + $0x2b4] ss:$8 sps:$4 sm:$0xff]  }
  0x75   :  { %1886 = vmatprep.subr.bf16.mxu0 %v2583_v3  ;;  %v2667_v3 = vld [vmem:[%s3682_s1 + $0x6b4] ss:$8 sps:$4 sm:$0xff]  }
  0x77   :  { %1715 = vmatpush1.bf16.msra.mxu1 %v2578_v4  ;;  %v2662_v4 = vld [vmem:[%s3682_s1 + $0x2b0] ss:$8 sps:$4 sm:$0xff]  }
  0x78   :  { %1887 = vmatpush1.bf16.msra.mxu0 %v2581_v5  ;;  %1716 = vmatprep.subr.bf16.mxu1 %v2586_v6  ;;  %v2665_v5 = vld [vmem:[%s3682_s1 + $0x6b0] ss:$8 sps:$4 sm:$0xff]   ;;  %v2670_v6 = vld [vmem:[%s3682_s1 + $0x2c4] ss:$8 sps:$4 sm:$0xff]  }
  0x79   :  { %1888 = vmatprep.subr.bf16.mxu0 %v2589_v7  ;;  %v2673_v7 = vld [vmem:[%s3682_s1 + $0x6c4] ss:$8 sps:$4 sm:$0xff]  }
  0x7b   :  { %1717 = vmatpush1.bf16.msra.mxu1 %v2584_v8  ;;  %v2668_v8 = vld [vmem:[%s3682_s1 + $0x2c0] ss:$8 sps:$4 sm:$0xff]  }
  0x7c   :  { %1889 = vmatpush1.bf16.msra.mxu0 %v2587_v9  ;;  %1718 = vmatprep.subr.bf16.mxu1 %v2592_v10  ;;  %v2671_v9 = vld [vmem:[%s3682_s1 + $0x6c0] ss:$8 sps:$4 sm:$0xff]   ;;  %v2676_v10 = vld [vmem:[%s3682_s1 + $0x2d4] ss:$8 sps:$4 sm:$0xff]  }
  0x7d   :  { %1890 = vmatprep.subr.bf16.mxu0 %v2595_v11  ;;  %v2679_v11 = vld [vmem:[%s3682_s1 + $0x6d4] ss:$8 sps:$4 sm:$0xff]  }
  0x7f   :  { %1719 = vmatpush1.bf16.msra.mxu1 %v2590_v12  ;;  %v2674_v12 = vld [vmem:[%s3682_s1 + $0x2d0] ss:$8 sps:$4 sm:$0xff]  }
  0x80   :  { %1891 = vmatpush1.bf16.msra.mxu0 %v2593_v13  ;;  %1731 = vmatprep.subr.bf16.mxu1 %v2598_v14  ;;  %v2677_v13 = vld [vmem:[%s3682_s1 + $0x6d0] ss:$8 sps:$4 sm:$0xff]   ;;  %v2682_v14 = vld [vmem:[%s3682_s1 + $0x2e4] ss:$8 sps:$4 sm:$0xff]  }
  0x81   :  { %1903 = vmatprep.subr.bf16.mxu0 %v2601_v15  ;;  %v2685_v15 = vld [vmem:[%s3682_s1 + $0x6e4] ss:$8 sps:$4 sm:$0xff]  }
  0x82   :  { %1721 = vmatmul.mubr.bf16.vlgmr.msra.gmra.mrb[0].mxu1 %v2104_v16  ;;  %v2680_v16 = vld [vmem:[%s3682_s1 + $0x2e0] ss:$8 sps:$4 sm:$0xff]  }
  0x83   :  { %1893 = vmatmul.mubr.bf16.vlgmr.msra.gmra.mrb[0].mxu0 %v2112_v18  ;;  %1732 = vmatpush1.bf16.msra.mxu1 %v2596_v17  ;;  %v2683_v17 = vld [vmem:[%s3682_s1 + $0x6e0] ss:$8 sps:$4 sm:$0xff]   ;;  %v2688_v18 = vld [vmem:[%s3682_s1 + $0x2f4] ss:$8 sps:$4 sm:$0xff]  }
  0x84   :  { %1904 = vmatpush1.bf16.msra.mxu0 %v2599_v19  ;;  %1733 = vmatprep.subr.bf16.mxu1 %v2604_v20  ;;  %v2691_v19 = vld [vmem:[%s3682_s1 + $0x6f4] ss:$8 sps:$4 sm:$0xff]   ;;  %v2686_v20 = vld [vmem:[%s3682_s1 + $0x2f0] ss:$8 sps:$4 sm:$0xff]  }
  0x85   :  { %1905 = vmatprep.subr.bf16.mxu0 %v2607_v21  ;;  %1763 = vmatprep.mubr.bf16.mxu1 %v2107_v28  ;;  %v2689_v21 = vld [vmem:[%s3682_s1 + $0x6f0] ss:$8 sps:$4 sm:$0xff]   ;;  %v2114_v28 = vcombine.low %v3277_v29, %v3282_v30  ;;  %v2700_v29 = vld [vmem:[%s3682_s1 + $0x314] ss:$8 sps:$4 sm:$0xff]  }
  0x86   :  { %1935 = vmatprep.mubr.bf16.mxu0 %v2115_v31  ;;  %v3466_v31 = vld [vmem:[%s3681_s0 + $0x58] sm:$0xff] }
  0x87   :  { %1734 = vmatpush1.bf16.msra.mxu1 %v2602_v22  ;;  %v2694_v22 = vld [vmem:[%s3682_s1 + $0x304] ss:$8 sps:$4 sm:$0xff]   ;;  %v2703_v30 = vld [vmem:[%s3682_s1 + $0x714] ss:$8 sps:$4 sm:$0xff]  }
  0x88   :  { %1906 = vmatpush1.bf16.msra.mxu0 %v2605_v23  ;;  %1735 = vmatprep.subr.bf16.mxu1 %v2610_v26  ;;  %v2697_v23 = vld [vmem:[%s3682_s1 + $0x704] ss:$8 sps:$4 sm:$0xff]   ;;  %v3457_v26 = vld [vmem:[%s3681_s0 + $0x18] sm:$0xff] }
  0x89   :  { %1907 = vmatprep.subr.bf16.mxu0 %v2613_v27  ;;  %v2106_v27 = vcombine.low %v3259_v24, %v3264_v25  ;;  %v2692_v24 = vld [vmem:[%s3682_s1 + $0x300] ss:$8 sps:$4 sm:$0xff]  }
  0x8a   :  { %v2695_v25 = vld [vmem:[%s3682_s1 + $0x700] ss:$8 sps:$4 sm:$0xff]  }
  0x8b   :  { %1736 = vmatpush1.bf16.msra.mxu1 %v2608_v32  ;;  %v3471_v32 = vld [vmem:[%s3681_s0 + $0x38] sm:$0xff] }
  0x8c   :  { %1908 = vmatpush1.bf16.msra.mxu0 %v2611_v33  ;;  %1737 = vmatprep.subr.bf16.mxu1 %v2616_v34  ;;  %v3476_v33 = vld [vmem:[%s3681_s0 + $0x78] sm:$0xff]  ;;  %v2109_v34 = vcombine.high %v3457_v26, %v3466_v31 }
  0x8d   :  { %1909 = vmatprep.subr.bf16.mxu0 %v2619_v35  ;;  %v2117_v35 = vcombine.high %v3471_v32, %v3476_v33 }
  0x8f   :  { %1738 = vmatpush1.bf16.msra.mxu1 %v2614_v36  ;;  %v2698_v36 = vld [vmem:[%s3682_s1 + $0x310] ss:$8 sps:$4 sm:$0xff]  }
  0x90   :  { %1910 = vmatpush1.bf16.msra.mxu0 %v2617_v37  ;;  %1739 = vmatprep.subr.bf16.mxu1 %v2622_v38  ;;  %v2701_v37 = vld [vmem:[%s3682_s1 + $0x710] ss:$8 sps:$4 sm:$0xff]   ;;  %v2706_v38 = vld [vmem:[%s3682_s1 + $0x324] ss:$8 sps:$4 sm:$0xff]  }
  0x91   :  { %1911 = vmatprep.subr.bf16.mxu0 %v2625_v39  ;;  %v2709_v39 = vld [vmem:[%s3682_s1 + $0x724] ss:$8 sps:$4 sm:$0xff]  }
  0x93   :  { %1740 = vmatpush1.bf16.msra.mxu1 %v2620_v40  ;;  %v2704_v40 = vld [vmem:[%s3682_s1 + $0x320] ss:$8 sps:$4 sm:$0xff]  }
  0x94   :  { %1912 = vmatpush1.bf16.msra.mxu0 %v2623_v41  ;;  %1741 = vmatprep.subr.bf16.mxu1 %v2628_v42  ;;  %v2707_v41 = vld [vmem:[%s3682_s1 + $0x720] ss:$8 sps:$4 sm:$0xff]   ;;  %v2712_v42 = vld [vmem:[%s3682_s1 + $0x334] ss:$8 sps:$4 sm:$0xff]  }
  0x95   :  { %1913 = vmatprep.subr.bf16.mxu0 %v2631_v43  ;;  %v2715_v43 = vld [vmem:[%s3682_s1 + $0x734] ss:$8 sps:$4 sm:$0xff]  }
  0x97   :  { %1742 = vmatpush1.bf16.msra.mxu1 %v2626_v44  ;;  %v2710_v44 = vld [vmem:[%s3682_s1 + $0x330] ss:$8 sps:$4 sm:$0xff]  }
  0x98   :  { %1914 = vmatpush1.bf16.msra.mxu0 %v2629_v45  ;;  %1743 = vmatprep.subr.bf16.mxu1 %v2634_v46  ;;  %v2713_v45 = vld [vmem:[%s3682_s1 + $0x730] ss:$8 sps:$4 sm:$0xff]   ;;  %v2718_v46 = vld [vmem:[%s3682_s1 + $0x344] ss:$8 sps:$4 sm:$0xff]  }
  0x99   :  { %1915 = vmatprep.subr.bf16.mxu0 %v2637_v47  ;;  %v2721_v47 = vld [vmem:[%s3682_s1 + $0x744] ss:$8 sps:$4 sm:$0xff]  }
  0x9b   :  { %1744 = vmatpush1.bf16.msra.mxu1 %v2632_v48  ;;  %v2716_v48 = vld [vmem:[%s3682_s1 + $0x340] ss:$8 sps:$4 sm:$0xff]  }
  0x9c   :  { %1916 = vmatpush1.bf16.msra.mxu0 %v2635_v49  ;;  %1745 = vmatprep.subr.bf16.mxu1 %v2640_v50  ;;  %v2719_v49 = vld [vmem:[%s3682_s1 + $0x740] ss:$8 sps:$4 sm:$0xff]   ;;  %v2724_v50 = vld [vmem:[%s3682_s1 + $0x354] ss:$8 sps:$4 sm:$0xff]  }
  0x9d   :  { %1917 = vmatprep.subr.bf16.mxu0 %v2643_v51  ;;  %v2727_v51 = vld [vmem:[%s3682_s1 + $0x754] ss:$8 sps:$4 sm:$0xff]  }
  0x9f   :  { %1746 = vmatpush1.bf16.msra.mxu1 %v2638_v52  ;;  %v2722_v52 = vld [vmem:[%s3682_s1 + $0x350] ss:$8 sps:$4 sm:$0xff]  }
  0xa0   :  { %1918 = vmatpush1.bf16.msra.mxu0 %v2641_v53  ;;  %1747 = vmatprep.subr.bf16.mxu1 %v2646_v54  ;;  %v2725_v53 = vld [vmem:[%s3682_s1 + $0x750] ss:$8 sps:$4 sm:$0xff]   ;;  %v2730_v54 = vld [vmem:[%s3682_s1 + $0x364] ss:$8 sps:$4 sm:$0xff]  }
  0xa1   :  { %1919 = vmatprep.subr.bf16.mxu0 %v2649_v55  ;;  %v2733_v55 = vld [vmem:[%s3682_s1 + $0x764] ss:$8 sps:$4 sm:$0xff]  }
  0xa3   :  { %1748 = vmatpush1.bf16.msra.mxu1 %v2644_v56  ;;  %v2728_v56 = vld [vmem:[%s3682_s1 + $0x360] ss:$8 sps:$4 sm:$0xff]  }
  0xa4   :  { %1920 = vmatpush1.bf16.msra.mxu0 %v2647_v57  ;;  %1749 = vmatprep.subr.bf16.mxu1 %v2652_v58  ;;  %v2731_v57 = vld [vmem:[%s3682_s1 + $0x760] ss:$8 sps:$4 sm:$0xff]   ;;  %v2736_v58 = vld [vmem:[%s3682_s1 + $0x374] ss:$8 sps:$4 sm:$0xff]  }
  0xa5   :  { %1921 = vmatprep.subr.bf16.mxu0 %v2655_v59  ;;  %v2739_v59 = vld [vmem:[%s3682_s1 + $0x774] ss:$8 sps:$4 sm:$0xff]  }
  0xa7   :  { %1750 = vmatpush1.bf16.msra.mxu1 %v2650_v60  ;;  %v2734_v60 = vld [vmem:[%s3682_s1 + $0x370] ss:$8 sps:$4 sm:$0xff]  }
  0xa8   :  { %1922 = vmatpush1.bf16.msra.mxu0 %v2653_v61  ;;  %1751 = vmatprep.subr.bf16.mxu1 %v2658_v62  ;;  %v2737_v61 = vld [vmem:[%s3682_s1 + $0x770] ss:$8 sps:$4 sm:$0xff]   ;;  %v2742_v62 = vld [vmem:[%s3682_s1 + $0x384] ss:$8 sps:$4 sm:$0xff]  }
  0xa9   :  { %1923 = vmatprep.subr.bf16.mxu0 %v2661_v63  ;;  %v2745_v63 = vld [vmem:[%s3682_s1 + $0x784] ss:$8 sps:$4 sm:$0xff]  }
  0xab   :  { %1752 = vmatpush1.bf16.msra.mxu1 %v2656_v0  ;;  %v2740_v0 = vld [vmem:[%s3682_s1 + $0x380] ss:$8 sps:$4 sm:$0xff]  }
  0xac   :  { %1924 = vmatpush1.bf16.msra.mxu0 %v2659_v1  ;;  %1753 = vmatprep.subr.bf16.mxu1 %v2664_v2  ;;  %v2743_v1 = vld [vmem:[%s3682_s1 + $0x780] ss:$8 sps:$4 sm:$0xff]   ;;  %v2748_v2 = vld [vmem:[%s3682_s1 + $0x394] ss:$8 sps:$4 sm:$0xff]  }
  0xad   :  { %1925 = vmatprep.subr.bf16.mxu0 %v2667_v3  ;;  %v2751_v3 = vld [vmem:[%s3682_s1 + $0x794] ss:$8 sps:$4 sm:$0xff]  }
  0xaf   :  { %1754 = vmatpush1.bf16.msra.mxu1 %v2662_v4  ;;  %v2746_v4 = vld [vmem:[%s3682_s1 + $0x390] ss:$8 sps:$4 sm:$0xff]  }
  0xb0   :  { %1926 = vmatpush1.bf16.msra.mxu0 %v2665_v5  ;;  %1755 = vmatprep.subr.bf16.mxu1 %v2670_v6  ;;  %v2749_v5 = vld [vmem:[%s3682_s1 + $0x790] ss:$8 sps:$4 sm:$0xff]   ;;  %v2754_v6 = vld [vmem:[%s3682_s1 + $0x3a4] ss:$8 sps:$4 sm:$0xff]  }
  0xb1   :  { %1927 = vmatprep.subr.bf16.mxu0 %v2673_v7  ;;  %v2757_v7 = vld [vmem:[%s3682_s1 + $0x7a4] ss:$8 sps:$4 sm:$0xff]  }
  0xb3   :  { %1756 = vmatpush1.bf16.msra.mxu1 %v2668_v8  ;;  %v2752_v8 = vld [vmem:[%s3682_s1 + $0x3a0] ss:$8 sps:$4 sm:$0xff]  }
  0xb4   :  { %1928 = vmatpush1.bf16.msra.mxu0 %v2671_v9  ;;  %1757 = vmatprep.subr.bf16.mxu1 %v2676_v10  ;;  %v2755_v9 = vld [vmem:[%s3682_s1 + $0x7a0] ss:$8 sps:$4 sm:$0xff]   ;;  %v2760_v10 = vld [vmem:[%s3682_s1 + $0x3b4] ss:$8 sps:$4 sm:$0xff]  }
  0xb5   :  { %1929 = vmatprep.subr.bf16.mxu0 %v2679_v11  ;;  %v2763_v11 = vld [vmem:[%s3682_s1 + $0x7b4] ss:$8 sps:$4 sm:$0xff]  }
  0xb7   :  { %1758 = vmatpush1.bf16.msra.mxu1 %v2674_v12  ;;  %v2758_v12 = vld [vmem:[%s3682_s1 + $0x3b0] ss:$8 sps:$4 sm:$0xff]  }
  0xb8   :  { %1930 = vmatpush1.bf16.msra.mxu0 %v2677_v13  ;;  %1759 = vmatprep.subr.bf16.mxu1 %v2682_v14  ;;  %v2761_v13 = vld [vmem:[%s3682_s1 + $0x7b0] ss:$8 sps:$4 sm:$0xff]   ;;  %v2766_v14 = vld [vmem:[%s3682_s1 + $0x3c4] ss:$8 sps:$4 sm:$0xff]  }
  0xb9   :  { %1931 = vmatprep.subr.bf16.mxu0 %v2685_v15  ;;  %v2769_v15 = vld [vmem:[%s3682_s1 + $0x7c4] ss:$8 sps:$4 sm:$0xff]  }
  0xbb   :  { %1760 = vmatpush1.bf16.msra.mxu1 %v2680_v16  ;;  %v2764_v16 = vld [vmem:[%s3682_s1 + $0x3c0] ss:$8 sps:$4 sm:$0xff]  }
  0xbc   :  { %1932 = vmatpush1.bf16.msra.mxu0 %v2683_v17  ;;  %1761 = vmatprep.subr.bf16.mxu1 %v2688_v18  ;;  %v2767_v17 = vld [vmem:[%s3682_s1 + $0x7c0] ss:$8 sps:$4 sm:$0xff]   ;;  %v2772_v18 = vld [vmem:[%s3682_s1 + $0x3d4] ss:$8 sps:$4 sm:$0xff]  }
  0xbd   :  { %1933 = vmatprep.subr.bf16.mxu0 %v2691_v19  ;;  %v2775_v19 = vld [vmem:[%s3682_s1 + $0x7d4] ss:$8 sps:$4 sm:$0xff]  }
  0xbf   :  { %1762 = vmatpush1.bf16.msra.mxu1 %v2686_v20  ;;  %v2770_v20 = vld [vmem:[%s3682_s1 + $0x3d0] ss:$8 sps:$4 sm:$0xff]  }
  0xc0   :  { %1934 = vmatpush1.bf16.msra.mxu0 %v2689_v21  ;;  %1774 = vmatprep.subr.bf16.mxu1 %v2694_v22  ;;  %v2773_v21 = vld [vmem:[%s3682_s1 + $0x7d0] ss:$8 sps:$4 sm:$0xff]   ;;  %v2778_v22 = vld [vmem:[%s3682_s1 + $0x3e4] ss:$8 sps:$4 sm:$0xff]  }
  0xc1   :  { %1946 = vmatprep.subr.bf16.mxu0 %v2697_v23  ;;  %v2781_v23 = vld [vmem:[%s3682_s1 + $0x7e4] ss:$8 sps:$4 sm:$0xff]  }
  0xc2   :  { %1764 = vmatmul.mubr.bf16.vlgmr.msra.gmra.mrb[0].mxu1 %v2106_v27  ;;  %v2776_v27 = vld [vmem:[%s3682_s1 + $0x3e0] ss:$8 sps:$4 sm:$0xff]  }
  0xc3   :  { %1936 = vmatmul.mubr.bf16.vlgmr.msra.gmra.mrb[0].mxu0 %v2114_v28  ;;  %1775 = vmatpush1.bf16.msra.mxu1 %v2692_v24  ;;  %v2779_v28 = vld [vmem:[%s3682_s1 + $0x7e0] ss:$8 sps:$4 sm:$0xff]   ;;  %v2784_v24 = vld [vmem:[%s3682_s1 + $0x3f4] ss:$8 sps:$4 sm:$0xff]  }
  0xc4   :  { %1947 = vmatpush1.bf16.msra.mxu0 %v2695_v25  ;;  %1776 = vmatprep.subr.bf16.mxu1 %v2700_v29  ;;  %v2787_v25 = vld [vmem:[%s3682_s1 + $0x7f4] ss:$8 sps:$4 sm:$0xff]   ;;  %v2782_v29 = vld [vmem:[%s3682_s1 + $0x3f0] ss:$8 sps:$4 sm:$0xff]  }
  0xc5   :  { %1948 = vmatprep.subr.bf16.mxu0 %v2703_v30  ;;  %1806 = vmatprep.mubr.bf16.mxu1 %v2109_v34  ;;  %v2785_v30 = vld [vmem:[%s3682_s1 + $0x7f0] ss:$8 sps:$4 sm:$0xff]   ;;  %v2108_v34 = vcombine.low %v3457_v26, %v3466_v31 }
  0xc6   :  { %1978 = vmatprep.mubr.bf16.mxu0 %v2117_v35  ;;  %v2116_v35 = vcombine.low %v3471_v32, %v3476_v33 }
  0xc7   :  { %1777 = vmatpush1.bf16.msra.mxu1 %v2698_v36 }
  0xc8   :  { %1949 = vmatpush1.bf16.msra.mxu0 %v2701_v37  ;;  %1778 = vmatprep.subr.bf16.mxu1 %v2706_v38 }
  0xc9   :  { %1950 = vmatprep.subr.bf16.mxu0 %v2709_v39 }
  0xcb   :  { %1779 = vmatpush1.bf16.msra.mxu1 %v2704_v40 }
  0xcc   :  { %1951 = vmatpush1.bf16.msra.mxu0 %v2707_v41  ;;  %1780 = vmatprep.subr.bf16.mxu1 %v2712_v42 }
  0xcd   :  { %1952 = vmatprep.subr.bf16.mxu0 %v2715_v43 }
  0xcf   :  { %1781 = vmatpush1.bf16.msra.mxu1 %v2710_v44 }
  0xd0   :  { %1953 = vmatpush1.bf16.msra.mxu0 %v2713_v45  ;;  %1782 = vmatprep.subr.bf16.mxu1 %v2718_v46 }
  0xd1   :  { %1954 = vmatprep.subr.bf16.mxu0 %v2721_v47 }
  0xd3   :  { %1783 = vmatpush1.bf16.msra.mxu1 %v2716_v48 }
  0xd4   :  { %1955 = vmatpush1.bf16.msra.mxu0 %v2719_v49  ;;  %1784 = vmatprep.subr.bf16.mxu1 %v2724_v50  ;;  %v2003_v49 = vlaneseq }
  0xd5   :  { %1956 = vmatprep.subr.bf16.mxu0 %v2727_v51 }
  0xd7   :  { %1785 = vmatpush1.bf16.msra.mxu1 %v2722_v52 }
  0xd8   :  { %1957 = vmatpush1.bf16.msra.mxu0 %v2725_v53  ;;  %1786 = vmatprep.subr.bf16.mxu1 %v2730_v54 }
  0xd9   :  { %1958 = vmatprep.subr.bf16.mxu0 %v2733_v55 }
  0xdb   :  { %1787 = vmatpush1.bf16.msra.mxu1 %v2728_v56 }
  0xdc   :  { %1959 = vmatpush1.bf16.msra.mxu0 %v2731_v57  ;;  %1788 = vmatprep.subr.bf16.mxu1 %v2736_v58  ;;  %v2004_v58 = vshrl.u32 %v2003_v49, 7 }
  0xdd   :  { %1960 = vmatprep.subr.bf16.mxu0 %v2739_v59 }
  0xde   :  { %vm2048_vm0 = vcmp.eq.s32.totalorder %v2004_v58, 0  ;;  %vm2051_vm1 = vcmp.eq.s32.totalorder %v2004_v58, 1 }
  0xdf   :  { %1789 = vmatpush1.bf16.msra.mxu1 %v2734_v60 }
  0xe0   :  { %1961 = vmatpush1.bf16.msra.mxu0 %v2737_v61  ;;  %1790 = vmatprep.subr.bf16.mxu1 %v2742_v62 }
  0xe1   :  { %1962 = vmatprep.subr.bf16.mxu0 %v2745_v63 }
  0xe3   :  { %1791 = vmatpush1.bf16.msra.mxu1 %v2740_v0 }
  0xe4   :  { %1963 = vmatpush1.bf16.msra.mxu0 %v2743_v1  ;;  %1792 = vmatprep.subr.bf16.mxu1 %v2748_v2 }
  0xe5   :  { %1964 = vmatprep.subr.bf16.mxu0 %v2751_v3 }
  0xe7   :  { %1793 = vmatpush1.bf16.msra.mxu1 %v2746_v4 }
  0xe8   :  { %1965 = vmatpush1.bf16.msra.mxu0 %v2749_v5  ;;  %1794 = vmatprep.subr.bf16.mxu1 %v2754_v6 }
  0xe9   :  { %1966 = vmatprep.subr.bf16.mxu0 %v2757_v7 }
  0xeb   :  { %1795 = vmatpush1.bf16.msra.mxu1 %v2752_v8 }
  0xec   :  { %1967 = vmatpush1.bf16.msra.mxu0 %v2755_v9  ;;  %1796 = vmatprep.subr.bf16.mxu1 %v2760_v10 }
  0xed   :  { %1968 = vmatprep.subr.bf16.mxu0 %v2763_v11 }
  0xef   :  { %1797 = vmatpush1.bf16.msra.mxu1 %v2758_v12 }
  0xf0   :  { %1969 = vmatpush1.bf16.msra.mxu0 %v2761_v13  ;;  %1798 = vmatprep.subr.bf16.mxu1 %v2766_v14 }
  0xf1   :  { %1970 = vmatprep.subr.bf16.mxu0 %v2769_v15 }
  0xf3   :  { %1799 = vmatpush1.bf16.msra.mxu1 %v2764_v16 }
  0xf4   :  { %1971 = vmatpush1.bf16.msra.mxu0 %v2767_v17  ;;  %1800 = vmatprep.subr.bf16.mxu1 %v2772_v18 }
  0xf5   :  { %1972 = vmatprep.subr.bf16.mxu0 %v2775_v19 }
  0xf7   :  { %1801 = vmatpush1.bf16.msra.mxu1 %v2770_v20 }
  0xf8   :  { %1973 = vmatpush1.bf16.msra.mxu0 %v2773_v21  ;;  %1802 = vmatprep.subr.bf16.mxu1 %v2778_v22 }
  0xf9   :  { %1974 = vmatprep.subr.bf16.mxu0 %v2781_v23 }
  0xfb   :  { %1803 = vmatpush1.bf16.msra.mxu1 %v2776_v27 }
  0xfc   :  { %1975 = vmatpush1.bf16.msra.mxu0 %v2779_v28  ;;  %1804 = vmatprep.subr.bf16.mxu1 %v2784_v24 }
  0xfd   :  { %1976 = vmatprep.subr.bf16.mxu0 %v2787_v25 }
  0xff   :  { %1805 = vmatpush1.bf16.msra.mxu1 %v2782_v29 }
 0x100   :  { %1977 = vmatpush1.bf16.msra.mxu0 %v2785_v30 }
 0x102   :  { %1807 = vmatmul.mubr.bf16.vlgmr.msra.gmra.mrb[0].mxu1 %v2108_v34 }
 0x103   :  { %1979 = vmatmul.mubr.bf16.vlgmr.msra.gmra.mrb[0].mxu0 %v2116_v35 }
 0x1d5   :  { %v1808_v36 = vpop.f32.mrb[0].mxu1 }
 0x1d6   :  { %v1980_v37 = vpop.f32.mrb[0].mxu0  ;;  %v1810_v39 = vpop.f32.mrb[1].mxu1 }
 0x1d7   :  { %v2378_v38 = vadd.f32 %v1980_v37, %v1808_v36  ;;  %v1982_v40 = vpop.f32.mrb[1].mxu0  ;;  %v1812_v42 = vpop.f32.mrb[2].mxu1 }
 0x1d8   :  { %v2379_v41 = vadd.f32 %v1982_v40, %v1810_v39  ;;  %v1984_v43 = vpop.f32.mrb[2].mxu0  ;;  %v1814_v46 = vpop.f32.mrb[3].mxu1 }
 0x1d9   :  { %v2017_v44 = vrot.slane %v2378_v38, 4  ;;  %v2030_v45 = vmul.f32 %v2378_v38, %v2378_v38  ;;  %v1986_v47 = vpop.f32.mrb[3].mxu0 }
 0x1da   :  { %v2376_v26 = vpack.c.bf16 %v2379_v41, %v2378_v38  ;;  %v2024_v31 = vrot.slane %v2379_v41, 4  ;;  %v2031_v48 = vmul.f32 %v2379_v41, %v2379_v41 }
 0x1db   :  { %v2018_v32 = vadd.f32 %v2378_v38, %v2017_v44  ;;  %v2035_v33 = vrot.slane %v2030_v45, 4 }
 0x1dc   :  { %v2025_v50 = vadd.f32 %v2379_v41, %v2024_v31  ;;  %v2042_v51 = vrot.slane %v2031_v48, 4  ;;  %2088 = vst [vmem:[%s3683_s2] sm:$0xff] %v2376_v26 }
 0x1dd   :  { %v2019_v52 = vrot.slane %v2018_v32, 2  ;;  %v2036_v53 = vadd.f32 %v2035_v33, %v2030_v45 }
 0x1de   :  { %v2026_v54 = vrot.slane %v2025_v50, 2  ;;  %v2043_v55 = vadd.f32 %v2042_v51, %v2031_v48 }
 0x1df   :  { %v2020_v56 = vadd.f32 %v2019_v52, %v2018_v32  ;;  %v2037_v57 = vrot.slane %v2036_v53, 2 }
 0x1e0   :  { %v2027_v59 = vadd.f32 %v2026_v54, %v2025_v50  ;;  %v2044_v60 = vrot.slane %v2043_v55, 2 }
 0x1e1   :  { %v2021_v61 = vrot.slane %v2020_v56, 1  ;;  %v2038_v62 = vadd.f32 %v2037_v57, %v2036_v53 }
 0x1e2   :  { %v2028_v63 = vrot.slane %v2027_v59, 1  ;;  %v2045_v0 = vadd.f32 %v2044_v60, %v2043_v55 }
 0x1e3   :  { %v2022_v1 = vadd.f32 %v2021_v61, %v2020_v56  ;;  %v2039_v2 = vrot.slane %v2038_v62, 1 }
 0x1e4   :  { %v2029_v3 = vadd.f32 %v2028_v63, %v2027_v59  ;;  %v2046_v4 = vrot.slane %v2045_v0, 1 }
 0x1e5   :  { %v2040_v5 = vadd.f32 %v2039_v2, %v2038_v62  ;;  %v2049_v7 = vsel %vm2048_vm0, %v2022_v1, 0.0 }
 0x1e6   :  { %v2047_v6 = vadd.f32 %v2046_v4, %v2045_v0  ;;  %v2050_v10 = vsel %vm2048_vm0, %v2029_v3, 0.0 }
 0x1e7   :  { %v2052_v8 = vsel %vm2051_vm1, %v2040_v5, 0.0 }
 0x1e8   :  { %v2054_v9 = vadd.f32 %v2052_v8, %v2049_v7  ;;  %v2053_v11 = vsel %vm2051_vm1, %v2047_v6, 0.0 }
 0x1e9   :  { %v2055_v12 = vadd.f32 %v2053_v11, %v2050_v10 }
 0x1ea   :  { %2056 = vst [vmem:[%s3684_s3] sm:$0xff] %v2054_v9 }
 0x1eb   :  { %2057 = vst [vmem:[%s3684_s3 + $0x8] sm:$0xff] %v2055_v12 }

// kernel: generator_forward.22
= control target key start
LH: loop header
LB: loop body
LE: loop exit
PB: predicated region body
PF: predicated region fallthrough
CT: control target
= control target key end

     0   :  { %v32_v2 = vlaneseq  ;;  %v434_v5 = vmov 1983009808   ;;  %v435_v46 = vmov 1966171168   ;;  %s479_s0 = inlined_call_operand.vmem [shape: bf16[1,2,512], index: 0, kind: input, shape index: {}]   ;;  %s480_s1 = inlined_call_operand.vmem [shape: f32[1,512], index: 1, kind: input, shape index: {}]   ;;  %s481_s2 = inlined_call_operand.vmem [shape: f32[1,512], index: 2, kind: input, shape index: {}]   ;;  %s482_s3 = inlined_call_operand.vmem [shape: bf16[1,2,512], index: 3, kind: output, shape index: {}]  }
   0x1   :  { %v414_v0 = vld [vmem:[%s479_s0] sm:$0xff]   ;;  %v429_v1 = vld [vmem:[%s479_s0 + $0x8] sm:$0xff]   ;;  %v53_v6 = vunpack.c.l.s4 %v434_v5  ;;  %v287_v47 = vunpack.c.l.s4 %v435_v46 }
   0x2   :  { %v415_v3 = vunpack.c.l.bf16 %v414_v0  ;;  %v462_v4 = vshrl.u32 %v32_v2, 7  ;;  %v416_v7 = vunpack.c.h.bf16 %v414_v0  ;;  %v419_v8 = vunpack.c.l.bf16 %v429_v1  ;;  %v30_v10 = vld [vmem:[%s480_s1] sm:$0xf] }
   0x3   :  { %v420_v9 = vunpack.c.h.bf16 %v429_v1  ;;  %v96_v15 = vld [vmem:[%s481_s2] sm:$0xf]  ;;  %v54_v16 = vunpack.c.0.s8 %v53_v6  ;;  %v288_v63 = vunpack.c.0.s8 %v287_v47 }
   0x4   :  { %v34_v11 = vsub.s32 0, %v462_v4  ;;  %v38_v12 = vsub.s32 1, %v462_v4  ;;  %v42_v13 = vsub.s32 2, %v462_v4  ;;  %v46_v14 = vsub.s32 3, %v462_v4 }
   0x5   :  { %v57_v21 = vsub.s32 %v54_v16, %v462_v4 }
   0x6   :  { %v35_v17 = vrot.slane %v30_v10, %v34_v11  ;;  %v39_v18 = vrot.slane %v30_v10, %v38_v12  ;;  %v43_v19 = vrot.slane %v30_v10, %v42_v13  ;;  %v47_v20 = vrot.slane %v30_v10, %v46_v14 }
   0x7   :  { %v101_v22 = vrot.slane %v96_v15, %v34_v11  ;;  %v105_v23 = vrot.slane %v96_v15, %v38_v12  ;;  %v109_v24 = vrot.slane %v96_v15, %v42_v13  ;;  %v113_v29 = vrot.slane %v96_v15, %v46_v14 }
   0x8   :  { %v48_v25 = vcombine.low %v35_v17, %v39_v18  ;;  %v49_v26 = vcombine.high %v35_v17, %v39_v18  ;;  %v50_v27 = vcombine.low %v43_v19, %v47_v20  ;;  %v51_v28 = vcombine.high %v43_v19, %v47_v20 }
   0x9   :  { %v114_v30 = vcombine.low %v101_v22, %v105_v23  ;;  %v115_v31 = vcombine.high %v101_v22, %v105_v23  ;;  %v116_v36 = vcombine.low %v109_v24, %v113_v29  ;;  %v117_v37 = vcombine.high %v109_v24, %v113_v29 }
   0xa   :  { %v58_v32 = vrot.slane %v48_v25, %v57_v21  ;;  %v65_v33 = vrot.slane %v49_v26, %v57_v21  ;;  %v72_v34 = vrot.slane %v50_v27, %v57_v21  ;;  %v79_v35 = vrot.slane %v51_v28, %v57_v21 }
   0xb   :  { %v124_v38 = vrot.slane %v114_v30, %v57_v21  ;;  %v131_v39 = vrot.slane %v115_v31, %v57_v21  ;;  %v138_v44 = vrot.slane %v116_v36, %v57_v21  ;;  %v145_v45 = vrot.slane %v117_v37, %v57_v21 }
   0xc   :  { %v80_v40 = vcombine.low %v58_v32, %v72_v34  ;;  %v81_v41 = vcombine.high %v58_v32, %v72_v34  ;;  %v82_v42 = vcombine.low %v65_v33, %v79_v35  ;;  %v83_v43 = vcombine.high %v65_v33, %v79_v35 }
   0xd   :  { %v146_v52 = vcombine.low %v124_v38, %v138_v44  ;;  %v147_v53 = vcombine.high %v124_v38, %v138_v44  ;;  %v148_v54 = vcombine.low %v131_v39, %v145_v45  ;;  %v149_v55 = vcombine.high %v131_v39, %v145_v45 }
   0xe   :  { %v88_v48 = vmul.f32 %v415_v3, %v80_v40  ;;  %v89_v49 = vmul.f32 %v416_v7, %v81_v41  ;;  %v90_v50 = vmul.f32 %v419_v8, %v82_v42  ;;  %v91_v51 = vmul.f32 %v420_v9, %v83_v43 }
   0xf   :  { %v291_v14 = vsub.s32 %v288_v63, %v462_v4 }
  0x10   :  { %v154_v56 = vadd.f32 %v146_v52, %v88_v48  ;;  %v155_v57 = vadd.f32 %v147_v53, %v89_v49  ;;  %v156_v58 = vadd.f32 %v148_v54, %v90_v50  ;;  %v157_v59 = vadd.f32 %v149_v55, %v91_v51 }
  0x12   :  { %vm162_vm0 = vcmp.gt.f32.partialorder %v154_v56, 0.0  ;;  %vm163_vm1 = vcmp.gt.f32.partialorder %v155_v57, 0.0  ;;  %vm164_vm2 = vcmp.gt.f32.partialorder %v156_v58, 0.0  ;;  %vm165_vm3 = vcmp.gt.f32.partialorder %v157_v59, 0.0 }
  0x13   :  { %v170_v60 = vmul.f32 0.2, %v154_v56  ;;  %v171_v61 = vmul.f32 0.2, %v155_v57  ;;  %v172_v62 = vmul.f32 0.2, %v156_v58 }
  0x14   :  { %v173_v0 = vmul.f32 0.2, %v157_v59 }
  0x15   :  { %v178_v1 = vsel %vm162_vm0, %v154_v56, %v170_v60  ;;  %v179_v2 = vsel %vm163_vm1, %v155_v57, %v171_v61  ;;  %v180_v3 = vsel %vm164_vm2, %v156_v58, %v172_v62 }
  0x16   :  { %v181_v5 = vsel %vm165_vm3, %v157_v59, %v173_v0  ;;  %v194_v6 = vcombine.low %v178_v1, %v179_v2  ;;  %v195_v7 = vcombine.high %v178_v1, %v179_v2 }
  0x17   :  { %v196_v8 = vcombine.low %v180_v3, %v181_v5  ;;  %v197_v9 = vcombine.high %v180_v3, %v181_v5 }
  0x18   :  { %v204_v10 = vrot.slane %v194_v6, %v57_v21  ;;  %v211_v11 = vrot.slane %v195_v7, %v57_v21 }
  0x19   :  { %v218_v12 = vrot.slane %v196_v8, %v57_v21  ;;  %v225_v13 = vrot.slane %v197_v9, %v57_v21 }
  0x1b   :  { %v226_v15 = vcombine.low %v204_v10, %v218_v12  ;;  %v227_v16 = vcombine.high %v204_v10, %v218_v12  ;;  %v228_v17 = vcombine.low %v211_v11, %v225_v13  ;;  %v229_v18 = vcombine.high %v211_v11, %v225_v13 }
  0x1d   :  { %v405_v19 = vpack.c.bf16 %v227_v16, %v226_v15  ;;  %v407_v20 = vpack.c.bf16 %v229_v18, %v228_v17 }
  0x1f   :  { %v292_v22 = vrot.slane %v405_v19, %v291_v14  ;;  %v306_v23 = vrot.slane %v407_v20, %v291_v14 }
  0x21   :  { %v314_v24 = vcombine.low %v292_v22, %v306_v23 }
  0x23   :  { %409 = vst.sshfl [vmem:[#allocation2] sm:$0x55 pattern:$0x73625140] %v314_v24 }
  0x2a   :  { %v383_v25 = vld [vmem:[#allocation2] sm:$0xf] }
  0x2b   :  { %384 = vst [vmem:[%s482_s3] sm:$0xf] %v383_v25 }

// kernel: generator_forward.21
= control target key start
LH: loop header
LB: loop body
LE: loop exit
PB: predicated region body
PF: predicated region fallthrough
CT: control target
= control target key end

     0   :  { %v11104_v38 = vmov 1966171168   ;;  %v1112_v40 = vlaneseq  ;;  %s14630_s0 = inlined_call_operand.vmem [shape: bf16[1,2,4096], index: 0, kind: input, shape index: {}]   ;;  %s14631_s1 = inlined_call_operand.vmem [shape: bf16[1,4096,512], index: 1, kind: input, shape index: {}]   ;;  %s14632_s2 = inlined_call_operand.vmem [shape: bf16[1,2,512], index: 2, kind: output, shape index: {0}]   ;;  %s14633_s3 = inlined_call_operand.vmem [shape: f32[1,1,8,512], index: 3, kind: output, shape index: {1}]  }
   0x1   :  { %v9560_v0 = vld [vmem:[%s14631_s1 + $0x4] ss:$16 sps:$4 sm:$0xff]   ;;  %v9562_v1 = vld [vmem:[%s14631_s1 + $0xc] ss:$16 sps:$4 sm:$0xff]   ;;  %v9564_v2 = vld [vmem:[%s14631_s1] ss:$16 sps:$4 sm:$0xff]   ;;  %v1110_v39 = vunpack.c.l.s4 %v11104_v38 }
   0x2   :  { %6797 = vmatprep.subr.bf16.mxu0 %v9560_v0  ;;  %v9565_v3 = vld [vmem:[%s14631_s1 + $0x8] ss:$16 sps:$4 sm:$0xff]   ;;  %7485 = vmatprep.subr.bf16.mxu1 %v9562_v1  ;;  %v9566_v4 = vld [vmem:[%s14631_s1 + $0x24] ss:$16 sps:$4 sm:$0xff]   ;;  %v9568_v5 = vld [vmem:[%s14631_s1 + $0x2c] ss:$16 sps:$4 sm:$0xff]  }
   0x3   :  { %6798 = vmatpush1.bf16.msra.mxu0 %v9564_v2  ;;  %7486 = vmatpush1.bf16.msra.mxu1 %v9565_v3  ;;  %v9570_v6 = vld [vmem:[%s14631_s1 + $0x20] ss:$16 sps:$4 sm:$0xff]   ;;  %v9571_v7 = vld [vmem:[%s14631_s1 + $0x28] ss:$16 sps:$4 sm:$0xff]   ;;  %v9572_v8 = vld [vmem:[%s14631_s1 + $0x44] ss:$16 sps:$4 sm:$0xff]   ;;  %v1111_v45 = vunpack.c.0.s8 %v1110_v39 }
   0x4   :  { %6799 = vmatprep.subr.bf16.mxu0 %v9566_v4  ;;  %7487 = vmatprep.subr.bf16.mxu1 %v9568_v5  ;;  %v9574_v9 = vld [vmem:[%s14631_s1 + $0x4c] ss:$16 sps:$4 sm:$0xff]   ;;  %v9576_v10 = vld [vmem:[%s14631_s1 + $0x40] ss:$16 sps:$4 sm:$0xff]   ;;  %v9577_v11 = vld [vmem:[%s14631_s1 + $0x48] ss:$16 sps:$4 sm:$0xff]  }
   0x5   :  { %v9578_v12 = vld [vmem:[%s14631_s1 + $0x64] ss:$16 sps:$4 sm:$0xff]   ;;  %v9580_v13 = vld [vmem:[%s14631_s1 + $0x6c] ss:$16 sps:$4 sm:$0xff]   ;;  %v9582_v14 = vld [vmem:[%s14631_s1 + $0x60] ss:$16 sps:$4 sm:$0xff]  }
   0x6   :  { %v9583_v15 = vld [vmem:[%s14631_s1 + $0x68] ss:$16 sps:$4 sm:$0xff]   ;;  %v9584_v16 = vld [vmem:[%s14631_s1 + $0x84] ss:$16 sps:$4 sm:$0xff]   ;;  %v9586_v17 = vld [vmem:[%s14631_s1 + $0x8c] ss:$16 sps:$4 sm:$0xff]  }
   0x7   :  { %6800 = vmatpush1.bf16.msra.mxu0 %v9570_v6  ;;  %7488 = vmatpush1.bf16.msra.mxu1 %v9571_v7  ;;  %v9588_v18 = vld [vmem:[%s14631_s1 + $0x80] ss:$16 sps:$4 sm:$0xff]   ;;  %v9589_v19 = vld [vmem:[%s14631_s1 + $0x88] ss:$16 sps:$4 sm:$0xff]   ;;  %v9590_v20 = vld [vmem:[%s14631_s1 + $0xa4] ss:$16 sps:$4 sm:$0xff]  }
   0x8   :  { %6801 = vmatprep.subr.bf16.mxu0 %v9572_v8  ;;  %7489 = vmatprep.subr.bf16.mxu1 %v9574_v9  ;;  %v9592_v21 = vld [vmem:[%s14631_s1 + $0xac] ss:$16 sps:$4 sm:$0xff]   ;;  %v9594_v22 = vld [vmem:[%s14631_s1 + $0xa0] ss:$16 sps:$4 sm:$0xff]   ;;  %v9595_v23 = vld [vmem:[%s14631_s1 + $0xa8] ss:$16 sps:$4 sm:$0xff]  }
   0x9   :  { %v9596_v24 = vld [vmem:[%s14631_s1 + $0xc4] ss:$16 sps:$4 sm:$0xff]   ;;  %v9598_v25 = vld [vmem:[%s14631_s1 + $0xcc] ss:$16 sps:$4 sm:$0xff]   ;;  %v9600_v26 = vld [vmem:[%s14631_s1 + $0xc0] ss:$16 sps:$4 sm:$0xff]  }
   0xa   :  { %v9601_v27 = vld [vmem:[%s14631_s1 + $0xc8] ss:$16 sps:$4 sm:$0xff]   ;;  %v9602_v28 = vld [vmem:[%s14631_s1 + $0xe4] ss:$16 sps:$4 sm:$0xff]   ;;  %v9604_v29 = vld [vmem:[%s14631_s1 + $0xec] ss:$16 sps:$4 sm:$0xff]  }
   0xb   :  { %6802 = vmatpush1.bf16.msra.mxu0 %v9576_v10  ;;  %7490 = vmatpush1.bf16.msra.mxu1 %v9577_v11  ;;  %v9606_v30 = vld [vmem:[%s14631_s1 + $0xe0] ss:$16 sps:$4 sm:$0xff]   ;;  %v9607_v31 = vld [vmem:[%s14631_s1 + $0xe8] ss:$16 sps:$4 sm:$0xff]   ;;  %v9608_v32 = vld [vmem:[%s14631_s1 + $0x104] ss:$16 sps:$4 sm:$0xff]  }
   0xc   :  { %6803 = vmatprep.subr.bf16.mxu0 %v9578_v12  ;;  %7491 = vmatprep.subr.bf16.mxu1 %v9580_v13  ;;  %v9610_v33 = vld [vmem:[%s14631_s1 + $0x10c] ss:$16 sps:$4 sm:$0xff]   ;;  %v9612_v34 = vld [vmem:[%s14631_s1 + $0x100] ss:$16 sps:$4 sm:$0xff]   ;;  %v9613_v35 = vld [vmem:[%s14631_s1 + $0x108] ss:$16 sps:$4 sm:$0xff]  }
   0xd   :  { %v9614_v36 = vld [vmem:[%s14631_s1 + $0x124] ss:$16 sps:$4 sm:$0xff]   ;;  %v9616_v37 = vld [vmem:[%s14631_s1 + $0x12c] ss:$16 sps:$4 sm:$0xff]   ;;  %v9618_v41 = vld [vmem:[%s14631_s1 + $0x120] ss:$16 sps:$4 sm:$0xff]  }
   0xe   :  { %v9619_v42 = vld [vmem:[%s14631_s1 + $0x128] ss:$16 sps:$4 sm:$0xff]   ;;  %v9620_v43 = vld [vmem:[%s14631_s1 + $0x144] ss:$16 sps:$4 sm:$0xff]   ;;  %v9622_v44 = vld [vmem:[%s14631_s1 + $0x14c] ss:$16 sps:$4 sm:$0xff]  }
   0xf   :  { %6804 = vmatpush1.bf16.msra.mxu0 %v9582_v14  ;;  %7492 = vmatpush1.bf16.msra.mxu1 %v9583_v15  ;;  %v11251_v46 = vshrl.u32 %v1112_v40, 7  ;;  %v9624_v47 = vld [vmem:[%s14631_s1 + $0x140] ss:$16 sps:$4 sm:$0xff]   ;;  %v9625_v48 = vld [vmem:[%s14631_s1 + $0x148] ss:$16 sps:$4 sm:$0xff]  }
  0x10   :  { %6805 = vmatprep.subr.bf16.mxu0 %v9584_v16  ;;  %7493 = vmatprep.subr.bf16.mxu1 %v9586_v17  ;;  %v9626_v49 = vld [vmem:[%s14631_s1 + $0x164] ss:$16 sps:$4 sm:$0xff]   ;;  %v9628_v50 = vld [vmem:[%s14631_s1 + $0x16c] ss:$16 sps:$4 sm:$0xff]   ;;  %v9630_v51 = vld [vmem:[%s14631_s1 + $0x160] ss:$16 sps:$4 sm:$0xff]  }
  0x11   :  { %v9631_v52 = vld [vmem:[%s14631_s1 + $0x168] ss:$16 sps:$4 sm:$0xff]   ;;  %v11274_v53 = vld [vmem:[%s14630_s0] sm:$0xff]  ;;  %v11277_v54 = vsub.s32 %v1111_v45, %v11251_v46  ;;  %v9634_v56 = vld [vmem:[%s14631_s1 + $0x18c] ss:$16 sps:$4 sm:$0xff]   ;;  %vm8272_vm0 = vcmp.lt.s32.totalorder %v11251_v46, 2 }
  0x12   :  { %v9632_v55 = vld [vmem:[%s14631_s1 + $0x184] ss:$16 sps:$4 sm:$0xff]   ;;  %v9636_v10 = vld [vmem:[%s14631_s1 + $0x180] ss:$16 sps:$4 sm:$0xff]   ;;  %v9637_v11 = vld [vmem:[%s14631_s1 + $0x188] ss:$16 sps:$4 sm:$0xff]  }
  0x13   :  { %6806 = vmatpush1.bf16.msra.mxu0 %v9588_v18  ;;  %7494 = vmatpush1.bf16.msra.mxu1 %v9589_v19  ;;  %v17_v57 = vld [vmem:[%s14630_s0 + $0x20] sm:$0xff]  ;;  %v9640_v17 = vld [vmem:[%s14631_s1 + $0x1ac] ss:$16 sps:$4 sm:$0xff]   ;;  %vm8346_vm1 = vcmp.eq.s32.totalorder %v11251_v46, 0  ;;  %vm8351_vm2 = vcmp.eq.s32.totalorder %v11251_v46, 1 }
  0x14   :  { %6807 = vmatprep.subr.bf16.mxu0 %v9590_v20  ;;  %7495 = vmatprep.subr.bf16.mxu1 %v9592_v21  ;;  %v21_v58 = vld [vmem:[%s14630_s0 + $0x40] sm:$0xff]  ;;  %v1101_v63 = vcombine.low %v11274_v53, %v17_v57  ;;  %v1102_v0 = vcombine.high %v11274_v53, %v17_v57 }
  0x15   :  { %v25_v59 = vld [vmem:[%s14630_s0 + $0x60] sm:$0xff] }
  0x16   :  { %v29_v60 = vld [vmem:[%s14630_s0 + $0x80] sm:$0xff]  ;;  %v1103_v1 = vcombine.low %v21_v58, %v25_v59  ;;  %v1104_v3 = vcombine.high %v21_v58, %v25_v59  ;;  %v1115_v8 = vrot.slane %v1101_v63, %v11277_v54  ;;  %v9673_v63 = vld [vmem:[%s14631_s1 + $0x24c] ss:$16 sps:$4 sm:$0xff]  }
  0x17   :  { %6808 = vmatpush1.bf16.msra.mxu0 %v9594_v22  ;;  %7496 = vmatpush1.bf16.msra.mxu1 %v9595_v23  ;;  %v33_v61 = vld [vmem:[%s14630_s0 + $0xa0] sm:$0xff]  ;;  %v9643_v22 = vld [vmem:[%s14631_s1 + $0x1a8] ss:$16 sps:$4 sm:$0xff]  }
  0x18   :  { %6809 = vmatprep.subr.bf16.mxu0 %v9596_v24  ;;  %7497 = vmatprep.subr.bf16.mxu1 %v9598_v25  ;;  %v37_v62 = vld [vmem:[%s14630_s0 + $0xc0] sm:$0xff]  ;;  %v1105_v4 = vcombine.low %v29_v60, %v33_v61  ;;  %v1106_v5 = vcombine.high %v29_v60, %v33_v61  ;;  %v1129_v9 = vrot.slane %v1103_v1, %v11277_v54  ;;  %v9665_v61 = vld [vmem:[%s14631_s1 + $0x228] ss:$16 sps:$4 sm:$0xff]  }
  0x19   :  { %v41_v2 = vld [vmem:[%s14630_s0 + $0xe0] sm:$0xff]  ;;  %v9671_v1 = vld [vmem:[%s14631_s1 + $0x248] ss:$16 sps:$4 sm:$0xff]  }
  0x1a   :  { %v1107_v6 = vcombine.low %v37_v62, %v41_v2  ;;  %v1108_v7 = vcombine.high %v37_v62, %v41_v2  ;;  %v1143_v12 = vrot.slane %v1105_v4, %v11277_v54  ;;  %v9638_v13 = vld [vmem:[%s14631_s1 + $0x1a4] ss:$16 sps:$4 sm:$0xff]   ;;  %v1166_v15 = vcombine.high %v1115_v8, %v1129_v9  ;;  %v9642_v21 = vld [vmem:[%s14631_s1 + $0x1a0] ss:$16 sps:$4 sm:$0xff]  }
  0x1b   :  { %6810 = vmatpush1.bf16.msra.mxu0 %v9600_v26  ;;  %7498 = vmatpush1.bf16.msra.mxu1 %v9601_v27  ;;  %v1165_v16 = vcombine.low %v1115_v8, %v1129_v9  ;;  %v9644_v23 = vld [vmem:[%s14631_s1 + $0x1c4] ss:$16 sps:$4 sm:$0xff]   ;;  %v9646_v27 = vld [vmem:[%s14631_s1 + $0x1cc] ss:$16 sps:$4 sm:$0xff]   ;;  %v1150_v38 = vrot.slane %v1106_v5, %v11277_v54  ;;  %v9662_v60 = vld [vmem:[%s14631_s1 + $0x220] ss:$16 sps:$4 sm:$0xff]  }
  0x1c   :  { %6811 = vmatprep.subr.bf16.mxu0 %v9602_v28  ;;  %7499 = vmatprep.subr.bf16.mxu1 %v9604_v29  ;;  %v1157_v14 = vrot.slane %v1107_v6, %v11277_v54  ;;  %v1193_v19 = vrot.slane %v1166_v15, %v11277_v54  ;;  %v1164_v39 = vrot.slane %v1108_v7, %v11277_v54  ;;  %v9658_v40 = vld [vmem:[%s14631_s1 + $0x204] ss:$16 sps:$4 sm:$0xff]   ;;  %v9674_v4 = vld [vmem:[%s14631_s1 + $0x260] ss:$16 sps:$4 sm:$0xff]   ;;  %v9677_v5 = vld [vmem:[%s14631_s1 + $0x268] ss:$16 sps:$4 sm:$0xff]  }
  0x1d   :  { %v1179_v25 = vrot.slane %v1165_v16, %v11277_v54  ;;  %v9670_v62 = vld [vmem:[%s14631_s1 + $0x244] ss:$16 sps:$4 sm:$0xff]   ;;  %v9685_v7 = vld [vmem:[%s14631_s1 + $0x28c] ss:$16 sps:$4 sm:$0xff]   ;;  %v9680_v8 = vld [vmem:[%s14631_s1 + $0x280] ss:$16 sps:$4 sm:$0xff]  }
  0x1e   :  { %v1170_v18 = vcombine.high %v1143_v12, %v1157_v14  ;;  %v1169_v20 = vcombine.low %v1143_v12, %v1157_v14  ;;  %v1171_v45 = vcombine.low %v1150_v38, %v1164_v39  ;;  %v9676_v2 = vld [vmem:[%s14631_s1 + $0x264] ss:$16 sps:$4 sm:$0xff]   ;;  %v9683_v9 = vld [vmem:[%s14631_s1 + $0x288] ss:$16 sps:$4 sm:$0xff]   ;;  %v9686_v12 = vld [vmem:[%s14631_s1 + $0x2a0] ss:$16 sps:$4 sm:$0xff]  }
  0x1f   :  { %6812 = vmatpush1.bf16.msra.mxu0 %v9606_v30  ;;  %7500 = vmatpush1.bf16.msra.mxu1 %v9607_v31  ;;  %v9648_v30 = vld [vmem:[%s14631_s1 + $0x1c0] ss:$16 sps:$4 sm:$0xff]   ;;  %v9649_v31 = vld [vmem:[%s14631_s1 + $0x1c8] ss:$16 sps:$4 sm:$0xff]   ;;  %v9682_v6 = vld [vmem:[%s14631_s1 + $0x284] ss:$16 sps:$4 sm:$0xff]  }
  0x20   :  { %6813 = vmatprep.subr.bf16.mxu0 %v9608_v32  ;;  %7501 = vmatprep.subr.bf16.mxu1 %v9610_v33  ;;  %v1221_v24 = vrot.slane %v1170_v18, %v11277_v54  ;;  %v1207_v26 = vrot.slane %v1169_v20, %v11277_v54  ;;  %v9650_v32 = vld [vmem:[%s14631_s1 + $0x1e4] ss:$16 sps:$4 sm:$0xff]   ;;  %v9652_v33 = vld [vmem:[%s14631_s1 + $0x1ec] ss:$16 sps:$4 sm:$0xff]   ;;  %v9692_v16 = vld [vmem:[%s14631_s1 + $0x2c0] ss:$16 sps:$4 sm:$0xff]  }
  0x21   :  { %v9694_v14 = vld [vmem:[%s14631_s1 + $0x2c4] ss:$16 sps:$4 sm:$0xff]   ;;  %v9697_v15 = vld [vmem:[%s14631_s1 + $0x2cc] ss:$16 sps:$4 sm:$0xff]   ;;  %v9698_v20 = vld [vmem:[%s14631_s1 + $0x2e0] ss:$16 sps:$4 sm:$0xff]  }
  0x22   :  { %v1233_v28 = vcombine.low %v1193_v19, %v1221_v24  ;;  %v11340_v29 = vcombine.high %v1179_v25, %v1207_v26  ;;  %v1234_v58 = vcombine.high %v1193_v19, %v1221_v24  ;;  %v9700_v18 = vld [vmem:[%s14631_s1 + $0x2e4] ss:$16 sps:$4 sm:$0xff]   ;;  %v9703_v19 = vld [vmem:[%s14631_s1 + $0x2ec] ss:$16 sps:$4 sm:$0xff]   ;;  %v9704_v24 = vld [vmem:[%s14631_s1 + $0x300] ss:$16 sps:$4 sm:$0xff]  }
  0x23   :  { %6814 = vmatpush1.bf16.msra.mxu0 %v9612_v34  ;;  %7502 = vmatpush1.bf16.msra.mxu1 %v9613_v35  ;;  %v9654_v34 = vld [vmem:[%s14631_s1 + $0x1e0] ss:$16 sps:$4 sm:$0xff]   ;;  %v9655_v35 = vld [vmem:[%s14631_s1 + $0x1e8] ss:$16 sps:$4 sm:$0xff]  }
  0x24   :  { %6815 = vmatprep.subr.bf16.mxu0 %v9614_v36  ;;  %7503 = vmatprep.subr.bf16.mxu1 %v9616_v37  ;;  %v1122_v36 = vrot.slane %v1102_v0, %v11277_v54  ;;  %v1136_v37 = vrot.slane %v1104_v3, %v11277_v54  ;;  %v9668_v0 = vld [vmem:[%s14631_s1 + $0x240] ss:$16 sps:$4 sm:$0xff]   ;;  %v9679_v3 = vld [vmem:[%s14631_s1 + $0x26c] ss:$16 sps:$4 sm:$0xff]  }
  0x25   :  { %6829 = vmatprep.mubr.bf16.mxu0 %v1233_v28  ;;  %7517 = vmatprep.mubr.bf16.mxu1 %v1233_v28  ;;  %v9710_v28 = vld [vmem:[%s14631_s1 + $0x320] ss:$16 sps:$4 sm:$0xff]  }
  0x27   :  { %6816 = vmatpush1.bf16.msra.mxu0 %v9618_v41  ;;  %7504 = vmatpush1.bf16.msra.mxu1 %v9619_v42  ;;  %v9661_v41 = vld [vmem:[%s14631_s1 + $0x20c] ss:$16 sps:$4 sm:$0xff]   ;;  %v1168_v42 = vcombine.high %v1122_v36, %v1136_v37 }
  0x28   :  { %6817 = vmatprep.subr.bf16.mxu0 %v9620_v43  ;;  %7505 = vmatprep.subr.bf16.mxu1 %v9622_v44  ;;  %v1172_v43 = vcombine.high %v1150_v38, %v1164_v39  ;;  %v1167_v44 = vcombine.low %v1122_v36, %v1136_v37  ;;  %v9727_v36 = vld [vmem:[%s14631_s1 + $0x36c] ss:$16 sps:$4 sm:$0xff]   ;;  %v9722_v37 = vld [vmem:[%s14631_s1 + $0x360] ss:$16 sps:$4 sm:$0xff]   ;;  %v9725_v38 = vld [vmem:[%s14631_s1 + $0x368] ss:$16 sps:$4 sm:$0xff]  }
  0x29   :  { %v9730_v39 = vld [vmem:[%s14631_s1 + $0x384] ss:$16 sps:$4 sm:$0xff]  }
  0x2a   :  { %v11386_v53 = vrot.slane %v1167_v44, %v11277_v54  ;;  %v9739_v44 = vld [vmem:[%s14631_s1 + $0x3ac] ss:$16 sps:$4 sm:$0xff]  }
  0x2b   :  { %6818 = vmatpush1.bf16.msra.mxu0 %v9624_v47  ;;  %7506 = vmatpush1.bf16.msra.mxu1 %v9625_v48  ;;  %v9656_v47 = vld [vmem:[%s14631_s1 + $0x200] ss:$16 sps:$4 sm:$0xff]   ;;  %v9659_v48 = vld [vmem:[%s14631_s1 + $0x208] ss:$16 sps:$4 sm:$0xff]  }
  0x2c   :  { %6819 = vmatprep.subr.bf16.mxu0 %v9626_v49  ;;  %7507 = vmatprep.subr.bf16.mxu1 %v9628_v50  ;;  %v1229_v49 = vcombine.low %v1179_v25, %v1207_v26  ;;  %v11377_v50 = vrot.slane %v1168_v42, %v11277_v54  ;;  %v9707_v25 = vld [vmem:[%s14631_s1 + $0x308] ss:$16 sps:$4 sm:$0xff]   ;;  %v9712_v26 = vld [vmem:[%s14631_s1 + $0x324] ss:$16 sps:$4 sm:$0xff]  }
  0x2d   :  { %v9731_v42 = vld [vmem:[%s14631_s1 + $0x388] ss:$16 sps:$4 sm:$0xff]  }
  0x2f   :  { %6820 = vmatpush1.bf16.msra.mxu0 %v9630_v51  ;;  %7508 = vmatpush1.bf16.msra.mxu1 %v9631_v52  ;;  %v11380_v51 = vrot.slane %v1172_v43, %v11277_v54  ;;  %v9664_v52 = vld [vmem:[%s14631_s1 + $0x224] ss:$16 sps:$4 sm:$0xff]  }
  0x30   :  { %6821 = vmatprep.subr.bf16.mxu0 %v9632_v55  ;;  %7509 = vmatprep.subr.bf16.mxu1 %v9634_v56  ;;  %v11389_v55 = vrot.slane %v1171_v45, %v11277_v54  ;;  %v9667_v56 = vld [vmem:[%s14631_s1 + $0x22c] ss:$16 sps:$4 sm:$0xff]   ;;  %v9736_v43 = vld [vmem:[%s14631_s1 + $0x3a4] ss:$16 sps:$4 sm:$0xff]   ;;  %v9734_v45 = vld [vmem:[%s14631_s1 + $0x3a0] ss:$16 sps:$4 sm:$0xff]  }
  0x31   :  { %v11396_v57 = vcombine.low %v11377_v50, %v11380_v51 }
  0x32   :  { %v11400_v59 = vcombine.low %v11386_v53, %v11389_v55 }
  0x33   :  { %6822 = vmatpush1.bf16.msra.mxu0 %v9636_v10  ;;  %7510 = vmatpush1.bf16.msra.mxu1 %v9637_v11  ;;  %v9688_v10 = vld [vmem:[%s14631_s1 + $0x2a4] ss:$16 sps:$4 sm:$0xff]   ;;  %v9691_v11 = vld [vmem:[%s14631_s1 + $0x2ac] ss:$16 sps:$4 sm:$0xff]  }
  0x34   :  { %6823 = vmatprep.subr.bf16.mxu0 %v9638_v13  ;;  %7511 = vmatprep.subr.bf16.mxu1 %v9640_v17  ;;  %v9689_v13 = vld [vmem:[%s14631_s1 + $0x2a8] ss:$16 sps:$4 sm:$0xff]  }
  0x35   :  { %v9695_v17 = vld [vmem:[%s14631_s1 + $0x2c8] ss:$16 sps:$4 sm:$0xff]  }
  0x37   :  { %6824 = vmatpush1.bf16.msra.mxu0 %v9642_v21  ;;  %7512 = vmatpush1.bf16.msra.mxu1 %v9643_v22  ;;  %v9701_v21 = vld [vmem:[%s14631_s1 + $0x2e8] ss:$16 sps:$4 sm:$0xff]   ;;  %v9706_v22 = vld [vmem:[%s14631_s1 + $0x304] ss:$16 sps:$4 sm:$0xff]  }
  0x38   :  { %6825 = vmatprep.subr.bf16.mxu0 %v9644_v23  ;;  %7513 = vmatprep.subr.bf16.mxu1 %v9646_v27  ;;  %v9709_v23 = vld [vmem:[%s14631_s1 + $0x30c] ss:$16 sps:$4 sm:$0xff]  }
  0x39   :  { %v9715_v27 = vld [vmem:[%s14631_s1 + $0x32c] ss:$16 sps:$4 sm:$0xff]  }
  0x3b   :  { %6826 = vmatpush1.bf16.msra.mxu0 %v9648_v30  ;;  %7514 = vmatpush1.bf16.msra.mxu1 %v9649_v31  ;;  %v9713_v30 = vld [vmem:[%s14631_s1 + $0x328] ss:$16 sps:$4 sm:$0xff]   ;;  %v9718_v31 = vld [vmem:[%s14631_s1 + $0x344] ss:$16 sps:$4 sm:$0xff]  }
  0x3c   :  { %6827 = vmatprep.subr.bf16.mxu0 %v9650_v32  ;;  %7515 = vmatprep.subr.bf16.mxu1 %v9652_v33  ;;  %v9721_v32 = vld [vmem:[%s14631_s1 + $0x34c] ss:$16 sps:$4 sm:$0xff]   ;;  %v9716_v33 = vld [vmem:[%s14631_s1 + $0x340] ss:$16 sps:$4 sm:$0xff]  }
  0x3f   :  { %6828 = vmatpush1.bf16.msra.mxu0 %v9654_v34  ;;  %7516 = vmatpush1.bf16.msra.mxu1 %v9655_v35  ;;  %v9719_v34 = vld [vmem:[%s14631_s1 + $0x348] ss:$16 sps:$4 sm:$0xff]   ;;  %v9724_v35 = vld [vmem:[%s14631_s1 + $0x364] ss:$16 sps:$4 sm:$0xff]  }
  0x40   :  { %6840 = vmatprep.subr.bf16.mxu0 %v9658_v40  ;;  %7528 = vmatprep.subr.bf16.mxu1 %v9661_v41  ;;  %v9733_v40 = vld [vmem:[%s14631_s1 + $0x38c] ss:$16 sps:$4 sm:$0xff]   ;;  %v9728_v41 = vld [vmem:[%s14631_s1 + $0x380] ss:$16 sps:$4 sm:$0xff]  }
  0x42   :  { %6830 = vmatmul.mubr.bf16.vlgmr.msra.gmra.mrb[0].mxu0 %v1229_v49  ;;  %7518 = vmatmul.mubr.bf16.vlgmr.msra.gmra.mrb[0].mxu1 %v1229_v49  ;;  %v9745_v49 = vld [vmem:[%s14631_s1 + $0x3cc] ss:$16 sps:$4 sm:$0xff]  }
  0x43   :  { %6841 = vmatpush1.bf16.msra.mxu0 %v9656_v47  ;;  %7529 = vmatpush1.bf16.msra.mxu1 %v9659_v48  ;;  %v9737_v47 = vld [vmem:[%s14631_s1 + $0x3a8] ss:$16 sps:$4 sm:$0xff]   ;;  %v9742_v48 = vld [vmem:[%s14631_s1 + $0x3c4] ss:$16 sps:$4 sm:$0xff]  }
  0x44   :  { %6842 = vmatprep.subr.bf16.mxu0 %v9664_v52  ;;  %7530 = vmatprep.subr.bf16.mxu1 %v9667_v56  ;;  %v9740_v52 = vld [vmem:[%s14631_s1 + $0x3c0] ss:$16 sps:$4 sm:$0xff]   ;;  %v9743_v56 = vld [vmem:[%s14631_s1 + $0x3c8] ss:$16 sps:$4 sm:$0xff]  }
  0x45   :  { %6872 = vmatprep.mubr.bf16.mxu0 %v1234_v58  ;;  %7560 = vmatprep.mubr.bf16.mxu1 %v1234_v58  ;;  %v9748_v58 = vld [vmem:[%s14631_s1 + $0x3e4] ss:$16 sps:$4 sm:$0xff]  }
  0x47   :  { %6843 = vmatpush1.bf16.msra.mxu0 %v9662_v60  ;;  %7531 = vmatpush1.bf16.msra.mxu1 %v9665_v61  ;;  %v9751_v60 = vld [vmem:[%s14631_s1 + $0x3ec] ss:$16 sps:$4 sm:$0xff]   ;;  %v9746_v61 = vld [vmem:[%s14631_s1 + $0x3e0] ss:$16 sps:$4 sm:$0xff]  }
  0x48   :  { %6844 = vmatprep.subr.bf16.mxu0 %v9670_v62  ;;  %7532 = vmatprep.subr.bf16.mxu1 %v9673_v63  ;;  %v9749_v62 = vld [vmem:[%s14631_s1 + $0x3e8] ss:$16 sps:$4 sm:$0xff]   ;;  %v9754_v63 = vld [vmem:[%s14631_s1 + $0x404] ss:$16 sps:$4 sm:$0xff]  }
  0x4b   :  { %6845 = vmatpush1.bf16.msra.mxu0 %v9668_v0  ;;  %7533 = vmatpush1.bf16.msra.mxu1 %v9671_v1  ;;  %v9757_v0 = vld [vmem:[%s14631_s1 + $0x40c] ss:$16 sps:$4 sm:$0xff]   ;;  %v9752_v1 = vld [vmem:[%s14631_s1 + $0x400] ss:$16 sps:$4 sm:$0xff]  }
  0x4c   :  { %6846 = vmatprep.subr.bf16.mxu0 %v9676_v2  ;;  %7534 = vmatprep.subr.bf16.mxu1 %v9679_v3  ;;  %v9755_v2 = vld [vmem:[%s14631_s1 + $0x408] ss:$16 sps:$4 sm:$0xff]   ;;  %v9760_v3 = vld [vmem:[%s14631_s1 + $0x424] ss:$16 sps:$4 sm:$0xff]  }
  0x4f   :  { %6847 = vmatpush1.bf16.msra.mxu0 %v9674_v4  ;;  %7535 = vmatpush1.bf16.msra.mxu1 %v9677_v5  ;;  %v11593_v4 = vcombine.high %v11377_v50, %v11380_v51  ;;  %v9763_v5 = vld [vmem:[%s14631_s1 + $0x42c] ss:$16 sps:$4 sm:$0xff]   ;;  %v9761_v50 = vld [vmem:[%s14631_s1 + $0x428] ss:$16 sps:$4 sm:$0xff]   ;;  %v9766_v51 = vld [vmem:[%s14631_s1 + $0x444] ss:$16 sps:$4 sm:$0xff]  }
  0x50   :  { %6848 = vmatprep.subr.bf16.mxu0 %v9682_v6  ;;  %7536 = vmatprep.subr.bf16.mxu1 %v9685_v7  ;;  %v11600_v6 = vcombine.high %v11386_v53, %v11389_v55  ;;  %v9758_v7 = vld [vmem:[%s14631_s1 + $0x420] ss:$16 sps:$4 sm:$0xff]   ;;  %v9767_v55 = vld [vmem:[%s14631_s1 + $0x448] ss:$16 sps:$4 sm:$0xff]  }
  0x51   :  { %v9764_v53 = vld [vmem:[%s14631_s1 + $0x440] ss:$16 sps:$4 sm:$0xff]  }
  0x53   :  { %6849 = vmatpush1.bf16.msra.mxu0 %v9680_v8  ;;  %7537 = vmatpush1.bf16.msra.mxu1 %v9683_v9  ;;  %v9772_v8 = vld [vmem:[%s14631_s1 + $0x464] ss:$16 sps:$4 sm:$0xff]   ;;  %v9770_v9 = vld [vmem:[%s14631_s1 + $0x460] ss:$16 sps:$4 sm:$0xff]  }
  0x54   :  { %6850 = vmatprep.subr.bf16.mxu0 %v9688_v10  ;;  %7538 = vmatprep.subr.bf16.mxu1 %v9691_v11  ;;  %v9773_v10 = vld [vmem:[%s14631_s1 + $0x468] ss:$16 sps:$4 sm:$0xff]   ;;  %v9778_v11 = vld [vmem:[%s14631_s1 + $0x484] ss:$16 sps:$4 sm:$0xff]  }
  0x57   :  { %6851 = vmatpush1.bf16.msra.mxu0 %v9686_v12  ;;  %7539 = vmatpush1.bf16.msra.mxu1 %v9689_v13  ;;  %v9781_v12 = vld [vmem:[%s14631_s1 + $0x48c] ss:$16 sps:$4 sm:$0xff]   ;;  %v9776_v13 = vld [vmem:[%s14631_s1 + $0x480] ss:$16 sps:$4 sm:$0xff]  }
  0x58   :  { %6852 = vmatprep.subr.bf16.mxu0 %v9694_v14  ;;  %7540 = vmatprep.subr.bf16.mxu1 %v9697_v15  ;;  %v9779_v14 = vld [vmem:[%s14631_s1 + $0x488] ss:$16 sps:$4 sm:$0xff]   ;;  %v9784_v15 = vld [vmem:[%s14631_s1 + $0x4a4] ss:$16 sps:$4 sm:$0xff]  }
  0x5b   :  { %6853 = vmatpush1.bf16.msra.mxu0 %v9692_v16  ;;  %7541 = vmatpush1.bf16.msra.mxu1 %v9695_v17  ;;  %v9787_v16 = vld [vmem:[%s14631_s1 + $0x4ac] ss:$16 sps:$4 sm:$0xff]   ;;  %v9782_v17 = vld [vmem:[%s14631_s1 + $0x4a0] ss:$16 sps:$4 sm:$0xff]  }
  0x5c   :  { %6854 = vmatprep.subr.bf16.mxu0 %v9700_v18  ;;  %7542 = vmatprep.subr.bf16.mxu1 %v9703_v19  ;;  %v9785_v18 = vld [vmem:[%s14631_s1 + $0x4a8] ss:$16 sps:$4 sm:$0xff]   ;;  %v9790_v19 = vld [vmem:[%s14631_s1 + $0x4c4] ss:$16 sps:$4 sm:$0xff]  }
  0x5f   :  { %6855 = vmatpush1.bf16.msra.mxu0 %v9698_v20  ;;  %7543 = vmatpush1.bf16.msra.mxu1 %v9701_v21  ;;  %v9793_v20 = vld [vmem:[%s14631_s1 + $0x4cc] ss:$16 sps:$4 sm:$0xff]   ;;  %v9788_v21 = vld [vmem:[%s14631_s1 + $0x4c0] ss:$16 sps:$4 sm:$0xff]  }
  0x60   :  { %6856 = vmatprep.subr.bf16.mxu0 %v9706_v22  ;;  %7544 = vmatprep.subr.bf16.mxu1 %v9709_v23  ;;  %v9791_v22 = vld [vmem:[%s14631_s1 + $0x4c8] ss:$16 sps:$4 sm:$0xff]   ;;  %v9796_v23 = vld [vmem:[%s14631_s1 + $0x4e4] ss:$16 sps:$4 sm:$0xff]  }
  0x63   :  { %6857 = vmatpush1.bf16.msra.mxu0 %v9704_v24  ;;  %7545 = vmatpush1.bf16.msra.mxu1 %v9707_v25  ;;  %v9799_v24 = vld [vmem:[%s14631_s1 + $0x4ec] ss:$16 sps:$4 sm:$0xff]   ;;  %v9794_v25 = vld [vmem:[%s14631_s1 + $0x4e0] ss:$16 sps:$4 sm:$0xff]  }
  0x64   :  { %6858 = vmatprep.subr.bf16.mxu0 %v9712_v26  ;;  %7546 = vmatprep.subr.bf16.mxu1 %v9715_v27  ;;  %v9797_v26 = vld [vmem:[%s14631_s1 + $0x4e8] ss:$16 sps:$4 sm:$0xff]   ;;  %v9802_v27 = vld [vmem:[%s14631_s1 + $0x504] ss:$16 sps:$4 sm:$0xff]  }
  0x67   :  { %6859 = vmatpush1.bf16.msra.mxu0 %v9710_v28  ;;  %7547 = vmatpush1.bf16.msra.mxu1 %v9713_v30  ;;  %v9805_v28 = vld [vmem:[%s14631_s1 + $0x50c] ss:$16 sps:$4 sm:$0xff]   ;;  %v9800_v30 = vld [vmem:[%s14631_s1 + $0x500] ss:$16 sps:$4 sm:$0xff]  }
  0x68   :  { %6860 = vmatprep.subr.bf16.mxu0 %v9718_v31  ;;  %7548 = vmatprep.subr.bf16.mxu1 %v9721_v32  ;;  %v9803_v31 = vld [vmem:[%s14631_s1 + $0x508] ss:$16 sps:$4 sm:$0xff]   ;;  %v9808_v32 = vld [vmem:[%s14631_s1 + $0x524] ss:$16 sps:$4 sm:$0xff]  }
  0x6b   :  { %6861 = vmatpush1.bf16.msra.mxu0 %v9716_v33  ;;  %7549 = vmatpush1.bf16.msra.mxu1 %v9719_v34  ;;  %v9811_v33 = vld [vmem:[%s14631_s1 + $0x52c] ss:$16 sps:$4 sm:$0xff]   ;;  %v9806_v34 = vld [vmem:[%s14631_s1 + $0x520] ss:$16 sps:$4 sm:$0xff]  }
  0x6c   :  { %6862 = vmatprep.subr.bf16.mxu0 %v9724_v35  ;;  %7550 = vmatprep.subr.bf16.mxu1 %v9727_v36  ;;  %v9809_v35 = vld [vmem:[%s14631_s1 + $0x528] ss:$16 sps:$4 sm:$0xff]   ;;  %v9814_v36 = vld [vmem:[%s14631_s1 + $0x544] ss:$16 sps:$4 sm:$0xff]  }
  0x6f   :  { %6863 = vmatpush1.bf16.msra.mxu0 %v9722_v37  ;;  %7551 = vmatpush1.bf16.msra.mxu1 %v9725_v38  ;;  %v9817_v37 = vld [vmem:[%s14631_s1 + $0x54c] ss:$16 sps:$4 sm:$0xff]   ;;  %v9812_v38 = vld [vmem:[%s14631_s1 + $0x540] ss:$16 sps:$4 sm:$0xff]  }
  0x70   :  { %6864 = vmatprep.subr.bf16.mxu0 %v9730_v39  ;;  %7552 = vmatprep.subr.bf16.mxu1 %v9733_v40  ;;  %v9815_v39 = vld [vmem:[%s14631_s1 + $0x548] ss:$16 sps:$4 sm:$0xff]   ;;  %v9820_v40 = vld [vmem:[%s14631_s1 + $0x564] ss:$16 sps:$4 sm:$0xff]  }
  0x73   :  { %6865 = vmatpush1.bf16.msra.mxu0 %v9728_v41  ;;  %7553 = vmatpush1.bf16.msra.mxu1 %v9731_v42  ;;  %v9823_v41 = vld [vmem:[%s14631_s1 + $0x56c] ss:$16 sps:$4 sm:$0xff]   ;;  %v9818_v42 = vld [vmem:[%s14631_s1 + $0x560] ss:$16 sps:$4 sm:$0xff]  }
  0x74   :  { %6866 = vmatprep.subr.bf16.mxu0 %v9736_v43  ;;  %7554 = vmatprep.subr.bf16.mxu1 %v9739_v44  ;;  %v9821_v43 = vld [vmem:[%s14631_s1 + $0x568] ss:$16 sps:$4 sm:$0xff]   ;;  %v9826_v44 = vld [vmem:[%s14631_s1 + $0x584] ss:$16 sps:$4 sm:$0xff]  }
  0x77   :  { %6867 = vmatpush1.bf16.msra.mxu0 %v9734_v45  ;;  %7555 = vmatpush1.bf16.msra.mxu1 %v9737_v47  ;;  %v9829_v45 = vld [vmem:[%s14631_s1 + $0x58c] ss:$16 sps:$4 sm:$0xff]   ;;  %v9824_v47 = vld [vmem:[%s14631_s1 + $0x580] ss:$16 sps:$4 sm:$0xff]  }
  0x78   :  { %6868 = vmatprep.subr.bf16.mxu0 %v9742_v48  ;;  %7556 = vmatprep.subr.bf16.mxu1 %v9745_v49  ;;  %v9827_v48 = vld [vmem:[%s14631_s1 + $0x588] ss:$16 sps:$4 sm:$0xff]   ;;  %v9832_v49 = vld [vmem:[%s14631_s1 + $0x5a4] ss:$16 sps:$4 sm:$0xff]  }
  0x7b   :  { %6869 = vmatpush1.bf16.msra.mxu0 %v9740_v52  ;;  %7557 = vmatpush1.bf16.msra.mxu1 %v9743_v56  ;;  %v9835_v52 = vld [vmem:[%s14631_s1 + $0x5ac] ss:$16 sps:$4 sm:$0xff]   ;;  %v9830_v56 = vld [vmem:[%s14631_s1 + $0x5a0] ss:$16 sps:$4 sm:$0xff]  }
  0x7c   :  { %6870 = vmatprep.subr.bf16.mxu0 %v9748_v58  ;;  %7558 = vmatprep.subr.bf16.mxu1 %v9751_v60  ;;  %v9833_v58 = vld [vmem:[%s14631_s1 + $0x5a8] ss:$16 sps:$4 sm:$0xff]   ;;  %v9838_v60 = vld [vmem:[%s14631_s1 + $0x5c4] ss:$16 sps:$4 sm:$0xff]  }
  0x7f   :  { %6871 = vmatpush1.bf16.msra.mxu0 %v9746_v61  ;;  %7559 = vmatpush1.bf16.msra.mxu1 %v9749_v62  ;;  %v9841_v61 = vld [vmem:[%s14631_s1 + $0x5cc] ss:$16 sps:$4 sm:$0xff]   ;;  %v9836_v62 = vld [vmem:[%s14631_s1 + $0x5c0] ss:$16 sps:$4 sm:$0xff]  }
  0x80   :  { %6883 = vmatprep.subr.bf16.mxu0 %v9754_v63  ;;  %7571 = vmatprep.subr.bf16.mxu1 %v9757_v0  ;;  %v9839_v63 = vld [vmem:[%s14631_s1 + $0x5c8] ss:$16 sps:$4 sm:$0xff]   ;;  %v9844_v0 = vld [vmem:[%s14631_s1 + $0x5e4] ss:$16 sps:$4 sm:$0xff]  }
  0x82   :  { %6873 = vmatmul.mubr.bf16.vlgmr.msra.gmra.mrb[0].mxu0 %v11340_v29  ;;  %7561 = vmatmul.mubr.bf16.vlgmr.msra.gmra.mrb[0].mxu1 %v11340_v29  ;;  %v9769_v29 = vld [vmem:[%s14631_s1 + $0x44c] ss:$16 sps:$4 sm:$0xff]  }
  0x83   :  { %6884 = vmatpush1.bf16.msra.mxu0 %v9752_v1  ;;  %7572 = vmatpush1.bf16.msra.mxu1 %v9755_v2  ;;  %v9847_v1 = vld [vmem:[%s14631_s1 + $0x5ec] ss:$16 sps:$4 sm:$0xff]   ;;  %v9842_v2 = vld [vmem:[%s14631_s1 + $0x5e0] ss:$16 sps:$4 sm:$0xff]  }
  0x84   :  { %6885 = vmatprep.subr.bf16.mxu0 %v9760_v3  ;;  %7573 = vmatprep.subr.bf16.mxu1 %v9763_v5  ;;  %v9845_v3 = vld [vmem:[%s14631_s1 + $0x5e8] ss:$16 sps:$4 sm:$0xff]   ;;  %v9850_v5 = vld [vmem:[%s14631_s1 + $0x604] ss:$16 sps:$4 sm:$0xff]  }
  0x85   :  { %6915 = vmatprep.mubr.bf16.mxu0 %v11396_v57  ;;  %7603 = vmatprep.mubr.bf16.mxu1 %v11396_v57  ;;  %v9775_v57 = vld [vmem:[%s14631_s1 + $0x46c] ss:$16 sps:$4 sm:$0xff]  }
  0x87   :  { %6886 = vmatpush1.bf16.msra.mxu0 %v9758_v7  ;;  %7574 = vmatpush1.bf16.msra.mxu1 %v9761_v50  ;;  %v9853_v7 = vld [vmem:[%s14631_s1 + $0x60c] ss:$16 sps:$4 sm:$0xff]   ;;  %v9848_v50 = vld [vmem:[%s14631_s1 + $0x600] ss:$16 sps:$4 sm:$0xff]  }
  0x88   :  { %6887 = vmatprep.subr.bf16.mxu0 %v9766_v51  ;;  %7575 = vmatprep.subr.bf16.mxu1 %v9769_v29  ;;  %v9851_v51 = vld [vmem:[%s14631_s1 + $0x608] ss:$16 sps:$4 sm:$0xff]   ;;  %v9856_v29 = vld [vmem:[%s14631_s1 + $0x624] ss:$16 sps:$4 sm:$0xff]  }
  0x8b   :  { %6888 = vmatpush1.bf16.msra.mxu0 %v9764_v53  ;;  %7576 = vmatpush1.bf16.msra.mxu1 %v9767_v55  ;;  %v9859_v53 = vld [vmem:[%s14631_s1 + $0x62c] ss:$16 sps:$4 sm:$0xff]   ;;  %v9854_v55 = vld [vmem:[%s14631_s1 + $0x620] ss:$16 sps:$4 sm:$0xff]  }
  0x8c   :  { %6889 = vmatprep.subr.bf16.mxu0 %v9772_v8  ;;  %7577 = vmatprep.subr.bf16.mxu1 %v9775_v57  ;;  %v9857_v8 = vld [vmem:[%s14631_s1 + $0x628] ss:$16 sps:$4 sm:$0xff]   ;;  %v9862_v57 = vld [vmem:[%s14631_s1 + $0x644] ss:$16 sps:$4 sm:$0xff]  }
  0x8f   :  { %6890 = vmatpush1.bf16.msra.mxu0 %v9770_v9  ;;  %7578 = vmatpush1.bf16.msra.mxu1 %v9773_v10  ;;  %v9860_v9 = vld [vmem:[%s14631_s1 + $0x640] ss:$16 sps:$4 sm:$0xff]   ;;  %v9863_v10 = vld [vmem:[%s14631_s1 + $0x648] ss:$16 sps:$4 sm:$0xff]  }
  0x90   :  { %6891 = vmatprep.subr.bf16.mxu0 %v9778_v11  ;;  %7579 = vmatprep.subr.bf16.mxu1 %v9781_v12  ;;  %v9868_v11 = vld [vmem:[%s14631_s1 + $0x664] ss:$16 sps:$4 sm:$0xff]   ;;  %v9866_v12 = vld [vmem:[%s14631_s1 + $0x660] ss:$16 sps:$4 sm:$0xff]  }
  0x93   :  { %6892 = vmatpush1.bf16.msra.mxu0 %v9776_v13  ;;  %7580 = vmatpush1.bf16.msra.mxu1 %v9779_v14  ;;  %v9869_v13 = vld [vmem:[%s14631_s1 + $0x668] ss:$16 sps:$4 sm:$0xff]   ;;  %v9874_v14 = vld [vmem:[%s14631_s1 + $0x684] ss:$16 sps:$4 sm:$0xff]  }
  0x94   :  { %6893 = vmatprep.subr.bf16.mxu0 %v9784_v15  ;;  %7581 = vmatprep.subr.bf16.mxu1 %v9787_v16  ;;  %v9877_v15 = vld [vmem:[%s14631_s1 + $0x68c] ss:$16 sps:$4 sm:$0xff]   ;;  %v9872_v16 = vld [vmem:[%s14631_s1 + $0x680] ss:$16 sps:$4 sm:$0xff]  }
  0x97   :  { %6894 = vmatpush1.bf16.msra.mxu0 %v9782_v17  ;;  %7582 = vmatpush1.bf16.msra.mxu1 %v9785_v18  ;;  %v9875_v17 = vld [vmem:[%s14631_s1 + $0x688] ss:$16 sps:$4 sm:$0xff]   ;;  %v9880_v18 = vld [vmem:[%s14631_s1 + $0x6a4] ss:$16 sps:$4 sm:$0xff]  }
  0x98   :  { %6895 = vmatprep.subr.bf16.mxu0 %v9790_v19  ;;  %7583 = vmatprep.subr.bf16.mxu1 %v9793_v20  ;;  %v9883_v19 = vld [vmem:[%s14631_s1 + $0x6ac] ss:$16 sps:$4 sm:$0xff]   ;;  %v9878_v20 = vld [vmem:[%s14631_s1 + $0x6a0] ss:$16 sps:$4 sm:$0xff]  }
  0x9b   :  { %6896 = vmatpush1.bf16.msra.mxu0 %v9788_v21  ;;  %7584 = vmatpush1.bf16.msra.mxu1 %v9791_v22  ;;  %v9881_v21 = vld [vmem:[%s14631_s1 + $0x6a8] ss:$16 sps:$4 sm:$0xff]   ;;  %v9886_v22 = vld [vmem:[%s14631_s1 + $0x6c4] ss:$16 sps:$4 sm:$0xff]  }
  0x9c   :  { %6897 = vmatprep.subr.bf16.mxu0 %v9796_v23  ;;  %7585 = vmatprep.subr.bf16.mxu1 %v9799_v24  ;;  %v9889_v23 = vld [vmem:[%s14631_s1 + $0x6cc] ss:$16 sps:$4 sm:$0xff]   ;;  %v9884_v24 = vld [vmem:[%s14631_s1 + $0x6c0] ss:$16 sps:$4 sm:$0xff]  }
  0x9f   :  { %6898 = vmatpush1.bf16.msra.mxu0 %v9794_v25  ;;  %7586 = vmatpush1.bf16.msra.mxu1 %v9797_v26  ;;  %v9887_v25 = vld [vmem:[%s14631_s1 + $0x6c8] ss:$16 sps:$4 sm:$0xff]   ;;  %v9892_v26 = vld [vmem:[%s14631_s1 + $0x6e4] ss:$16 sps:$4 sm:$0xff]  }
  0xa0   :  { %6899 = vmatprep.subr.bf16.mxu0 %v9802_v27  ;;  %7587 = vmatprep.subr.bf16.mxu1 %v9805_v28  ;;  %v9895_v27 = vld [vmem:[%s14631_s1 + $0x6ec] ss:$16 sps:$4 sm:$0xff]   ;;  %v9890_v28 = vld [vmem:[%s14631_s1 + $0x6e0] ss:$16 sps:$4 sm:$0xff]  }
  0xa3   :  { %6900 = vmatpush1.bf16.msra.mxu0 %v9800_v30  ;;  %7588 = vmatpush1.bf16.msra.mxu1 %v9803_v31  ;;  %v9893_v30 = vld [vmem:[%s14631_s1 + $0x6e8] ss:$16 sps:$4 sm:$0xff]   ;;  %v9898_v31 = vld [vmem:[%s14631_s1 + $0x704] ss:$16 sps:$4 sm:$0xff]  }
  0xa4   :  { %6901 = vmatprep.subr.bf16.mxu0 %v9808_v32  ;;  %7589 = vmatprep.subr.bf16.mxu1 %v9811_v33  ;;  %v9901_v32 = vld [vmem:[%s14631_s1 + $0x70c] ss:$16 sps:$4 sm:$0xff]   ;;  %v9896_v33 = vld [vmem:[%s14631_s1 + $0x700] ss:$16 sps:$4 sm:$0xff]  }
  0xa7   :  { %6902 = vmatpush1.bf16.msra.mxu0 %v9806_v34  ;;  %7590 = vmatpush1.bf16.msra.mxu1 %v9809_v35  ;;  %v9899_v34 = vld [vmem:[%s14631_s1 + $0x708] ss:$16 sps:$4 sm:$0xff]   ;;  %v9904_v35 = vld [vmem:[%s14631_s1 + $0x724] ss:$16 sps:$4 sm:$0xff]  }
  0xa8   :  { %6903 = vmatprep.subr.bf16.mxu0 %v9814_v36  ;;  %7591 = vmatprep.subr.bf16.mxu1 %v9817_v37  ;;  %v9907_v36 = vld [vmem:[%s14631_s1 + $0x72c] ss:$16 sps:$4 sm:$0xff]   ;;  %v9902_v37 = vld [vmem:[%s14631_s1 + $0x720] ss:$16 sps:$4 sm:$0xff]  }
  0xab   :  { %6904 = vmatpush1.bf16.msra.mxu0 %v9812_v38  ;;  %7592 = vmatpush1.bf16.msra.mxu1 %v9815_v39  ;;  %v9905_v38 = vld [vmem:[%s14631_s1 + $0x728] ss:$16 sps:$4 sm:$0xff]   ;;  %v9910_v39 = vld [vmem:[%s14631_s1 + $0x744] ss:$16 sps:$4 sm:$0xff]  }
  0xac   :  { %6905 = vmatprep.subr.bf16.mxu0 %v9820_v40  ;;  %7593 = vmatprep.subr.bf16.mxu1 %v9823_v41  ;;  %v9913_v40 = vld [vmem:[%s14631_s1 + $0x74c] ss:$16 sps:$4 sm:$0xff]   ;;  %v9908_v41 = vld [vmem:[%s14631_s1 + $0x740] ss:$16 sps:$4 sm:$0xff]  }
  0xaf   :  { %6906 = vmatpush1.bf16.msra.mxu0 %v9818_v42  ;;  %7594 = vmatpush1.bf16.msra.mxu1 %v9821_v43  ;;  %v9911_v42 = vld [vmem:[%s14631_s1 + $0x748] ss:$16 sps:$4 sm:$0xff]   ;;  %v9916_v43 = vld [vmem:[%s14631_s1 + $0x764] ss:$16 sps:$4 sm:$0xff]  }
  0xb0   :  { %6907 = vmatprep.subr.bf16.mxu0 %v9826_v44  ;;  %7595 = vmatprep.subr.bf16.mxu1 %v9829_v45  ;;  %v9919_v44 = vld [vmem:[%s14631_s1 + $0x76c] ss:$16 sps:$4 sm:$0xff]   ;;  %v9914_v45 = vld [vmem:[%s14631_s1 + $0x760] ss:$16 sps:$4 sm:$0xff]  }
  0xb3   :  { %6908 = vmatpush1.bf16.msra.mxu0 %v9824_v47  ;;  %7596 = vmatpush1.bf16.msra.mxu1 %v9827_v48  ;;  %v9917_v47 = vld [vmem:[%s14631_s1 + $0x768] ss:$16 sps:$4 sm:$0xff]   ;;  %v9922_v48 = vld [vmem:[%s14631_s1 + $0x784] ss:$16 sps:$4 sm:$0xff]  }
  0xb4   :  { %6909 = vmatprep.subr.bf16.mxu0 %v9832_v49  ;;  %7597 = vmatprep.subr.bf16.mxu1 %v9835_v52  ;;  %v9925_v49 = vld [vmem:[%s14631_s1 + $0x78c] ss:$16 sps:$4 sm:$0xff]  }
  0xb5   :  { %v14_v52 = vld [vmem:[%s14630_s0 + $0x8] sm:$0xff] }
  0xb7   :  { %6910 = vmatpush1.bf16.msra.mxu0 %v9830_v56  ;;  %7598 = vmatpush1.bf16.msra.mxu1 %v9833_v58  ;;  %v18_v56 = vld [vmem:[%s14630_s0 + $0x28] sm:$0xff] }
  0xb8   :  { %6911 = vmatprep.subr.bf16.mxu0 %v9838_v60  ;;  %7599 = vmatprep.subr.bf16.mxu1 %v9841_v61  ;;  %v22_v58 = vld [vmem:[%s14630_s0 + $0x48] sm:$0xff]  ;;  %v9920_v61 = vld [vmem:[%s14631_s1 + $0x780] ss:$16 sps:$4 sm:$0xff]  }
  0xb9   :  { %v26_v60 = vld [vmem:[%s14630_s0 + $0x68] sm:$0xff] }
  0xbb   :  { %6912 = vmatpush1.bf16.msra.mxu0 %v9836_v62  ;;  %7600 = vmatpush1.bf16.msra.mxu1 %v9839_v63  ;;  %v9923_v62 = vld [vmem:[%s14631_s1 + $0x788] ss:$16 sps:$4 sm:$0xff]  }
  0xbc   :  { %6913 = vmatprep.subr.bf16.mxu0 %v9844_v0  ;;  %7601 = vmatprep.subr.bf16.mxu1 %v9847_v1  ;;  %v30_v63 = vld [vmem:[%s14630_s0 + $0x88] sm:$0xff] }
  0xbd   :  { %v34_v0 = vld [vmem:[%s14630_s0 + $0xa8] sm:$0xff] }
  0xbe   :  { %v38_v1 = vld [vmem:[%s14630_s0 + $0xc8] sm:$0xff] }
  0xbf   :  { %6914 = vmatpush1.bf16.msra.mxu0 %v9842_v2  ;;  %7602 = vmatpush1.bf16.msra.mxu1 %v9845_v3  ;;  %v42_v2 = vld [vmem:[%s14630_s0 + $0xe8] sm:$0xff]  ;;  %v9928_v3 = vld [vmem:[%s14631_s1 + $0x7a4] ss:$16 sps:$4 sm:$0xff]  }
  0xc0   :  { %6926 = vmatprep.subr.bf16.mxu0 %v9850_v5  ;;  %7614 = vmatprep.subr.bf16.mxu1 %v9853_v7  ;;  %v9931_v5 = vld [vmem:[%s14631_s1 + $0x7ac] ss:$16 sps:$4 sm:$0xff]   ;;  %v1237_v7 = vcombine.low %v14_v52, %v18_v56  ;;  %v9974_v56 = vld [vmem:[%s14631_s1 + $0x8a0] ss:$16 sps:$4 sm:$0xff]  }
  0xc1   :  { %v9979_v52 = vld [vmem:[%s14631_s1 + $0x8ac] ss:$16 sps:$4 sm:$0xff]  }
  0xc2   :  { %6916 = vmatmul.mubr.bf16.vlgmr.msra.gmra.mrb[0].mxu0 %v11400_v59  ;;  %7604 = vmatmul.mubr.bf16.vlgmr.msra.gmra.mrb[0].mxu1 %v11400_v59  ;;  %v9865_v59 = vld [vmem:[%s14631_s1 + $0x64c] ss:$16 sps:$4 sm:$0xff]  }
  0xc3   :  { %6927 = vmatpush1.bf16.msra.mxu0 %v9848_v50  ;;  %7615 = vmatpush1.bf16.msra.mxu1 %v9851_v51  ;;  %v1239_v50 = vcombine.low %v22_v58, %v26_v60  ;;  %v1241_v51 = vcombine.low %v30_v63, %v34_v0  ;;  %v9977_v58 = vld [vmem:[%s14631_s1 + $0x8a8] ss:$16 sps:$4 sm:$0xff]   ;;  %v9982_v60 = vld [vmem:[%s14631_s1 + $0x8c4] ss:$16 sps:$4 sm:$0xff]  }
  0xc4   :  { %6928 = vmatprep.subr.bf16.mxu0 %v9856_v29  ;;  %7616 = vmatprep.subr.bf16.mxu1 %v9859_v53  ;;  %v1243_v29 = vcombine.low %v38_v1, %v42_v2  ;;  %v9926_v53 = vld [vmem:[%s14631_s1 + $0x7a0] ss:$16 sps:$4 sm:$0xff]   ;;  %v9983_v63 = vld [vmem:[%s14631_s1 + $0x8c8] ss:$16 sps:$4 sm:$0xff]   ;;  %v9988_v0 = vld [vmem:[%s14631_s1 + $0x8e4] ss:$16 sps:$4 sm:$0xff]  }
  0xc5   :  { %6958 = vmatprep.mubr.bf16.mxu0 %v11593_v4  ;;  %7646 = vmatprep.mubr.bf16.mxu1 %v11593_v4  ;;  %v9871_v4 = vld [vmem:[%s14631_s1 + $0x66c] ss:$16 sps:$4 sm:$0xff]   ;;  %v9986_v2 = vld [vmem:[%s14631_s1 + $0x8e0] ss:$16 sps:$4 sm:$0xff]  }
  0xc6   :  { %v9991_v1 = vld [vmem:[%s14631_s1 + $0x8ec] ss:$16 sps:$4 sm:$0xff]  }
  0xc7   :  { %6929 = vmatpush1.bf16.msra.mxu0 %v9854_v55  ;;  %7617 = vmatpush1.bf16.msra.mxu1 %v9857_v8  ;;  %v9929_v55 = vld [vmem:[%s14631_s1 + $0x7a8] ss:$16 sps:$4 sm:$0xff]   ;;  %v9934_v8 = vld [vmem:[%s14631_s1 + $0x7c4] ss:$16 sps:$4 sm:$0xff]  }
  0xc8   :  { %6930 = vmatprep.subr.bf16.mxu0 %v9862_v57  ;;  %7618 = vmatprep.subr.bf16.mxu1 %v9865_v59  ;;  %v9937_v57 = vld [vmem:[%s14631_s1 + $0x7cc] ss:$16 sps:$4 sm:$0xff]   ;;  %v1251_v59 = vrot.slane %v1237_v7, %v11277_v54 }
  0xc9   :  { %v9997_v7 = vld [vmem:[%s14631_s1 + $0x90c] ss:$16 sps:$4 sm:$0xff]  }
  0xcb   :  { %6931 = vmatpush1.bf16.msra.mxu0 %v9860_v9  ;;  %7619 = vmatpush1.bf16.msra.mxu1 %v9863_v10  ;;  %v1265_v9 = vrot.slane %v1239_v50, %v11277_v54  ;;  %v1279_v10 = vrot.slane %v1241_v51, %v11277_v54  ;;  %v9992_v50 = vld [vmem:[%s14631_s1 + $0x900] ss:$16 sps:$4 sm:$0xff]   ;;  %v9995_v51 = vld [vmem:[%s14631_s1 + $0x908] ss:$16 sps:$4 sm:$0xff]  }
  0xcc   :  { %6932 = vmatprep.subr.bf16.mxu0 %v9868_v11  ;;  %7620 = vmatprep.subr.bf16.mxu1 %v9871_v4  ;;  %v1293_v11 = vrot.slane %v1243_v29, %v11277_v54  ;;  %v9932_v4 = vld [vmem:[%s14631_s1 + $0x7c0] ss:$16 sps:$4 sm:$0xff]   ;;  %v10000_v29 = vld [vmem:[%s14631_s1 + $0x924] ss:$16 sps:$4 sm:$0xff]  }
  0xcf   :  { %6933 = vmatpush1.bf16.msra.mxu0 %v9866_v12  ;;  %7621 = vmatpush1.bf16.msra.mxu1 %v9869_v13  ;;  %v9935_v12 = vld [vmem:[%s14631_s1 + $0x7c8] ss:$16 sps:$4 sm:$0xff]   ;;  %v9940_v13 = vld [vmem:[%s14631_s1 + $0x7e4] ss:$16 sps:$4 sm:$0xff]  }
  0xd0   :  { %6934 = vmatprep.subr.bf16.mxu0 %v9874_v14  ;;  %7622 = vmatprep.subr.bf16.mxu1 %v9877_v15  ;;  %v9943_v14 = vld [vmem:[%s14631_s1 + $0x7ec] ss:$16 sps:$4 sm:$0xff]   ;;  %v1302_v15 = vcombine.high %v1251_v59, %v1265_v9 }
  0xd3   :  { %6935 = vmatpush1.bf16.msra.mxu0 %v9872_v16  ;;  %7623 = vmatpush1.bf16.msra.mxu1 %v9875_v17  ;;  %v1306_v16 = vcombine.high %v1279_v10, %v1293_v11  ;;  %v9938_v17 = vld [vmem:[%s14631_s1 + $0x7e0] ss:$16 sps:$4 sm:$0xff]  }
  0xd4   :  { %6936 = vmatprep.subr.bf16.mxu0 %v9880_v18  ;;  %7624 = vmatprep.subr.bf16.mxu1 %v9883_v19  ;;  %v9941_v18 = vld [vmem:[%s14631_s1 + $0x7e8] ss:$16 sps:$4 sm:$0xff]   ;;  %v1301_v19 = vcombine.low %v1251_v59, %v1265_v9  ;;  %v10009_v59 = vld [vmem:[%s14631_s1 + $0x94c] ss:$16 sps:$4 sm:$0xff]   ;;  %v10004_v9 = vld [vmem:[%s14631_s1 + $0x940] ss:$16 sps:$4 sm:$0xff]  }
  0xd7   :  { %6937 = vmatpush1.bf16.msra.mxu0 %v9878_v20  ;;  %7625 = vmatpush1.bf16.msra.mxu1 %v9881_v21  ;;  %v1305_v20 = vcombine.low %v1279_v10, %v1293_v11  ;;  %v9946_v21 = vld [vmem:[%s14631_s1 + $0x804] ss:$16 sps:$4 sm:$0xff]   ;;  %v10007_v10 = vld [vmem:[%s14631_s1 + $0x948] ss:$16 sps:$4 sm:$0xff]  }
  0xd8   :  { %6938 = vmatprep.subr.bf16.mxu0 %v9886_v22  ;;  %7626 = vmatprep.subr.bf16.mxu1 %v9889_v23  ;;  %v9949_v22 = vld [vmem:[%s14631_s1 + $0x80c] ss:$16 sps:$4 sm:$0xff]   ;;  %v1329_v23 = vrot.slane %v1302_v15, %v11277_v54  ;;  %v10012_v11 = vld [vmem:[%s14631_s1 + $0x964] ss:$16 sps:$4 sm:$0xff]  }
  0xd9   :  { %v10021_v15 = vld [vmem:[%s14631_s1 + $0x98c] ss:$16 sps:$4 sm:$0xff]  }
  0xdb   :  { %6939 = vmatpush1.bf16.msra.mxu0 %v9884_v24  ;;  %7627 = vmatpush1.bf16.msra.mxu1 %v9887_v25  ;;  %v1357_v24 = vrot.slane %v1306_v16, %v11277_v54  ;;  %v9944_v25 = vld [vmem:[%s14631_s1 + $0x800] ss:$16 sps:$4 sm:$0xff]  }
  0xdc   :  { %6940 = vmatprep.subr.bf16.mxu0 %v9892_v26  ;;  %7628 = vmatprep.subr.bf16.mxu1 %v9895_v27  ;;  %v9947_v26 = vld [vmem:[%s14631_s1 + $0x808] ss:$16 sps:$4 sm:$0xff]   ;;  %v12019_v27 = vrot.slane %v1301_v19, %v11277_v54  ;;  %v10016_v16 = vld [vmem:[%s14631_s1 + $0x980] ss:$16 sps:$4 sm:$0xff]   ;;  %v10027_v19 = vld [vmem:[%s14631_s1 + $0x9ac] ss:$16 sps:$4 sm:$0xff]  }
  0xdf   :  { %6941 = vmatpush1.bf16.msra.mxu0 %v9890_v28  ;;  %7629 = vmatpush1.bf16.msra.mxu1 %v9893_v30  ;;  %v12022_v28 = vrot.slane %v1305_v20, %v11277_v54  ;;  %v9952_v30 = vld [vmem:[%s14631_s1 + $0x824] ss:$16 sps:$4 sm:$0xff]   ;;  %v10022_v20 = vld [vmem:[%s14631_s1 + $0x9a0] ss:$16 sps:$4 sm:$0xff]  }
  0xe0   :  { %6942 = vmatprep.subr.bf16.mxu0 %v9898_v31  ;;  %7630 = vmatprep.subr.bf16.mxu1 %v9901_v32  ;;  %v12027_v31 = vcombine.high %v1329_v23, %v1357_v24  ;;  %v9955_v32 = vld [vmem:[%s14631_s1 + $0x82c] ss:$16 sps:$4 sm:$0xff]  }
  0xe3   :  { %6943 = vmatpush1.bf16.msra.mxu0 %v9896_v33  ;;  %7631 = vmatpush1.bf16.msra.mxu1 %v9899_v34  ;;  %v12034_v33 = vcombine.high %v12019_v27, %v12022_v28  ;;  %v1369_v34 = vcombine.low %v1329_v23, %v1357_v24  ;;  %v10033_v23 = vld [vmem:[%s14631_s1 + $0x9cc] ss:$16 sps:$4 sm:$0xff]   ;;  %v10028_v24 = vld [vmem:[%s14631_s1 + $0x9c0] ss:$16 sps:$4 sm:$0xff]  }
  0xe4   :  { %6944 = vmatprep.subr.bf16.mxu0 %v9904_v35  ;;  %7632 = vmatprep.subr.bf16.mxu1 %v9907_v36  ;;  %v9950_v35 = vld [vmem:[%s14631_s1 + $0x820] ss:$16 sps:$4 sm:$0xff]   ;;  %v9953_v36 = vld [vmem:[%s14631_s1 + $0x828] ss:$16 sps:$4 sm:$0xff]  }
  0xe7   :  { %6945 = vmatpush1.bf16.msra.mxu0 %v9902_v37  ;;  %7633 = vmatpush1.bf16.msra.mxu1 %v9905_v38  ;;  %v9958_v37 = vld [vmem:[%s14631_s1 + $0x844] ss:$16 sps:$4 sm:$0xff]   ;;  %v9956_v38 = vld [vmem:[%s14631_s1 + $0x840] ss:$16 sps:$4 sm:$0xff]  }
  0xe8   :  { %6946 = vmatprep.subr.bf16.mxu0 %v9910_v39  ;;  %7634 = vmatprep.subr.bf16.mxu1 %v9913_v40  ;;  %v9959_v39 = vld [vmem:[%s14631_s1 + $0x848] ss:$16 sps:$4 sm:$0xff]   ;;  %v9964_v40 = vld [vmem:[%s14631_s1 + $0x864] ss:$16 sps:$4 sm:$0xff]  }
  0xeb   :  { %6947 = vmatpush1.bf16.msra.mxu0 %v9908_v41  ;;  %7635 = vmatpush1.bf16.msra.mxu1 %v9911_v42  ;;  %v9967_v41 = vld [vmem:[%s14631_s1 + $0x86c] ss:$16 sps:$4 sm:$0xff]   ;;  %v9962_v42 = vld [vmem:[%s14631_s1 + $0x860] ss:$16 sps:$4 sm:$0xff]  }
  0xec   :  { %6948 = vmatprep.subr.bf16.mxu0 %v9916_v43  ;;  %7636 = vmatprep.subr.bf16.mxu1 %v9919_v44  ;;  %v9965_v43 = vld [vmem:[%s14631_s1 + $0x868] ss:$16 sps:$4 sm:$0xff]   ;;  %v9970_v44 = vld [vmem:[%s14631_s1 + $0x884] ss:$16 sps:$4 sm:$0xff]  }
  0xef   :  { %6949 = vmatpush1.bf16.msra.mxu0 %v9914_v45  ;;  %7637 = vmatpush1.bf16.msra.mxu1 %v9917_v47  ;;  %v9973_v45 = vld [vmem:[%s14631_s1 + $0x88c] ss:$16 sps:$4 sm:$0xff]   ;;  %v9968_v47 = vld [vmem:[%s14631_s1 + $0x880] ss:$16 sps:$4 sm:$0xff]  }
  0xf0   :  { %6950 = vmatprep.subr.bf16.mxu0 %v9922_v48  ;;  %7638 = vmatprep.subr.bf16.mxu1 %v9925_v49  ;;  %v9971_v48 = vld [vmem:[%s14631_s1 + $0x888] ss:$16 sps:$4 sm:$0xff]   ;;  %v9976_v49 = vld [vmem:[%s14631_s1 + $0x8a4] ss:$16 sps:$4 sm:$0xff]  }
  0xf3   :  { %6951 = vmatpush1.bf16.msra.mxu0 %v9920_v61  ;;  %7639 = vmatpush1.bf16.msra.mxu1 %v9923_v62  ;;  %v9985_v61 = vld [vmem:[%s14631_s1 + $0x8cc] ss:$16 sps:$4 sm:$0xff]   ;;  %v9980_v62 = vld [vmem:[%s14631_s1 + $0x8c0] ss:$16 sps:$4 sm:$0xff]  }
  0xf4   :  { %6952 = vmatprep.subr.bf16.mxu0 %v9928_v3  ;;  %7640 = vmatprep.subr.bf16.mxu1 %v9931_v5  ;;  %v9989_v3 = vld [vmem:[%s14631_s1 + $0x8e8] ss:$16 sps:$4 sm:$0xff]   ;;  %v9994_v5 = vld [vmem:[%s14631_s1 + $0x904] ss:$16 sps:$4 sm:$0xff]  }
  0xf7   :  { %6953 = vmatpush1.bf16.msra.mxu0 %v9926_v53  ;;  %7641 = vmatpush1.bf16.msra.mxu1 %v9929_v55  ;;  %v10003_v53 = vld [vmem:[%s14631_s1 + $0x92c] ss:$16 sps:$4 sm:$0xff]   ;;  %v9998_v55 = vld [vmem:[%s14631_s1 + $0x920] ss:$16 sps:$4 sm:$0xff]  }
  0xf8   :  { %6954 = vmatprep.subr.bf16.mxu0 %v9934_v8  ;;  %7642 = vmatprep.subr.bf16.mxu1 %v9937_v57  ;;  %v10001_v8 = vld [vmem:[%s14631_s1 + $0x928] ss:$16 sps:$4 sm:$0xff]   ;;  %v10006_v57 = vld [vmem:[%s14631_s1 + $0x944] ss:$16 sps:$4 sm:$0xff]  }
  0xfb   :  { %6955 = vmatpush1.bf16.msra.mxu0 %v9932_v4  ;;  %7643 = vmatpush1.bf16.msra.mxu1 %v9935_v12  ;;  %v10015_v4 = vld [vmem:[%s14631_s1 + $0x96c] ss:$16 sps:$4 sm:$0xff]   ;;  %v10010_v12 = vld [vmem:[%s14631_s1 + $0x960] ss:$16 sps:$4 sm:$0xff]  }
  0xfc   :  { %6956 = vmatprep.subr.bf16.mxu0 %v9940_v13  ;;  %7644 = vmatprep.subr.bf16.mxu1 %v9943_v14  ;;  %v10013_v13 = vld [vmem:[%s14631_s1 + $0x968] ss:$16 sps:$4 sm:$0xff]   ;;  %v10018_v14 = vld [vmem:[%s14631_s1 + $0x984] ss:$16 sps:$4 sm:$0xff]  }
  0xff   :  { %6957 = vmatpush1.bf16.msra.mxu0 %v9938_v17  ;;  %7645 = vmatpush1.bf16.msra.mxu1 %v9941_v18  ;;  %v10019_v17 = vld [vmem:[%s14631_s1 + $0x988] ss:$16 sps:$4 sm:$0xff]   ;;  %v10024_v18 = vld [vmem:[%s14631_s1 + $0x9a4] ss:$16 sps:$4 sm:$0xff]  }
 0x100   :  { %6969 = vmatprep.subr.bf16.mxu0 %v9946_v21  ;;  %7657 = vmatprep.subr.bf16.mxu1 %v9949_v22  ;;  %v10025_v21 = vld [vmem:[%s14631_s1 + $0x9a8] ss:$16 sps:$4 sm:$0xff]   ;;  %v10030_v22 = vld [vmem:[%s14631_s1 + $0x9c4] ss:$16 sps:$4 sm:$0xff]  }
 0x102   :  { %6959 = vmatmul.mubr.bf16.vlgmr.msra.gmra.mrb[0].mxu0 %v11600_v6  ;;  %7647 = vmatmul.mubr.bf16.vlgmr.msra.gmra.mrb[0].mxu1 %v11600_v6  ;;  %v9961_v6 = vld [vmem:[%s14631_s1 + $0x84c] ss:$16 sps:$4 sm:$0xff]  }
 0x103   :  { %6970 = vmatpush1.bf16.msra.mxu0 %v9944_v25  ;;  %7658 = vmatpush1.bf16.msra.mxu1 %v9947_v26  ;;  %v10031_v25 = vld [vmem:[%s14631_s1 + $0x9c8] ss:$16 sps:$4 sm:$0xff]   ;;  %v10036_v26 = vld [vmem:[%s14631_s1 + $0x9e4] ss:$16 sps:$4 sm:$0xff]  }
 0x104   :  { %6971 = vmatprep.subr.bf16.mxu0 %v9952_v30  ;;  %7659 = vmatprep.subr.bf16.mxu1 %v9955_v32  ;;  %v10039_v30 = vld [vmem:[%s14631_s1 + $0x9ec] ss:$16 sps:$4 sm:$0xff]   ;;  %v10034_v32 = vld [vmem:[%s14631_s1 + $0x9e0] ss:$16 sps:$4 sm:$0xff]  }
 0x105   :  { %7001 = vmatprep.mubr.bf16.mxu0 %v1369_v34  ;;  %7689 = vmatprep.mubr.bf16.mxu1 %v1369_v34  ;;  %v10037_v34 = vld [vmem:[%s14631_s1 + $0x9e8] ss:$16 sps:$4 sm:$0xff]  }
 0x107   :  { %6972 = vmatpush1.bf16.msra.mxu0 %v9950_v35  ;;  %7660 = vmatpush1.bf16.msra.mxu1 %v9953_v36  ;;  %v10042_v35 = vld [vmem:[%s14631_s1 + $0xa04] ss:$16 sps:$4 sm:$0xff]   ;;  %v10045_v36 = vld [vmem:[%s14631_s1 + $0xa0c] ss:$16 sps:$4 sm:$0xff]  }
 0x108   :  { %6973 = vmatprep.subr.bf16.mxu0 %v9958_v37  ;;  %7661 = vmatprep.subr.bf16.mxu1 %v9961_v6  ;;  %v1365_v37 = vcombine.low %v12019_v27, %v12022_v28  ;;  %v10040_v6 = vld [vmem:[%s14631_s1 + $0xa00] ss:$16 sps:$4 sm:$0xff]   ;;  %v10051_v27 = vld [vmem:[%s14631_s1 + $0xa2c] ss:$16 sps:$4 sm:$0xff]  }
 0x109   :  { %v10046_v28 = vld [vmem:[%s14631_s1 + $0xa20] ss:$16 sps:$4 sm:$0xff]  }
 0x10b   :  { %6974 = vmatpush1.bf16.msra.mxu0 %v9956_v38  ;;  %7662 = vmatpush1.bf16.msra.mxu1 %v9959_v39  ;;  %v10043_v38 = vld [vmem:[%s14631_s1 + $0xa08] ss:$16 sps:$4 sm:$0xff]   ;;  %v10048_v39 = vld [vmem:[%s14631_s1 + $0xa24] ss:$16 sps:$4 sm:$0xff]  }
 0x10c   :  { %6975 = vmatprep.subr.bf16.mxu0 %v9964_v40  ;;  %7663 = vmatprep.subr.bf16.mxu1 %v9967_v41  ;;  %v10049_v40 = vld [vmem:[%s14631_s1 + $0xa28] ss:$16 sps:$4 sm:$0xff]   ;;  %v10054_v41 = vld [vmem:[%s14631_s1 + $0xa44] ss:$16 sps:$4 sm:$0xff]  }
 0x10f   :  { %6976 = vmatpush1.bf16.msra.mxu0 %v9962_v42  ;;  %7664 = vmatpush1.bf16.msra.mxu1 %v9965_v43  ;;  %v10057_v42 = vld [vmem:[%s14631_s1 + $0xa4c] ss:$16 sps:$4 sm:$0xff]   ;;  %v10052_v43 = vld [vmem:[%s14631_s1 + $0xa40] ss:$16 sps:$4 sm:$0xff]  }
 0x110   :  { %6977 = vmatprep.subr.bf16.mxu0 %v9970_v44  ;;  %7665 = vmatprep.subr.bf16.mxu1 %v9973_v45  ;;  %v10055_v44 = vld [vmem:[%s14631_s1 + $0xa48] ss:$16 sps:$4 sm:$0xff]   ;;  %v10060_v45 = vld [vmem:[%s14631_s1 + $0xa64] ss:$16 sps:$4 sm:$0xff]  }
 0x113   :  { %6978 = vmatpush1.bf16.msra.mxu0 %v9968_v47  ;;  %7666 = vmatpush1.bf16.msra.mxu1 %v9971_v48  ;;  %v10058_v47 = vld [vmem:[%s14631_s1 + $0xa60] ss:$16 sps:$4 sm:$0xff]   ;;  %v10061_v48 = vld [vmem:[%s14631_s1 + $0xa68] ss:$16 sps:$4 sm:$0xff]  }
 0x114   :  { %6979 = vmatprep.subr.bf16.mxu0 %v9976_v49  ;;  %7667 = vmatprep.subr.bf16.mxu1 %v9979_v52  ;;  %v10066_v49 = vld [vmem:[%s14631_s1 + $0xa84] ss:$16 sps:$4 sm:$0xff]   ;;  %v10069_v52 = vld [vmem:[%s14631_s1 + $0xa8c] ss:$16 sps:$4 sm:$0xff]  }
 0x117   :  { %6980 = vmatpush1.bf16.msra.mxu0 %v9974_v56  ;;  %7668 = vmatpush1.bf16.msra.mxu1 %v9977_v58  ;;  %v10064_v56 = vld [vmem:[%s14631_s1 + $0xa80] ss:$16 sps:$4 sm:$0xff]   ;;  %v10067_v58 = vld [vmem:[%s14631_s1 + $0xa88] ss:$16 sps:$4 sm:$0xff]  }
 0x118   :  { %6981 = vmatprep.subr.bf16.mxu0 %v9982_v60  ;;  %7669 = vmatprep.subr.bf16.mxu1 %v9985_v61  ;;  %v10072_v60 = vld [vmem:[%s14631_s1 + $0xaa4] ss:$16 sps:$4 sm:$0xff]   ;;  %v10075_v61 = vld [vmem:[%s14631_s1 + $0xaac] ss:$16 sps:$4 sm:$0xff]  }
 0x11b   :  { %6982 = vmatpush1.bf16.msra.mxu0 %v9980_v62  ;;  %7670 = vmatpush1.bf16.msra.mxu1 %v9983_v63  ;;  %v10070_v62 = vld [vmem:[%s14631_s1 + $0xaa0] ss:$16 sps:$4 sm:$0xff]   ;;  %v10073_v63 = vld [vmem:[%s14631_s1 + $0xaa8] ss:$16 sps:$4 sm:$0xff]  }
 0x11c   :  { %6983 = vmatprep.subr.bf16.mxu0 %v9988_v0  ;;  %7671 = vmatprep.subr.bf16.mxu1 %v9991_v1  ;;  %v10078_v0 = vld [vmem:[%s14631_s1 + $0xac4] ss:$16 sps:$4 sm:$0xff]   ;;  %v10081_v1 = vld [vmem:[%s14631_s1 + $0xacc] ss:$16 sps:$4 sm:$0xff]  }
 0x11f   :  { %6984 = vmatpush1.bf16.msra.mxu0 %v9986_v2  ;;  %7672 = vmatpush1.bf16.msra.mxu1 %v9989_v3  ;;  %v10076_v2 = vld [vmem:[%s14631_s1 + $0xac0] ss:$16 sps:$4 sm:$0xff]   ;;  %v10079_v3 = vld [vmem:[%s14631_s1 + $0xac8] ss:$16 sps:$4 sm:$0xff]  }
 0x120   :  { %6985 = vmatprep.subr.bf16.mxu0 %v9994_v5  ;;  %7673 = vmatprep.subr.bf16.mxu1 %v9997_v7  ;;  %v10084_v5 = vld [vmem:[%s14631_s1 + $0xae4] ss:$16 sps:$4 sm:$0xff]   ;;  %v10087_v7 = vld [vmem:[%s14631_s1 + $0xaec] ss:$16 sps:$4 sm:$0xff]  }
 0x123   :  { %6986 = vmatpush1.bf16.msra.mxu0 %v9992_v50  ;;  %7674 = vmatpush1.bf16.msra.mxu1 %v9995_v51  ;;  %v10082_v50 = vld [vmem:[%s14631_s1 + $0xae0] ss:$16 sps:$4 sm:$0xff]   ;;  %v10085_v51 = vld [vmem:[%s14631_s1 + $0xae8] ss:$16 sps:$4 sm:$0xff]  }
 0x124   :  { %6987 = vmatprep.subr.bf16.mxu0 %v10000_v29  ;;  %7675 = vmatprep.subr.bf16.mxu1 %v10003_v53  ;;  %v10090_v29 = vld [vmem:[%s14631_s1 + $0xb04] ss:$16 sps:$4 sm:$0xff]   ;;  %v10093_v53 = vld [vmem:[%s14631_s1 + $0xb0c] ss:$16 sps:$4 sm:$0xff]  }
 0x127   :  { %6988 = vmatpush1.bf16.msra.mxu0 %v9998_v55  ;;  %7676 = vmatpush1.bf16.msra.mxu1 %v10001_v8  ;;  %v10088_v55 = vld [vmem:[%s14631_s1 + $0xb00] ss:$16 sps:$4 sm:$0xff]   ;;  %v10091_v8 = vld [vmem:[%s14631_s1 + $0xb08] ss:$16 sps:$4 sm:$0xff]  }
 0x128   :  { %6989 = vmatprep.subr.bf16.mxu0 %v10006_v57  ;;  %7677 = vmatprep.subr.bf16.mxu1 %v10009_v59  ;;  %v10096_v57 = vld [vmem:[%s14631_s1 + $0xb24] ss:$16 sps:$4 sm:$0xff]   ;;  %v10099_v59 = vld [vmem:[%s14631_s1 + $0xb2c] ss:$16 sps:$4 sm:$0xff]  }
 0x12b   :  { %6990 = vmatpush1.bf16.msra.mxu0 %v10004_v9  ;;  %7678 = vmatpush1.bf16.msra.mxu1 %v10007_v10  ;;  %v10094_v9 = vld [vmem:[%s14631_s1 + $0xb20] ss:$16 sps:$4 sm:$0xff]   ;;  %v10097_v10 = vld [vmem:[%s14631_s1 + $0xb28] ss:$16 sps:$4 sm:$0xff]  }
 0x12c   :  { %6991 = vmatprep.subr.bf16.mxu0 %v10012_v11  ;;  %7679 = vmatprep.subr.bf16.mxu1 %v10015_v4  ;;  %v10102_v11 = vld [vmem:[%s14631_s1 + $0xb44] ss:$16 sps:$4 sm:$0xff]   ;;  %v10105_v4 = vld [vmem:[%s14631_s1 + $0xb4c] ss:$16 sps:$4 sm:$0xff]  }
 0x12f   :  { %6992 = vmatpush1.bf16.msra.mxu0 %v10010_v12  ;;  %7680 = vmatpush1.bf16.msra.mxu1 %v10013_v13  ;;  %v10100_v12 = vld [vmem:[%s14631_s1 + $0xb40] ss:$16 sps:$4 sm:$0xff]   ;;  %v10103_v13 = vld [vmem:[%s14631_s1 + $0xb48] ss:$16 sps:$4 sm:$0xff]  }
 0x130   :  { %6993 = vmatprep.subr.bf16.mxu0 %v10018_v14  ;;  %7681 = vmatprep.subr.bf16.mxu1 %v10021_v15  ;;  %v10108_v14 = vld [vmem:[%s14631_s1 + $0xb64] ss:$16 sps:$4 sm:$0xff]   ;;  %v10111_v15 = vld [vmem:[%s14631_s1 + $0xb6c] ss:$16 sps:$4 sm:$0xff]  }
 0x133   :  { %6994 = vmatpush1.bf16.msra.mxu0 %v10016_v16  ;;  %7682 = vmatpush1.bf16.msra.mxu1 %v10019_v17  ;;  %v10106_v16 = vld [vmem:[%s14631_s1 + $0xb60] ss:$16 sps:$4 sm:$0xff]   ;;  %v10109_v17 = vld [vmem:[%s14631_s1 + $0xb68] ss:$16 sps:$4 sm:$0xff]  }
 0x134   :  { %6995 = vmatprep.subr.bf16.mxu0 %v10024_v18  ;;  %7683 = vmatprep.subr.bf16.mxu1 %v10027_v19  ;;  %v10114_v18 = vld [vmem:[%s14631_s1 + $0xb84] ss:$16 sps:$4 sm:$0xff]   ;;  %v10117_v19 = vld [vmem:[%s14631_s1 + $0xb8c] ss:$16 sps:$4 sm:$0xff]  }
 0x137   :  { %6996 = vmatpush1.bf16.msra.mxu0 %v10022_v20  ;;  %7684 = vmatpush1.bf16.msra.mxu1 %v10025_v21  ;;  %v10112_v20 = vld [vmem:[%s14631_s1 + $0xb80] ss:$16 sps:$4 sm:$0xff]   ;;  %v10115_v21 = vld [vmem:[%s14631_s1 + $0xb88] ss:$16 sps:$4 sm:$0xff]  }
 0x138   :  { %6997 = vmatprep.subr.bf16.mxu0 %v10030_v22  ;;  %7685 = vmatprep.subr.bf16.mxu1 %v10033_v23  ;;  %v10120_v22 = vld [vmem:[%s14631_s1 + $0xba4] ss:$16 sps:$4 sm:$0xff]   ;;  %v10123_v23 = vld [vmem:[%s14631_s1 + $0xbac] ss:$16 sps:$4 sm:$0xff]  }
 0x13b   :  { %6998 = vmatpush1.bf16.msra.mxu0 %v10028_v24  ;;  %7686 = vmatpush1.bf16.msra.mxu1 %v10031_v25  ;;  %v11096_v24 = vld [vmem:[%s14630_s0 + $0x8] sm:$0xff] }
 0x13c   :  { %6999 = vmatprep.subr.bf16.mxu0 %v10036_v26  ;;  %7687 = vmatprep.subr.bf16.mxu1 %v10039_v30  ;;  %v11097_v25 = vld [vmem:[%s14630_s0 + $0x28] sm:$0xff] }
 0x13d   :  { %v1238_v26 = vcombine.high %v11096_v24, %v11097_v25  ;;  %v11098_v30 = vld [vmem:[%s14630_s0 + $0x48] sm:$0xff]  ;;  %v10172_v25 = vld [vmem:[%s14631_s1 + $0xcc0] ss:$16 sps:$4 sm:$0xff]  }
 0x13e   :  { %v10177_v24 = vld [vmem:[%s14631_s1 + $0xccc] ss:$16 sps:$4 sm:$0xff]  }
 0x13f   :  { %7000 = vmatpush1.bf16.msra.mxu0 %v10034_v32  ;;  %7688 = vmatpush1.bf16.msra.mxu1 %v10037_v34  ;;  %v11099_v32 = vld [vmem:[%s14630_s0 + $0x68] sm:$0xff] }
 0x140   :  { %7012 = vmatprep.subr.bf16.mxu0 %v10042_v35  ;;  %7700 = vmatprep.subr.bf16.mxu1 %v10045_v36  ;;  %v1240_v34 = vcombine.high %v11098_v30, %v11099_v32  ;;  %v11100_v35 = vld [vmem:[%s14630_s0 + $0x88] sm:$0xff]  ;;  %v10180_v30 = vld [vmem:[%s14631_s1 + $0xce4] ss:$16 sps:$4 sm:$0xff]  }
 0x141   :  { %v11101_v36 = vld [vmem:[%s14630_s0 + $0xa8] sm:$0xff] }
 0x142   :  { %7002 = vmatmul.mubr.bf16.vlgmr.msra.gmra.mrb[0].mxu0 %v1365_v37  ;;  %7690 = vmatmul.mubr.bf16.vlgmr.msra.gmra.mrb[0].mxu1 %v1365_v37  ;;  %v1242_v37 = vcombine.high %v11100_v35, %v11101_v36  ;;  %v10183_v32 = vld [vmem:[%s14631_s1 + $0xcec] ss:$16 sps:$4 sm:$0xff]   ;;  %v10181_v35 = vld [vmem:[%s14631_s1 + $0xce8] ss:$16 sps:$4 sm:$0xff]   ;;  %v10186_v36 = vld [vmem:[%s14631_s1 + $0xd04] ss:$16 sps:$4 sm:$0xff]  }
 0x143   :  { %7013 = vmatpush1.bf16.msra.mxu0 %v10040_v6  ;;  %7701 = vmatpush1.bf16.msra.mxu1 %v10043_v38  ;;  %v11102_v6 = vld [vmem:[%s14630_s0 + $0xc8] sm:$0xff] }
 0x144   :  { %7014 = vmatprep.subr.bf16.mxu0 %v10048_v39  ;;  %7702 = vmatprep.subr.bf16.mxu1 %v10051_v27  ;;  %v11103_v38 = vld [vmem:[%s14630_s0 + $0xe8] sm:$0xff]  ;;  %v10118_v27 = vld [vmem:[%s14631_s1 + $0xba0] ss:$16 sps:$4 sm:$0xff]  }
 0x145   :  { %7044 = vmatprep.mubr.bf16.mxu0 %v12027_v31  ;;  %7732 = vmatprep.mubr.bf16.mxu1 %v12027_v31  ;;  %v10063_v31 = vld [vmem:[%s14631_s1 + $0xa6c] ss:$16 sps:$4 sm:$0xff]   ;;  %v1244_v39 = vcombine.high %v11102_v6, %v11103_v38  ;;  %v10184_v6 = vld [vmem:[%s14631_s1 + $0xd00] ss:$16 sps:$4 sm:$0xff]   ;;  %v10187_v38 = vld [vmem:[%s14631_s1 + $0xd08] ss:$16 sps:$4 sm:$0xff]  }
 0x147   :  { %7015 = vmatpush1.bf16.msra.mxu0 %v10046_v28  ;;  %7703 = vmatpush1.bf16.msra.mxu1 %v10049_v40  ;;  %v10121_v28 = vld [vmem:[%s14631_s1 + $0xba8] ss:$16 sps:$4 sm:$0xff]   ;;  %v10126_v40 = vld [vmem:[%s14631_s1 + $0xbc4] ss:$16 sps:$4 sm:$0xff]  }
 0x148   :  { %7016 = vmatprep.subr.bf16.mxu0 %v10054_v41  ;;  %7704 = vmatprep.subr.bf16.mxu1 %v10057_v42  ;;  %v10129_v41 = vld [vmem:[%s14631_s1 + $0xbcc] ss:$16 sps:$4 sm:$0xff]   ;;  %v1258_v42 = vrot.slane %v1238_v26, %v11277_v54  ;;  %v10175_v26 = vld [vmem:[%s14631_s1 + $0xcc8] ss:$16 sps:$4 sm:$0xff]  }
 0x14b   :  { %7017 = vmatpush1.bf16.msra.mxu0 %v10052_v43  ;;  %7705 = vmatpush1.bf16.msra.mxu1 %v10055_v44  ;;  %v1272_v43 = vrot.slane %v1240_v34, %v11277_v54  ;;  %v1286_v44 = vrot.slane %v1242_v37, %v11277_v54  ;;  %v10178_v34 = vld [vmem:[%s14631_s1 + $0xce0] ss:$16 sps:$4 sm:$0xff]   ;;  %v10189_v37 = vld [vmem:[%s14631_s1 + $0xd0c] ss:$16 sps:$4 sm:$0xff]  }
 0x14c   :  { %7018 = vmatprep.subr.bf16.mxu0 %v10060_v45  ;;  %7706 = vmatprep.subr.bf16.mxu1 %v10063_v31  ;;  %v1300_v45 = vrot.slane %v1244_v39, %v11277_v54  ;;  %v10124_v31 = vld [vmem:[%s14631_s1 + $0xbc0] ss:$16 sps:$4 sm:$0xff]   ;;  %v10192_v39 = vld [vmem:[%s14631_s1 + $0xd24] ss:$16 sps:$4 sm:$0xff]  }
 0x14f   :  { %7019 = vmatpush1.bf16.msra.mxu0 %v10058_v47  ;;  %7707 = vmatpush1.bf16.msra.mxu1 %v10061_v48  ;;  %v10127_v47 = vld [vmem:[%s14631_s1 + $0xbc8] ss:$16 sps:$4 sm:$0xff]   ;;  %v10132_v48 = vld [vmem:[%s14631_s1 + $0xbe4] ss:$16 sps:$4 sm:$0xff]  }
 0x150   :  { %7020 = vmatprep.subr.bf16.mxu0 %v10066_v49  ;;  %7708 = vmatprep.subr.bf16.mxu1 %v10069_v52  ;;  %v10135_v49 = vld [vmem:[%s14631_s1 + $0xbec] ss:$16 sps:$4 sm:$0xff]   ;;  %v1304_v52 = vcombine.high %v1258_v42, %v1272_v43 }
 0x153   :  { %7021 = vmatpush1.bf16.msra.mxu0 %v10064_v56  ;;  %7709 = vmatpush1.bf16.msra.mxu1 %v10067_v58  ;;  %v1308_v56 = vcombine.high %v1286_v44, %v1300_v45  ;;  %v1303_v58 = vcombine.low %v1258_v42, %v1272_v43  ;;  %v10201_v42 = vld [vmem:[%s14631_s1 + $0xd4c] ss:$16 sps:$4 sm:$0xff]   ;;  %v10196_v43 = vld [vmem:[%s14631_s1 + $0xd40] ss:$16 sps:$4 sm:$0xff]  }
 0x154   :  { %7022 = vmatprep.subr.bf16.mxu0 %v10072_v60  ;;  %7710 = vmatprep.subr.bf16.mxu1 %v10075_v61  ;;  %v1307_v60 = vcombine.low %v1286_v44, %v1300_v45  ;;  %v10130_v61 = vld [vmem:[%s14631_s1 + $0xbe0] ss:$16 sps:$4 sm:$0xff]   ;;  %v10199_v44 = vld [vmem:[%s14631_s1 + $0xd48] ss:$16 sps:$4 sm:$0xff]   ;;  %v10204_v45 = vld [vmem:[%s14631_s1 + $0xd64] ss:$16 sps:$4 sm:$0xff]  }
 0x157   :  { %7023 = vmatpush1.bf16.msra.mxu0 %v10070_v62  ;;  %7711 = vmatpush1.bf16.msra.mxu1 %v10073_v63  ;;  %v10133_v62 = vld [vmem:[%s14631_s1 + $0xbe8] ss:$16 sps:$4 sm:$0xff]   ;;  %v10138_v63 = vld [vmem:[%s14631_s1 + $0xc04] ss:$16 sps:$4 sm:$0xff]  }
 0x158   :  { %7024 = vmatprep.subr.bf16.mxu0 %v10078_v0  ;;  %7712 = vmatprep.subr.bf16.mxu1 %v10081_v1  ;;  %v10141_v0 = vld [vmem:[%s14631_s1 + $0xc0c] ss:$16 sps:$4 sm:$0xff]   ;;  %v1336_v1 = vrot.slane %v1304_v52, %v11277_v54 }
 0x159   :  { %v10213_v52 = vld [vmem:[%s14631_s1 + $0xd8c] ss:$16 sps:$4 sm:$0xff]  }
 0x15b   :  { %7025 = vmatpush1.bf16.msra.mxu0 %v10076_v2  ;;  %7713 = vmatpush1.bf16.msra.mxu1 %v10079_v3  ;;  %v1364_v2 = vrot.slane %v1308_v56, %v11277_v54  ;;  %v12445_v3 = vrot.slane %v1303_v58, %v11277_v54  ;;  %v10208_v56 = vld [vmem:[%s14631_s1 + $0xd80] ss:$16 sps:$4 sm:$0xff]   ;;  %v10211_v58 = vld [vmem:[%s14631_s1 + $0xd88] ss:$16 sps:$4 sm:$0xff]  }
 0x15c   :  { %7026 = vmatprep.subr.bf16.mxu0 %v10084_v5  ;;  %7714 = vmatprep.subr.bf16.mxu1 %v10087_v7  ;;  %v12448_v5 = vrot.slane %v1307_v60, %v11277_v54  ;;  %v10136_v7 = vld [vmem:[%s14631_s1 + $0xc00] ss:$16 sps:$4 sm:$0xff]   ;;  %v10216_v60 = vld [vmem:[%s14631_s1 + $0xda4] ss:$16 sps:$4 sm:$0xff]  }
 0x15f   :  { %7027 = vmatpush1.bf16.msra.mxu0 %v10082_v50  ;;  %7715 = vmatpush1.bf16.msra.mxu1 %v10085_v51  ;;  %v10139_v50 = vld [vmem:[%s14631_s1 + $0xc08] ss:$16 sps:$4 sm:$0xff]   ;;  %v12456_v51 = vcombine.high %v1336_v1, %v1364_v2 }
 0x160   :  { %7028 = vmatprep.subr.bf16.mxu0 %v10090_v29  ;;  %7716 = vmatprep.subr.bf16.mxu1 %v10093_v53  ;;  %v10144_v29 = vld [vmem:[%s14631_s1 + $0xc24] ss:$16 sps:$4 sm:$0xff]   ;;  %v10147_v53 = vld [vmem:[%s14631_s1 + $0xc2c] ss:$16 sps:$4 sm:$0xff]  }
 0x163   :  { %7029 = vmatpush1.bf16.msra.mxu0 %v10088_v55  ;;  %7717 = vmatpush1.bf16.msra.mxu1 %v10091_v8  ;;  %v12466_v55 = vcombine.high %v12445_v3, %v12448_v5  ;;  %v1371_v8 = vcombine.low %v1336_v1, %v1364_v2  ;;  %v10225_v1 = vld [vmem:[%s14631_s1 + $0xdcc] ss:$16 sps:$4 sm:$0xff]   ;;  %v10220_v2 = vld [vmem:[%s14631_s1 + $0xdc0] ss:$16 sps:$4 sm:$0xff]  }
 0x164   :  { %7030 = vmatprep.subr.bf16.mxu0 %v10096_v57  ;;  %7718 = vmatprep.subr.bf16.mxu1 %v10099_v59  ;;  %v10142_v57 = vld [vmem:[%s14631_s1 + $0xc20] ss:$16 sps:$4 sm:$0xff]   ;;  %v10145_v59 = vld [vmem:[%s14631_s1 + $0xc28] ss:$16 sps:$4 sm:$0xff]  }
 0x167   :  { %7031 = vmatpush1.bf16.msra.mxu0 %v10094_v9  ;;  %7719 = vmatpush1.bf16.msra.mxu1 %v10097_v10  ;;  %v10150_v9 = vld [vmem:[%s14631_s1 + $0xc44] ss:$16 sps:$4 sm:$0xff]   ;;  %v10148_v10 = vld [vmem:[%s14631_s1 + $0xc40] ss:$16 sps:$4 sm:$0xff]  }
 0x168   :  { %7032 = vmatprep.subr.bf16.mxu0 %v10102_v11  ;;  %7720 = vmatprep.subr.bf16.mxu1 %v10105_v4  ;;  %v10151_v11 = vld [vmem:[%s14631_s1 + $0xc48] ss:$16 sps:$4 sm:$0xff]   ;;  %v10156_v4 = vld [vmem:[%s14631_s1 + $0xc64] ss:$16 sps:$4 sm:$0xff]  }
 0x16b   :  { %7033 = vmatpush1.bf16.msra.mxu0 %v10100_v12  ;;  %7721 = vmatpush1.bf16.msra.mxu1 %v10103_v13  ;;  %v10159_v12 = vld [vmem:[%s14631_s1 + $0xc6c] ss:$16 sps:$4 sm:$0xff]   ;;  %v10154_v13 = vld [vmem:[%s14631_s1 + $0xc60] ss:$16 sps:$4 sm:$0xff]  }
 0x16c   :  { %7034 = vmatprep.subr.bf16.mxu0 %v10108_v14  ;;  %7722 = vmatprep.subr.bf16.mxu1 %v10111_v15  ;;  %v10157_v14 = vld [vmem:[%s14631_s1 + $0xc68] ss:$16 sps:$4 sm:$0xff]   ;;  %v10162_v15 = vld [vmem:[%s14631_s1 + $0xc84] ss:$16 sps:$4 sm:$0xff]  }
 0x16f   :  { %7035 = vmatpush1.bf16.msra.mxu0 %v10106_v16  ;;  %7723 = vmatpush1.bf16.msra.mxu1 %v10109_v17  ;;  %v10165_v16 = vld [vmem:[%s14631_s1 + $0xc8c] ss:$16 sps:$4 sm:$0xff]   ;;  %v10160_v17 = vld [vmem:[%s14631_s1 + $0xc80] ss:$16 sps:$4 sm:$0xff]  }
 0x170   :  { %7036 = vmatprep.subr.bf16.mxu0 %v10114_v18  ;;  %7724 = vmatprep.subr.bf16.mxu1 %v10117_v19  ;;  %v10163_v18 = vld [vmem:[%s14631_s1 + $0xc88] ss:$16 sps:$4 sm:$0xff]   ;;  %v10168_v19 = vld [vmem:[%s14631_s1 + $0xca4] ss:$16 sps:$4 sm:$0xff]  }
 0x173   :  { %7037 = vmatpush1.bf16.msra.mxu0 %v10112_v20  ;;  %7725 = vmatpush1.bf16.msra.mxu1 %v10115_v21  ;;  %v10171_v20 = vld [vmem:[%s14631_s1 + $0xcac] ss:$16 sps:$4 sm:$0xff]   ;;  %v10166_v21 = vld [vmem:[%s14631_s1 + $0xca0] ss:$16 sps:$4 sm:$0xff]  }
 0x174   :  { %7038 = vmatprep.subr.bf16.mxu0 %v10120_v22  ;;  %7726 = vmatprep.subr.bf16.mxu1 %v10123_v23  ;;  %v10169_v22 = vld [vmem:[%s14631_s1 + $0xca8] ss:$16 sps:$4 sm:$0xff]   ;;  %v10174_v23 = vld [vmem:[%s14631_s1 + $0xcc4] ss:$16 sps:$4 sm:$0xff]  }
 0x177   :  { %7039 = vmatpush1.bf16.msra.mxu0 %v10118_v27  ;;  %7727 = vmatpush1.bf16.msra.mxu1 %v10121_v28  ;;  %v10195_v27 = vld [vmem:[%s14631_s1 + $0xd2c] ss:$16 sps:$4 sm:$0xff]   ;;  %v10190_v28 = vld [vmem:[%s14631_s1 + $0xd20] ss:$16 sps:$4 sm:$0xff]  }
 0x178   :  { %7040 = vmatprep.subr.bf16.mxu0 %v10126_v40  ;;  %7728 = vmatprep.subr.bf16.mxu1 %v10129_v41  ;;  %v10193_v40 = vld [vmem:[%s14631_s1 + $0xd28] ss:$16 sps:$4 sm:$0xff]   ;;  %v10198_v41 = vld [vmem:[%s14631_s1 + $0xd44] ss:$16 sps:$4 sm:$0xff]  }
 0x17b   :  { %7041 = vmatpush1.bf16.msra.mxu0 %v10124_v31  ;;  %7729 = vmatpush1.bf16.msra.mxu1 %v10127_v47  ;;  %v10207_v31 = vld [vmem:[%s14631_s1 + $0xd6c] ss:$16 sps:$4 sm:$0xff]   ;;  %v10202_v47 = vld [vmem:[%s14631_s1 + $0xd60] ss:$16 sps:$4 sm:$0xff]  }
 0x17c   :  { %7042 = vmatprep.subr.bf16.mxu0 %v10132_v48  ;;  %7730 = vmatprep.subr.bf16.mxu1 %v10135_v49  ;;  %v10205_v48 = vld [vmem:[%s14631_s1 + $0xd68] ss:$16 sps:$4 sm:$0xff]   ;;  %v10210_v49 = vld [vmem:[%s14631_s1 + $0xd84] ss:$16 sps:$4 sm:$0xff]  }
 0x17f   :  { %7043 = vmatpush1.bf16.msra.mxu0 %v10130_v61  ;;  %7731 = vmatpush1.bf16.msra.mxu1 %v10133_v62  ;;  %v10219_v61 = vld [vmem:[%s14631_s1 + $0xdac] ss:$16 sps:$4 sm:$0xff]   ;;  %v10214_v62 = vld [vmem:[%s14631_s1 + $0xda0] ss:$16 sps:$4 sm:$0xff]  }
 0x180   :  { %7055 = vmatprep.subr.bf16.mxu0 %v10138_v63  ;;  %7743 = vmatprep.subr.bf16.mxu1 %v10141_v0  ;;  %v10217_v63 = vld [vmem:[%s14631_s1 + $0xda8] ss:$16 sps:$4 sm:$0xff]   ;;  %v10222_v0 = vld [vmem:[%s14631_s1 + $0xdc4] ss:$16 sps:$4 sm:$0xff]  }
 0x182   :  { %7045 = vmatmul.mubr.bf16.vlgmr.msra.gmra.mrb[0].mxu0 %v12034_v33  ;;  %7733 = vmatmul.mubr.bf16.vlgmr.msra.gmra.mrb[0].mxu1 %v12034_v33  ;;  %v10153_v33 = vld [vmem:[%s14631_s1 + $0xc4c] ss:$16 sps:$4 sm:$0xff]  }
 0x183   :  { %7056 = vmatpush1.bf16.msra.mxu0 %v10136_v7  ;;  %7744 = vmatpush1.bf16.msra.mxu1 %v10139_v50  ;;  %v10223_v7 = vld [vmem:[%s14631_s1 + $0xdc8] ss:$16 sps:$4 sm:$0xff]   ;;  %v10228_v50 = vld [vmem:[%s14631_s1 + $0xde4] ss:$16 sps:$4 sm:$0xff]  }
 0x184   :  { %7057 = vmatprep.subr.bf16.mxu0 %v10144_v29  ;;  %7745 = vmatprep.subr.bf16.mxu1 %v10147_v53  ;;  %v10231_v29 = vld [vmem:[%s14631_s1 + $0xdec] ss:$16 sps:$4 sm:$0xff]   ;;  %v10226_v53 = vld [vmem:[%s14631_s1 + $0xde0] ss:$16 sps:$4 sm:$0xff]  }
 0x185   :  { %7087 = vmatprep.mubr.bf16.mxu0 %v1371_v8  ;;  %7775 = vmatprep.mubr.bf16.mxu1 %v1371_v8  ;;  %v10229_v8 = vld [vmem:[%s14631_s1 + $0xde8] ss:$16 sps:$4 sm:$0xff]  }
 0x187   :  { %7058 = vmatpush1.bf16.msra.mxu0 %v10142_v57  ;;  %7746 = vmatpush1.bf16.msra.mxu1 %v10145_v59  ;;  %v10234_v57 = vld [vmem:[%s14631_s1 + $0xe04] ss:$16 sps:$4 sm:$0xff]   ;;  %v10237_v59 = vld [vmem:[%s14631_s1 + $0xe0c] ss:$16 sps:$4 sm:$0xff]  }
 0x188   :  { %7059 = vmatprep.subr.bf16.mxu0 %v10150_v9  ;;  %7747 = vmatprep.subr.bf16.mxu1 %v10153_v33  ;;  %v1367_v9 = vcombine.low %v12445_v3, %v12448_v5  ;;  %v10232_v33 = vld [vmem:[%s14631_s1 + $0xe00] ss:$16 sps:$4 sm:$0xff]   ;;  %v10243_v3 = vld [vmem:[%s14631_s1 + $0xe2c] ss:$16 sps:$4 sm:$0xff]  }
 0x189   :  { %v10238_v5 = vld [vmem:[%s14631_s1 + $0xe20] ss:$16 sps:$4 sm:$0xff]  }
 0x18b   :  { %7060 = vmatpush1.bf16.msra.mxu0 %v10148_v10  ;;  %7748 = vmatpush1.bf16.msra.mxu1 %v10151_v11  ;;  %v10235_v10 = vld [vmem:[%s14631_s1 + $0xe08] ss:$16 sps:$4 sm:$0xff]   ;;  %v10240_v11 = vld [vmem:[%s14631_s1 + $0xe24] ss:$16 sps:$4 sm:$0xff]  }
 0x18c   :  { %7061 = vmatprep.subr.bf16.mxu0 %v10156_v4  ;;  %7749 = vmatprep.subr.bf16.mxu1 %v10159_v12  ;;  %v10241_v4 = vld [vmem:[%s14631_s1 + $0xe28] ss:$16 sps:$4 sm:$0xff]   ;;  %v10246_v12 = vld [vmem:[%s14631_s1 + $0xe44] ss:$16 sps:$4 sm:$0xff]  }
 0x18f   :  { %7062 = vmatpush1.bf16.msra.mxu0 %v10154_v13  ;;  %7750 = vmatpush1.bf16.msra.mxu1 %v10157_v14  ;;  %v10249_v13 = vld [vmem:[%s14631_s1 + $0xe4c] ss:$16 sps:$4 sm:$0xff]   ;;  %v10244_v14 = vld [vmem:[%s14631_s1 + $0xe40] ss:$16 sps:$4 sm:$0xff]  }
 0x190   :  { %7063 = vmatprep.subr.bf16.mxu0 %v10162_v15  ;;  %7751 = vmatprep.subr.bf16.mxu1 %v10165_v16  ;;  %v10247_v15 = vld [vmem:[%s14631_s1 + $0xe48] ss:$16 sps:$4 sm:$0xff]   ;;  %v10252_v16 = vld [vmem:[%s14631_s1 + $0xe64] ss:$16 sps:$4 sm:$0xff]  }
 0x193   :  { %7064 = vmatpush1.bf16.msra.mxu0 %v10160_v17  ;;  %7752 = vmatpush1.bf16.msra.mxu1 %v10163_v18  ;;  %v10250_v17 = vld [vmem:[%s14631_s1 + $0xe60] ss:$16 sps:$4 sm:$0xff]   ;;  %v10253_v18 = vld [vmem:[%s14631_s1 + $0xe68] ss:$16 sps:$4 sm:$0xff]  }
 0x194   :  { %7065 = vmatprep.subr.bf16.mxu0 %v10168_v19  ;;  %7753 = vmatprep.subr.bf16.mxu1 %v10171_v20  ;;  %v10258_v19 = vld [vmem:[%s14631_s1 + $0xe84] ss:$16 sps:$4 sm:$0xff]   ;;  %v10261_v20 = vld [vmem:[%s14631_s1 + $0xe8c] ss:$16 sps:$4 sm:$0xff]  }
 0x197   :  { %7066 = vmatpush1.bf16.msra.mxu0 %v10166_v21  ;;  %7754 = vmatpush1.bf16.msra.mxu1 %v10169_v22  ;;  %v10256_v21 = vld [vmem:[%s14631_s1 + $0xe80] ss:$16 sps:$4 sm:$0xff]   ;;  %v10259_v22 = vld [vmem:[%s14631_s1 + $0xe88] ss:$16 sps:$4 sm:$0xff]  }
 0x198   :  { %7067 = vmatprep.subr.bf16.mxu0 %v10174_v23  ;;  %7755 = vmatprep.subr.bf16.mxu1 %v10177_v24  ;;  %v10264_v23 = vld [vmem:[%s14631_s1 + $0xea4] ss:$16 sps:$4 sm:$0xff]   ;;  %v10267_v24 = vld [vmem:[%s14631_s1 + $0xeac] ss:$16 sps:$4 sm:$0xff]  }
 0x19b   :  { %7068 = vmatpush1.bf16.msra.mxu0 %v10172_v25  ;;  %7756 = vmatpush1.bf16.msra.mxu1 %v10175_v26  ;;  %v10262_v25 = vld [vmem:[%s14631_s1 + $0xea0] ss:$16 sps:$4 sm:$0xff]   ;;  %v10265_v26 = vld [vmem:[%s14631_s1 + $0xea8] ss:$16 sps:$4 sm:$0xff]  }
 0x19c   :  { %7069 = vmatprep.subr.bf16.mxu0 %v10180_v30  ;;  %7757 = vmatprep.subr.bf16.mxu1 %v10183_v32  ;;  %v10270_v30 = vld [vmem:[%s14631_s1 + $0xec4] ss:$16 sps:$4 sm:$0xff]   ;;  %v10273_v32 = vld [vmem:[%s14631_s1 + $0xecc] ss:$16 sps:$4 sm:$0xff]  }
 0x19f   :  { %7070 = vmatpush1.bf16.msra.mxu0 %v10178_v34  ;;  %7758 = vmatpush1.bf16.msra.mxu1 %v10181_v35  ;;  %v10268_v34 = vld [vmem:[%s14631_s1 + $0xec0] ss:$16 sps:$4 sm:$0xff]   ;;  %v10271_v35 = vld [vmem:[%s14631_s1 + $0xec8] ss:$16 sps:$4 sm:$0xff]  }
 0x1a0   :  { %7071 = vmatprep.subr.bf16.mxu0 %v10186_v36  ;;  %7759 = vmatprep.subr.bf16.mxu1 %v10189_v37  ;;  %v10276_v36 = vld [vmem:[%s14631_s1 + $0xee4] ss:$16 sps:$4 sm:$0xff]   ;;  %v10279_v37 = vld [vmem:[%s14631_s1 + $0xeec] ss:$16 sps:$4 sm:$0xff]  }
 0x1a3   :  { %7072 = vmatpush1.bf16.msra.mxu0 %v10184_v6  ;;  %7760 = vmatpush1.bf16.msra.mxu1 %v10187_v38  ;;  %v10274_v6 = vld [vmem:[%s14631_s1 + $0xee0] ss:$16 sps:$4 sm:$0xff]   ;;  %v10277_v38 = vld [vmem:[%s14631_s1 + $0xee8] ss:$16 sps:$4 sm:$0xff]  }
 0x1a4   :  { %7073 = vmatprep.subr.bf16.mxu0 %v10192_v39  ;;  %7761 = vmatprep.subr.bf16.mxu1 %v10195_v27  ;;  %v10282_v39 = vld [vmem:[%s14631_s1 + $0xf04] ss:$16 sps:$4 sm:$0xff]   ;;  %v10285_v27 = vld [vmem:[%s14631_s1 + $0xf0c] ss:$16 sps:$4 sm:$0xff]  }
 0x1a7   :  { %7074 = vmatpush1.bf16.msra.mxu0 %v10190_v28  ;;  %7762 = vmatpush1.bf16.msra.mxu1 %v10193_v40  ;;  %v10280_v28 = vld [vmem:[%s14631_s1 + $0xf00] ss:$16 sps:$4 sm:$0xff]   ;;  %v10283_v40 = vld [vmem:[%s14631_s1 + $0xf08] ss:$16 sps:$4 sm:$0xff]  }
 0x1a8   :  { %7075 = vmatprep.subr.bf16.mxu0 %v10198_v41  ;;  %7763 = vmatprep.subr.bf16.mxu1 %v10201_v42  ;;  %v10288_v41 = vld [vmem:[%s14631_s1 + $0xf24] ss:$16 sps:$4 sm:$0xff]   ;;  %v10291_v42 = vld [vmem:[%s14631_s1 + $0xf2c] ss:$16 sps:$4 sm:$0xff]  }
 0x1ab   :  { %7076 = vmatpush1.bf16.msra.mxu0 %v10196_v43  ;;  %7764 = vmatpush1.bf16.msra.mxu1 %v10199_v44  ;;  %v10286_v43 = vld [vmem:[%s14631_s1 + $0xf20] ss:$16 sps:$4 sm:$0xff]   ;;  %v10289_v44 = vld [vmem:[%s14631_s1 + $0xf28] ss:$16 sps:$4 sm:$0xff]  }
 0x1ac   :  { %7077 = vmatprep.subr.bf16.mxu0 %v10204_v45  ;;  %7765 = vmatprep.subr.bf16.mxu1 %v10207_v31  ;;  %v10294_v45 = vld [vmem:[%s14631_s1 + $0xf44] ss:$16 sps:$4 sm:$0xff]   ;;  %v10297_v31 = vld [vmem:[%s14631_s1 + $0xf4c] ss:$16 sps:$4 sm:$0xff]  }
 0x1af   :  { %7078 = vmatpush1.bf16.msra.mxu0 %v10202_v47  ;;  %7766 = vmatpush1.bf16.msra.mxu1 %v10205_v48  ;;  %v10292_v47 = vld [vmem:[%s14631_s1 + $0xf40] ss:$16 sps:$4 sm:$0xff]   ;;  %v10295_v48 = vld [vmem:[%s14631_s1 + $0xf48] ss:$16 sps:$4 sm:$0xff]  }
 0x1b0   :  { %7079 = vmatprep.subr.bf16.mxu0 %v10210_v49  ;;  %7767 = vmatprep.subr.bf16.mxu1 %v10213_v52  ;;  %v10300_v49 = vld [vmem:[%s14631_s1 + $0xf64] ss:$16 sps:$4 sm:$0xff]   ;;  %v10303_v52 = vld [vmem:[%s14631_s1 + $0xf6c] ss:$16 sps:$4 sm:$0xff]  }
 0x1b3   :  { %7080 = vmatpush1.bf16.msra.mxu0 %v10208_v56  ;;  %7768 = vmatpush1.bf16.msra.mxu1 %v10211_v58  ;;  %v10298_v56 = vld [vmem:[%s14631_s1 + $0xf60] ss:$16 sps:$4 sm:$0xff]   ;;  %v10301_v58 = vld [vmem:[%s14631_s1 + $0xf68] ss:$16 sps:$4 sm:$0xff]  }
 0x1b4   :  { %7081 = vmatprep.subr.bf16.mxu0 %v10216_v60  ;;  %7769 = vmatprep.subr.bf16.mxu1 %v10219_v61  ;;  %v10306_v60 = vld [vmem:[%s14631_s1 + $0xf84] ss:$16 sps:$4 sm:$0xff]   ;;  %v10309_v61 = vld [vmem:[%s14631_s1 + $0xf8c] ss:$16 sps:$4 sm:$0xff]  }
 0x1b7   :  { %7082 = vmatpush1.bf16.msra.mxu0 %v10214_v62  ;;  %7770 = vmatpush1.bf16.msra.mxu1 %v10217_v63  ;;  %v12801_v62 = vld [vmem:[%s14630_s0 + $0x10] sm:$0xff] }
 0x1b8   :  { %7083 = vmatprep.subr.bf16.mxu0 %v10222_v0  ;;  %7771 = vmatprep.subr.bf16.mxu1 %v10225_v1  ;;  %v12806_v63 = vld [vmem:[%s14630_s0 + $0x30] sm:$0xff] }
 0x1b9   :  { %v12811_v0 = vld [vmem:[%s14630_s0 + $0x50] sm:$0xff] }
 0x1ba   :  { %v12816_v1 = vld [vmem:[%s14630_s0 + $0x70] sm:$0xff] }
 0x1bb   :  { %7084 = vmatpush1.bf16.msra.mxu0 %v10220_v2  ;;  %7772 = vmatpush1.bf16.msra.mxu1 %v10223_v7  ;;  %v12821_v2 = vld [vmem:[%s14630_s0 + $0x90] sm:$0xff] }
 0x1bc   :  { %7085 = vmatprep.subr.bf16.mxu0 %v10228_v50  ;;  %7773 = vmatprep.subr.bf16.mxu1 %v10231_v29  ;;  %v12826_v7 = vld [vmem:[%s14630_s0 + $0xb0] sm:$0xff] }
 0x1bd   :  { %v12831_v50 = vld [vmem:[%s14630_s0 + $0xd0] sm:$0xff] }
 0x1be   :  { %v12836_v29 = vld [vmem:[%s14630_s0 + $0xf0] sm:$0xff] }
 0x1bf   :  { %7086 = vmatpush1.bf16.msra.mxu0 %v10226_v53  ;;  %7774 = vmatpush1.bf16.msra.mxu1 %v10229_v8  ;;  %v10304_v53 = vld [vmem:[%s14631_s1 + $0xf80] ss:$16 sps:$4 sm:$0xff]   ;;  %v10307_v8 = vld [vmem:[%s14631_s1 + $0xf88] ss:$16 sps:$4 sm:$0xff]  }
 0x1c0   :  { %7098 = vmatprep.subr.bf16.mxu0 %v10234_v57  ;;  %7786 = vmatprep.subr.bf16.mxu1 %v10237_v59  ;;  %v10312_v57 = vld [vmem:[%s14631_s1 + $0xfa4] ss:$16 sps:$4 sm:$0xff]   ;;  %v10315_v59 = vld [vmem:[%s14631_s1 + $0xfac] ss:$16 sps:$4 sm:$0xff]  }
 0x1c2   :  { %7088 = vmatmul.mubr.bf16.vlgmr.msra.gmra.mrb[0].mxu0 %v1367_v9  ;;  %7776 = vmatmul.mubr.bf16.vlgmr.msra.gmra.mrb[0].mxu1 %v1367_v9  ;;  %v1373_v9 = vcombine.low %v12801_v62, %v12806_v63 }
 0x1c3   :  { %7099 = vmatpush1.bf16.msra.mxu0 %v10232_v33  ;;  %7787 = vmatpush1.bf16.msra.mxu1 %v10235_v10  ;;  %v1375_v33 = vcombine.low %v12811_v0, %v12816_v1  ;;  %v1377_v10 = vcombine.low %v12821_v2, %v12826_v7 }
 0x1c4   :  { %7100 = vmatprep.subr.bf16.mxu0 %v10240_v11  ;;  %7788 = vmatprep.subr.bf16.mxu1 %v10243_v3  ;;  %v1379_v11 = vcombine.low %v12831_v50, %v12836_v29  ;;  %v10310_v3 = vld [vmem:[%s14631_s1 + $0xfa0] ss:$16 sps:$4 sm:$0xff]  }
 0x1c5   :  { %7130 = vmatprep.mubr.bf16.mxu0 %v12456_v51  ;;  %7818 = vmatprep.mubr.bf16.mxu1 %v12456_v51  ;;  %v10255_v51 = vld [vmem:[%s14631_s1 + $0xe6c] ss:$16 sps:$4 sm:$0xff]  }
 0x1c7   :  { %7101 = vmatpush1.bf16.msra.mxu0 %v10238_v5  ;;  %7789 = vmatpush1.bf16.msra.mxu1 %v10241_v4  ;;  %v10313_v5 = vld [vmem:[%s14631_s1 + $0xfa8] ss:$16 sps:$4 sm:$0xff]   ;;  %v10318_v4 = vld [vmem:[%s14631_s1 + $0xfc4] ss:$16 sps:$4 sm:$0xff]  }
 0x1c8   :  { %7102 = vmatprep.subr.bf16.mxu0 %v10246_v12  ;;  %7790 = vmatprep.subr.bf16.mxu1 %v10249_v13  ;;  %v10321_v12 = vld [vmem:[%s14631_s1 + $0xfcc] ss:$16 sps:$4 sm:$0xff]   ;;  %v1387_v13 = vrot.slane %v1373_v9, %v11277_v54 }
 0x1c9   :  { %v10369_v9 = vld [vmem:[%s14631_s1 + $0x10cc] ss:$16 sps:$4 sm:$0xff]  }
 0x1cb   :  { %7103 = vmatpush1.bf16.msra.mxu0 %v10244_v14  ;;  %7791 = vmatpush1.bf16.msra.mxu1 %v10247_v15  ;;  %v1401_v14 = vrot.slane %v1375_v33, %v11277_v54  ;;  %v1415_v15 = vrot.slane %v1377_v10, %v11277_v54  ;;  %v10364_v33 = vld [vmem:[%s14631_s1 + $0x10c0] ss:$16 sps:$4 sm:$0xff]   ;;  %v10367_v10 = vld [vmem:[%s14631_s1 + $0x10c8] ss:$16 sps:$4 sm:$0xff]  }
 0x1cc   :  { %7104 = vmatprep.subr.bf16.mxu0 %v10252_v16  ;;  %7792 = vmatprep.subr.bf16.mxu1 %v10255_v51  ;;  %v1429_v16 = vrot.slane %v1379_v11, %v11277_v54  ;;  %v10316_v51 = vld [vmem:[%s14631_s1 + $0xfc0] ss:$16 sps:$4 sm:$0xff]   ;;  %v10372_v11 = vld [vmem:[%s14631_s1 + $0x10e4] ss:$16 sps:$4 sm:$0xff]  }
 0x1cf   :  { %7105 = vmatpush1.bf16.msra.mxu0 %v10250_v17  ;;  %7793 = vmatpush1.bf16.msra.mxu1 %v10253_v18  ;;  %v10319_v17 = vld [vmem:[%s14631_s1 + $0xfc8] ss:$16 sps:$4 sm:$0xff]   ;;  %v10324_v18 = vld [vmem:[%s14631_s1 + $0xfe4] ss:$16 sps:$4 sm:$0xff]  }
 0x1d0   :  { %7106 = vmatprep.subr.bf16.mxu0 %v10258_v19  ;;  %7794 = vmatprep.subr.bf16.mxu1 %v10261_v20  ;;  %v10327_v19 = vld [vmem:[%s14631_s1 + $0xfec] ss:$16 sps:$4 sm:$0xff]   ;;  %v1438_v20 = vcombine.high %v1387_v13, %v1401_v14 }
 0x1d3   :  { %7107 = vmatpush1.bf16.msra.mxu0 %v10256_v21  ;;  %7795 = vmatpush1.bf16.msra.mxu1 %v10259_v22  ;;  %v1442_v21 = vcombine.high %v1415_v15, %v1429_v16  ;;  %v1437_v22 = vcombine.low %v1387_v13, %v1401_v14  ;;  %v10381_v13 = vld [vmem:[%s14631_s1 + $0x110c] ss:$16 sps:$4 sm:$0xff]   ;;  %v10376_v14 = vld [vmem:[%s14631_s1 + $0x1100] ss:$16 sps:$4 sm:$0xff]  }
 0x1d4   :  { %7108 = vmatprep.subr.bf16.mxu0 %v10264_v23  ;;  %7796 = vmatprep.subr.bf16.mxu1 %v10267_v24  ;;  %v1441_v23 = vcombine.low %v1415_v15, %v1429_v16  ;;  %v10322_v24 = vld [vmem:[%s14631_s1 + $0xfe0] ss:$16 sps:$4 sm:$0xff]   ;;  %v10379_v15 = vld [vmem:[%s14631_s1 + $0x1108] ss:$16 sps:$4 sm:$0xff]   ;;  %v10384_v16 = vld [vmem:[%s14631_s1 + $0x1124] ss:$16 sps:$4 sm:$0xff]  }
 0x1d7   :  { %7109 = vmatpush1.bf16.msra.mxu0 %v10262_v25  ;;  %7797 = vmatpush1.bf16.msra.mxu1 %v10265_v26  ;;  %v10325_v25 = vld [vmem:[%s14631_s1 + $0xfe8] ss:$16 sps:$4 sm:$0xff]   ;;  %v10330_v26 = vld [vmem:[%s14631_s1 + $0x1004] ss:$16 sps:$4 sm:$0xff]  }
 0x1d8   :  { %7110 = vmatprep.subr.bf16.mxu0 %v10270_v30  ;;  %7798 = vmatprep.subr.bf16.mxu1 %v10273_v32  ;;  %v10333_v30 = vld [vmem:[%s14631_s1 + $0x100c] ss:$16 sps:$4 sm:$0xff]   ;;  %v1465_v32 = vrot.slane %v1438_v20, %v11277_v54 }
 0x1d9   :  { %v10393_v20 = vld [vmem:[%s14631_s1 + $0x114c] ss:$16 sps:$4 sm:$0xff]  }
 0x1db   :  { %7111 = vmatpush1.bf16.msra.mxu0 %v10268_v34  ;;  %7799 = vmatpush1.bf16.msra.mxu1 %v10271_v35  ;;  %v1493_v34 = vrot.slane %v1442_v21, %v11277_v54  ;;  %v12901_v35 = vrot.slane %v1437_v22, %v11277_v54  ;;  %v10388_v21 = vld [vmem:[%s14631_s1 + $0x1140] ss:$16 sps:$4 sm:$0xff]   ;;  %v10391_v22 = vld [vmem:[%s14631_s1 + $0x1148] ss:$16 sps:$4 sm:$0xff]  }
 0x1dc   :  { %7112 = vmatprep.subr.bf16.mxu0 %v10276_v36  ;;  %7800 = vmatprep.subr.bf16.mxu1 %v10279_v37  ;;  %v12904_v36 = vrot.slane %v1441_v23, %v11277_v54  ;;  %v10328_v37 = vld [vmem:[%s14631_s1 + $0x1000] ss:$16 sps:$4 sm:$0xff]   ;;  %v10396_v23 = vld [vmem:[%s14631_s1 + $0x1164] ss:$16 sps:$4 sm:$0xff]  }
 0x1df   :  { %7113 = vmatpush1.bf16.msra.mxu0 %v10274_v6  ;;  %7801 = vmatpush1.bf16.msra.mxu1 %v10277_v38  ;;  %v10331_v6 = vld [vmem:[%s14631_s1 + $0x1008] ss:$16 sps:$4 sm:$0xff]   ;;  %v12912_v38 = vcombine.high %v1465_v32, %v1493_v34 }
 0x1e0   :  { %7114 = vmatprep.subr.bf16.mxu0 %v10282_v39  ;;  %7802 = vmatprep.subr.bf16.mxu1 %v10285_v27  ;;  %v10336_v39 = vld [vmem:[%s14631_s1 + $0x1024] ss:$16 sps:$4 sm:$0xff]   ;;  %v10339_v27 = vld [vmem:[%s14631_s1 + $0x102c] ss:$16 sps:$4 sm:$0xff]  }
 0x1e3   :  { %7115 = vmatpush1.bf16.msra.mxu0 %v10280_v28  ;;  %7803 = vmatpush1.bf16.msra.mxu1 %v10283_v40  ;;  %v12922_v28 = vcombine.high %v12901_v35, %v12904_v36  ;;  %v1505_v40 = vcombine.low %v1465_v32, %v1493_v34  ;;  %v10405_v32 = vld [vmem:[%s14631_s1 + $0x118c] ss:$16 sps:$4 sm:$0xff]   ;;  %v10400_v34 = vld [vmem:[%s14631_s1 + $0x1180] ss:$16 sps:$4 sm:$0xff]  }
 0x1e4   :  { %7116 = vmatprep.subr.bf16.mxu0 %v10288_v41  ;;  %7804 = vmatprep.subr.bf16.mxu1 %v10291_v42  ;;  %v10334_v41 = vld [vmem:[%s14631_s1 + $0x1020] ss:$16 sps:$4 sm:$0xff]   ;;  %v10337_v42 = vld [vmem:[%s14631_s1 + $0x1028] ss:$16 sps:$4 sm:$0xff]  }
 0x1e7   :  { %7117 = vmatpush1.bf16.msra.mxu0 %v10286_v43  ;;  %7805 = vmatpush1.bf16.msra.mxu1 %v10289_v44  ;;  %v10342_v43 = vld [vmem:[%s14631_s1 + $0x1044] ss:$16 sps:$4 sm:$0xff]   ;;  %v10340_v44 = vld [vmem:[%s14631_s1 + $0x1040] ss:$16 sps:$4 sm:$0xff]  }
 0x1e8   :  { %7118 = vmatprep.subr.bf16.mxu0 %v10294_v45  ;;  %7806 = vmatprep.subr.bf16.mxu1 %v10297_v31  ;;  %v10343_v45 = vld [vmem:[%s14631_s1 + $0x1048] ss:$16 sps:$4 sm:$0xff]   ;;  %v10348_v31 = vld [vmem:[%s14631_s1 + $0x1064] ss:$16 sps:$4 sm:$0xff]  }
 0x1eb   :  { %7119 = vmatpush1.bf16.msra.mxu0 %v10292_v47  ;;  %7807 = vmatpush1.bf16.msra.mxu1 %v10295_v48  ;;  %v10351_v47 = vld [vmem:[%s14631_s1 + $0x106c] ss:$16 sps:$4 sm:$0xff]   ;;  %v10346_v48 = vld [vmem:[%s14631_s1 + $0x1060] ss:$16 sps:$4 sm:$0xff]  }
 0x1ec   :  { %7120 = vmatprep.subr.bf16.mxu0 %v10300_v49  ;;  %7808 = vmatprep.subr.bf16.mxu1 %v10303_v52  ;;  %v10349_v49 = vld [vmem:[%s14631_s1 + $0x1068] ss:$16 sps:$4 sm:$0xff]   ;;  %v10354_v52 = vld [vmem:[%s14631_s1 + $0x1084] ss:$16 sps:$4 sm:$0xff]  }
 0x1ef   :  { %7121 = vmatpush1.bf16.msra.mxu0 %v10298_v56  ;;  %7809 = vmatpush1.bf16.msra.mxu1 %v10301_v58  ;;  %v10357_v56 = vld [vmem:[%s14631_s1 + $0x108c] ss:$16 sps:$4 sm:$0xff]   ;;  %v10352_v58 = vld [vmem:[%s14631_s1 + $0x1080] ss:$16 sps:$4 sm:$0xff]  }
 0x1f0   :  { %7122 = vmatprep.subr.bf16.mxu0 %v10306_v60  ;;  %7810 = vmatprep.subr.bf16.mxu1 %v10309_v61  ;;  %v10355_v60 = vld [vmem:[%s14631_s1 + $0x1088] ss:$16 sps:$4 sm:$0xff]   ;;  %v10360_v61 = vld [vmem:[%s14631_s1 + $0x10a4] ss:$16 sps:$4 sm:$0xff]  }
 0x1f3   :  { %7123 = vmatpush1.bf16.msra.mxu0 %v10304_v53  ;;  %7811 = vmatpush1.bf16.msra.mxu1 %v10307_v8  ;;  %v10363_v53 = vld [vmem:[%s14631_s1 + $0x10ac] ss:$16 sps:$4 sm:$0xff]   ;;  %v10358_v8 = vld [vmem:[%s14631_s1 + $0x10a0] ss:$16 sps:$4 sm:$0xff]  }
 0x1f4   :  { %7124 = vmatprep.subr.bf16.mxu0 %v10312_v57  ;;  %7812 = vmatprep.subr.bf16.mxu1 %v10315_v59  ;;  %v10361_v57 = vld [vmem:[%s14631_s1 + $0x10a8] ss:$16 sps:$4 sm:$0xff]   ;;  %v10366_v59 = vld [vmem:[%s14631_s1 + $0x10c4] ss:$16 sps:$4 sm:$0xff]  }
 0x1f7   :  { %7125 = vmatpush1.bf16.msra.mxu0 %v10310_v3  ;;  %7813 = vmatpush1.bf16.msra.mxu1 %v10313_v5  ;;  %v10375_v3 = vld [vmem:[%s14631_s1 + $0x10ec] ss:$16 sps:$4 sm:$0xff]   ;;  %v10370_v5 = vld [vmem:[%s14631_s1 + $0x10e0] ss:$16 sps:$4 sm:$0xff]  }
 0x1f8   :  { %7126 = vmatprep.subr.bf16.mxu0 %v10318_v4  ;;  %7814 = vmatprep.subr.bf16.mxu1 %v10321_v12  ;;  %v10373_v4 = vld [vmem:[%s14631_s1 + $0x10e8] ss:$16 sps:$4 sm:$0xff]   ;;  %v10378_v12 = vld [vmem:[%s14631_s1 + $0x1104] ss:$16 sps:$4 sm:$0xff]  }
 0x1fb   :  { %7127 = vmatpush1.bf16.msra.mxu0 %v10316_v51  ;;  %7815 = vmatpush1.bf16.msra.mxu1 %v10319_v17  ;;  %v10387_v51 = vld [vmem:[%s14631_s1 + $0x112c] ss:$16 sps:$4 sm:$0xff]   ;;  %v10382_v17 = vld [vmem:[%s14631_s1 + $0x1120] ss:$16 sps:$4 sm:$0xff]  }
 0x1fc   :  { %7128 = vmatprep.subr.bf16.mxu0 %v10324_v18  ;;  %7816 = vmatprep.subr.bf16.mxu1 %v10327_v19  ;;  %v10385_v18 = vld [vmem:[%s14631_s1 + $0x1128] ss:$16 sps:$4 sm:$0xff]   ;;  %v10390_v19 = vld [vmem:[%s14631_s1 + $0x1144] ss:$16 sps:$4 sm:$0xff]  }
 0x1ff   :  { %7129 = vmatpush1.bf16.msra.mxu0 %v10322_v24  ;;  %7817 = vmatpush1.bf16.msra.mxu1 %v10325_v25  ;;  %v10399_v24 = vld [vmem:[%s14631_s1 + $0x116c] ss:$16 sps:$4 sm:$0xff]   ;;  %v10394_v25 = vld [vmem:[%s14631_s1 + $0x1160] ss:$16 sps:$4 sm:$0xff]  }
 0x200   :  { %7141 = vmatprep.subr.bf16.mxu0 %v10330_v26  ;;  %7829 = vmatprep.subr.bf16.mxu1 %v10333_v30  ;;  %v10397_v26 = vld [vmem:[%s14631_s1 + $0x1168] ss:$16 sps:$4 sm:$0xff]   ;;  %v10402_v30 = vld [vmem:[%s14631_s1 + $0x1184] ss:$16 sps:$4 sm:$0xff]  }
 0x202   :  { %7131 = vmatmul.mubr.bf16.vlgmr.msra.gmra.mrb[0].mxu0 %v12466_v55  ;;  %7819 = vmatmul.mubr.bf16.vlgmr.msra.gmra.mrb[0].mxu1 %v12466_v55  ;;  %v10345_v55 = vld [vmem:[%s14631_s1 + $0x104c] ss:$16 sps:$4 sm:$0xff]  }
 0x203   :  { %7142 = vmatpush1.bf16.msra.mxu0 %v10328_v37  ;;  %7830 = vmatpush1.bf16.msra.mxu1 %v10331_v6  ;;  %v10403_v37 = vld [vmem:[%s14631_s1 + $0x1188] ss:$16 sps:$4 sm:$0xff]   ;;  %v10408_v6 = vld [vmem:[%s14631_s1 + $0x11a4] ss:$16 sps:$4 sm:$0xff]  }
 0x204   :  { %7143 = vmatprep.subr.bf16.mxu0 %v10336_v39  ;;  %7831 = vmatprep.subr.bf16.mxu1 %v10339_v27  ;;  %v10411_v39 = vld [vmem:[%s14631_s1 + $0x11ac] ss:$16 sps:$4 sm:$0xff]   ;;  %v10406_v27 = vld [vmem:[%s14631_s1 + $0x11a0] ss:$16 sps:$4 sm:$0xff]  }
 0x205   :  { %7173 = vmatprep.mubr.bf16.mxu0 %v1505_v40  ;;  %7861 = vmatprep.mubr.bf16.mxu1 %v1505_v40  ;;  %v10409_v40 = vld [vmem:[%s14631_s1 + $0x11a8] ss:$16 sps:$4 sm:$0xff]  }
 0x207   :  { %7144 = vmatpush1.bf16.msra.mxu0 %v10334_v41  ;;  %7832 = vmatpush1.bf16.msra.mxu1 %v10337_v42  ;;  %v10414_v41 = vld [vmem:[%s14631_s1 + $0x11c4] ss:$16 sps:$4 sm:$0xff]   ;;  %v10417_v42 = vld [vmem:[%s14631_s1 + $0x11cc] ss:$16 sps:$4 sm:$0xff]  }
 0x208   :  { %7145 = vmatprep.subr.bf16.mxu0 %v10342_v43  ;;  %7833 = vmatprep.subr.bf16.mxu1 %v10345_v55  ;;  %v10412_v43 = vld [vmem:[%s14631_s1 + $0x11c0] ss:$16 sps:$4 sm:$0xff]   ;;  %v10415_v55 = vld [vmem:[%s14631_s1 + $0x11c8] ss:$16 sps:$4 sm:$0xff]  }
 0x20b   :  { %7146 = vmatpush1.bf16.msra.mxu0 %v10340_v44  ;;  %7834 = vmatpush1.bf16.msra.mxu1 %v10343_v45  ;;  %v10420_v44 = vld [vmem:[%s14631_s1 + $0x11e4] ss:$16 sps:$4 sm:$0xff]   ;;  %v10423_v45 = vld [vmem:[%s14631_s1 + $0x11ec] ss:$16 sps:$4 sm:$0xff]  }
 0x20c   :  { %7147 = vmatprep.subr.bf16.mxu0 %v10348_v31  ;;  %7835 = vmatprep.subr.bf16.mxu1 %v10351_v47  ;;  %v10418_v31 = vld [vmem:[%s14631_s1 + $0x11e0] ss:$16 sps:$4 sm:$0xff]   ;;  %v10421_v47 = vld [vmem:[%s14631_s1 + $0x11e8] ss:$16 sps:$4 sm:$0xff]  }
 0x20f   :  { %7148 = vmatpush1.bf16.msra.mxu0 %v10346_v48  ;;  %7836 = vmatpush1.bf16.msra.mxu1 %v10349_v49  ;;  %v10426_v48 = vld [vmem:[%s14631_s1 + $0x1204] ss:$16 sps:$4 sm:$0xff]   ;;  %v10429_v49 = vld [vmem:[%s14631_s1 + $0x120c] ss:$16 sps:$4 sm:$0xff]  }
 0x210   :  { %7149 = vmatprep.subr.bf16.mxu0 %v10354_v52  ;;  %7837 = vmatprep.subr.bf16.mxu1 %v10357_v56  ;;  %v1501_v52 = vcombine.low %v12901_v35, %v12904_v36  ;;  %v10424_v56 = vld [vmem:[%s14631_s1 + $0x1200] ss:$16 sps:$4 sm:$0xff]   ;;  %v10435_v35 = vld [vmem:[%s14631_s1 + $0x122c] ss:$16 sps:$4 sm:$0xff]  }
 0x211   :  { %v10430_v36 = vld [vmem:[%s14631_s1 + $0x1220] ss:$16 sps:$4 sm:$0xff]  }
 0x213   :  { %7150 = vmatpush1.bf16.msra.mxu0 %v10352_v58  ;;  %7838 = vmatpush1.bf16.msra.mxu1 %v10355_v60  ;;  %v10427_v58 = vld [vmem:[%s14631_s1 + $0x1208] ss:$16 sps:$4 sm:$0xff]   ;;  %v10432_v60 = vld [vmem:[%s14631_s1 + $0x1224] ss:$16 sps:$4 sm:$0xff]  }
 0x214   :  { %7151 = vmatprep.subr.bf16.mxu0 %v10360_v61  ;;  %7839 = vmatprep.subr.bf16.mxu1 %v10363_v53  ;;  %v10433_v61 = vld [vmem:[%s14631_s1 + $0x1228] ss:$16 sps:$4 sm:$0xff]   ;;  %v10438_v53 = vld [vmem:[%s14631_s1 + $0x1244] ss:$16 sps:$4 sm:$0xff]  }
 0x217   :  { %7152 = vmatpush1.bf16.msra.mxu0 %v10358_v8  ;;  %7840 = vmatpush1.bf16.msra.mxu1 %v10361_v57  ;;  %v10441_v8 = vld [vmem:[%s14631_s1 + $0x124c] ss:$16 sps:$4 sm:$0xff]   ;;  %v10436_v57 = vld [vmem:[%s14631_s1 + $0x1240] ss:$16 sps:$4 sm:$0xff]  }
 0x218   :  { %7153 = vmatprep.subr.bf16.mxu0 %v10366_v59  ;;  %7841 = vmatprep.subr.bf16.mxu1 %v10369_v9  ;;  %v10439_v59 = vld [vmem:[%s14631_s1 + $0x1248] ss:$16 sps:$4 sm:$0xff]   ;;  %v10444_v9 = vld [vmem:[%s14631_s1 + $0x1264] ss:$16 sps:$4 sm:$0xff]  }
 0x21b   :  { %7154 = vmatpush1.bf16.msra.mxu0 %v10364_v33  ;;  %7842 = vmatpush1.bf16.msra.mxu1 %v10367_v10  ;;  %v10442_v33 = vld [vmem:[%s14631_s1 + $0x1260] ss:$16 sps:$4 sm:$0xff]   ;;  %v10445_v10 = vld [vmem:[%s14631_s1 + $0x1268] ss:$16 sps:$4 sm:$0xff]  }
 0x21c   :  { %7155 = vmatprep.subr.bf16.mxu0 %v10372_v11  ;;  %7843 = vmatprep.subr.bf16.mxu1 %v10375_v3  ;;  %v10450_v11 = vld [vmem:[%s14631_s1 + $0x1284] ss:$16 sps:$4 sm:$0xff]   ;;  %v10453_v3 = vld [vmem:[%s14631_s1 + $0x128c] ss:$16 sps:$4 sm:$0xff]  }
 0x21f   :  { %7156 = vmatpush1.bf16.msra.mxu0 %v10370_v5  ;;  %7844 = vmatpush1.bf16.msra.mxu1 %v10373_v4  ;;  %v10448_v5 = vld [vmem:[%s14631_s1 + $0x1280] ss:$16 sps:$4 sm:$0xff]   ;;  %v10451_v4 = vld [vmem:[%s14631_s1 + $0x1288] ss:$16 sps:$4 sm:$0xff]  }
 0x220   :  { %7157 = vmatprep.subr.bf16.mxu0 %v10378_v12  ;;  %7845 = vmatprep.subr.bf16.mxu1 %v10381_v13  ;;  %v10456_v12 = vld [vmem:[%s14631_s1 + $0x12a4] ss:$16 sps:$4 sm:$0xff]   ;;  %v10459_v13 = vld [vmem:[%s14631_s1 + $0x12ac] ss:$16 sps:$4 sm:$0xff]  }
 0x223   :  { %7158 = vmatpush1.bf16.msra.mxu0 %v10376_v14  ;;  %7846 = vmatpush1.bf16.msra.mxu1 %v10379_v15  ;;  %v10454_v14 = vld [vmem:[%s14631_s1 + $0x12a0] ss:$16 sps:$4 sm:$0xff]   ;;  %v10457_v15 = vld [vmem:[%s14631_s1 + $0x12a8] ss:$16 sps:$4 sm:$0xff]  }
 0x224   :  { %7159 = vmatprep.subr.bf16.mxu0 %v10384_v16  ;;  %7847 = vmatprep.subr.bf16.mxu1 %v10387_v51  ;;  %v10462_v16 = vld [vmem:[%s14631_s1 + $0x12c4] ss:$16 sps:$4 sm:$0xff]   ;;  %v10465_v51 = vld [vmem:[%s14631_s1 + $0x12cc] ss:$16 sps:$4 sm:$0xff]  }
 0x227   :  { %7160 = vmatpush1.bf16.msra.mxu0 %v10382_v17  ;;  %7848 = vmatpush1.bf16.msra.mxu1 %v10385_v18  ;;  %v10460_v17 = vld [vmem:[%s14631_s1 + $0x12c0] ss:$16 sps:$4 sm:$0xff]   ;;  %v10463_v18 = vld [vmem:[%s14631_s1 + $0x12c8] ss:$16 sps:$4 sm:$0xff]  }
 0x228   :  { %7161 = vmatprep.subr.bf16.mxu0 %v10390_v19  ;;  %7849 = vmatprep.subr.bf16.mxu1 %v10393_v20  ;;  %v10468_v19 = vld [vmem:[%s14631_s1 + $0x12e4] ss:$16 sps:$4 sm:$0xff]   ;;  %v10471_v20 = vld [vmem:[%s14631_s1 + $0x12ec] ss:$16 sps:$4 sm:$0xff]  }
 0x22b   :  { %7162 = vmatpush1.bf16.msra.mxu0 %v10388_v21  ;;  %7850 = vmatpush1.bf16.msra.mxu1 %v10391_v22  ;;  %v10466_v21 = vld [vmem:[%s14631_s1 + $0x12e0] ss:$16 sps:$4 sm:$0xff]   ;;  %v10469_v22 = vld [vmem:[%s14631_s1 + $0x12e8] ss:$16 sps:$4 sm:$0xff]  }
 0x22c   :  { %7163 = vmatprep.subr.bf16.mxu0 %v10396_v23  ;;  %7851 = vmatprep.subr.bf16.mxu1 %v10399_v24  ;;  %v10474_v23 = vld [vmem:[%s14631_s1 + $0x1304] ss:$16 sps:$4 sm:$0xff]   ;;  %v10477_v24 = vld [vmem:[%s14631_s1 + $0x130c] ss:$16 sps:$4 sm:$0xff]  }
 0x22f   :  { %7164 = vmatpush1.bf16.msra.mxu0 %v10394_v25  ;;  %7852 = vmatpush1.bf16.msra.mxu1 %v10397_v26  ;;  %v10472_v25 = vld [vmem:[%s14631_s1 + $0x1300] ss:$16 sps:$4 sm:$0xff]   ;;  %v10475_v26 = vld [vmem:[%s14631_s1 + $0x1308] ss:$16 sps:$4 sm:$0xff]  }
 0x230   :  { %7165 = vmatprep.subr.bf16.mxu0 %v10402_v30  ;;  %7853 = vmatprep.subr.bf16.mxu1 %v10405_v32  ;;  %v10480_v30 = vld [vmem:[%s14631_s1 + $0x1324] ss:$16 sps:$4 sm:$0xff]   ;;  %v10483_v32 = vld [vmem:[%s14631_s1 + $0x132c] ss:$16 sps:$4 sm:$0xff]  }
 0x233   :  { %7166 = vmatpush1.bf16.msra.mxu0 %v10400_v34  ;;  %7854 = vmatpush1.bf16.msra.mxu1 %v10403_v37  ;;  %v10478_v34 = vld [vmem:[%s14631_s1 + $0x1320] ss:$16 sps:$4 sm:$0xff]   ;;  %v10481_v37 = vld [vmem:[%s14631_s1 + $0x1328] ss:$16 sps:$4 sm:$0xff]  }
 0x234   :  { %7167 = vmatprep.subr.bf16.mxu0 %v10408_v6  ;;  %7855 = vmatprep.subr.bf16.mxu1 %v10411_v39  ;;  %v10486_v6 = vld [vmem:[%s14631_s1 + $0x1344] ss:$16 sps:$4 sm:$0xff]   ;;  %v10489_v39 = vld [vmem:[%s14631_s1 + $0x134c] ss:$16 sps:$4 sm:$0xff]  }
 0x237   :  { %7168 = vmatpush1.bf16.msra.mxu0 %v10406_v27  ;;  %7856 = vmatpush1.bf16.msra.mxu1 %v10409_v40  ;;  %v10484_v27 = vld [vmem:[%s14631_s1 + $0x1340] ss:$16 sps:$4 sm:$0xff]   ;;  %v10487_v40 = vld [vmem:[%s14631_s1 + $0x1348] ss:$16 sps:$4 sm:$0xff]  }
 0x238   :  { %7169 = vmatprep.subr.bf16.mxu0 %v10414_v41  ;;  %7857 = vmatprep.subr.bf16.mxu1 %v10417_v42  ;;  %v10492_v41 = vld [vmem:[%s14631_s1 + $0x1364] ss:$16 sps:$4 sm:$0xff]   ;;  %v10495_v42 = vld [vmem:[%s14631_s1 + $0x136c] ss:$16 sps:$4 sm:$0xff]  }
 0x23b   :  { %7170 = vmatpush1.bf16.msra.mxu0 %v10412_v43  ;;  %7858 = vmatpush1.bf16.msra.mxu1 %v10415_v55  ;;  %v10490_v43 = vld [vmem:[%s14631_s1 + $0x1360] ss:$16 sps:$4 sm:$0xff]   ;;  %v10493_v55 = vld [vmem:[%s14631_s1 + $0x1368] ss:$16 sps:$4 sm:$0xff]  }
 0x23c   :  { %7171 = vmatprep.subr.bf16.mxu0 %v10420_v44  ;;  %7859 = vmatprep.subr.bf16.mxu1 %v10423_v45  ;;  %v10498_v44 = vld [vmem:[%s14631_s1 + $0x1384] ss:$16 sps:$4 sm:$0xff]   ;;  %v10501_v45 = vld [vmem:[%s14631_s1 + $0x138c] ss:$16 sps:$4 sm:$0xff]  }
 0x23f   :  { %7172 = vmatpush1.bf16.msra.mxu0 %v10418_v31  ;;  %7860 = vmatpush1.bf16.msra.mxu1 %v10421_v47  ;;  %v10496_v31 = vld [vmem:[%s14631_s1 + $0x1380] ss:$16 sps:$4 sm:$0xff]   ;;  %v10499_v47 = vld [vmem:[%s14631_s1 + $0x1388] ss:$16 sps:$4 sm:$0xff]  }
 0x240   :  { %7184 = vmatprep.subr.bf16.mxu0 %v10426_v48  ;;  %7872 = vmatprep.subr.bf16.mxu1 %v10429_v49  ;;  %v10504_v48 = vld [vmem:[%s14631_s1 + $0x13a4] ss:$16 sps:$4 sm:$0xff]   ;;  %v10507_v49 = vld [vmem:[%s14631_s1 + $0x13ac] ss:$16 sps:$4 sm:$0xff]  }
 0x242   :  { %7174 = vmatmul.mubr.bf16.vlgmr.msra.gmra.mrb[0].mxu0 %v1501_v52  ;;  %7862 = vmatmul.mubr.bf16.vlgmr.msra.gmra.mrb[0].mxu1 %v1501_v52  ;;  %v1374_v52 = vcombine.high %v12801_v62, %v12806_v63  ;;  %v10510_v62 = vld [vmem:[%s14631_s1 + $0x13c4] ss:$16 sps:$4 sm:$0xff]   ;;  %v10513_v63 = vld [vmem:[%s14631_s1 + $0x13cc] ss:$16 sps:$4 sm:$0xff]  }
 0x243   :  { %7185 = vmatpush1.bf16.msra.mxu0 %v10424_v56  ;;  %7873 = vmatpush1.bf16.msra.mxu1 %v10427_v58  ;;  %v1376_v56 = vcombine.high %v12811_v0, %v12816_v1  ;;  %v1378_v58 = vcombine.high %v12821_v2, %v12826_v7 }
 0x244   :  { %7186 = vmatprep.subr.bf16.mxu0 %v10432_v60  ;;  %7874 = vmatprep.subr.bf16.mxu1 %v10435_v35  ;;  %v1380_v60 = vcombine.high %v12831_v50, %v12836_v29  ;;  %v10502_v35 = vld [vmem:[%s14631_s1 + $0x13a0] ss:$16 sps:$4 sm:$0xff]   ;;  %v1394_v0 = vrot.slane %v1374_v52, %v11277_v54  ;;  %v10511_v29 = vld [vmem:[%s14631_s1 + $0x13c8] ss:$16 sps:$4 sm:$0xff]   ;;  %v10573_v52 = vld [vmem:[%s14631_s1 + $0x150c] ss:$16 sps:$4 sm:$0xff]  }
 0x245   :  { %7216 = vmatprep.mubr.bf16.mxu0 %v12912_v38  ;;  %7904 = vmatprep.mubr.bf16.mxu1 %v12912_v38  ;;  %v10447_v38 = vld [vmem:[%s14631_s1 + $0x126c] ss:$16 sps:$4 sm:$0xff]   ;;  %v1408_v1 = vrot.slane %v1376_v56, %v11277_v54  ;;  %v1422_v2 = vrot.slane %v1378_v58, %v11277_v54  ;;  %v10508_v50 = vld [vmem:[%s14631_s1 + $0x13c0] ss:$16 sps:$4 sm:$0xff]   ;;  %v10571_v58 = vld [vmem:[%s14631_s1 + $0x1508] ss:$16 sps:$4 sm:$0xff]  }
 0x246   :  { %v1436_v7 = vrot.slane %v1380_v60, %v11277_v54  ;;  %v10568_v56 = vld [vmem:[%s14631_s1 + $0x1500] ss:$16 sps:$4 sm:$0xff]   ;;  %v10576_v60 = vld [vmem:[%s14631_s1 + $0x1524] ss:$16 sps:$4 sm:$0xff]  }
 0x247   :  { %7187 = vmatpush1.bf16.msra.mxu0 %v10430_v36  ;;  %7875 = vmatpush1.bf16.msra.mxu1 %v10433_v61  ;;  %v10505_v36 = vld [vmem:[%s14631_s1 + $0x13a8] ss:$16 sps:$4 sm:$0xff]   ;;  %v10516_v61 = vld [vmem:[%s14631_s1 + $0x13e4] ss:$16 sps:$4 sm:$0xff]  }
 0x248   :  { %7188 = vmatprep.subr.bf16.mxu0 %v10438_v53  ;;  %7876 = vmatprep.subr.bf16.mxu1 %v10441_v8  ;;  %v10519_v53 = vld [vmem:[%s14631_s1 + $0x13ec] ss:$16 sps:$4 sm:$0xff]   ;;  %v1440_v8 = vcombine.high %v1394_v0, %v1408_v1 }
 0x24b   :  { %7189 = vmatpush1.bf16.msra.mxu0 %v10436_v57  ;;  %7877 = vmatpush1.bf16.msra.mxu1 %v10439_v59  ;;  %v1444_v57 = vcombine.high %v1422_v2, %v1436_v7  ;;  %v1439_v59 = vcombine.low %v1394_v0, %v1408_v1  ;;  %v10585_v0 = vld [vmem:[%s14631_s1 + $0x154c] ss:$16 sps:$4 sm:$0xff]   ;;  %v10580_v1 = vld [vmem:[%s14631_s1 + $0x1540] ss:$16 sps:$4 sm:$0xff]  }
 0x24c   :  { %7190 = vmatprep.subr.bf16.mxu0 %v10444_v9  ;;  %7878 = vmatprep.subr.bf16.mxu1 %v10447_v38  ;;  %v1443_v9 = vcombine.low %v1422_v2, %v1436_v7  ;;  %v10514_v38 = vld [vmem:[%s14631_s1 + $0x13e0] ss:$16 sps:$4 sm:$0xff]   ;;  %v10583_v2 = vld [vmem:[%s14631_s1 + $0x1548] ss:$16 sps:$4 sm:$0xff]   ;;  %v10588_v7 = vld [vmem:[%s14631_s1 + $0x1564] ss:$16 sps:$4 sm:$0xff]  }
 0x24f   :  { %7191 = vmatpush1.bf16.msra.mxu0 %v10442_v33  ;;  %7879 = vmatpush1.bf16.msra.mxu1 %v10445_v10  ;;  %v10517_v33 = vld [vmem:[%s14631_s1 + $0x13e8] ss:$16 sps:$4 sm:$0xff]   ;;  %v10522_v10 = vld [vmem:[%s14631_s1 + $0x1404] ss:$16 sps:$4 sm:$0xff]  }
 0x250   :  { %7192 = vmatprep.subr.bf16.mxu0 %v10450_v11  ;;  %7880 = vmatprep.subr.bf16.mxu1 %v10453_v3  ;;  %v10525_v11 = vld [vmem:[%s14631_s1 + $0x140c] ss:$16 sps:$4 sm:$0xff]   ;;  %v1472_v3 = vrot.slane %v1440_v8, %v11277_v54 }
 0x251   :  { %v10597_v8 = vld [vmem:[%s14631_s1 + $0x158c] ss:$16 sps:$4 sm:$0xff]  }
 0x253   :  { %7193 = vmatpush1.bf16.msra.mxu0 %v10448_v5  ;;  %7881 = vmatpush1.bf16.msra.mxu1 %v10451_v4  ;;  %v1500_v5 = vrot.slane %v1444_v57, %v11277_v54  ;;  %v13317_v4 = vrot.slane %v1439_v59, %v11277_v54  ;;  %v10592_v57 = vld [vmem:[%s14631_s1 + $0x1580] ss:$16 sps:$4 sm:$0xff]   ;;  %v10595_v59 = vld [vmem:[%s14631_s1 + $0x1588] ss:$16 sps:$4 sm:$0xff]  }
 0x254   :  { %7194 = vmatprep.subr.bf16.mxu0 %v10456_v12  ;;  %7882 = vmatprep.subr.bf16.mxu1 %v10459_v13  ;;  %v13320_v12 = vrot.slane %v1443_v9, %v11277_v54  ;;  %v10520_v13 = vld [vmem:[%s14631_s1 + $0x1400] ss:$16 sps:$4 sm:$0xff]   ;;  %v10600_v9 = vld [vmem:[%s14631_s1 + $0x15a4] ss:$16 sps:$4 sm:$0xff]  }
 0x257   :  { %7195 = vmatpush1.bf16.msra.mxu0 %v10454_v14  ;;  %7883 = vmatpush1.bf16.msra.mxu1 %v10457_v15  ;;  %v10523_v14 = vld [vmem:[%s14631_s1 + $0x1408] ss:$16 sps:$4 sm:$0xff]   ;;  %v13328_v15 = vcombine.high %v1472_v3, %v1500_v5 }
 0x258   :  { %7196 = vmatprep.subr.bf16.mxu0 %v10462_v16  ;;  %7884 = vmatprep.subr.bf16.mxu1 %v10465_v51  ;;  %v10528_v16 = vld [vmem:[%s14631_s1 + $0x1424] ss:$16 sps:$4 sm:$0xff]   ;;  %v10531_v51 = vld [vmem:[%s14631_s1 + $0x142c] ss:$16 sps:$4 sm:$0xff]  }
 0x25b   :  { %7197 = vmatpush1.bf16.msra.mxu0 %v10460_v17  ;;  %7885 = vmatpush1.bf16.msra.mxu1 %v10463_v18  ;;  %v13338_v17 = vcombine.high %v13317_v4, %v13320_v12  ;;  %v1507_v18 = vcombine.low %v1472_v3, %v1500_v5  ;;  %v10609_v3 = vld [vmem:[%s14631_s1 + $0x15cc] ss:$16 sps:$4 sm:$0xff]   ;;  %v10604_v5 = vld [vmem:[%s14631_s1 + $0x15c0] ss:$16 sps:$4 sm:$0xff]  }
 0x25c   :  { %7198 = vmatprep.subr.bf16.mxu0 %v10468_v19  ;;  %7886 = vmatprep.subr.bf16.mxu1 %v10471_v20  ;;  %v10526_v19 = vld [vmem:[%s14631_s1 + $0x1420] ss:$16 sps:$4 sm:$0xff]   ;;  %v10529_v20 = vld [vmem:[%s14631_s1 + $0x1428] ss:$16 sps:$4 sm:$0xff]  }
 0x25f   :  { %7199 = vmatpush1.bf16.msra.mxu0 %v10466_v21  ;;  %7887 = vmatpush1.bf16.msra.mxu1 %v10469_v22  ;;  %v10534_v21 = vld [vmem:[%s14631_s1 + $0x1444] ss:$16 sps:$4 sm:$0xff]   ;;  %v10532_v22 = vld [vmem:[%s14631_s1 + $0x1440] ss:$16 sps:$4 sm:$0xff]  }
 0x260   :  { %7200 = vmatprep.subr.bf16.mxu0 %v10474_v23  ;;  %7888 = vmatprep.subr.bf16.mxu1 %v10477_v24  ;;  %v10535_v23 = vld [vmem:[%s14631_s1 + $0x1448] ss:$16 sps:$4 sm:$0xff]   ;;  %v10540_v24 = vld [vmem:[%s14631_s1 + $0x1464] ss:$16 sps:$4 sm:$0xff]  }
 0x263   :  { %7201 = vmatpush1.bf16.msra.mxu0 %v10472_v25  ;;  %7889 = vmatpush1.bf16.msra.mxu1 %v10475_v26  ;;  %v10543_v25 = vld [vmem:[%s14631_s1 + $0x146c] ss:$16 sps:$4 sm:$0xff]   ;;  %v10538_v26 = vld [vmem:[%s14631_s1 + $0x1460] ss:$16 sps:$4 sm:$0xff]  }
 0x264   :  { %7202 = vmatprep.subr.bf16.mxu0 %v10480_v30  ;;  %7890 = vmatprep.subr.bf16.mxu1 %v10483_v32  ;;  %v10541_v30 = vld [vmem:[%s14631_s1 + $0x1468] ss:$16 sps:$4 sm:$0xff]   ;;  %v10546_v32 = vld [vmem:[%s14631_s1 + $0x1484] ss:$16 sps:$4 sm:$0xff]  }
 0x267   :  { %7203 = vmatpush1.bf16.msra.mxu0 %v10478_v34  ;;  %7891 = vmatpush1.bf16.msra.mxu1 %v10481_v37  ;;  %v10549_v34 = vld [vmem:[%s14631_s1 + $0x148c] ss:$16 sps:$4 sm:$0xff]   ;;  %v10544_v37 = vld [vmem:[%s14631_s1 + $0x1480] ss:$16 sps:$4 sm:$0xff]  }
 0x268   :  { %7204 = vmatprep.subr.bf16.mxu0 %v10486_v6  ;;  %7892 = vmatprep.subr.bf16.mxu1 %v10489_v39  ;;  %v10547_v6 = vld [vmem:[%s14631_s1 + $0x1488] ss:$16 sps:$4 sm:$0xff]   ;;  %v10552_v39 = vld [vmem:[%s14631_s1 + $0x14a4] ss:$16 sps:$4 sm:$0xff]  }
 0x26b   :  { %7205 = vmatpush1.bf16.msra.mxu0 %v10484_v27  ;;  %7893 = vmatpush1.bf16.msra.mxu1 %v10487_v40  ;;  %v10555_v27 = vld [vmem:[%s14631_s1 + $0x14ac] ss:$16 sps:$4 sm:$0xff]   ;;  %v10550_v40 = vld [vmem:[%s14631_s1 + $0x14a0] ss:$16 sps:$4 sm:$0xff]  }
 0x26c   :  { %7206 = vmatprep.subr.bf16.mxu0 %v10492_v41  ;;  %7894 = vmatprep.subr.bf16.mxu1 %v10495_v42  ;;  %v10553_v41 = vld [vmem:[%s14631_s1 + $0x14a8] ss:$16 sps:$4 sm:$0xff]   ;;  %v10558_v42 = vld [vmem:[%s14631_s1 + $0x14c4] ss:$16 sps:$4 sm:$0xff]  }
 0x26f   :  { %7207 = vmatpush1.bf16.msra.mxu0 %v10490_v43  ;;  %7895 = vmatpush1.bf16.msra.mxu1 %v10493_v55  ;;  %v10561_v43 = vld [vmem:[%s14631_s1 + $0x14cc] ss:$16 sps:$4 sm:$0xff]   ;;  %v10556_v55 = vld [vmem:[%s14631_s1 + $0x14c0] ss:$16 sps:$4 sm:$0xff]  }
 0x270   :  { %7208 = vmatprep.subr.bf16.mxu0 %v10498_v44  ;;  %7896 = vmatprep.subr.bf16.mxu1 %v10501_v45  ;;  %v10559_v44 = vld [vmem:[%s14631_s1 + $0x14c8] ss:$16 sps:$4 sm:$0xff]   ;;  %v10564_v45 = vld [vmem:[%s14631_s1 + $0x14e4] ss:$16 sps:$4 sm:$0xff]  }
 0x273   :  { %7209 = vmatpush1.bf16.msra.mxu0 %v10496_v31  ;;  %7897 = vmatpush1.bf16.msra.mxu1 %v10499_v47  ;;  %v10567_v31 = vld [vmem:[%s14631_s1 + $0x14ec] ss:$16 sps:$4 sm:$0xff]   ;;  %v10562_v47 = vld [vmem:[%s14631_s1 + $0x14e0] ss:$16 sps:$4 sm:$0xff]  }
 0x274   :  { %7210 = vmatprep.subr.bf16.mxu0 %v10504_v48  ;;  %7898 = vmatprep.subr.bf16.mxu1 %v10507_v49  ;;  %v10565_v48 = vld [vmem:[%s14631_s1 + $0x14e8] ss:$16 sps:$4 sm:$0xff]   ;;  %v10570_v49 = vld [vmem:[%s14631_s1 + $0x1504] ss:$16 sps:$4 sm:$0xff]  }
 0x277   :  { %7211 = vmatpush1.bf16.msra.mxu0 %v10502_v35  ;;  %7899 = vmatpush1.bf16.msra.mxu1 %v10505_v36  ;;  %v10579_v35 = vld [vmem:[%s14631_s1 + $0x152c] ss:$16 sps:$4 sm:$0xff]   ;;  %v10574_v36 = vld [vmem:[%s14631_s1 + $0x1520] ss:$16 sps:$4 sm:$0xff]  }
 0x278   :  { %7212 = vmatprep.subr.bf16.mxu0 %v10510_v62  ;;  %7900 = vmatprep.subr.bf16.mxu1 %v10513_v63  ;;  %v10577_v62 = vld [vmem:[%s14631_s1 + $0x1528] ss:$16 sps:$4 sm:$0xff]   ;;  %v10582_v63 = vld [vmem:[%s14631_s1 + $0x1544] ss:$16 sps:$4 sm:$0xff]  }
 0x27b   :  { %7213 = vmatpush1.bf16.msra.mxu0 %v10508_v50  ;;  %7901 = vmatpush1.bf16.msra.mxu1 %v10511_v29  ;;  %v10591_v50 = vld [vmem:[%s14631_s1 + $0x156c] ss:$16 sps:$4 sm:$0xff]   ;;  %v10586_v29 = vld [vmem:[%s14631_s1 + $0x1560] ss:$16 sps:$4 sm:$0xff]  }
 0x27c   :  { %7214 = vmatprep.subr.bf16.mxu0 %v10516_v61  ;;  %7902 = vmatprep.subr.bf16.mxu1 %v10519_v53  ;;  %v10589_v61 = vld [vmem:[%s14631_s1 + $0x1568] ss:$16 sps:$4 sm:$0xff]   ;;  %v10594_v53 = vld [vmem:[%s14631_s1 + $0x1584] ss:$16 sps:$4 sm:$0xff]  }
 0x27f   :  { %7215 = vmatpush1.bf16.msra.mxu0 %v10514_v38  ;;  %7903 = vmatpush1.bf16.msra.mxu1 %v10517_v33  ;;  %v10603_v38 = vld [vmem:[%s14631_s1 + $0x15ac] ss:$16 sps:$4 sm:$0xff]   ;;  %v10598_v33 = vld [vmem:[%s14631_s1 + $0x15a0] ss:$16 sps:$4 sm:$0xff]  }
 0x280   :  { %7227 = vmatprep.subr.bf16.mxu0 %v10522_v10  ;;  %7915 = vmatprep.subr.bf16.mxu1 %v10525_v11  ;;  %v10601_v10 = vld [vmem:[%s14631_s1 + $0x15a8] ss:$16 sps:$4 sm:$0xff]   ;;  %v10606_v11 = vld [vmem:[%s14631_s1 + $0x15c4] ss:$16 sps:$4 sm:$0xff]  }
 0x282   :  { %7217 = vmatmul.mubr.bf16.vlgmr.msra.gmra.mrb[0].mxu0 %v12922_v28  ;;  %7905 = vmatmul.mubr.bf16.vlgmr.msra.gmra.mrb[0].mxu1 %v12922_v28  ;;  %v10537_v28 = vld [vmem:[%s14631_s1 + $0x144c] ss:$16 sps:$4 sm:$0xff]  }
 0x283   :  { %7228 = vmatpush1.bf16.msra.mxu0 %v10520_v13  ;;  %7916 = vmatpush1.bf16.msra.mxu1 %v10523_v14  ;;  %v10607_v13 = vld [vmem:[%s14631_s1 + $0x15c8] ss:$16 sps:$4 sm:$0xff]   ;;  %v10612_v14 = vld [vmem:[%s14631_s1 + $0x15e4] ss:$16 sps:$4 sm:$0xff]  }
 0x284   :  { %7229 = vmatprep.subr.bf16.mxu0 %v10528_v16  ;;  %7917 = vmatprep.subr.bf16.mxu1 %v10531_v51  ;;  %v10615_v16 = vld [vmem:[%s14631_s1 + $0x15ec] ss:$16 sps:$4 sm:$0xff]   ;;  %v10610_v51 = vld [vmem:[%s14631_s1 + $0x15e0] ss:$16 sps:$4 sm:$0xff]  }
 0x285   :  { %7259 = vmatprep.mubr.bf16.mxu0 %v1507_v18  ;;  %7947 = vmatprep.mubr.bf16.mxu1 %v1507_v18  ;;  %v10613_v18 = vld [vmem:[%s14631_s1 + $0x15e8] ss:$16 sps:$4 sm:$0xff]  }
 0x287   :  { %7230 = vmatpush1.bf16.msra.mxu0 %v10526_v19  ;;  %7918 = vmatpush1.bf16.msra.mxu1 %v10529_v20  ;;  %v10618_v19 = vld [vmem:[%s14631_s1 + $0x1604] ss:$16 sps:$4 sm:$0xff]   ;;  %v10621_v20 = vld [vmem:[%s14631_s1 + $0x160c] ss:$16 sps:$4 sm:$0xff]  }
 0x288   :  { %7231 = vmatprep.subr.bf16.mxu0 %v10534_v21  ;;  %7919 = vmatprep.subr.bf16.mxu1 %v10537_v28  ;;  %v1503_v21 = vcombine.low %v13317_v4, %v13320_v12  ;;  %v10616_v28 = vld [vmem:[%s14631_s1 + $0x1600] ss:$16 sps:$4 sm:$0xff]   ;;  %v10627_v4 = vld [vmem:[%s14631_s1 + $0x162c] ss:$16 sps:$4 sm:$0xff]  }
 0x289   :  { %v10622_v12 = vld [vmem:[%s14631_s1 + $0x1620] ss:$16 sps:$4 sm:$0xff]  }
 0x28b   :  { %7232 = vmatpush1.bf16.msra.mxu0 %v10532_v22  ;;  %7920 = vmatpush1.bf16.msra.mxu1 %v10535_v23  ;;  %v10619_v22 = vld [vmem:[%s14631_s1 + $0x1608] ss:$16 sps:$4 sm:$0xff]   ;;  %v10624_v23 = vld [vmem:[%s14631_s1 + $0x1624] ss:$16 sps:$4 sm:$0xff]  }
 0x28c   :  { %7233 = vmatprep.subr.bf16.mxu0 %v10540_v24  ;;  %7921 = vmatprep.subr.bf16.mxu1 %v10543_v25  ;;  %v10625_v24 = vld [vmem:[%s14631_s1 + $0x1628] ss:$16 sps:$4 sm:$0xff]   ;;  %v10630_v25 = vld [vmem:[%s14631_s1 + $0x1644] ss:$16 sps:$4 sm:$0xff]  }
 0x28f   :  { %7234 = vmatpush1.bf16.msra.mxu0 %v10538_v26  ;;  %7922 = vmatpush1.bf16.msra.mxu1 %v10541_v30  ;;  %v10633_v26 = vld [vmem:[%s14631_s1 + $0x164c] ss:$16 sps:$4 sm:$0xff]   ;;  %v10628_v30 = vld [vmem:[%s14631_s1 + $0x1640] ss:$16 sps:$4 sm:$0xff]  }
 0x290   :  { %7235 = vmatprep.subr.bf16.mxu0 %v10546_v32  ;;  %7923 = vmatprep.subr.bf16.mxu1 %v10549_v34  ;;  %v10631_v32 = vld [vmem:[%s14631_s1 + $0x1648] ss:$16 sps:$4 sm:$0xff]   ;;  %v10636_v34 = vld [vmem:[%s14631_s1 + $0x1664] ss:$16 sps:$4 sm:$0xff]  }
 0x293   :  { %7236 = vmatpush1.bf16.msra.mxu0 %v10544_v37  ;;  %7924 = vmatpush1.bf16.msra.mxu1 %v10547_v6  ;;  %v10634_v37 = vld [vmem:[%s14631_s1 + $0x1660] ss:$16 sps:$4 sm:$0xff]   ;;  %v10637_v6 = vld [vmem:[%s14631_s1 + $0x1668] ss:$16 sps:$4 sm:$0xff]  }
 0x294   :  { %7237 = vmatprep.subr.bf16.mxu0 %v10552_v39  ;;  %7925 = vmatprep.subr.bf16.mxu1 %v10555_v27  ;;  %v10642_v39 = vld [vmem:[%s14631_s1 + $0x1684] ss:$16 sps:$4 sm:$0xff]   ;;  %v10645_v27 = vld [vmem:[%s14631_s1 + $0x168c] ss:$16 sps:$4 sm:$0xff]  }
 0x297   :  { %7238 = vmatpush1.bf16.msra.mxu0 %v10550_v40  ;;  %7926 = vmatpush1.bf16.msra.mxu1 %v10553_v41  ;;  %v10640_v40 = vld [vmem:[%s14631_s1 + $0x1680] ss:$16 sps:$4 sm:$0xff]   ;;  %v10643_v41 = vld [vmem:[%s14631_s1 + $0x1688] ss:$16 sps:$4 sm:$0xff]  }
 0x298   :  { %7239 = vmatprep.subr.bf16.mxu0 %v10558_v42  ;;  %7927 = vmatprep.subr.bf16.mxu1 %v10561_v43  ;;  %v10648_v42 = vld [vmem:[%s14631_s1 + $0x16a4] ss:$16 sps:$4 sm:$0xff]   ;;  %v10651_v43 = vld [vmem:[%s14631_s1 + $0x16ac] ss:$16 sps:$4 sm:$0xff]  }
 0x29b   :  { %7240 = vmatpush1.bf16.msra.mxu0 %v10556_v55  ;;  %7928 = vmatpush1.bf16.msra.mxu1 %v10559_v44  ;;  %v10646_v55 = vld [vmem:[%s14631_s1 + $0x16a0] ss:$16 sps:$4 sm:$0xff]   ;;  %v10649_v44 = vld [vmem:[%s14631_s1 + $0x16a8] ss:$16 sps:$4 sm:$0xff]  }
 0x29c   :  { %7241 = vmatprep.subr.bf16.mxu0 %v10564_v45  ;;  %7929 = vmatprep.subr.bf16.mxu1 %v10567_v31  ;;  %v10654_v45 = vld [vmem:[%s14631_s1 + $0x16c4] ss:$16 sps:$4 sm:$0xff]   ;;  %v10657_v31 = vld [vmem:[%s14631_s1 + $0x16cc] ss:$16 sps:$4 sm:$0xff]  }
 0x29f   :  { %7242 = vmatpush1.bf16.msra.mxu0 %v10562_v47  ;;  %7930 = vmatpush1.bf16.msra.mxu1 %v10565_v48  ;;  %v10652_v47 = vld [vmem:[%s14631_s1 + $0x16c0] ss:$16 sps:$4 sm:$0xff]   ;;  %v10655_v48 = vld [vmem:[%s14631_s1 + $0x16c8] ss:$16 sps:$4 sm:$0xff]  }
 0x2a0   :  { %7243 = vmatprep.subr.bf16.mxu0 %v10570_v49  ;;  %7931 = vmatprep.subr.bf16.mxu1 %v10573_v52  ;;  %v10660_v49 = vld [vmem:[%s14631_s1 + $0x16e4] ss:$16 sps:$4 sm:$0xff]   ;;  %v10663_v52 = vld [vmem:[%s14631_s1 + $0x16ec] ss:$16 sps:$4 sm:$0xff]  }
 0x2a3   :  { %7244 = vmatpush1.bf16.msra.mxu0 %v10568_v56  ;;  %7932 = vmatpush1.bf16.msra.mxu1 %v10571_v58  ;;  %v10658_v56 = vld [vmem:[%s14631_s1 + $0x16e0] ss:$16 sps:$4 sm:$0xff]   ;;  %v10661_v58 = vld [vmem:[%s14631_s1 + $0x16e8] ss:$16 sps:$4 sm:$0xff]  }
 0x2a4   :  { %7245 = vmatprep.subr.bf16.mxu0 %v10576_v60  ;;  %7933 = vmatprep.subr.bf16.mxu1 %v10579_v35  ;;  %v10666_v60 = vld [vmem:[%s14631_s1 + $0x1704] ss:$16 sps:$4 sm:$0xff]   ;;  %v10669_v35 = vld [vmem:[%s14631_s1 + $0x170c] ss:$16 sps:$4 sm:$0xff]  }
 0x2a7   :  { %7246 = vmatpush1.bf16.msra.mxu0 %v10574_v36  ;;  %7934 = vmatpush1.bf16.msra.mxu1 %v10577_v62  ;;  %v10664_v36 = vld [vmem:[%s14631_s1 + $0x1700] ss:$16 sps:$4 sm:$0xff]   ;;  %v10667_v62 = vld [vmem:[%s14631_s1 + $0x1708] ss:$16 sps:$4 sm:$0xff]  }
 0x2a8   :  { %7247 = vmatprep.subr.bf16.mxu0 %v10582_v63  ;;  %7935 = vmatprep.subr.bf16.mxu1 %v10585_v0  ;;  %v10672_v63 = vld [vmem:[%s14631_s1 + $0x1724] ss:$16 sps:$4 sm:$0xff]   ;;  %v10675_v0 = vld [vmem:[%s14631_s1 + $0x172c] ss:$16 sps:$4 sm:$0xff]  }
 0x2ab   :  { %7248 = vmatpush1.bf16.msra.mxu0 %v10580_v1  ;;  %7936 = vmatpush1.bf16.msra.mxu1 %v10583_v2  ;;  %v10670_v1 = vld [vmem:[%s14631_s1 + $0x1720] ss:$16 sps:$4 sm:$0xff]   ;;  %v10673_v2 = vld [vmem:[%s14631_s1 + $0x1728] ss:$16 sps:$4 sm:$0xff]  }
 0x2ac   :  { %7249 = vmatprep.subr.bf16.mxu0 %v10588_v7  ;;  %7937 = vmatprep.subr.bf16.mxu1 %v10591_v50  ;;  %v10678_v7 = vld [vmem:[%s14631_s1 + $0x1744] ss:$16 sps:$4 sm:$0xff]   ;;  %v10681_v50 = vld [vmem:[%s14631_s1 + $0x174c] ss:$16 sps:$4 sm:$0xff]  }
 0x2af   :  { %7250 = vmatpush1.bf16.msra.mxu0 %v10586_v29  ;;  %7938 = vmatpush1.bf16.msra.mxu1 %v10589_v61  ;;  %v10676_v29 = vld [vmem:[%s14631_s1 + $0x1740] ss:$16 sps:$4 sm:$0xff]   ;;  %v10679_v61 = vld [vmem:[%s14631_s1 + $0x1748] ss:$16 sps:$4 sm:$0xff]  }
 0x2b0   :  { %7251 = vmatprep.subr.bf16.mxu0 %v10594_v53  ;;  %7939 = vmatprep.subr.bf16.mxu1 %v10597_v8  ;;  %v10684_v53 = vld [vmem:[%s14631_s1 + $0x1764] ss:$16 sps:$4 sm:$0xff]   ;;  %v10687_v8 = vld [vmem:[%s14631_s1 + $0x176c] ss:$16 sps:$4 sm:$0xff]  }
 0x2b3   :  { %7252 = vmatpush1.bf16.msra.mxu0 %v10592_v57  ;;  %7940 = vmatpush1.bf16.msra.mxu1 %v10595_v59  ;;  %v10682_v57 = vld [vmem:[%s14631_s1 + $0x1760] ss:$16 sps:$4 sm:$0xff]   ;;  %v10685_v59 = vld [vmem:[%s14631_s1 + $0x1768] ss:$16 sps:$4 sm:$0xff]  }
 0x2b4   :  { %7253 = vmatprep.subr.bf16.mxu0 %v10600_v9  ;;  %7941 = vmatprep.subr.bf16.mxu1 %v10603_v38  ;;  %v10690_v9 = vld [vmem:[%s14631_s1 + $0x1784] ss:$16 sps:$4 sm:$0xff]   ;;  %v10693_v38 = vld [vmem:[%s14631_s1 + $0x178c] ss:$16 sps:$4 sm:$0xff]  }
 0x2b7   :  { %7254 = vmatpush1.bf16.msra.mxu0 %v10598_v33  ;;  %7942 = vmatpush1.bf16.msra.mxu1 %v10601_v10  ;;  %v13673_v33 = vld [vmem:[%s14630_s0 + $0x18] sm:$0xff] }
 0x2b8   :  { %7255 = vmatprep.subr.bf16.mxu0 %v10606_v11  ;;  %7943 = vmatprep.subr.bf16.mxu1 %v10609_v3  ;;  %v13678_v10 = vld [vmem:[%s14630_s0 + $0x38] sm:$0xff] }
 0x2b9   :  { %v13683_v11 = vld [vmem:[%s14630_s0 + $0x58] sm:$0xff] }
 0x2ba   :  { %v13688_v3 = vld [vmem:[%s14630_s0 + $0x78] sm:$0xff] }
 0x2bb   :  { %7256 = vmatpush1.bf16.msra.mxu0 %v10604_v5  ;;  %7944 = vmatpush1.bf16.msra.mxu1 %v10607_v13  ;;  %v13693_v5 = vld [vmem:[%s14630_s0 + $0x98] sm:$0xff] }
 0x2bc   :  { %7257 = vmatprep.subr.bf16.mxu0 %v10612_v14  ;;  %7945 = vmatprep.subr.bf16.mxu1 %v10615_v16  ;;  %v13698_v13 = vld [vmem:[%s14630_s0 + $0xb8] sm:$0xff] }
 0x2bd   :  { %v13703_v14 = vld [vmem:[%s14630_s0 + $0xd8] sm:$0xff] }
 0x2be   :  { %v13708_v16 = vld [vmem:[%s14630_s0 + $0xf8] sm:$0xff] }
 0x2bf   :  { %7258 = vmatpush1.bf16.msra.mxu0 %v10610_v51  ;;  %7946 = vmatpush1.bf16.msra.mxu1 %v10613_v18  ;;  %v10688_v51 = vld [vmem:[%s14631_s1 + $0x1780] ss:$16 sps:$4 sm:$0xff]   ;;  %v10691_v18 = vld [vmem:[%s14631_s1 + $0x1788] ss:$16 sps:$4 sm:$0xff]  }
 0x2c0   :  { %7270 = vmatprep.subr.bf16.mxu0 %v10618_v19  ;;  %7958 = vmatprep.subr.bf16.mxu1 %v10621_v20  ;;  %v10696_v19 = vld [vmem:[%s14631_s1 + $0x17a4] ss:$16 sps:$4 sm:$0xff]   ;;  %v10699_v20 = vld [vmem:[%s14631_s1 + $0x17ac] ss:$16 sps:$4 sm:$0xff]  }
 0x2c2   :  { %7260 = vmatmul.mubr.bf16.vlgmr.msra.gmra.mrb[0].mxu0 %v1503_v21  ;;  %7948 = vmatmul.mubr.bf16.vlgmr.msra.gmra.mrb[0].mxu1 %v1503_v21  ;;  %v1509_v21 = vcombine.low %v13673_v33, %v13678_v10 }
 0x2c3   :  { %7271 = vmatpush1.bf16.msra.mxu0 %v10616_v28  ;;  %7959 = vmatpush1.bf16.msra.mxu1 %v10619_v22  ;;  %v1511_v28 = vcombine.low %v13683_v11, %v13688_v3  ;;  %v1513_v22 = vcombine.low %v13693_v5, %v13698_v13 }
 0x2c4   :  { %7272 = vmatprep.subr.bf16.mxu0 %v10624_v23  ;;  %7960 = vmatprep.subr.bf16.mxu1 %v10627_v4  ;;  %v1515_v23 = vcombine.low %v13703_v14, %v13708_v16  ;;  %v10694_v4 = vld [vmem:[%s14631_s1 + $0x17a0] ss:$16 sps:$4 sm:$0xff]  }
 0x2c5   :  { %7302 = vmatprep.mubr.bf16.mxu0 %v13328_v15  ;;  %7990 = vmatprep.mubr.bf16.mxu1 %v13328_v15  ;;  %v10639_v15 = vld [vmem:[%s14631_s1 + $0x166c] ss:$16 sps:$4 sm:$0xff]  }
 0x2c7   :  { %7273 = vmatpush1.bf16.msra.mxu0 %v10622_v12  ;;  %7961 = vmatpush1.bf16.msra.mxu1 %v10625_v24  ;;  %v10697_v12 = vld [vmem:[%s14631_s1 + $0x17a8] ss:$16 sps:$4 sm:$0xff]   ;;  %v10702_v24 = vld [vmem:[%s14631_s1 + $0x17c4] ss:$16 sps:$4 sm:$0xff]  }
 0x2c8   :  { %7274 = vmatprep.subr.bf16.mxu0 %v10630_v25  ;;  %7962 = vmatprep.subr.bf16.mxu1 %v10633_v26  ;;  %v10705_v25 = vld [vmem:[%s14631_s1 + $0x17cc] ss:$16 sps:$4 sm:$0xff]   ;;  %v1523_v26 = vrot.slane %v1509_v21, %v11277_v54 }
 0x2c9   :  { %v10753_v21 = vld [vmem:[%s14631_s1 + $0x18cc] ss:$16 sps:$4 sm:$0xff]  }
 0x2cb   :  { %7275 = vmatpush1.bf16.msra.mxu0 %v10628_v30  ;;  %7963 = vmatpush1.bf16.msra.mxu1 %v10631_v32  ;;  %v1537_v30 = vrot.slane %v1511_v28, %v11277_v54  ;;  %v1551_v32 = vrot.slane %v1513_v22, %v11277_v54  ;;  %v10748_v28 = vld [vmem:[%s14631_s1 + $0x18c0] ss:$16 sps:$4 sm:$0xff]   ;;  %v10751_v22 = vld [vmem:[%s14631_s1 + $0x18c8] ss:$16 sps:$4 sm:$0xff]  }
 0x2cc   :  { %7276 = vmatprep.subr.bf16.mxu0 %v10636_v34  ;;  %7964 = vmatprep.subr.bf16.mxu1 %v10639_v15  ;;  %v1565_v34 = vrot.slane %v1515_v23, %v11277_v54  ;;  %v10700_v15 = vld [vmem:[%s14631_s1 + $0x17c0] ss:$16 sps:$4 sm:$0xff]   ;;  %v10756_v23 = vld [vmem:[%s14631_s1 + $0x18e4] ss:$16 sps:$4 sm:$0xff]  }
 0x2cf   :  { %7277 = vmatpush1.bf16.msra.mxu0 %v10634_v37  ;;  %7965 = vmatpush1.bf16.msra.mxu1 %v10637_v6  ;;  %v10703_v37 = vld [vmem:[%s14631_s1 + $0x17c8] ss:$16 sps:$4 sm:$0xff]   ;;  %v10708_v6 = vld [vmem:[%s14631_s1 + $0x17e4] ss:$16 sps:$4 sm:$0xff]  }
 0x2d0   :  { %7278 = vmatprep.subr.bf16.mxu0 %v10642_v39  ;;  %7966 = vmatprep.subr.bf16.mxu1 %v10645_v27  ;;  %v10711_v39 = vld [vmem:[%s14631_s1 + $0x17ec] ss:$16 sps:$4 sm:$0xff]   ;;  %v1574_v27 = vcombine.high %v1523_v26, %v1537_v30 }
 0x2d3   :  { %7279 = vmatpush1.bf16.msra.mxu0 %v10640_v40  ;;  %7967 = vmatpush1.bf16.msra.mxu1 %v10643_v41  ;;  %v1578_v40 = vcombine.high %v1551_v32, %v1565_v34  ;;  %v1573_v41 = vcombine.low %v1523_v26, %v1537_v30  ;;  %v10765_v26 = vld [vmem:[%s14631_s1 + $0x190c] ss:$16 sps:$4 sm:$0xff]   ;;  %v10760_v30 = vld [vmem:[%s14631_s1 + $0x1900] ss:$16 sps:$4 sm:$0xff]  }
 0x2d4   :  { %7280 = vmatprep.subr.bf16.mxu0 %v10648_v42  ;;  %7968 = vmatprep.subr.bf16.mxu1 %v10651_v43  ;;  %v1577_v42 = vcombine.low %v1551_v32, %v1565_v34  ;;  %v10706_v43 = vld [vmem:[%s14631_s1 + $0x17e0] ss:$16 sps:$4 sm:$0xff]   ;;  %v10763_v32 = vld [vmem:[%s14631_s1 + $0x1908] ss:$16 sps:$4 sm:$0xff]   ;;  %v10768_v34 = vld [vmem:[%s14631_s1 + $0x1924] ss:$16 sps:$4 sm:$0xff]  }
 0x2d7   :  { %7281 = vmatpush1.bf16.msra.mxu0 %v10646_v55  ;;  %7969 = vmatpush1.bf16.msra.mxu1 %v10649_v44  ;;  %v10709_v55 = vld [vmem:[%s14631_s1 + $0x17e8] ss:$16 sps:$4 sm:$0xff]   ;;  %v10714_v44 = vld [vmem:[%s14631_s1 + $0x1804] ss:$16 sps:$4 sm:$0xff]  }
 0x2d8   :  { %7282 = vmatprep.subr.bf16.mxu0 %v10654_v45  ;;  %7970 = vmatprep.subr.bf16.mxu1 %v10657_v31  ;;  %v10717_v45 = vld [vmem:[%s14631_s1 + $0x180c] ss:$16 sps:$4 sm:$0xff]   ;;  %v1601_v31 = vrot.slane %v1574_v27, %v11277_v54 }
 0x2d9   :  { %v10777_v27 = vld [vmem:[%s14631_s1 + $0x194c] ss:$16 sps:$4 sm:$0xff]  }
 0x2db   :  { %7283 = vmatpush1.bf16.msra.mxu0 %v10652_v47  ;;  %7971 = vmatpush1.bf16.msra.mxu1 %v10655_v48  ;;  %v1629_v47 = vrot.slane %v1578_v40, %v11277_v54  ;;  %v13773_v48 = vrot.slane %v1573_v41, %v11277_v54  ;;  %v10772_v40 = vld [vmem:[%s14631_s1 + $0x1940] ss:$16 sps:$4 sm:$0xff]   ;;  %v10775_v41 = vld [vmem:[%s14631_s1 + $0x1948] ss:$16 sps:$4 sm:$0xff]  }
 0x2dc   :  { %7284 = vmatprep.subr.bf16.mxu0 %v10660_v49  ;;  %7972 = vmatprep.subr.bf16.mxu1 %v10663_v52  ;;  %v13776_v49 = vrot.slane %v1577_v42, %v11277_v54  ;;  %v10712_v52 = vld [vmem:[%s14631_s1 + $0x1800] ss:$16 sps:$4 sm:$0xff]   ;;  %v10780_v42 = vld [vmem:[%s14631_s1 + $0x1964] ss:$16 sps:$4 sm:$0xff]  }
 0x2df   :  { %7285 = vmatpush1.bf16.msra.mxu0 %v10658_v56  ;;  %7973 = vmatpush1.bf16.msra.mxu1 %v10661_v58  ;;  %v10715_v56 = vld [vmem:[%s14631_s1 + $0x1808] ss:$16 sps:$4 sm:$0xff]   ;;  %v13784_v58 = vcombine.high %v1601_v31, %v1629_v47 }
 0x2e0   :  { %7286 = vmatprep.subr.bf16.mxu0 %v10666_v60  ;;  %7974 = vmatprep.subr.bf16.mxu1 %v10669_v35  ;;  %v10720_v60 = vld [vmem:[%s14631_s1 + $0x1824] ss:$16 sps:$4 sm:$0xff]   ;;  %v10723_v35 = vld [vmem:[%s14631_s1 + $0x182c] ss:$16 sps:$4 sm:$0xff]  }
 0x2e3   :  { %7287 = vmatpush1.bf16.msra.mxu0 %v10664_v36  ;;  %7975 = vmatpush1.bf16.msra.mxu1 %v10667_v62  ;;  %v13794_v36 = vcombine.high %v13773_v48, %v13776_v49  ;;  %v1641_v62 = vcombine.low %v1601_v31, %v1629_v47  ;;  %v10789_v31 = vld [vmem:[%s14631_s1 + $0x198c] ss:$16 sps:$4 sm:$0xff]   ;;  %v10784_v47 = vld [vmem:[%s14631_s1 + $0x1980] ss:$16 sps:$4 sm:$0xff]  }
 0x2e4   :  { %7288 = vmatprep.subr.bf16.mxu0 %v10672_v63  ;;  %7976 = vmatprep.subr.bf16.mxu1 %v10675_v0  ;;  %v10718_v63 = vld [vmem:[%s14631_s1 + $0x1820] ss:$16 sps:$4 sm:$0xff]   ;;  %v10721_v0 = vld [vmem:[%s14631_s1 + $0x1828] ss:$16 sps:$4 sm:$0xff]  }
 0x2e7   :  { %7289 = vmatpush1.bf16.msra.mxu0 %v10670_v1  ;;  %7977 = vmatpush1.bf16.msra.mxu1 %v10673_v2  ;;  %v10726_v1 = vld [vmem:[%s14631_s1 + $0x1844] ss:$16 sps:$4 sm:$0xff]   ;;  %v10724_v2 = vld [vmem:[%s14631_s1 + $0x1840] ss:$16 sps:$4 sm:$0xff]  }
 0x2e8   :  { %7290 = vmatprep.subr.bf16.mxu0 %v10678_v7  ;;  %7978 = vmatprep.subr.bf16.mxu1 %v10681_v50  ;;  %v10727_v7 = vld [vmem:[%s14631_s1 + $0x1848] ss:$16 sps:$4 sm:$0xff]   ;;  %v10732_v50 = vld [vmem:[%s14631_s1 + $0x1864] ss:$16 sps:$4 sm:$0xff]  }
 0x2eb   :  { %7291 = vmatpush1.bf16.msra.mxu0 %v10676_v29  ;;  %7979 = vmatpush1.bf16.msra.mxu1 %v10679_v61  ;;  %v10735_v29 = vld [vmem:[%s14631_s1 + $0x186c] ss:$16 sps:$4 sm:$0xff]   ;;  %v10730_v61 = vld [vmem:[%s14631_s1 + $0x1860] ss:$16 sps:$4 sm:$0xff]  }
 0x2ec   :  { %7292 = vmatprep.subr.bf16.mxu0 %v10684_v53  ;;  %7980 = vmatprep.subr.bf16.mxu1 %v10687_v8  ;;  %v10733_v53 = vld [vmem:[%s14631_s1 + $0x1868] ss:$16 sps:$4 sm:$0xff]   ;;  %v10738_v8 = vld [vmem:[%s14631_s1 + $0x1884] ss:$16 sps:$4 sm:$0xff]  }
 0x2ef   :  { %7293 = vmatpush1.bf16.msra.mxu0 %v10682_v57  ;;  %7981 = vmatpush1.bf16.msra.mxu1 %v10685_v59  ;;  %v10741_v57 = vld [vmem:[%s14631_s1 + $0x188c] ss:$16 sps:$4 sm:$0xff]   ;;  %v10736_v59 = vld [vmem:[%s14631_s1 + $0x1880] ss:$16 sps:$4 sm:$0xff]  }
 0x2f0   :  { %7294 = vmatprep.subr.bf16.mxu0 %v10690_v9  ;;  %7982 = vmatprep.subr.bf16.mxu1 %v10693_v38  ;;  %v10739_v9 = vld [vmem:[%s14631_s1 + $0x1888] ss:$16 sps:$4 sm:$0xff]   ;;  %v10744_v38 = vld [vmem:[%s14631_s1 + $0x18a4] ss:$16 sps:$4 sm:$0xff]  }
 0x2f3   :  { %7295 = vmatpush1.bf16.msra.mxu0 %v10688_v51  ;;  %7983 = vmatpush1.bf16.msra.mxu1 %v10691_v18  ;;  %v10747_v51 = vld [vmem:[%s14631_s1 + $0x18ac] ss:$16 sps:$4 sm:$0xff]   ;;  %v10742_v18 = vld [vmem:[%s14631_s1 + $0x18a0] ss:$16 sps:$4 sm:$0xff]  }
 0x2f4   :  { %7296 = vmatprep.subr.bf16.mxu0 %v10696_v19  ;;  %7984 = vmatprep.subr.bf16.mxu1 %v10699_v20  ;;  %v10745_v19 = vld [vmem:[%s14631_s1 + $0x18a8] ss:$16 sps:$4 sm:$0xff]   ;;  %v10750_v20 = vld [vmem:[%s14631_s1 + $0x18c4] ss:$16 sps:$4 sm:$0xff]  }
 0x2f7   :  { %7297 = vmatpush1.bf16.msra.mxu0 %v10694_v4  ;;  %7985 = vmatpush1.bf16.msra.mxu1 %v10697_v12  ;;  %v10759_v4 = vld [vmem:[%s14631_s1 + $0x18ec] ss:$16 sps:$4 sm:$0xff]   ;;  %v10754_v12 = vld [vmem:[%s14631_s1 + $0x18e0] ss:$16 sps:$4 sm:$0xff]  }
 0x2f8   :  { %7298 = vmatprep.subr.bf16.mxu0 %v10702_v24  ;;  %7986 = vmatprep.subr.bf16.mxu1 %v10705_v25  ;;  %v10757_v24 = vld [vmem:[%s14631_s1 + $0x18e8] ss:$16 sps:$4 sm:$0xff]   ;;  %v10762_v25 = vld [vmem:[%s14631_s1 + $0x1904] ss:$16 sps:$4 sm:$0xff]  }
 0x2fb   :  { %7299 = vmatpush1.bf16.msra.mxu0 %v10700_v15  ;;  %7987 = vmatpush1.bf16.msra.mxu1 %v10703_v37  ;;  %v10771_v15 = vld [vmem:[%s14631_s1 + $0x192c] ss:$16 sps:$4 sm:$0xff]   ;;  %v10766_v37 = vld [vmem:[%s14631_s1 + $0x1920] ss:$16 sps:$4 sm:$0xff]  }
 0x2fc   :  { %7300 = vmatprep.subr.bf16.mxu0 %v10708_v6  ;;  %7988 = vmatprep.subr.bf16.mxu1 %v10711_v39  ;;  %v10769_v6 = vld [vmem:[%s14631_s1 + $0x1928] ss:$16 sps:$4 sm:$0xff]   ;;  %v10774_v39 = vld [vmem:[%s14631_s1 + $0x1944] ss:$16 sps:$4 sm:$0xff]  }
 0x2ff   :  { %7301 = vmatpush1.bf16.msra.mxu0 %v10706_v43  ;;  %7989 = vmatpush1.bf16.msra.mxu1 %v10709_v55  ;;  %v10783_v43 = vld [vmem:[%s14631_s1 + $0x196c] ss:$16 sps:$4 sm:$0xff]   ;;  %v10778_v55 = vld [vmem:[%s14631_s1 + $0x1960] ss:$16 sps:$4 sm:$0xff]  }
 0x300   :  { %7313 = vmatprep.subr.bf16.mxu0 %v10714_v44  ;;  %8001 = vmatprep.subr.bf16.mxu1 %v10717_v45  ;;  %v10781_v44 = vld [vmem:[%s14631_s1 + $0x1968] ss:$16 sps:$4 sm:$0xff]   ;;  %v10786_v45 = vld [vmem:[%s14631_s1 + $0x1984] ss:$16 sps:$4 sm:$0xff]  }
 0x302   :  { %7303 = vmatmul.mubr.bf16.vlgmr.msra.gmra.mrb[0].mxu0 %v13338_v17  ;;  %7991 = vmatmul.mubr.bf16.vlgmr.msra.gmra.mrb[0].mxu1 %v13338_v17  ;;  %v10729_v17 = vld [vmem:[%s14631_s1 + $0x184c] ss:$16 sps:$4 sm:$0xff]  }
 0x303   :  { %7314 = vmatpush1.bf16.msra.mxu0 %v10712_v52  ;;  %8002 = vmatpush1.bf16.msra.mxu1 %v10715_v56  ;;  %v10787_v52 = vld [vmem:[%s14631_s1 + $0x1988] ss:$16 sps:$4 sm:$0xff]   ;;  %v10792_v56 = vld [vmem:[%s14631_s1 + $0x19a4] ss:$16 sps:$4 sm:$0xff]  }
 0x304   :  { %7315 = vmatprep.subr.bf16.mxu0 %v10720_v60  ;;  %8003 = vmatprep.subr.bf16.mxu1 %v10723_v35  ;;  %v10795_v60 = vld [vmem:[%s14631_s1 + $0x19ac] ss:$16 sps:$4 sm:$0xff]   ;;  %v10790_v35 = vld [vmem:[%s14631_s1 + $0x19a0] ss:$16 sps:$4 sm:$0xff]  }
 0x305   :  { %7345 = vmatprep.mubr.bf16.mxu0 %v1641_v62  ;;  %8033 = vmatprep.mubr.bf16.mxu1 %v1641_v62  ;;  %v10793_v62 = vld [vmem:[%s14631_s1 + $0x19a8] ss:$16 sps:$4 sm:$0xff]  }
 0x307   :  { %7316 = vmatpush1.bf16.msra.mxu0 %v10718_v63  ;;  %8004 = vmatpush1.bf16.msra.mxu1 %v10721_v0  ;;  %v10798_v63 = vld [vmem:[%s14631_s1 + $0x19c4] ss:$16 sps:$4 sm:$0xff]   ;;  %v10801_v0 = vld [vmem:[%s14631_s1 + $0x19cc] ss:$16 sps:$4 sm:$0xff]  }
 0x308   :  { %7317 = vmatprep.subr.bf16.mxu0 %v10726_v1  ;;  %8005 = vmatprep.subr.bf16.mxu1 %v10729_v17  ;;  %v10796_v1 = vld [vmem:[%s14631_s1 + $0x19c0] ss:$16 sps:$4 sm:$0xff]   ;;  %v10799_v17 = vld [vmem:[%s14631_s1 + $0x19c8] ss:$16 sps:$4 sm:$0xff]  }
 0x30b   :  { %7318 = vmatpush1.bf16.msra.mxu0 %v10724_v2  ;;  %8006 = vmatpush1.bf16.msra.mxu1 %v10727_v7  ;;  %v10804_v2 = vld [vmem:[%s14631_s1 + $0x19e4] ss:$16 sps:$4 sm:$0xff]   ;;  %v10807_v7 = vld [vmem:[%s14631_s1 + $0x19ec] ss:$16 sps:$4 sm:$0xff]  }
 0x30c   :  { %7319 = vmatprep.subr.bf16.mxu0 %v10732_v50  ;;  %8007 = vmatprep.subr.bf16.mxu1 %v10735_v29  ;;  %v10802_v50 = vld [vmem:[%s14631_s1 + $0x19e0] ss:$16 sps:$4 sm:$0xff]   ;;  %v10805_v29 = vld [vmem:[%s14631_s1 + $0x19e8] ss:$16 sps:$4 sm:$0xff]  }
 0x30f   :  { %7320 = vmatpush1.bf16.msra.mxu0 %v10730_v61  ;;  %8008 = vmatpush1.bf16.msra.mxu1 %v10733_v53  ;;  %v10810_v61 = vld [vmem:[%s14631_s1 + $0x1a04] ss:$16 sps:$4 sm:$0xff]   ;;  %v10813_v53 = vld [vmem:[%s14631_s1 + $0x1a0c] ss:$16 sps:$4 sm:$0xff]  }
 0x310   :  { %7321 = vmatprep.subr.bf16.mxu0 %v10738_v8  ;;  %8009 = vmatprep.subr.bf16.mxu1 %v10741_v57  ;;  %v1637_v8 = vcombine.low %v13773_v48, %v13776_v49  ;;  %v10808_v57 = vld [vmem:[%s14631_s1 + $0x1a00] ss:$16 sps:$4 sm:$0xff]   ;;  %v10819_v48 = vld [vmem:[%s14631_s1 + $0x1a2c] ss:$16 sps:$4 sm:$0xff]  }
 0x311   :  { %v10814_v49 = vld [vmem:[%s14631_s1 + $0x1a20] ss:$16 sps:$4 sm:$0xff]  }
 0x313   :  { %7322 = vmatpush1.bf16.msra.mxu0 %v10736_v59  ;;  %8010 = vmatpush1.bf16.msra.mxu1 %v10739_v9  ;;  %v10811_v59 = vld [vmem:[%s14631_s1 + $0x1a08] ss:$16 sps:$4 sm:$0xff]   ;;  %v10816_v9 = vld [vmem:[%s14631_s1 + $0x1a24] ss:$16 sps:$4 sm:$0xff]  }
 0x314   :  { %7323 = vmatprep.subr.bf16.mxu0 %v10744_v38  ;;  %8011 = vmatprep.subr.bf16.mxu1 %v10747_v51  ;;  %v10817_v38 = vld [vmem:[%s14631_s1 + $0x1a28] ss:$16 sps:$4 sm:$0xff]   ;;  %v10822_v51 = vld [vmem:[%s14631_s1 + $0x1a44] ss:$16 sps:$4 sm:$0xff]  }
 0x317   :  { %7324 = vmatpush1.bf16.msra.mxu0 %v10742_v18  ;;  %8012 = vmatpush1.bf16.msra.mxu1 %v10745_v19  ;;  %v10825_v18 = vld [vmem:[%s14631_s1 + $0x1a4c] ss:$16 sps:$4 sm:$0xff]   ;;  %v10820_v19 = vld [vmem:[%s14631_s1 + $0x1a40] ss:$16 sps:$4 sm:$0xff]  }
 0x318   :  { %7325 = vmatprep.subr.bf16.mxu0 %v10750_v20  ;;  %8013 = vmatprep.subr.bf16.mxu1 %v10753_v21  ;;  %v10823_v20 = vld [vmem:[%s14631_s1 + $0x1a48] ss:$16 sps:$4 sm:$0xff]   ;;  %v10828_v21 = vld [vmem:[%s14631_s1 + $0x1a64] ss:$16 sps:$4 sm:$0xff]  }
 0x31b   :  { %7326 = vmatpush1.bf16.msra.mxu0 %v10748_v28  ;;  %8014 = vmatpush1.bf16.msra.mxu1 %v10751_v22  ;;  %v10826_v28 = vld [vmem:[%s14631_s1 + $0x1a60] ss:$16 sps:$4 sm:$0xff]   ;;  %v10829_v22 = vld [vmem:[%s14631_s1 + $0x1a68] ss:$16 sps:$4 sm:$0xff]  }
 0x31c   :  { %7327 = vmatprep.subr.bf16.mxu0 %v10756_v23  ;;  %8015 = vmatprep.subr.bf16.mxu1 %v10759_v4  ;;  %v10834_v23 = vld [vmem:[%s14631_s1 + $0x1a84] ss:$16 sps:$4 sm:$0xff]   ;;  %v10837_v4 = vld [vmem:[%s14631_s1 + $0x1a8c] ss:$16 sps:$4 sm:$0xff]  }
 0x31f   :  { %7328 = vmatpush1.bf16.msra.mxu0 %v10754_v12  ;;  %8016 = vmatpush1.bf16.msra.mxu1 %v10757_v24  ;;  %v10832_v12 = vld [vmem:[%s14631_s1 + $0x1a80] ss:$16 sps:$4 sm:$0xff]   ;;  %v10835_v24 = vld [vmem:[%s14631_s1 + $0x1a88] ss:$16 sps:$4 sm:$0xff]  }
 0x320   :  { %7329 = vmatprep.subr.bf16.mxu0 %v10762_v25  ;;  %8017 = vmatprep.subr.bf16.mxu1 %v10765_v26  ;;  %v10840_v25 = vld [vmem:[%s14631_s1 + $0x1aa4] ss:$16 sps:$4 sm:$0xff]   ;;  %v10843_v26 = vld [vmem:[%s14631_s1 + $0x1aac] ss:$16 sps:$4 sm:$0xff]  }
 0x323   :  { %7330 = vmatpush1.bf16.msra.mxu0 %v10760_v30  ;;  %8018 = vmatpush1.bf16.msra.mxu1 %v10763_v32  ;;  %v10838_v30 = vld [vmem:[%s14631_s1 + $0x1aa0] ss:$16 sps:$4 sm:$0xff]   ;;  %v10841_v32 = vld [vmem:[%s14631_s1 + $0x1aa8] ss:$16 sps:$4 sm:$0xff]  }
 0x324   :  { %7331 = vmatprep.subr.bf16.mxu0 %v10768_v34  ;;  %8019 = vmatprep.subr.bf16.mxu1 %v10771_v15  ;;  %v10846_v34 = vld [vmem:[%s14631_s1 + $0x1ac4] ss:$16 sps:$4 sm:$0xff]   ;;  %v10849_v15 = vld [vmem:[%s14631_s1 + $0x1acc] ss:$16 sps:$4 sm:$0xff]  }
 0x327   :  { %7332 = vmatpush1.bf16.msra.mxu0 %v10766_v37  ;;  %8020 = vmatpush1.bf16.msra.mxu1 %v10769_v6  ;;  %v10844_v37 = vld [vmem:[%s14631_s1 + $0x1ac0] ss:$16 sps:$4 sm:$0xff]   ;;  %v10847_v6 = vld [vmem:[%s14631_s1 + $0x1ac8] ss:$16 sps:$4 sm:$0xff]  }
 0x328   :  { %7333 = vmatprep.subr.bf16.mxu0 %v10774_v39  ;;  %8021 = vmatprep.subr.bf16.mxu1 %v10777_v27  ;;  %v10852_v39 = vld [vmem:[%s14631_s1 + $0x1ae4] ss:$16 sps:$4 sm:$0xff]   ;;  %v10855_v27 = vld [vmem:[%s14631_s1 + $0x1aec] ss:$16 sps:$4 sm:$0xff]  }
 0x32b   :  { %7334 = vmatpush1.bf16.msra.mxu0 %v10772_v40  ;;  %8022 = vmatpush1.bf16.msra.mxu1 %v10775_v41  ;;  %v10850_v40 = vld [vmem:[%s14631_s1 + $0x1ae0] ss:$16 sps:$4 sm:$0xff]   ;;  %v10853_v41 = vld [vmem:[%s14631_s1 + $0x1ae8] ss:$16 sps:$4 sm:$0xff]  }
 0x32c   :  { %7335 = vmatprep.subr.bf16.mxu0 %v10780_v42  ;;  %8023 = vmatprep.subr.bf16.mxu1 %v10783_v43  ;;  %v10858_v42 = vld [vmem:[%s14631_s1 + $0x1b04] ss:$16 sps:$4 sm:$0xff]   ;;  %v10861_v43 = vld [vmem:[%s14631_s1 + $0x1b0c] ss:$16 sps:$4 sm:$0xff]  }
 0x32f   :  { %7336 = vmatpush1.bf16.msra.mxu0 %v10778_v55  ;;  %8024 = vmatpush1.bf16.msra.mxu1 %v10781_v44  ;;  %v10856_v55 = vld [vmem:[%s14631_s1 + $0x1b00] ss:$16 sps:$4 sm:$0xff]   ;;  %v10859_v44 = vld [vmem:[%s14631_s1 + $0x1b08] ss:$16 sps:$4 sm:$0xff]  }
 0x330   :  { %7337 = vmatprep.subr.bf16.mxu0 %v10786_v45  ;;  %8025 = vmatprep.subr.bf16.mxu1 %v10789_v31  ;;  %v10864_v45 = vld [vmem:[%s14631_s1 + $0x1b24] ss:$16 sps:$4 sm:$0xff]   ;;  %v10867_v31 = vld [vmem:[%s14631_s1 + $0x1b2c] ss:$16 sps:$4 sm:$0xff]  }
 0x333   :  { %7338 = vmatpush1.bf16.msra.mxu0 %v10784_v47  ;;  %8026 = vmatpush1.bf16.msra.mxu1 %v10787_v52  ;;  %v10862_v47 = vld [vmem:[%s14631_s1 + $0x1b20] ss:$16 sps:$4 sm:$0xff]   ;;  %v10865_v52 = vld [vmem:[%s14631_s1 + $0x1b28] ss:$16 sps:$4 sm:$0xff]  }
 0x334   :  { %7339 = vmatprep.subr.bf16.mxu0 %v10792_v56  ;;  %8027 = vmatprep.subr.bf16.mxu1 %v10795_v60  ;;  %v10870_v56 = vld [vmem:[%s14631_s1 + $0x1b44] ss:$16 sps:$4 sm:$0xff]   ;;  %v10873_v60 = vld [vmem:[%s14631_s1 + $0x1b4c] ss:$16 sps:$4 sm:$0xff]  }
 0x337   :  { %7340 = vmatpush1.bf16.msra.mxu0 %v10790_v35  ;;  %8028 = vmatpush1.bf16.msra.mxu1 %v10793_v62  ;;  %v10868_v35 = vld [vmem:[%s14631_s1 + $0x1b40] ss:$16 sps:$4 sm:$0xff]   ;;  %v10871_v62 = vld [vmem:[%s14631_s1 + $0x1b48] ss:$16 sps:$4 sm:$0xff]  }
 0x338   :  { %7341 = vmatprep.subr.bf16.mxu0 %v10798_v63  ;;  %8029 = vmatprep.subr.bf16.mxu1 %v10801_v0  ;;  %v10876_v63 = vld [vmem:[%s14631_s1 + $0x1b64] ss:$16 sps:$4 sm:$0xff]   ;;  %v10879_v0 = vld [vmem:[%s14631_s1 + $0x1b6c] ss:$16 sps:$4 sm:$0xff]  }
 0x33b   :  { %7342 = vmatpush1.bf16.msra.mxu0 %v10796_v1  ;;  %8030 = vmatpush1.bf16.msra.mxu1 %v10799_v17  ;;  %v10874_v1 = vld [vmem:[%s14631_s1 + $0x1b60] ss:$16 sps:$4 sm:$0xff]   ;;  %v10877_v17 = vld [vmem:[%s14631_s1 + $0x1b68] ss:$16 sps:$4 sm:$0xff]  }
 0x33c   :  { %7343 = vmatprep.subr.bf16.mxu0 %v10804_v2  ;;  %8031 = vmatprep.subr.bf16.mxu1 %v10807_v7  ;;  %v10882_v2 = vld [vmem:[%s14631_s1 + $0x1b84] ss:$16 sps:$4 sm:$0xff]   ;;  %v10885_v7 = vld [vmem:[%s14631_s1 + $0x1b8c] ss:$16 sps:$4 sm:$0xff]  }
 0x33f   :  { %7344 = vmatpush1.bf16.msra.mxu0 %v10802_v50  ;;  %8032 = vmatpush1.bf16.msra.mxu1 %v10805_v29  ;;  %v10880_v50 = vld [vmem:[%s14631_s1 + $0x1b80] ss:$16 sps:$4 sm:$0xff]   ;;  %v10883_v29 = vld [vmem:[%s14631_s1 + $0x1b88] ss:$16 sps:$4 sm:$0xff]  }
 0x340   :  { %7356 = vmatprep.subr.bf16.mxu0 %v10810_v61  ;;  %8044 = vmatprep.subr.bf16.mxu1 %v10813_v53  ;;  %v10888_v61 = vld [vmem:[%s14631_s1 + $0x1ba4] ss:$16 sps:$4 sm:$0xff]   ;;  %v10891_v53 = vld [vmem:[%s14631_s1 + $0x1bac] ss:$16 sps:$4 sm:$0xff]  }
 0x342   :  { %7346 = vmatmul.mubr.bf16.vlgmr.msra.gmra.mrb[0].mxu0 %v1637_v8  ;;  %8034 = vmatmul.mubr.bf16.vlgmr.msra.gmra.mrb[0].mxu1 %v1637_v8  ;;  %v1510_v8 = vcombine.high %v13673_v33, %v13678_v10  ;;  %v10894_v33 = vld [vmem:[%s14631_s1 + $0x1bc4] ss:$16 sps:$4 sm:$0xff]   ;;  %v10897_v10 = vld [vmem:[%s14631_s1 + $0x1bcc] ss:$16 sps:$4 sm:$0xff]  }
 0x343   :  { %7357 = vmatpush1.bf16.msra.mxu0 %v10808_v57  ;;  %8045 = vmatpush1.bf16.msra.mxu1 %v10811_v59  ;;  %v1512_v57 = vcombine.high %v13683_v11, %v13688_v3  ;;  %v1514_v59 = vcombine.high %v13693_v5, %v13698_v13 }
 0x344   :  { %7358 = vmatprep.subr.bf16.mxu0 %v10816_v9  ;;  %8046 = vmatprep.subr.bf16.mxu1 %v10819_v48  ;;  %v1516_v9 = vcombine.high %v13703_v14, %v13708_v16  ;;  %v10886_v48 = vld [vmem:[%s14631_s1 + $0x1ba0] ss:$16 sps:$4 sm:$0xff]   ;;  %v1530_v11 = vrot.slane %v1510_v8, %v11277_v54  ;;  %v10895_v16 = vld [vmem:[%s14631_s1 + $0x1bc8] ss:$16 sps:$4 sm:$0xff]   ;;  %v10957_v8 = vld [vmem:[%s14631_s1 + $0x1d0c] ss:$16 sps:$4 sm:$0xff]  }
 0x345   :  { %7388 = vmatprep.mubr.bf16.mxu0 %v13784_v58  ;;  %8076 = vmatprep.mubr.bf16.mxu1 %v13784_v58  ;;  %v10831_v58 = vld [vmem:[%s14631_s1 + $0x1a6c] ss:$16 sps:$4 sm:$0xff]   ;;  %v1544_v3 = vrot.slane %v1512_v57, %v11277_v54  ;;  %v1558_v5 = vrot.slane %v1514_v59, %v11277_v54  ;;  %v10892_v14 = vld [vmem:[%s14631_s1 + $0x1bc0] ss:$16 sps:$4 sm:$0xff]   ;;  %v10955_v59 = vld [vmem:[%s14631_s1 + $0x1d08] ss:$16 sps:$4 sm:$0xff]  }
 0x346   :  { %v1572_v13 = vrot.slane %v1516_v9, %v11277_v54  ;;  %v10952_v57 = vld [vmem:[%s14631_s1 + $0x1d00] ss:$16 sps:$4 sm:$0xff]   ;;  %v10960_v9 = vld [vmem:[%s14631_s1 + $0x1d24] ss:$16 sps:$4 sm:$0xff]  }
 0x347   :  { %7359 = vmatpush1.bf16.msra.mxu0 %v10814_v49  ;;  %8047 = vmatpush1.bf16.msra.mxu1 %v10817_v38  ;;  %v10889_v49 = vld [vmem:[%s14631_s1 + $0x1ba8] ss:$16 sps:$4 sm:$0xff]   ;;  %v10900_v38 = vld [vmem:[%s14631_s1 + $0x1be4] ss:$16 sps:$4 sm:$0xff]  }
 0x348   :  { %7360 = vmatprep.subr.bf16.mxu0 %v10822_v51  ;;  %8048 = vmatprep.subr.bf16.mxu1 %v10825_v18  ;;  %v10903_v51 = vld [vmem:[%s14631_s1 + $0x1bec] ss:$16 sps:$4 sm:$0xff]   ;;  %v1576_v18 = vcombine.high %v1530_v11, %v1544_v3 }
 0x34b   :  { %7361 = vmatpush1.bf16.msra.mxu0 %v10820_v19  ;;  %8049 = vmatpush1.bf16.msra.mxu1 %v10823_v20  ;;  %v1580_v19 = vcombine.high %v1558_v5, %v1572_v13  ;;  %v1575_v20 = vcombine.low %v1530_v11, %v1544_v3  ;;  %v10969_v11 = vld [vmem:[%s14631_s1 + $0x1d4c] ss:$16 sps:$4 sm:$0xff]   ;;  %v10964_v3 = vld [vmem:[%s14631_s1 + $0x1d40] ss:$16 sps:$4 sm:$0xff]  }
 0x34c   :  { %7362 = vmatprep.subr.bf16.mxu0 %v10828_v21  ;;  %8050 = vmatprep.subr.bf16.mxu1 %v10831_v58  ;;  %v1579_v21 = vcombine.low %v1558_v5, %v1572_v13  ;;  %v10898_v58 = vld [vmem:[%s14631_s1 + $0x1be0] ss:$16 sps:$4 sm:$0xff]   ;;  %v10967_v5 = vld [vmem:[%s14631_s1 + $0x1d48] ss:$16 sps:$4 sm:$0xff]   ;;  %v10972_v13 = vld [vmem:[%s14631_s1 + $0x1d64] ss:$16 sps:$4 sm:$0xff]  }
 0x34f   :  { %7363 = vmatpush1.bf16.msra.mxu0 %v10826_v28  ;;  %8051 = vmatpush1.bf16.msra.mxu1 %v10829_v22  ;;  %v10901_v28 = vld [vmem:[%s14631_s1 + $0x1be8] ss:$16 sps:$4 sm:$0xff]   ;;  %v10906_v22 = vld [vmem:[%s14631_s1 + $0x1c04] ss:$16 sps:$4 sm:$0xff]  }
 0x350   :  { %7364 = vmatprep.subr.bf16.mxu0 %v10834_v23  ;;  %8052 = vmatprep.subr.bf16.mxu1 %v10837_v4  ;;  %v10909_v23 = vld [vmem:[%s14631_s1 + $0x1c0c] ss:$16 sps:$4 sm:$0xff]   ;;  %v1608_v4 = vrot.slane %v1576_v18, %v11277_v54 }
 0x351   :  { %v10981_v18 = vld [vmem:[%s14631_s1 + $0x1d8c] ss:$16 sps:$4 sm:$0xff]  }
 0x353   :  { %7365 = vmatpush1.bf16.msra.mxu0 %v10832_v12  ;;  %8053 = vmatpush1.bf16.msra.mxu1 %v10835_v24  ;;  %v1636_v12 = vrot.slane %v1580_v19, %v11277_v54  ;;  %v14189_v24 = vrot.slane %v1575_v20, %v11277_v54  ;;  %v10976_v19 = vld [vmem:[%s14631_s1 + $0x1d80] ss:$16 sps:$4 sm:$0xff]   ;;  %v10979_v20 = vld [vmem:[%s14631_s1 + $0x1d88] ss:$16 sps:$4 sm:$0xff]  }
 0x354   :  { %7366 = vmatprep.subr.bf16.mxu0 %v10840_v25  ;;  %8054 = vmatprep.subr.bf16.mxu1 %v10843_v26  ;;  %v14192_v25 = vrot.slane %v1579_v21, %v11277_v54  ;;  %v10904_v26 = vld [vmem:[%s14631_s1 + $0x1c00] ss:$16 sps:$4 sm:$0xff]   ;;  %v10984_v21 = vld [vmem:[%s14631_s1 + $0x1da4] ss:$16 sps:$4 sm:$0xff]  }
 0x357   :  { %7367 = vmatpush1.bf16.msra.mxu0 %v10838_v30  ;;  %8055 = vmatpush1.bf16.msra.mxu1 %v10841_v32  ;;  %v10907_v30 = vld [vmem:[%s14631_s1 + $0x1c08] ss:$16 sps:$4 sm:$0xff]   ;;  %v14200_v32 = vcombine.high %v1608_v4, %v1636_v12 }
 0x358   :  { %7368 = vmatprep.subr.bf16.mxu0 %v10846_v34  ;;  %8056 = vmatprep.subr.bf16.mxu1 %v10849_v15  ;;  %v14204_v34 = vcombine.high %v14189_v24, %v14192_v25  ;;  %v10912_v15 = vld [vmem:[%s14631_s1 + $0x1c24] ss:$16 sps:$4 sm:$0xff]  }
 0x35b   :  { %7369 = vmatpush1.bf16.msra.mxu0 %v10844_v37  ;;  %8057 = vmatpush1.bf16.msra.mxu1 %v10847_v6  ;;  %v10915_v37 = vld [vmem:[%s14631_s1 + $0x1c2c] ss:$16 sps:$4 sm:$0xff]   ;;  %v1643_v6 = vcombine.low %v1608_v4, %v1636_v12  ;;  %v10988_v12 = vld [vmem:[%s14631_s1 + $0x1dc0] ss:$16 sps:$4 sm:$0xff]  }
 0x35c   :  { %7370 = vmatprep.subr.bf16.mxu0 %v10852_v39  ;;  %8058 = vmatprep.subr.bf16.mxu1 %v10855_v27  ;;  %v10910_v39 = vld [vmem:[%s14631_s1 + $0x1c20] ss:$16 sps:$4 sm:$0xff]   ;;  %v10913_v27 = vld [vmem:[%s14631_s1 + $0x1c28] ss:$16 sps:$4 sm:$0xff]   ;;  %v10993_v4 = vld [vmem:[%s14631_s1 + $0x1dcc] ss:$16 sps:$4 sm:$0xff]  }
 0x35f   :  { %7371 = vmatpush1.bf16.msra.mxu0 %v10850_v40  ;;  %8059 = vmatpush1.bf16.msra.mxu1 %v10853_v41  ;;  %v10918_v40 = vld [vmem:[%s14631_s1 + $0x1c44] ss:$16 sps:$4 sm:$0xff]   ;;  %v10916_v41 = vld [vmem:[%s14631_s1 + $0x1c40] ss:$16 sps:$4 sm:$0xff]  }
 0x360   :  { %7372 = vmatprep.subr.bf16.mxu0 %v10858_v42  ;;  %8060 = vmatprep.subr.bf16.mxu1 %v10861_v43  ;;  %v10919_v42 = vld [vmem:[%s14631_s1 + $0x1c48] ss:$16 sps:$4 sm:$0xff]   ;;  %v10924_v43 = vld [vmem:[%s14631_s1 + $0x1c64] ss:$16 sps:$4 sm:$0xff]  }
 0x363   :  { %7373 = vmatpush1.bf16.msra.mxu0 %v10856_v55  ;;  %8061 = vmatpush1.bf16.msra.mxu1 %v10859_v44  ;;  %v10927_v55 = vld [vmem:[%s14631_s1 + $0x1c6c] ss:$16 sps:$4 sm:$0xff]   ;;  %v10922_v44 = vld [vmem:[%s14631_s1 + $0x1c60] ss:$16 sps:$4 sm:$0xff]  }
 0x364   :  { %7374 = vmatprep.subr.bf16.mxu0 %v10864_v45  ;;  %8062 = vmatprep.subr.bf16.mxu1 %v10867_v31  ;;  %v10925_v45 = vld [vmem:[%s14631_s1 + $0x1c68] ss:$16 sps:$4 sm:$0xff]   ;;  %v10930_v31 = vld [vmem:[%s14631_s1 + $0x1c84] ss:$16 sps:$4 sm:$0xff]  }
 0x367   :  { %7375 = vmatpush1.bf16.msra.mxu0 %v10862_v47  ;;  %8063 = vmatpush1.bf16.msra.mxu1 %v10865_v52  ;;  %v10933_v47 = vld [vmem:[%s14631_s1 + $0x1c8c] ss:$16 sps:$4 sm:$0xff]   ;;  %v10928_v52 = vld [vmem:[%s14631_s1 + $0x1c80] ss:$16 sps:$4 sm:$0xff]  }
 0x368   :  { %7376 = vmatprep.subr.bf16.mxu0 %v10870_v56  ;;  %8064 = vmatprep.subr.bf16.mxu1 %v10873_v60  ;;  %v10931_v56 = vld [vmem:[%s14631_s1 + $0x1c88] ss:$16 sps:$4 sm:$0xff]   ;;  %v10936_v60 = vld [vmem:[%s14631_s1 + $0x1ca4] ss:$16 sps:$4 sm:$0xff]  }
 0x36b   :  { %7377 = vmatpush1.bf16.msra.mxu0 %v10868_v35  ;;  %8065 = vmatpush1.bf16.msra.mxu1 %v10871_v62  ;;  %v10939_v35 = vld [vmem:[%s14631_s1 + $0x1cac] ss:$16 sps:$4 sm:$0xff]   ;;  %v10934_v62 = vld [vmem:[%s14631_s1 + $0x1ca0] ss:$16 sps:$4 sm:$0xff]  }
 0x36c   :  { %7378 = vmatprep.subr.bf16.mxu0 %v10876_v63  ;;  %8066 = vmatprep.subr.bf16.mxu1 %v10879_v0  ;;  %v10937_v63 = vld [vmem:[%s14631_s1 + $0x1ca8] ss:$16 sps:$4 sm:$0xff]   ;;  %v10942_v0 = vld [vmem:[%s14631_s1 + $0x1cc4] ss:$16 sps:$4 sm:$0xff]  }
 0x36f   :  { %7379 = vmatpush1.bf16.msra.mxu0 %v10874_v1  ;;  %8067 = vmatpush1.bf16.msra.mxu1 %v10877_v17  ;;  %v10945_v1 = vld [vmem:[%s14631_s1 + $0x1ccc] ss:$16 sps:$4 sm:$0xff]   ;;  %v10940_v17 = vld [vmem:[%s14631_s1 + $0x1cc0] ss:$16 sps:$4 sm:$0xff]  }
 0x370   :  { %7380 = vmatprep.subr.bf16.mxu0 %v10882_v2  ;;  %8068 = vmatprep.subr.bf16.mxu1 %v10885_v7  ;;  %v10943_v2 = vld [vmem:[%s14631_s1 + $0x1cc8] ss:$16 sps:$4 sm:$0xff]   ;;  %v10948_v7 = vld [vmem:[%s14631_s1 + $0x1ce4] ss:$16 sps:$4 sm:$0xff]  }
 0x373   :  { %7381 = vmatpush1.bf16.msra.mxu0 %v10880_v50  ;;  %8069 = vmatpush1.bf16.msra.mxu1 %v10883_v29  ;;  %v10951_v50 = vld [vmem:[%s14631_s1 + $0x1cec] ss:$16 sps:$4 sm:$0xff]   ;;  %v10946_v29 = vld [vmem:[%s14631_s1 + $0x1ce0] ss:$16 sps:$4 sm:$0xff]  }
 0x374   :  { %7382 = vmatprep.subr.bf16.mxu0 %v10888_v61  ;;  %8070 = vmatprep.subr.bf16.mxu1 %v10891_v53  ;;  %v10949_v61 = vld [vmem:[%s14631_s1 + $0x1ce8] ss:$16 sps:$4 sm:$0xff]   ;;  %v10954_v53 = vld [vmem:[%s14631_s1 + $0x1d04] ss:$16 sps:$4 sm:$0xff]  }
 0x377   :  { %7383 = vmatpush1.bf16.msra.mxu0 %v10886_v48  ;;  %8071 = vmatpush1.bf16.msra.mxu1 %v10889_v49  ;;  %v10963_v48 = vld [vmem:[%s14631_s1 + $0x1d2c] ss:$16 sps:$4 sm:$0xff]   ;;  %v10958_v49 = vld [vmem:[%s14631_s1 + $0x1d20] ss:$16 sps:$4 sm:$0xff]  }
 0x378   :  { %7384 = vmatprep.subr.bf16.mxu0 %v10894_v33  ;;  %8072 = vmatprep.subr.bf16.mxu1 %v10897_v10  ;;  %v10961_v33 = vld [vmem:[%s14631_s1 + $0x1d28] ss:$16 sps:$4 sm:$0xff]   ;;  %v10966_v10 = vld [vmem:[%s14631_s1 + $0x1d44] ss:$16 sps:$4 sm:$0xff]  }
 0x37b   :  { %7385 = vmatpush1.bf16.msra.mxu0 %v10892_v14  ;;  %8073 = vmatpush1.bf16.msra.mxu1 %v10895_v16  ;;  %v10975_v14 = vld [vmem:[%s14631_s1 + $0x1d6c] ss:$16 sps:$4 sm:$0xff]   ;;  %v10970_v16 = vld [vmem:[%s14631_s1 + $0x1d60] ss:$16 sps:$4 sm:$0xff]  }
 0x37c   :  { %7386 = vmatprep.subr.bf16.mxu0 %v10900_v38  ;;  %8074 = vmatprep.subr.bf16.mxu1 %v10903_v51  ;;  %v10973_v38 = vld [vmem:[%s14631_s1 + $0x1d68] ss:$16 sps:$4 sm:$0xff]   ;;  %v10978_v51 = vld [vmem:[%s14631_s1 + $0x1d84] ss:$16 sps:$4 sm:$0xff]  }
 0x37f   :  { %7387 = vmatpush1.bf16.msra.mxu0 %v10898_v58  ;;  %8075 = vmatpush1.bf16.msra.mxu1 %v10901_v28  ;;  %v10987_v58 = vld [vmem:[%s14631_s1 + $0x1dac] ss:$16 sps:$4 sm:$0xff]   ;;  %v10982_v28 = vld [vmem:[%s14631_s1 + $0x1da0] ss:$16 sps:$4 sm:$0xff]  }
 0x380   :  { %7399 = vmatprep.subr.bf16.mxu0 %v10906_v22  ;;  %8087 = vmatprep.subr.bf16.mxu1 %v10909_v23  ;;  %v10985_v22 = vld [vmem:[%s14631_s1 + $0x1da8] ss:$16 sps:$4 sm:$0xff]   ;;  %v10990_v23 = vld [vmem:[%s14631_s1 + $0x1dc4] ss:$16 sps:$4 sm:$0xff]  }
 0x382   :  { %7389 = vmatmul.mubr.bf16.vlgmr.msra.gmra.mrb[0].mxu0 %v13794_v36  ;;  %8077 = vmatmul.mubr.bf16.vlgmr.msra.gmra.mrb[0].mxu1 %v13794_v36  ;;  %v10921_v36 = vld [vmem:[%s14631_s1 + $0x1c4c] ss:$16 sps:$4 sm:$0xff]  }
 0x383   :  { %7400 = vmatpush1.bf16.msra.mxu0 %v10904_v26  ;;  %8088 = vmatpush1.bf16.msra.mxu1 %v10907_v30  ;;  %v10991_v26 = vld [vmem:[%s14631_s1 + $0x1dc8] ss:$16 sps:$4 sm:$0xff]   ;;  %v10996_v30 = vld [vmem:[%s14631_s1 + $0x1de4] ss:$16 sps:$4 sm:$0xff]  }
 0x384   :  { %7401 = vmatprep.subr.bf16.mxu0 %v10912_v15  ;;  %8089 = vmatprep.subr.bf16.mxu1 %v10915_v37  ;;  %v10999_v15 = vld [vmem:[%s14631_s1 + $0x1dec] ss:$16 sps:$4 sm:$0xff]   ;;  %v10994_v37 = vld [vmem:[%s14631_s1 + $0x1de0] ss:$16 sps:$4 sm:$0xff]  }
 0x385   :  { %7431 = vmatprep.mubr.bf16.mxu0 %v1643_v6  ;;  %8119 = vmatprep.mubr.bf16.mxu1 %v1643_v6  ;;  %v10997_v6 = vld [vmem:[%s14631_s1 + $0x1de8] ss:$16 sps:$4 sm:$0xff]  }
 0x387   :  { %7402 = vmatpush1.bf16.msra.mxu0 %v10910_v39  ;;  %8090 = vmatpush1.bf16.msra.mxu1 %v10913_v27  ;;  %v11002_v39 = vld [vmem:[%s14631_s1 + $0x1e04] ss:$16 sps:$4 sm:$0xff]   ;;  %v11005_v27 = vld [vmem:[%s14631_s1 + $0x1e0c] ss:$16 sps:$4 sm:$0xff]  }
 0x388   :  { %7403 = vmatprep.subr.bf16.mxu0 %v10918_v40  ;;  %8091 = vmatprep.subr.bf16.mxu1 %v10921_v36  ;;  %v1639_v40 = vcombine.low %v14189_v24, %v14192_v25  ;;  %v11000_v36 = vld [vmem:[%s14631_s1 + $0x1e00] ss:$16 sps:$4 sm:$0xff]   ;;  %v11011_v24 = vld [vmem:[%s14631_s1 + $0x1e2c] ss:$16 sps:$4 sm:$0xff]  }
 0x389   :  { %v11006_v25 = vld [vmem:[%s14631_s1 + $0x1e20] ss:$16 sps:$4 sm:$0xff]  }
 0x38b   :  { %7404 = vmatpush1.bf16.msra.mxu0 %v10916_v41  ;;  %8092 = vmatpush1.bf16.msra.mxu1 %v10919_v42  ;;  %v11003_v41 = vld [vmem:[%s14631_s1 + $0x1e08] ss:$16 sps:$4 sm:$0xff]   ;;  %v11008_v42 = vld [vmem:[%s14631_s1 + $0x1e24] ss:$16 sps:$4 sm:$0xff]  }
 0x38c   :  { %7405 = vmatprep.subr.bf16.mxu0 %v10924_v43  ;;  %8093 = vmatprep.subr.bf16.mxu1 %v10927_v55  ;;  %v11009_v43 = vld [vmem:[%s14631_s1 + $0x1e28] ss:$16 sps:$4 sm:$0xff]   ;;  %v11014_v55 = vld [vmem:[%s14631_s1 + $0x1e44] ss:$16 sps:$4 sm:$0xff]  }
 0x38f   :  { %7406 = vmatpush1.bf16.msra.mxu0 %v10922_v44  ;;  %8094 = vmatpush1.bf16.msra.mxu1 %v10925_v45  ;;  %v11017_v44 = vld [vmem:[%s14631_s1 + $0x1e4c] ss:$16 sps:$4 sm:$0xff]   ;;  %v11012_v45 = vld [vmem:[%s14631_s1 + $0x1e40] ss:$16 sps:$4 sm:$0xff]  }
 0x390   :  { %7407 = vmatprep.subr.bf16.mxu0 %v10930_v31  ;;  %8095 = vmatprep.subr.bf16.mxu1 %v10933_v47  ;;  %v11015_v31 = vld [vmem:[%s14631_s1 + $0x1e48] ss:$16 sps:$4 sm:$0xff]   ;;  %v11020_v47 = vld [vmem:[%s14631_s1 + $0x1e64] ss:$16 sps:$4 sm:$0xff]  }
 0x393   :  { %7408 = vmatpush1.bf16.msra.mxu0 %v10928_v52  ;;  %8096 = vmatpush1.bf16.msra.mxu1 %v10931_v56  ;;  %v11018_v52 = vld [vmem:[%s14631_s1 + $0x1e60] ss:$16 sps:$4 sm:$0xff]   ;;  %v11021_v56 = vld [vmem:[%s14631_s1 + $0x1e68] ss:$16 sps:$4 sm:$0xff]  }
 0x394   :  { %7409 = vmatprep.subr.bf16.mxu0 %v10936_v60  ;;  %8097 = vmatprep.subr.bf16.mxu1 %v10939_v35  ;;  %v11026_v60 = vld [vmem:[%s14631_s1 + $0x1e84] ss:$16 sps:$4 sm:$0xff]   ;;  %v11029_v35 = vld [vmem:[%s14631_s1 + $0x1e8c] ss:$16 sps:$4 sm:$0xff]  }
 0x397   :  { %7410 = vmatpush1.bf16.msra.mxu0 %v10934_v62  ;;  %8098 = vmatpush1.bf16.msra.mxu1 %v10937_v63  ;;  %v11024_v62 = vld [vmem:[%s14631_s1 + $0x1e80] ss:$16 sps:$4 sm:$0xff]   ;;  %v11027_v63 = vld [vmem:[%s14631_s1 + $0x1e88] ss:$16 sps:$4 sm:$0xff]  }
 0x398   :  { %7411 = vmatprep.subr.bf16.mxu0 %v10942_v0  ;;  %8099 = vmatprep.subr.bf16.mxu1 %v10945_v1  ;;  %v11032_v0 = vld [vmem:[%s14631_s1 + $0x1ea4] ss:$16 sps:$4 sm:$0xff]   ;;  %v11035_v1 = vld [vmem:[%s14631_s1 + $0x1eac] ss:$16 sps:$4 sm:$0xff]  }
 0x39b   :  { %7412 = vmatpush1.bf16.msra.mxu0 %v10940_v17  ;;  %8100 = vmatpush1.bf16.msra.mxu1 %v10943_v2  ;;  %v11030_v17 = vld [vmem:[%s14631_s1 + $0x1ea0] ss:$16 sps:$4 sm:$0xff]   ;;  %v11033_v2 = vld [vmem:[%s14631_s1 + $0x1ea8] ss:$16 sps:$4 sm:$0xff]  }
 0x39c   :  { %7413 = vmatprep.subr.bf16.mxu0 %v10948_v7  ;;  %8101 = vmatprep.subr.bf16.mxu1 %v10951_v50  ;;  %v11038_v7 = vld [vmem:[%s14631_s1 + $0x1ec4] ss:$16 sps:$4 sm:$0xff]   ;;  %v11041_v50 = vld [vmem:[%s14631_s1 + $0x1ecc] ss:$16 sps:$4 sm:$0xff]  }
 0x39f   :  { %7414 = vmatpush1.bf16.msra.mxu0 %v10946_v29  ;;  %8102 = vmatpush1.bf16.msra.mxu1 %v10949_v61  ;;  %v11036_v29 = vld [vmem:[%s14631_s1 + $0x1ec0] ss:$16 sps:$4 sm:$0xff]   ;;  %v11039_v61 = vld [vmem:[%s14631_s1 + $0x1ec8] ss:$16 sps:$4 sm:$0xff]  }
 0x3a0   :  { %7415 = vmatprep.subr.bf16.mxu0 %v10954_v53  ;;  %8103 = vmatprep.subr.bf16.mxu1 %v10957_v8  ;;  %v11044_v53 = vld [vmem:[%s14631_s1 + $0x1ee4] ss:$16 sps:$4 sm:$0xff]   ;;  %v11047_v8 = vld [vmem:[%s14631_s1 + $0x1eec] ss:$16 sps:$4 sm:$0xff]  }
 0x3a3   :  { %7416 = vmatpush1.bf16.msra.mxu0 %v10952_v57  ;;  %8104 = vmatpush1.bf16.msra.mxu1 %v10955_v59  ;;  %v11042_v57 = vld [vmem:[%s14631_s1 + $0x1ee0] ss:$16 sps:$4 sm:$0xff]   ;;  %v11045_v59 = vld [vmem:[%s14631_s1 + $0x1ee8] ss:$16 sps:$4 sm:$0xff]  }
 0x3a4   :  { %7417 = vmatprep.subr.bf16.mxu0 %v10960_v9  ;;  %8105 = vmatprep.subr.bf16.mxu1 %v10963_v48  ;;  %v11050_v9 = vld [vmem:[%s14631_s1 + $0x1f04] ss:$16 sps:$4 sm:$0xff]   ;;  %v11053_v48 = vld [vmem:[%s14631_s1 + $0x1f0c] ss:$16 sps:$4 sm:$0xff]  }
 0x3a7   :  { %7418 = vmatpush1.bf16.msra.mxu0 %v10958_v49  ;;  %8106 = vmatpush1.bf16.msra.mxu1 %v10961_v33  ;;  %v11048_v49 = vld [vmem:[%s14631_s1 + $0x1f00] ss:$16 sps:$4 sm:$0xff]   ;;  %v11051_v33 = vld [vmem:[%s14631_s1 + $0x1f08] ss:$16 sps:$4 sm:$0xff]  }
 0x3a8   :  { %7419 = vmatprep.subr.bf16.mxu0 %v10966_v10  ;;  %8107 = vmatprep.subr.bf16.mxu1 %v10969_v11  ;;  %v11056_v10 = vld [vmem:[%s14631_s1 + $0x1f24] ss:$16 sps:$4 sm:$0xff]   ;;  %v11059_v11 = vld [vmem:[%s14631_s1 + $0x1f2c] ss:$16 sps:$4 sm:$0xff]  }
 0x3ab   :  { %7420 = vmatpush1.bf16.msra.mxu0 %v10964_v3  ;;  %8108 = vmatpush1.bf16.msra.mxu1 %v10967_v5  ;;  %v11054_v3 = vld [vmem:[%s14631_s1 + $0x1f20] ss:$16 sps:$4 sm:$0xff]   ;;  %v11057_v5 = vld [vmem:[%s14631_s1 + $0x1f28] ss:$16 sps:$4 sm:$0xff]  }
 0x3ac   :  { %7421 = vmatprep.subr.bf16.mxu0 %v10972_v13  ;;  %8109 = vmatprep.subr.bf16.mxu1 %v10975_v14  ;;  %v11062_v13 = vld [vmem:[%s14631_s1 + $0x1f44] ss:$16 sps:$4 sm:$0xff]   ;;  %v11065_v14 = vld [vmem:[%s14631_s1 + $0x1f4c] ss:$16 sps:$4 sm:$0xff]  }
 0x3af   :  { %7422 = vmatpush1.bf16.msra.mxu0 %v10970_v16  ;;  %8110 = vmatpush1.bf16.msra.mxu1 %v10973_v38  ;;  %v11060_v16 = vld [vmem:[%s14631_s1 + $0x1f40] ss:$16 sps:$4 sm:$0xff]   ;;  %v11063_v38 = vld [vmem:[%s14631_s1 + $0x1f48] ss:$16 sps:$4 sm:$0xff]  }
 0x3b0   :  { %7423 = vmatprep.subr.bf16.mxu0 %v10978_v51  ;;  %8111 = vmatprep.subr.bf16.mxu1 %v10981_v18  ;;  %v11068_v51 = vld [vmem:[%s14631_s1 + $0x1f64] ss:$16 sps:$4 sm:$0xff]   ;;  %v11071_v18 = vld [vmem:[%s14631_s1 + $0x1f6c] ss:$16 sps:$4 sm:$0xff]  }
 0x3b3   :  { %7424 = vmatpush1.bf16.msra.mxu0 %v10976_v19  ;;  %8112 = vmatpush1.bf16.msra.mxu1 %v10979_v20  ;;  %v11066_v19 = vld [vmem:[%s14631_s1 + $0x1f60] ss:$16 sps:$4 sm:$0xff]   ;;  %v11069_v20 = vld [vmem:[%s14631_s1 + $0x1f68] ss:$16 sps:$4 sm:$0xff]  }
 0x3b4   :  { %7425 = vmatprep.subr.bf16.mxu0 %v10984_v21  ;;  %8113 = vmatprep.subr.bf16.mxu1 %v10987_v58  ;;  %v11074_v21 = vld [vmem:[%s14631_s1 + $0x1f84] ss:$16 sps:$4 sm:$0xff]   ;;  %v11077_v58 = vld [vmem:[%s14631_s1 + $0x1f8c] ss:$16 sps:$4 sm:$0xff]  }
 0x3b7   :  { %7426 = vmatpush1.bf16.msra.mxu0 %v10982_v28  ;;  %8114 = vmatpush1.bf16.msra.mxu1 %v10985_v22  ;;  %v11072_v28 = vld [vmem:[%s14631_s1 + $0x1f80] ss:$16 sps:$4 sm:$0xff]   ;;  %v11075_v22 = vld [vmem:[%s14631_s1 + $0x1f88] ss:$16 sps:$4 sm:$0xff]  }
 0x3b8   :  { %7427 = vmatprep.subr.bf16.mxu0 %v10990_v23  ;;  %8115 = vmatprep.subr.bf16.mxu1 %v10993_v4  ;;  %v11080_v23 = vld [vmem:[%s14631_s1 + $0x1fa4] ss:$16 sps:$4 sm:$0xff]   ;;  %v11083_v4 = vld [vmem:[%s14631_s1 + $0x1fac] ss:$16 sps:$4 sm:$0xff]  }
 0x3bb   :  { %7428 = vmatpush1.bf16.msra.mxu0 %v10988_v12  ;;  %8116 = vmatpush1.bf16.msra.mxu1 %v10991_v26  ;;  %v11078_v12 = vld [vmem:[%s14631_s1 + $0x1fa0] ss:$16 sps:$4 sm:$0xff]   ;;  %v11081_v26 = vld [vmem:[%s14631_s1 + $0x1fa8] ss:$16 sps:$4 sm:$0xff]  }
 0x3bc   :  { %7429 = vmatprep.subr.bf16.mxu0 %v10996_v30  ;;  %8117 = vmatprep.subr.bf16.mxu1 %v10999_v15  ;;  %v11086_v30 = vld [vmem:[%s14631_s1 + $0x1fc4] ss:$16 sps:$4 sm:$0xff]   ;;  %v11089_v15 = vld [vmem:[%s14631_s1 + $0x1fcc] ss:$16 sps:$4 sm:$0xff]  }
 0x3bf   :  { %7430 = vmatpush1.bf16.msra.mxu0 %v10994_v37  ;;  %8118 = vmatpush1.bf16.msra.mxu1 %v10997_v6  ;;  %v11084_v37 = vld [vmem:[%s14631_s1 + $0x1fc0] ss:$16 sps:$4 sm:$0xff]   ;;  %v11087_v6 = vld [vmem:[%s14631_s1 + $0x1fc8] ss:$16 sps:$4 sm:$0xff]  }
 0x3c0   :  { %7442 = vmatprep.subr.bf16.mxu0 %v11002_v39  ;;  %8130 = vmatprep.subr.bf16.mxu1 %v11005_v27  ;;  %v11092_v39 = vld [vmem:[%s14631_s1 + $0x1fe4] ss:$16 sps:$4 sm:$0xff]   ;;  %v11095_v27 = vld [vmem:[%s14631_s1 + $0x1fec] ss:$16 sps:$4 sm:$0xff]  }
 0x3c2   :  { %7432 = vmatmul.mubr.bf16.vlgmr.msra.gmra.mrb[0].mxu0 %v1639_v40  ;;  %8120 = vmatmul.mubr.bf16.vlgmr.msra.gmra.mrb[0].mxu1 %v1639_v40  ;;  %v11090_v40 = vld [vmem:[%s14631_s1 + $0x1fe0] ss:$16 sps:$4 sm:$0xff]  }
 0x3c3   :  { %7443 = vmatpush1.bf16.msra.mxu0 %v11000_v36  ;;  %8131 = vmatpush1.bf16.msra.mxu1 %v11003_v41  ;;  %v11093_v36 = vld [vmem:[%s14631_s1 + $0x1fe8] ss:$16 sps:$4 sm:$0xff]  }
 0x3c4   :  { %7444 = vmatprep.subr.bf16.mxu0 %v11008_v42  ;;  %8132 = vmatprep.subr.bf16.mxu1 %v11011_v24 }
 0x3c5   :  { %7474 = vmatprep.mubr.bf16.mxu0 %v14200_v32  ;;  %8162 = vmatprep.mubr.bf16.mxu1 %v14200_v32  ;;  %v11023_v32 = vld [vmem:[%s14631_s1 + $0x1e6c] ss:$16 sps:$4 sm:$0xff]  }
 0x3c7   :  { %7445 = vmatpush1.bf16.msra.mxu0 %v11006_v25  ;;  %8133 = vmatpush1.bf16.msra.mxu1 %v11009_v43 }
 0x3c8   :  { %7446 = vmatprep.subr.bf16.mxu0 %v11014_v55  ;;  %8134 = vmatprep.subr.bf16.mxu1 %v11017_v44 }
 0x3cb   :  { %7447 = vmatpush1.bf16.msra.mxu0 %v11012_v45  ;;  %8135 = vmatpush1.bf16.msra.mxu1 %v11015_v31 }
 0x3cc   :  { %7448 = vmatprep.subr.bf16.mxu0 %v11020_v47  ;;  %8136 = vmatprep.subr.bf16.mxu1 %v11023_v32 }
 0x3cf   :  { %7449 = vmatpush1.bf16.msra.mxu0 %v11018_v52  ;;  %8137 = vmatpush1.bf16.msra.mxu1 %v11021_v56 }
 0x3d0   :  { %7450 = vmatprep.subr.bf16.mxu0 %v11026_v60  ;;  %8138 = vmatprep.subr.bf16.mxu1 %v11029_v35 }
 0x3d3   :  { %7451 = vmatpush1.bf16.msra.mxu0 %v11024_v62  ;;  %8139 = vmatpush1.bf16.msra.mxu1 %v11027_v63 }
 0x3d4   :  { %7452 = vmatprep.subr.bf16.mxu0 %v11032_v0  ;;  %8140 = vmatprep.subr.bf16.mxu1 %v11035_v1 }
 0x3d7   :  { %7453 = vmatpush1.bf16.msra.mxu0 %v11030_v17  ;;  %8141 = vmatpush1.bf16.msra.mxu1 %v11033_v2 }
 0x3d8   :  { %7454 = vmatprep.subr.bf16.mxu0 %v11038_v7  ;;  %8142 = vmatprep.subr.bf16.mxu1 %v11041_v50 }
 0x3db   :  { %7455 = vmatpush1.bf16.msra.mxu0 %v11036_v29  ;;  %8143 = vmatpush1.bf16.msra.mxu1 %v11039_v61 }
 0x3dc   :  { %7456 = vmatprep.subr.bf16.mxu0 %v11044_v53  ;;  %8144 = vmatprep.subr.bf16.mxu1 %v11047_v8 }
 0x3df   :  { %7457 = vmatpush1.bf16.msra.mxu0 %v11042_v57  ;;  %8145 = vmatpush1.bf16.msra.mxu1 %v11045_v59 }
 0x3e0   :  { %7458 = vmatprep.subr.bf16.mxu0 %v11050_v9  ;;  %8146 = vmatprep.subr.bf16.mxu1 %v11053_v48 }
 0x3e3   :  { %7459 = vmatpush1.bf16.msra.mxu0 %v11048_v49  ;;  %8147 = vmatpush1.bf16.msra.mxu1 %v11051_v33 }
 0x3e4   :  { %7460 = vmatprep.subr.bf16.mxu0 %v11056_v10  ;;  %8148 = vmatprep.subr.bf16.mxu1 %v11059_v11 }
 0x3e7   :  { %7461 = vmatpush1.bf16.msra.mxu0 %v11054_v3  ;;  %8149 = vmatpush1.bf16.msra.mxu1 %v11057_v5 }
 0x3e8   :  { %7462 = vmatprep.subr.bf16.mxu0 %v11062_v13  ;;  %8150 = vmatprep.subr.bf16.mxu1 %v11065_v14 }
 0x3eb   :  { %7463 = vmatpush1.bf16.msra.mxu0 %v11060_v16  ;;  %8151 = vmatpush1.bf16.msra.mxu1 %v11063_v38 }
 0x3ec   :  { %7464 = vmatprep.subr.bf16.mxu0 %v11068_v51  ;;  %8152 = vmatprep.subr.bf16.mxu1 %v11071_v18 }
 0x3ef   :  { %7465 = vmatpush1.bf16.msra.mxu0 %v11066_v19  ;;  %8153 = vmatpush1.bf16.msra.mxu1 %v11069_v20 }
 0x3f0   :  { %7466 = vmatprep.subr.bf16.mxu0 %v11074_v21  ;;  %8154 = vmatprep.subr.bf16.mxu1 %v11077_v58 }
 0x3f3   :  { %7467 = vmatpush1.bf16.msra.mxu0 %v11072_v28  ;;  %8155 = vmatpush1.bf16.msra.mxu1 %v11075_v22 }
 0x3f4   :  { %7468 = vmatprep.subr.bf16.mxu0 %v11080_v23  ;;  %8156 = vmatprep.subr.bf16.mxu1 %v11083_v4 }
 0x3f7   :  { %7469 = vmatpush1.bf16.msra.mxu0 %v11078_v12  ;;  %8157 = vmatpush1.bf16.msra.mxu1 %v11081_v26 }
 0x3f8   :  { %7470 = vmatprep.subr.bf16.mxu0 %v11086_v30  ;;  %8158 = vmatprep.subr.bf16.mxu1 %v11089_v15 }
 0x3fb   :  { %7471 = vmatpush1.bf16.msra.mxu0 %v11084_v37  ;;  %8159 = vmatpush1.bf16.msra.mxu1 %v11087_v6 }
 0x3fc   :  { %7472 = vmatprep.subr.bf16.mxu0 %v11092_v39  ;;  %8160 = vmatprep.subr.bf16.mxu1 %v11095_v27 }
 0x3ff   :  { %7473 = vmatpush1.bf16.msra.mxu0 %v11090_v40  ;;  %8161 = vmatpush1.bf16.msra.mxu1 %v11093_v36 }
 0x402   :  { %7475 = vmatmul.mubr.bf16.vlgmr.msra.gmra.mrb[0].mxu0 %v14204_v34  ;;  %8163 = vmatmul.mubr.bf16.vlgmr.msra.gmra.mrb[0].mxu1 %v14204_v34 }
 0x4d5   :  { %v7476_v41 = vpop.f32.mrb[0].mxu0  ;;  %v8164_v42 = vpop.f32.mrb[0].mxu1 }
 0x4d6   :  { %v8274_v24 = vsel %vm8272_vm0, %v7476_v41, 0.0  ;;  %v8276_v25 = vsel %vm8272_vm0, %v8164_v42, 0.0  ;;  %v7478_v43 = vpop.f32.mrb[1].mxu0  ;;  %v8166_v55 = vpop.f32.mrb[1].mxu1 }
 0x4d7   :  { %v8283_v44 = vrot.slane %v8274_v24, 4  ;;  %v8310_v45 = vmul.f32 %v8274_v24, %v8274_v24  ;;  %v8297_v31 = vrot.slane %v8276_v25, 4  ;;  %v8312_v47 = vmul.f32 %v8276_v25, %v8276_v25  ;;  %v7480_v32 = vpop.f32.mrb[2].mxu0  ;;  %v8168_v52 = vpop.f32.mrb[2].mxu1 }
 0x4d8   :  { %v9431_v34 = vpack.c.bf16 %v7478_v43, %v7476_v41  ;;  %v8275_v56 = vsel %vm8272_vm0, %v7478_v43, 0.0  ;;  %v9433_v60 = vpack.c.bf16 %v8166_v55, %v8164_v42  ;;  %v8277_v35 = vsel %vm8272_vm0, %v8166_v55, 0.0  ;;  %v7482_v62 = vpop.f32.mrb[3].mxu0  ;;  %v8170_v63 = vpop.f32.mrb[3].mxu1 }
 0x4d9   :  { %v8284_v0 = vadd.f32 %v8283_v44, %v8274_v24  ;;  %v8319_v1 = vrot.slane %v8310_v45, 4  ;;  %v8298_v17 = vadd.f32 %v8297_v31, %v8276_v25  ;;  %v8333_v2 = vrot.slane %v8312_v47, 4 }
 0x4da   :  { %v8191_v7 = vrot.slane %v9431_v34, %v11277_v54  ;;  %v8290_v50 = vrot.slane %v8275_v56, 4  ;;  %v8311_v29 = vmul.f32 %v8275_v56, %v8275_v56  ;;  %v8205_v61 = vrot.slane %v9433_v60, %v11277_v54 }
 0x4db   :  { %v8285_v53 = vrot.slane %v8284_v0, 2  ;;  %v8320_v8 = vadd.f32 %v8319_v1, %v8310_v45  ;;  %v8299_v57 = vrot.slane %v8298_v17, 2  ;;  %v8334_v59 = vadd.f32 %v8333_v2, %v8312_v47 }
 0x4dc   :  { %v8291_v9 = vadd.f32 %v8290_v50, %v8275_v56  ;;  %v8326_v48 = vrot.slane %v8311_v29, 4  ;;  %v8213_v49 = vcombine.low %v8191_v7, %v8205_v61  ;;  %v8304_v23 = vrot.slane %v8277_v35, 4 }
 0x4dd   :  { %v8286_v33 = vadd.f32 %v8285_v53, %v8284_v0  ;;  %v8321_v10 = vrot.slane %v8320_v8, 2  ;;  %v8300_v11 = vadd.f32 %v8299_v57, %v8298_v17  ;;  %v8335_v3 = vrot.slane %v8334_v59, 2 }
 0x4de   :  { %v8292_v5 = vrot.slane %v8291_v9, 2  ;;  %v8327_v13 = vadd.f32 %v8326_v48, %v8311_v29  ;;  %9435 = vst.sshfl [vmem:[#allocation2] sm:$0x55 pattern:$0x73625140] %v8213_v49  ;;  %v8313_v4 = vmul.f32 %v8277_v35, %v8277_v35  ;;  %v8305_v39 = vadd.f32 %v8304_v23, %v8277_v35 }
 0x4df   :  { %v8287_v14 = vrot.slane %v8286_v33, 1  ;;  %v8322_v16 = vadd.f32 %v8321_v10, %v8320_v8  ;;  %v8301_v38 = vrot.slane %v8300_v11, 1  ;;  %v8336_v51 = vadd.f32 %v8335_v3, %v8334_v59 }
 0x4e0   :  { %v8293_v18 = vadd.f32 %v8292_v5, %v8291_v9  ;;  %v8328_v54 = vrot.slane %v8327_v13, 2  ;;  %v8340_v27 = vrot.slane %v8313_v4, 4  ;;  %v8306_v43 = vrot.slane %v8305_v39, 2 }
 0x4e1   :  { %v8288_v19 = vadd.f32 %v8287_v14, %v8286_v33  ;;  %v8323_v20 = vrot.slane %v8322_v16, 1  ;;  %v8302_v21 = vadd.f32 %v8301_v38, %v8300_v11  ;;  %v8337_v58 = vrot.slane %v8336_v51, 1 }
 0x4e2   :  { %v8294_v28 = vrot.slane %v8293_v18, 1  ;;  %v8329_v22 = vadd.f32 %v8328_v54, %v8327_v13  ;;  %v8341_v55 = vadd.f32 %v8340_v27, %v8313_v4  ;;  %v8307_v47 = vadd.f32 %v8306_v43, %v8305_v39 }
 0x4e3   :  { %v8324_v12 = vadd.f32 %v8323_v20, %v8322_v16  ;;  %v8347_v26 = vsel %vm8346_vm1, %v8288_v19, 0.0  ;;  %v8338_v30 = vadd.f32 %v8337_v58, %v8336_v51  ;;  %v8349_v15 = vsel %vm8346_vm1, %v8302_v21, 0.0 }
 0x4e4   :  { %v8295_v37 = vadd.f32 %v8294_v28, %v8293_v18  ;;  %v8330_v6 = vrot.slane %v8329_v22, 1  ;;  %v8342_v32 = vrot.slane %v8341_v55, 2  ;;  %v8308_v52 = vrot.slane %v8307_v47, 1 }
 0x4e5   :  { %v8352_v40 = vsel %vm8351_vm2, %v8324_v12, 0.0  ;;  %v8354_v36 = vsel %vm8351_vm2, %v8338_v30, 0.0  ;;  %v8381_v41 = vld [vmem:[#allocation2] sm:$0xf] }
 0x4e6   :  { %v8356_v42 = vadd.f32 %v8352_v40, %v8347_v26  ;;  %v8358_v24 = vadd.f32 %v8354_v36, %v8349_v15  ;;  %v8331_v25 = vadd.f32 %v8330_v6, %v8329_v22  ;;  %8382 = vst [vmem:[%s14632_s2] sm:$0xf] %v8381_v41  ;;  %v8348_v44 = vsel %vm8346_vm1, %v8295_v37, 0.0 }
 0x4e7   :  { %v8343_v34 = vadd.f32 %v8342_v32, %v8341_v55  ;;  %v8309_v56 = vadd.f32 %v8308_v52, %v8307_v47 }
 0x4e8   :  { %8360 = vst [vmem:[%s14633_s3] sm:$0xff] %v8356_v42  ;;  %8362 = vst [vmem:[%s14633_s3 + $0x10] sm:$0xff] %v8358_v24  ;;  %v8353_v45 = vsel %vm8351_vm2, %v8331_v25, 0.0 }
 0x4e9   :  { %v8357_v31 = vadd.f32 %v8353_v45, %v8348_v44  ;;  %v8344_v60 = vrot.slane %v8343_v34, 1  ;;  %v8350_v62 = vsel %vm8346_vm1, %v8309_v56, 0.0 }
 0x4eb   :  { %8361 = vst [vmem:[%s14633_s3 + $0x8] sm:$0xff] %v8357_v31  ;;  %v8345_v35 = vadd.f32 %v8344_v60, %v8343_v34 }
 0x4ed   :  { %v8355_v63 = vsel %vm8351_vm2, %v8345_v35, 0.0 }
 0x4ee   :  { %v8359_v0 = vadd.f32 %v8355_v63, %v8350_v62 }
 0x4f0   :  { %8363 = vst [vmem:[%s14633_s3 + $0x18] sm:$0xff] %v8359_v0 }

// kernel: generator_forward.24
= control target key start
LH: loop header
LB: loop body
LE: loop exit
PB: predicated region body
PF: predicated region fallthrough
CT: control target
= control target key end

     0   :  { %s760_s12 = smov 0   ;;  %s762_s13 = smov 0   ;;  %s836_s0 = inlined_call_operand.vmem [shape: bf16[4,2,256], index: 0, kind: input, shape index: {}]   ;;  %s837_s1 = inlined_call_operand.vmem [shape: f32[1,256], index: 1, kind: input, shape index: {}]   ;;  %s838_s2 = inlined_call_operand.vmem [shape: f32[1,256], index: 2, kind: input, shape index: {}]   ;;  %s839_s3 = inlined_call_operand.vmem [shape: bf16[4,2,256], index: 3, kind: output, shape index: {}]  }
   0x1   :  { %s764_s14 = smov 0   ;;  %s766_s15 = smov 0  }
   0x2   :  { %s768_s16 = smov 0  }
   0x3 LB: > { %s585_s17 = sadd.s32 4294967295, %s732_s16   ;;  %s25_s18 = sadd.s32 1, %s728_s15  ;;  %s732_s16 = sphi %s768_s16, %s13_s16   ;;  %s728_s15 = sphi %s766_s15, %s844_s15   ;;  %s724_s14 = sphi %s764_s14, %s843_s14   ;;  %s720_s13 = sphi %s762_s13, %s842_s13   ;;  %s716_s12 = sphi %s760_s12, %s841_s12  }
   0x4   : > { %p27_p0 = scmp.ge.s32.totalorder %s25_s18, 4  ;;  %s104_s19 = sadd.s32 1, %s720_s13 }
   0x5   : > { %p114_p1 = scmp.ne.s32.totalorder %s720_s13, %s716_s12  ;;  %p115_p2 = scmp.eq.s32.totalorder %s585_s17, 3 }
   0x6   : > { %s846_s18 = smov (%p27_p0, %s25_s18), 0  ;;  %p589_p4 = scmp.ge.s32.totalorder %s732_s16, 1 }
   0x7   : > { %p792_p3 = por %p115_p2, %p114_p1  ;;  %s99_s21 = ssub.s32 %s728_s15, %s846_s18 }
   0x8   : > { %p164_p5 = scmp.lt.s32.totalorder %s732_s16, 5  ;;  %p102_p6 = scmp.eq.s32.totalorder %s99_s21, 0 }
   0xa   : > { %p165_p7 = pnand %p589_p4, %p164_p5 }
   0xb   : > { %s801_s22 = scalar_select %p102_p6, %s720_s13, %s104_s19  }
   0xc   : > { %168 = sbr.rel (%p165_p7) target bundleno = 54 (0x36), region = 32  ;;  %p198_p8 = scmp.lt.s32.totalorder (!%p165_p7), %s724_s14, 3  ;;  %v232_v0 = vlaneseq (!%p165_p7)  ;;  %v738_v1 = vmov (!%p165_p7), 1983009808   ;;  %v230_v4 = vld [vmem:[%s837_s1] sm:$0x3] (!%p165_p7) }
   0xd   : > { %v243_v2 = vunpack.c.l.s4 (!%p165_p7), %v738_v1  ;;  %v270_v6 = vld [vmem:[%s838_s2] sm:$0x3] (!%p165_p7)  ;;  %v739_v32 = vmov (!%p165_p7), 1966171168   ;;  %s191_s5 = sand.u32 (!%p165_p7), 1, %s716_s12  }
   0xe   : > { %v233_v3 = vshrl.u32 (!%p165_p7), %v232_v0, 7  ;;  %v373_v33 = vunpack.c.l.s4 (!%p165_p7), %v739_v32  ;;  %s590_s6 = sshll.u32 (!%p165_p7), %s191_s5, 4 }
   0xf   : > { %v244_v5 = vunpack.c.0.s8 (!%p165_p7), %v243_v2  ;;  %s193_s7 = scalar_lea.vmem (!%p165_p7), [#allocation2], %s590_s6  }
  0x10   : > { %v234_v7 = vsub.s32 (!%p165_p7), 0, %v233_v3  ;;  %v238_v8 = vsub.s32 (!%p165_p7), 1, %v233_v3  ;;  %v374_v49 = vunpack.c.0.s8 (!%p165_p7), %v373_v33 }
  0x11   : > { %v247_v9 = vsub.s32 (!%p165_p7), %v244_v5, %v233_v3 }
  0x12   : > { %v235_v10 = vrot.slane (!%p165_p7), %v230_v4, %v234_v7  ;;  %v239_v11 = vrot.slane (!%p165_p7), %v230_v4, %v238_v8  ;;  %v275_v12 = vrot.slane (!%p165_p7), %v270_v6, %v234_v7  ;;  %v279_v13 = vrot.slane (!%p165_p7), %v270_v6, %v238_v8 }
  0x13   : > { %s199_s23 = scalar_select %p198_p8, %s724_s14, 3  ;;  %v377_v53 = vsub.s32 %v374_v49, %v233_v3 }
  0x14   : > { %v240_v21 = vcombine.low %v235_v10, %v239_v11  ;;  %v241_v23 = vcombine.high %v235_v10, %v239_v11  ;;  %v280_v24 = vcombine.low %v275_v12, %v279_v13  ;;  %v281_v25 = vcombine.high %v275_v12, %v279_v13  ;;  %s599_s8 = sshll.u32 (%p792_p3), %s724_s14, 1  ;;  %s734_s12 = smov (%p792_p3), 0  }
  0x15   : > { %s591_s28 = sshll.u32 %s199_s23, 1  ;;  %s451_s11 = scalar_lea.vmem (%p792_p3), %s839_s3, %s599_s8  }
  0x16   : > { %s205_s4 = scalar_lea.vmem %s836_s0, %s591_s28  ;;  %v248_v26 = vrot.slane %v240_v21, %v247_v9  ;;  %v255_v27 = vrot.slane %v241_v23, %v247_v9  ;;  %v288_v28 = vrot.slane %v280_v24, %v247_v9  ;;  %v295_v29 = vrot.slane %v281_v25, %v247_v9 }
  0x17   : > { %v214_v14 = vld [vmem:[%s205_s4] sm:$0x3]  ;;  %v215_v15 = vld [vmem:[%s205_s4 + $0x2] sm:$0x3]  ;;  %v216_v16 = vld [vmem:[%s205_s4 + $0x4] sm:$0x3] }
  0x18   : > { %v217_v17 = vld [vmem:[%s205_s4 + $0x6] sm:$0x3]  ;;  %v222_v18 = vunpack.c.l.bf16 %v214_v14  ;;  %v223_v19 = vunpack.c.l.bf16 %v215_v15  ;;  %v224_v20 = vunpack.c.l.bf16 %v216_v16  ;;  %v256_v30 = vcombine.high %v248_v26, %v248_v26 }
  0x19   : > { %v225_v22 = vunpack.c.l.bf16 %v217_v17  ;;  %v257_v34 = vcombine.high %v255_v27, %v255_v27  ;;  %v296_v36 = vcombine.high %v288_v28, %v288_v28  ;;  %v297_v37 = vcombine.high %v295_v29, %v295_v29 }
  0x1a   : > { %v262_v31 = vmul.f32 %v248_v26, %v222_v18  ;;  %v264_v35 = vmul.f32 %v255_v27, %v224_v20  ;;  %v263_v38 = vmul.f32 %v256_v30, %v223_v19 }
  0x1b   : > { %v265_v40 = vmul.f32 %v257_v34, %v225_v22 }
  0x1c   : > { %v302_v39 = vadd.f32 %v288_v28, %v262_v31  ;;  %v304_v41 = vadd.f32 %v295_v29, %v264_v35  ;;  %v303_v42 = vadd.f32 %v296_v36, %v263_v38 }
  0x1d   : > { %v305_v44 = vadd.f32 %v297_v37, %v265_v40 }
  0x1e   : > { %v310_v43 = vmax.f32 %v302_v39, 0.0  ;;  %v312_v45 = vmax.f32 %v304_v41, 0.0  ;;  %v311_v46 = vmax.f32 %v303_v42, 0.0 }
  0x1f   : > { %v313_v47 = vmax.f32 %v305_v44, 0.0 }
  0x20   : > { %v326_v48 = vcombine.low %v310_v43, %v311_v46 }
  0x21   : > { %v327_v50 = vcombine.low %v312_v45, %v313_v47 }
  0x22   : > { %v334_v51 = vrot.slane %v326_v48, %v247_v9 }
  0x23   : > { %v341_v52 = vrot.slane %v327_v50, %v247_v9 }
  0x25   : > { %v342_v54 = vcombine.low %v334_v51, %v341_v52  ;;  %v343_v55 = vcombine.high %v334_v51, %v341_v52  ;;  %442 = sbr.rel (!%p792_p3) target bundleno = 54 (0x36), region = 36 }
  0x27   : > { %v592_v56 = vpack.c.bf16 %v343_v55, %v342_v54 }
  0x29   : > { %v378_v57 = vrot.slane %v592_v56, %v377_v53 }
  0x2b   : > { %594 = vst.sshfl [vmem:[%s193_s7] sm:$0x5 pattern:$0x73625140] %v378_v57 }
  0x2c LB: >> { %s463_s12 = sadd.s32 1, %s736_s12   ;;  %s736_s12 = sphi %s734_s12, %s463_s12  }
  0x2d   : >> { %p462_p9 = scmp.ge.s32.totalorder %s463_s12, 1 }
  0x2f   : > { %465 = sbr.rel (!%p462_p9) target bundleno = 44 (0x2c), region = 96 }
  0x32   : >> { %v469_v58 = vld [vmem:[%s193_s7] sm:$0x3] }
  0x33   : >> { %470 = vst [vmem:[%s451_s11] sm:$0x3] %v469_v58 }
  0x36 PF: > { %s13_s16 = sadd.s32 1, %s732_s16   ;;  %s841_s12 = smov %s720_s13 }
  0x37   : > { %p10_p10 = scmp.ge.s32.totalorder %s13_s16, 6   ;;  %s842_s13 = smov %s801_s22 }
  0x38   : > { %s843_s14 = smov %s728_s15  ;;  %s844_s15 = smov %s846_s18 }
  0x39   :  { %12 = sbr.rel (!%p10_p10) target bundleno = 3 (0x3), region = 107 }

// kernel: generator_forward.23
= control target key start
LH: loop header
LB: loop body
LE: loop exit
PB: predicated region body
PF: predicated region fallthrough
CT: control target
= control target key end

     0   :  { %s3667_s12 = smov 0   ;;  %s3669_s13 = smov 0   ;;  %s4145_s0 = inlined_call_operand.vmem [shape: bf16[4,2,2048], index: 0, kind: input, shape index: {}]   ;;  %s4146_s1 = inlined_call_operand.vmem [shape: bf16[4,2048,256], index: 1, kind: input, shape index: {}]   ;;  %s4147_s2 = inlined_call_operand.vmem [shape: bf16[4,2,256], index: 2, kind: output, shape index: {0}]   ;;  %s4148_s3 = inlined_call_operand.vmem [shape: f32[4,1,8,256], index: 3, kind: output, shape index: {1}]  }
   0x1   :  { %s3671_s14 = smov 0   ;;  %s3673_s15 = smov 0  }
   0x2   :  { %s3675_s16 = smov 0  }
   0x3 LB: > { %s2796_s17 = sadd.s32 4294967295, %s3640_s16   ;;  %s26_s18 = sadd.s32 1, %s3636_s15  ;;  %s3640_s16 = sphi %s3675_s16, %s14_s16   ;;  %s3636_s15 = sphi %s3673_s15, %s4153_s15   ;;  %s3632_s14 = sphi %s3671_s14, %s4152_s14   ;;  %s3628_s13 = sphi %s3669_s13, %s4151_s13   ;;  %s3624_s12 = sphi %s3667_s12, %s4150_s12  }
   0x4   : > { %p28_p0 = scmp.ge.s32.totalorder %s26_s18, 4  ;;  %s89_s19 = sadd.s32 1, %s3628_s13 }
   0x5   : > { %p99_p1 = scmp.ne.s32.totalorder %s3628_s13, %s3624_s12  ;;  %p100_p2 = scmp.eq.s32.totalorder %s2796_s17, 3 }
   0x6   : > { %s4155_s18 = smov (%p28_p0, %s26_s18), 0  ;;  %p2800_p4 = scmp.ge.s32.totalorder %s3640_s16, 1 }
   0x7   : > { %p3699_p3 = por %p100_p2, %p99_p1  ;;  %s84_s21 = ssub.s32 %s3636_s15, %s4155_s18 }
   0x8   : > { %p179_p5 = scmp.lt.s32.totalorder %s3640_s16, 5  ;;  %p87_p6 = scmp.eq.s32.totalorder %s84_s21, 0 }
   0xa   : > { %p180_p7 = pnand %p2800_p4, %p179_p5 }
   0xb   : > { %s3708_s22 = scalar_select %p87_p6, %s3628_s13, %s89_s19  }
   0xc   : > { %183 = sbr.rel (%p180_p7) target bundleno = 525 (0x20d), region = 28  ;;  %p227_p8 = scmp.lt.s32.totalorder (!%p180_p7), %s3632_s14, 3  ;;  %v3646_v39 = vmov (!%p180_p7), 1966171168   ;;  %v556_v41 = vlaneseq (!%p180_p7) }
   0xd   : > { %v554_v40 = vunpack.c.l.s4 (!%p180_p7), %v3646_v39  ;;  %s209_s5 = sand.u32 (!%p180_p7), 1, %s3624_s12  }
   0xe   : > { %v3765_v48 = vshrl.u32 (!%p180_p7), %v556_v41, 7  ;;  %s4109_s6 = sshll.u32 (!%p180_p7), %s209_s5, 4 }
   0xf   : > { %v555_v47 = vunpack.c.0.s8 (!%p180_p7), %v554_v40  ;;  %s211_s7 = scalar_lea.vmem (!%p180_p7), [#allocation2], %s4109_s6  }
  0x10   : > { %vm2534_vm0 = vcmp.lt.s32.totalorder (!%p180_p7), %v3765_v48, 2  ;;  %vm2572_vm1 = vcmp.eq.s32.totalorder (!%p180_p7), %v3765_v48, 0  ;;  %vm2575_vm2 = vcmp.eq.s32.totalorder (!%p180_p7), %v3765_v48, 1 }
  0x11   : > { %v3780_v54 = vsub.s32 (!%p180_p7), %v555_v47, %v3765_v48 }
  0x13   : > { %s3712_s23 = scalar_select %p227_p8, %s3632_s14, 3 }
  0x14   : > { %s3070_s11 = sshll.u32 (%p3699_p3), %s3632_s14, 1  ;;  %s3642_s21 = smov (%p3699_p3), 0  }
  0x15   : > { %s3075_s24 = sshll.u32 %s3712_s23, 11  ;;  %s2802_s28 = sshll.u32 %s3712_s23, 4 }
  0x16   : > { %s3718_s27 = scalar_lea.vmem %s4146_s1, %s3075_s24  ;;  %s3774_s4 = scalar_lea.vmem %s4145_s0, %s2802_s28 }
  0x17   : > { %v3178_v0 = vld [vmem:[%s3718_s27 + $0x4] ss:$8 sps:$4 sm:$0xff]   ;;  %v3182_v2 = vld [vmem:[%s3718_s27] ss:$8 sps:$4 sm:$0xff]   ;;  %v3184_v4 = vld [vmem:[%s3718_s27 + $0x14] ss:$8 sps:$4 sm:$0xff]   ;;  %s256_s10 = scalar_lea.vmem %s4148_s3, %s2802_s28  ;;  %s2606_s19 = scalar_lea.vmem (%p3699_p3), %s4147_s2, %s3070_s11  }
  0x18   : > { %v3180_v1 = vld [vmem:[%s3718_s27 + $0x404] ss:$8 sps:$4 sm:$0xff]   ;;  %2113 = vmatprep.subr.bf16.mxu1 %v3178_v0  ;;  %v3183_v3 = vld [vmem:[%s3718_s27 + $0x400] ss:$8 sps:$4 sm:$0xff]   ;;  %v3186_v5 = vld [vmem:[%s3718_s27 + $0x414] ss:$8 sps:$4 sm:$0xff]  }
  0x19   : > { %2285 = vmatprep.subr.bf16.mxu0 %v3180_v1  ;;  %2114 = vmatpush1.bf16.msra.mxu1 %v3182_v2  ;;  %v3188_v6 = vld [vmem:[%s3718_s27 + $0x10] ss:$8 sps:$4 sm:$0xff]   ;;  %v3190_v8 = vld [vmem:[%s3718_s27 + $0x24] ss:$8 sps:$4 sm:$0xff]   ;;  %v3194_v10 = vld [vmem:[%s3718_s27 + $0x20] ss:$8 sps:$4 sm:$0xff]  }
  0x1a   : > { %2286 = vmatpush1.bf16.msra.mxu0 %v3183_v3  ;;  %2115 = vmatprep.subr.bf16.mxu1 %v3184_v4  ;;  %v3189_v7 = vld [vmem:[%s3718_s27 + $0x410] ss:$8 sps:$4 sm:$0xff]   ;;  %v3192_v9 = vld [vmem:[%s3718_s27 + $0x424] ss:$8 sps:$4 sm:$0xff]   ;;  %v3195_v11 = vld [vmem:[%s3718_s27 + $0x420] ss:$8 sps:$4 sm:$0xff]  }
  0x1b   : > { %2287 = vmatprep.subr.bf16.mxu0 %v3186_v5  ;;  %v3196_v12 = vld [vmem:[%s3718_s27 + $0x34] ss:$8 sps:$4 sm:$0xff]   ;;  %v3200_v14 = vld [vmem:[%s3718_s27 + $0x30] ss:$8 sps:$4 sm:$0xff]   ;;  %v3202_v16 = vld [vmem:[%s3718_s27 + $0x44] ss:$8 sps:$4 sm:$0xff]  }
  0x1c   : > { %v3198_v13 = vld [vmem:[%s3718_s27 + $0x434] ss:$8 sps:$4 sm:$0xff]   ;;  %v3201_v15 = vld [vmem:[%s3718_s27 + $0x430] ss:$8 sps:$4 sm:$0xff]   ;;  %v3204_v17 = vld [vmem:[%s3718_s27 + $0x444] ss:$8 sps:$4 sm:$0xff]  }
  0x1d   : > { %2116 = vmatpush1.bf16.msra.mxu1 %v3188_v6  ;;  %v3206_v18 = vld [vmem:[%s3718_s27 + $0x40] ss:$8 sps:$4 sm:$0xff]   ;;  %v3208_v20 = vld [vmem:[%s3718_s27 + $0x54] ss:$8 sps:$4 sm:$0xff]   ;;  %v3212_v22 = vld [vmem:[%s3718_s27 + $0x50] ss:$8 sps:$4 sm:$0xff]  }
  0x1e   : > { %2288 = vmatpush1.bf16.msra.mxu0 %v3189_v7  ;;  %2117 = vmatprep.subr.bf16.mxu1 %v3190_v8  ;;  %v3207_v19 = vld [vmem:[%s3718_s27 + $0x440] ss:$8 sps:$4 sm:$0xff]   ;;  %v3210_v21 = vld [vmem:[%s3718_s27 + $0x454] ss:$8 sps:$4 sm:$0xff]   ;;  %v3213_v23 = vld [vmem:[%s3718_s27 + $0x450] ss:$8 sps:$4 sm:$0xff]  }
  0x1f   : > { %2289 = vmatprep.subr.bf16.mxu0 %v3192_v9  ;;  %v3214_v24 = vld [vmem:[%s3718_s27 + $0x64] ss:$8 sps:$4 sm:$0xff]   ;;  %v3218_v26 = vld [vmem:[%s3718_s27 + $0x60] ss:$8 sps:$4 sm:$0xff]   ;;  %v3220_v28 = vld [vmem:[%s3718_s27 + $0x74] ss:$8 sps:$4 sm:$0xff]  }
  0x20   : > { %v3216_v25 = vld [vmem:[%s3718_s27 + $0x464] ss:$8 sps:$4 sm:$0xff]   ;;  %v3219_v27 = vld [vmem:[%s3718_s27 + $0x460] ss:$8 sps:$4 sm:$0xff]   ;;  %v3222_v29 = vld [vmem:[%s3718_s27 + $0x474] ss:$8 sps:$4 sm:$0xff]  }
  0x21   : > { %2118 = vmatpush1.bf16.msra.mxu1 %v3194_v10  ;;  %v3224_v30 = vld [vmem:[%s3718_s27 + $0x70] ss:$8 sps:$4 sm:$0xff]   ;;  %v3226_v32 = vld [vmem:[%s3718_s27 + $0x84] ss:$8 sps:$4 sm:$0xff]   ;;  %v3230_v34 = vld [vmem:[%s3718_s27 + $0x80] ss:$8 sps:$4 sm:$0xff]  }
  0x22   : > { %2290 = vmatpush1.bf16.msra.mxu0 %v3195_v11  ;;  %2119 = vmatprep.subr.bf16.mxu1 %v3196_v12  ;;  %v3225_v31 = vld [vmem:[%s3718_s27 + $0x470] ss:$8 sps:$4 sm:$0xff]   ;;  %v3228_v33 = vld [vmem:[%s3718_s27 + $0x484] ss:$8 sps:$4 sm:$0xff]   ;;  %v3231_v35 = vld [vmem:[%s3718_s27 + $0x480] ss:$8 sps:$4 sm:$0xff]  }
  0x23   : > { %2291 = vmatprep.subr.bf16.mxu0 %v3198_v13  ;;  %v3232_v36 = vld [vmem:[%s3718_s27 + $0x94] ss:$8 sps:$4 sm:$0xff]   ;;  %v3236_v38 = vld [vmem:[%s3718_s27 + $0x90] ss:$8 sps:$4 sm:$0xff]   ;;  %v3238_v43 = vld [vmem:[%s3718_s27 + $0xa4] ss:$8 sps:$4 sm:$0xff]  }
  0x24   : > { %v3234_v37 = vld [vmem:[%s3718_s27 + $0x494] ss:$8 sps:$4 sm:$0xff]   ;;  %v3237_v42 = vld [vmem:[%s3718_s27 + $0x490] ss:$8 sps:$4 sm:$0xff]   ;;  %v3240_v44 = vld [vmem:[%s3718_s27 + $0x4a4] ss:$8 sps:$4 sm:$0xff]  }
  0x25   : > { %2120 = vmatpush1.bf16.msra.mxu1 %v3200_v14  ;;  %v3242_v45 = vld [vmem:[%s3718_s27 + $0xa0] ss:$8 sps:$4 sm:$0xff]   ;;  %v3244_v49 = vld [vmem:[%s3718_s27 + $0xb4] ss:$8 sps:$4 sm:$0xff]   ;;  %v3248_v51 = vld [vmem:[%s3718_s27 + $0xb0] ss:$8 sps:$4 sm:$0xff]  }
  0x26   : > { %2292 = vmatpush1.bf16.msra.mxu0 %v3201_v15  ;;  %2121 = vmatprep.subr.bf16.mxu1 %v3202_v16  ;;  %v3243_v46 = vld [vmem:[%s3718_s27 + $0x4a0] ss:$8 sps:$4 sm:$0xff]   ;;  %v3246_v50 = vld [vmem:[%s3718_s27 + $0x4b4] ss:$8 sps:$4 sm:$0xff]   ;;  %v3249_v52 = vld [vmem:[%s3718_s27 + $0x4b0] ss:$8 sps:$4 sm:$0xff]  }
  0x27   : > { %2293 = vmatprep.subr.bf16.mxu0 %v3204_v17  ;;  %v3250_v53 = vld [vmem:[%s3718_s27 + $0xc4] ss:$8 sps:$4 sm:$0xff]   ;;  %v3274_v56 = vld [vmem:[%s3774_s4] ss:$16 sps:$4 sm:$0xff]   ;;  %v3256_v63 = vld [vmem:[%s3718_s27 + $0xd4] ss:$8 sps:$4 sm:$0xff]  }
  0x28   : > { %v3252_v55 = vld [vmem:[%s3718_s27 + $0x4c4] ss:$8 sps:$4 sm:$0xff]   ;;  %v3277_v57 = vld [vmem:[%s3774_s4 + $0x20] ss:$16 sps:$4 sm:$0xff]   ;;  %v559_v62 = vrot.slane %v3274_v56, %v3780_v54  ;;  %v3258_v2 = vld [vmem:[%s3718_s27 + $0x4d4] ss:$8 sps:$4 sm:$0xff]  }
  0x29   : > { %2122 = vmatpush1.bf16.msra.mxu1 %v3206_v18  ;;  %v3280_v58 = vld [vmem:[%s3774_s4 + $0x40] ss:$16 sps:$4 sm:$0xff]   ;;  %v573_v0 = vrot.slane %v3277_v57, %v3780_v54  ;;  %v3289_v11 = vld [vmem:[%s3774_s4 + $0x8] ss:$16 sps:$4 sm:$0xff]   ;;  %v3262_v13 = vld [vmem:[%s3718_s27 + $0xe4] ss:$8 sps:$4 sm:$0xff]  }
  0x2a   : > { %2294 = vmatpush1.bf16.msra.mxu0 %v3207_v19  ;;  %2123 = vmatprep.subr.bf16.mxu1 %v3208_v20  ;;  %v3254_v59 = vld [vmem:[%s3718_s27 + $0xc0] ss:$8 sps:$4 sm:$0xff]   ;;  %v587_v1 = vrot.slane %v3280_v58, %v3780_v54  ;;  %v3260_v4 = vld [vmem:[%s3718_s27 + $0xd0] ss:$8 sps:$4 sm:$0xff]   ;;  %v3264_v14 = vld [vmem:[%s3718_s27 + $0x4e4] ss:$8 sps:$4 sm:$0xff]   ;;  %v695_v18 = vrot.slane %v3289_v11, %v3780_v54 }
  0x2b   : > { %2295 = vmatprep.subr.bf16.mxu0 %v3210_v21  ;;  %v3255_v60 = vld [vmem:[%s3718_s27 + $0x4c0] ss:$8 sps:$4 sm:$0xff]   ;;  %v610_v5 = vcombine.high %v559_v62, %v573_v0  ;;  %v609_v7 = vcombine.low %v559_v62, %v573_v0  ;;  %v3261_v9 = vld [vmem:[%s3718_s27 + $0x4d0] ss:$8 sps:$4 sm:$0xff]   ;;  %v3288_v40 = vld [vmem:[%s3718_s27 + $0x104] ss:$8 sps:$4 sm:$0xff]  }
  0x2c   : > { %v3283_v61 = vld [vmem:[%s3774_s4 + $0x60] ss:$16 sps:$4 sm:$0xff]   ;;  %v3292_v12 = vld [vmem:[%s3774_s4 + $0x28] ss:$16 sps:$4 sm:$0xff]   ;;  %v3312_v56 = vld [vmem:[%s3718_s27 + $0x124] ss:$8 sps:$4 sm:$0xff]  }
  0x2d   : > { %2124 = vmatpush1.bf16.msra.mxu1 %v3212_v22  ;;  %v601_v3 = vrot.slane %v3283_v61, %v3780_v54  ;;  %v3798_v10 = vrot.slane %v610_v5, %v3780_v54  ;;  %v3295_v16 = vld [vmem:[%s3774_s4 + $0x48] ss:$16 sps:$4 sm:$0xff]   ;;  %v709_v19 = vrot.slane %v3292_v12, %v3780_v54  ;;  %v3315_v57 = vld [vmem:[%s3718_s27 + $0x524] ss:$8 sps:$4 sm:$0xff]   ;;  %v3321_v61 = vld [vmem:[%s3718_s27 + $0x534] ss:$8 sps:$4 sm:$0xff]  }
  0x2e   : > { %2296 = vmatpush1.bf16.msra.mxu0 %v3213_v23  ;;  %2125 = vmatprep.subr.bf16.mxu1 %v3214_v24  ;;  %v3298_v17 = vld [vmem:[%s3774_s4 + $0x68] ss:$16 sps:$4 sm:$0xff]   ;;  %v723_v23 = vrot.slane %v3295_v16, %v3780_v54  ;;  %v3814_v24 = vrot.slane %v609_v7, %v3780_v54  ;;  %v3324_v0 = vld [vmem:[%s3718_s27 + $0x144] ss:$8 sps:$4 sm:$0xff]   ;;  %v3333_v5 = vld [vmem:[%s3718_s27 + $0x554] ss:$8 sps:$4 sm:$0xff]  }
  0x2f   : > { %2297 = vmatprep.subr.bf16.mxu0 %v3216_v25  ;;  %v614_v6 = vcombine.high %v587_v1, %v601_v3  ;;  %v613_v8 = vcombine.low %v587_v1, %v601_v3  ;;  %v3266_v20 = vld [vmem:[%s3718_s27 + $0xe0] ss:$8 sps:$4 sm:$0xff]   ;;  %v3316_v62 = vld [vmem:[%s3718_s27 + $0x130] ss:$8 sps:$4 sm:$0xff]   ;;  %v3327_v1 = vld [vmem:[%s3718_s27 + $0x544] ss:$8 sps:$4 sm:$0xff]  }
  0x30   : > { %v3267_v21 = vld [vmem:[%s3718_s27 + $0x4e0] ss:$8 sps:$4 sm:$0xff]   ;;  %v3331_v7 = vld [vmem:[%s3718_s27 + $0x550] ss:$8 sps:$4 sm:$0xff]   ;;  %v3342_v12 = vld [vmem:[%s3718_s27 + $0x174] ss:$8 sps:$4 sm:$0xff]  }
  0x31   : > { %2126 = vmatpush1.bf16.msra.mxu1 %v3218_v26  ;;  %v665_v15 = vrot.slane %v614_v6, %v3780_v54  ;;  %v3817_v25 = vrot.slane %v613_v8, %v3780_v54  ;;  %v3268_v26 = vld [vmem:[%s3718_s27 + $0xf4] ss:$8 sps:$4 sm:$0xff]   ;;  %v3310_v58 = vld [vmem:[%s3718_s27 + $0x120] ss:$8 sps:$4 sm:$0xff]   ;;  %v3328_v6 = vld [vmem:[%s3718_s27 + $0x150] ss:$8 sps:$4 sm:$0xff]  }
  0x32   : > { %2298 = vmatpush1.bf16.msra.mxu0 %v3219_v27  ;;  %2127 = vmatprep.subr.bf16.mxu1 %v3220_v28  ;;  %v737_v27 = vrot.slane %v3298_v17, %v3780_v54  ;;  %v746_v28 = vcombine.high %v695_v18, %v709_v19  ;;  %v3325_v3 = vld [vmem:[%s3718_s27 + $0x540] ss:$8 sps:$4 sm:$0xff]   ;;  %v3336_v8 = vld [vmem:[%s3718_s27 + $0x164] ss:$8 sps:$4 sm:$0xff]  }
  0x33   : > { %2299 = vmatprep.subr.bf16.mxu0 %v3222_v29  ;;  %v677_v22 = vcombine.low %v3798_v10, %v665_v15  ;;  %v745_v29 = vcombine.low %v695_v18, %v709_v19  ;;  %v3337_v11 = vld [vmem:[%s3718_s27 + $0x560] ss:$8 sps:$4 sm:$0xff]   ;;  %v3348_v16 = vld [vmem:[%s3718_s27 + $0x184] ss:$8 sps:$4 sm:$0xff]  }
  0x34   : > { %v3351_v17 = vld [vmem:[%s3718_s27 + $0x584] ss:$8 sps:$4 sm:$0xff]   ;;  %v3346_v18 = vld [vmem:[%s3718_s27 + $0x180] ss:$8 sps:$4 sm:$0xff]  }
  0x35   : > { %2128 = vmatpush1.bf16.msra.mxu1 %v3224_v30  ;;  %v3270_v30 = vld [vmem:[%s3718_s27 + $0x4f4] ss:$8 sps:$4 sm:$0xff]   ;;  %2145 = vmatprep.mubr.bf16.mxu1 %v677_v22  ;;  %v3349_v19 = vld [vmem:[%s3718_s27 + $0x580] ss:$8 sps:$4 sm:$0xff]   ;;  %v3352_v22 = vld [vmem:[%s3718_s27 + $0x190] ss:$8 sps:$4 sm:$0xff]  }
  0x36   : > { %2300 = vmatpush1.bf16.msra.mxu0 %v3225_v31  ;;  %2129 = vmatprep.subr.bf16.mxu1 %v3226_v32  ;;  %v674_v31 = vcombine.high %v3814_v24, %v3817_v25  ;;  %v750_v32 = vcombine.high %v723_v23, %v737_v27 }
  0x37   : > { %2301 = vmatprep.subr.bf16.mxu0 %v3228_v33  ;;  %v773_v33 = vrot.slane %v746_v28, %v3780_v54  ;;  %v3358_v28 = vld [vmem:[%s3718_s27 + $0x1a0] ss:$8 sps:$4 sm:$0xff]  }
  0x39   : > { %2130 = vmatpush1.bf16.msra.mxu1 %v3230_v34  ;;  %v749_v34 = vcombine.low %v723_v23, %v737_v27  ;;  %v3355_v23 = vld [vmem:[%s3718_s27 + $0x590] ss:$8 sps:$4 sm:$0xff]   ;;  %v3363_v27 = vld [vmem:[%s3718_s27 + $0x5a4] ss:$8 sps:$4 sm:$0xff]  }
  0x3a   : > { %2302 = vmatpush1.bf16.msra.mxu0 %v3231_v35  ;;  %2131 = vmatprep.subr.bf16.mxu1 %v3232_v36  ;;  %v3272_v35 = vld [vmem:[%s3718_s27 + $0xf0] ss:$8 sps:$4 sm:$0xff]   ;;  %v3827_v36 = vrot.slane %v745_v29, %v3780_v54  ;;  %v3361_v29 = vld [vmem:[%s3718_s27 + $0x5a0] ss:$8 sps:$4 sm:$0xff]  }
  0x3b   : > { %2303 = vmatprep.subr.bf16.mxu0 %v3234_v37  ;;  %v3273_v37 = vld [vmem:[%s3718_s27 + $0x4f0] ss:$8 sps:$4 sm:$0xff]   ;;  %v3832_v39 = vrot.slane %v749_v34, %v3780_v54 }
  0x3c   : > { %v3367_v34 = vld [vmem:[%s3718_s27 + $0x5b0] ss:$8 sps:$4 sm:$0xff]  }
  0x3d   : > { %2132 = vmatpush1.bf16.msra.mxu1 %v3236_v38  ;;  %v801_v38 = vrot.slane %v750_v32, %v3780_v54  ;;  %v809_v47 = vcombine.low %v3827_v36, %v3832_v39  ;;  %v3369_v32 = vld [vmem:[%s3718_s27 + $0x5b4] ss:$8 sps:$4 sm:$0xff]  }
  0x3e   : > { %2304 = vmatpush1.bf16.msra.mxu0 %v3237_v42  ;;  %2133 = vmatprep.subr.bf16.mxu1 %v3238_v43  ;;  %v3303_v42 = vld [vmem:[%s3718_s27 + $0x504] ss:$8 sps:$4 sm:$0xff]   ;;  %v810_v43 = vcombine.high %v3827_v36, %v3832_v39  ;;  %v3417_v36 = vld [vmem:[%s3718_s27 + $0x634] ss:$8 sps:$4 sm:$0xff]   ;;  %v3412_v39 = vld [vmem:[%s3718_s27 + $0x230] ss:$8 sps:$4 sm:$0xff]  }
  0x3f   : > { %2305 = vmatprep.subr.bf16.mxu0 %v3240_v44  ;;  %v813_v41 = vcombine.low %v773_v33, %v801_v38  ;;  %v3286_v44 = vld [vmem:[%s3718_s27 + $0x100] ss:$8 sps:$4 sm:$0xff]  }
  0x41   : > { %2134 = vmatpush1.bf16.msra.mxu1 %v3242_v45  ;;  %v3301_v45 = vld [vmem:[%s3718_s27 + $0x500] ss:$8 sps:$4 sm:$0xff]   ;;  %2317 = vmatprep.mubr.bf16.mxu0 %v813_v41  ;;  %v3282_v41 = vld [vmem:[%s3774_s4 + $0x44] ss:$16 sps:$4 sm:$0xff]  }
  0x42   : > { %2306 = vmatpush1.bf16.msra.mxu0 %v3243_v46  ;;  %2135 = vmatprep.subr.bf16.mxu1 %v3244_v49  ;;  %v673_v46 = vcombine.low %v3814_v24, %v3817_v25  ;;  %v3306_v49 = vld [vmem:[%s3718_s27 + $0x114] ss:$8 sps:$4 sm:$0xff]   ;;  %v3406_v24 = vld [vmem:[%s3718_s27 + $0x220] ss:$8 sps:$4 sm:$0xff]  }
  0x43   : > { %2307 = vmatprep.subr.bf16.mxu0 %v3246_v50  ;;  %v3309_v50 = vld [vmem:[%s3718_s27 + $0x514] ss:$8 sps:$4 sm:$0xff]   ;;  %v3409_v25 = vld [vmem:[%s3718_s27 + $0x620] ss:$8 sps:$4 sm:$0xff]  }
  0x45   : > { %2136 = vmatpush1.bf16.msra.mxu1 %v3248_v51  ;;  %v678_v51 = vcombine.high %v3798_v10, %v665_v15  ;;  %v3334_v10 = vld [vmem:[%s3718_s27 + $0x160] ss:$8 sps:$4 sm:$0xff]   ;;  %v3343_v15 = vld [vmem:[%s3718_s27 + $0x570] ss:$8 sps:$4 sm:$0xff]  }
  0x46   : > { %2308 = vmatpush1.bf16.msra.mxu0 %v3249_v52  ;;  %2137 = vmatprep.subr.bf16.mxu1 %v3250_v53  ;;  %v814_v52 = vcombine.high %v773_v33, %v801_v38  ;;  %v3304_v53 = vld [vmem:[%s3718_s27 + $0x110] ss:$8 sps:$4 sm:$0xff]   ;;  %v3276_v38 = vld [vmem:[%s3774_s4 + $0x4] ss:$16 sps:$4 sm:$0xff]  }
  0x47   : > { %2309 = vmatprep.subr.bf16.mxu0 %v3252_v55  ;;  %v3307_v55 = vld [vmem:[%s3718_s27 + $0x510] ss:$8 sps:$4 sm:$0xff]  }
  0x48   : > { %v3364_v33 = vld [vmem:[%s3718_s27 + $0x1b0] ss:$8 sps:$4 sm:$0xff]  }
  0x49   : > { %2138 = vmatpush1.bf16.msra.mxu1 %v3254_v59  ;;  %v3313_v59 = vld [vmem:[%s3718_s27 + $0x520] ss:$8 sps:$4 sm:$0xff]  }
  0x4a   : > { %2310 = vmatpush1.bf16.msra.mxu0 %v3255_v60  ;;  %2139 = vmatprep.subr.bf16.mxu1 %v3256_v63  ;;  %v3318_v60 = vld [vmem:[%s3718_s27 + $0x134] ss:$8 sps:$4 sm:$0xff]   ;;  %v3319_v63 = vld [vmem:[%s3718_s27 + $0x530] ss:$8 sps:$4 sm:$0xff]  }
  0x4b   : > { %2311 = vmatprep.subr.bf16.mxu0 %v3258_v2  ;;  %v3322_v2 = vld [vmem:[%s3718_s27 + $0x140] ss:$8 sps:$4 sm:$0xff]  }
  0x4d   : > { %2140 = vmatpush1.bf16.msra.mxu1 %v3260_v4  ;;  %v3330_v4 = vld [vmem:[%s3718_s27 + $0x154] ss:$8 sps:$4 sm:$0xff]  }
  0x4e   : > { %2312 = vmatpush1.bf16.msra.mxu0 %v3261_v9  ;;  %2141 = vmatprep.subr.bf16.mxu1 %v3262_v13  ;;  %v3339_v9 = vld [vmem:[%s3718_s27 + $0x564] ss:$8 sps:$4 sm:$0xff]   ;;  %v3345_v13 = vld [vmem:[%s3718_s27 + $0x574] ss:$8 sps:$4 sm:$0xff]  }
  0x4f   : > { %2313 = vmatprep.subr.bf16.mxu0 %v3264_v14  ;;  %v3340_v14 = vld [vmem:[%s3718_s27 + $0x170] ss:$8 sps:$4 sm:$0xff]  }
  0x51   : > { %2142 = vmatpush1.bf16.msra.mxu1 %v3266_v20  ;;  %v3354_v20 = vld [vmem:[%s3718_s27 + $0x194] ss:$8 sps:$4 sm:$0xff]  }
  0x52   : > { %2314 = vmatpush1.bf16.msra.mxu0 %v3267_v21  ;;  %2143 = vmatprep.subr.bf16.mxu1 %v3268_v26  ;;  %v3357_v21 = vld [vmem:[%s3718_s27 + $0x594] ss:$8 sps:$4 sm:$0xff]   ;;  %v3360_v26 = vld [vmem:[%s3718_s27 + $0x1a4] ss:$8 sps:$4 sm:$0xff]  }
  0x53   : > { %2315 = vmatprep.subr.bf16.mxu0 %v3270_v30  ;;  %v3366_v30 = vld [vmem:[%s3718_s27 + $0x1b4] ss:$8 sps:$4 sm:$0xff]  }
  0x55   : > { %2144 = vmatpush1.bf16.msra.mxu1 %v3272_v35  ;;  %v3372_v35 = vld [vmem:[%s3718_s27 + $0x1c4] ss:$8 sps:$4 sm:$0xff]  }
  0x56   : > { %2316 = vmatpush1.bf16.msra.mxu0 %v3273_v37  ;;  %2156 = vmatprep.subr.bf16.mxu1 %v3288_v40  ;;  %v3375_v37 = vld [vmem:[%s3718_s27 + $0x5c4] ss:$8 sps:$4 sm:$0xff]  }
  0x57   : > { %2328 = vmatprep.subr.bf16.mxu0 %v3303_v42  ;;  %v3279_v40 = vld [vmem:[%s3774_s4 + $0x24] ss:$16 sps:$4 sm:$0xff]  }
  0x58   : > { %2146 = vmatmul.mubr.bf16.vlgmr.msra.gmra.mrb[0].mxu1 %v673_v46  ;;  %v3285_v42 = vld [vmem:[%s3774_s4 + $0x64] ss:$16 sps:$4 sm:$0xff]   ;;  %v3291_v46 = vld [vmem:[%s3774_s4 + $0xc] ss:$16 sps:$4 sm:$0xff]  }
  0x59   : > { %2318 = vmatmul.mubr.bf16.vlgmr.msra.gmra.mrb[0].mxu0 %v809_v47  ;;  %2157 = vmatpush1.bf16.msra.mxu1 %v3286_v44  ;;  %v3370_v44 = vld [vmem:[%s3718_s27 + $0x1c0] ss:$8 sps:$4 sm:$0xff]   ;;  %v3294_v47 = vld [vmem:[%s3774_s4 + $0x2c] ss:$16 sps:$4 sm:$0xff]  }
  0x5a   : > { %2329 = vmatpush1.bf16.msra.mxu0 %v3301_v45  ;;  %2158 = vmatprep.subr.bf16.mxu1 %v3306_v49  ;;  %v3373_v45 = vld [vmem:[%s3718_s27 + $0x5c0] ss:$8 sps:$4 sm:$0xff]   ;;  %v3378_v49 = vld [vmem:[%s3718_s27 + $0x1d4] ss:$8 sps:$4 sm:$0xff]  }
  0x5b   : > { %2330 = vmatprep.subr.bf16.mxu0 %v3309_v50  ;;  %2188 = vmatprep.mubr.bf16.mxu1 %v678_v51  ;;  %v3381_v50 = vld [vmem:[%s3718_s27 + $0x5d4] ss:$8 sps:$4 sm:$0xff]  }
  0x5c   : > { %2360 = vmatprep.mubr.bf16.mxu0 %v814_v52  ;;  %v3297_v51 = vld [vmem:[%s3774_s4 + $0x4c] ss:$16 sps:$4 sm:$0xff]  }
  0x5d   : > { %2159 = vmatpush1.bf16.msra.mxu1 %v3304_v53  ;;  %v3300_v52 = vld [vmem:[%s3774_s4 + $0x6c] ss:$16 sps:$4 sm:$0xff]   ;;  %v3376_v53 = vld [vmem:[%s3718_s27 + $0x1d0] ss:$8 sps:$4 sm:$0xff]  }
  0x5e   : > { %2331 = vmatpush1.bf16.msra.mxu0 %v3307_v55  ;;  %2160 = vmatprep.subr.bf16.mxu1 %v3312_v56  ;;  %v3379_v55 = vld [vmem:[%s3718_s27 + $0x5d0] ss:$8 sps:$4 sm:$0xff]   ;;  %v3384_v56 = vld [vmem:[%s3718_s27 + $0x1e4] ss:$8 sps:$4 sm:$0xff]  }
  0x5f   : > { %2332 = vmatprep.subr.bf16.mxu0 %v3315_v57  ;;  %v566_v57 = vrot.slane %v3276_v38, %v3780_v54 }
  0x61   : > { %2161 = vmatpush1.bf16.msra.mxu1 %v3310_v58  ;;  %v3387_v58 = vld [vmem:[%s3718_s27 + $0x5e4] ss:$8 sps:$4 sm:$0xff]  }
  0x62   : > { %2333 = vmatpush1.bf16.msra.mxu0 %v3313_v59  ;;  %2162 = vmatprep.subr.bf16.mxu1 %v3318_v60  ;;  %v580_v59 = vrot.slane %v3279_v40, %v3780_v54  ;;  %v594_v60 = vrot.slane %v3282_v41, %v3780_v54  ;;  %v3400_v41 = vld [vmem:[%s3718_s27 + $0x210] ss:$8 sps:$4 sm:$0xff]  }
  0x63   : > { %2334 = vmatprep.subr.bf16.mxu0 %v3321_v61  ;;  %v608_v61 = vrot.slane %v3285_v42, %v3780_v54  ;;  %v3403_v42 = vld [vmem:[%s3718_s27 + $0x610] ss:$8 sps:$4 sm:$0xff]  }
  0x65   : > { %2163 = vmatpush1.bf16.msra.mxu1 %v3316_v62  ;;  %v702_v62 = vrot.slane %v3291_v46, %v3780_v54  ;;  %v3420_v46 = vld [vmem:[%s3718_s27 + $0x244] ss:$8 sps:$4 sm:$0xff]  }
  0x66   : > { %2335 = vmatpush1.bf16.msra.mxu0 %v3319_v63  ;;  %2164 = vmatprep.subr.bf16.mxu1 %v3324_v0  ;;  %v716_v63 = vrot.slane %v3294_v47, %v3780_v54  ;;  %v730_v0 = vrot.slane %v3297_v51, %v3780_v54  ;;  %v3423_v47 = vld [vmem:[%s3718_s27 + $0x644] ss:$8 sps:$4 sm:$0xff]   ;;  %v3426_v51 = vld [vmem:[%s3718_s27 + $0x254] ss:$8 sps:$4 sm:$0xff]  }
  0x67   : > { %2336 = vmatprep.subr.bf16.mxu0 %v3327_v1  ;;  %v744_v1 = vrot.slane %v3300_v52, %v3780_v54  ;;  %v3429_v52 = vld [vmem:[%s3718_s27 + $0x654] ss:$8 sps:$4 sm:$0xff]  }
  0x69   : > { %2165 = vmatpush1.bf16.msra.mxu1 %v3322_v2  ;;  %v3382_v2 = vld [vmem:[%s3718_s27 + $0x1e0] ss:$8 sps:$4 sm:$0xff]  }
  0x6a   : > { %2337 = vmatpush1.bf16.msra.mxu0 %v3325_v3  ;;  %2166 = vmatprep.subr.bf16.mxu1 %v3330_v4  ;;  %v3385_v3 = vld [vmem:[%s3718_s27 + $0x5e0] ss:$8 sps:$4 sm:$0xff]   ;;  %v3390_v4 = vld [vmem:[%s3718_s27 + $0x1f4] ss:$8 sps:$4 sm:$0xff]  }
  0x6b   : > { %2338 = vmatprep.subr.bf16.mxu0 %v3333_v5  ;;  %v3393_v5 = vld [vmem:[%s3718_s27 + $0x5f4] ss:$8 sps:$4 sm:$0xff]  }
  0x6d   : > { %2167 = vmatpush1.bf16.msra.mxu1 %v3328_v6  ;;  %v612_v6 = vcombine.high %v566_v57, %v580_v59 }
  0x6e   : > { %2339 = vmatpush1.bf16.msra.mxu0 %v3331_v7  ;;  %2168 = vmatprep.subr.bf16.mxu1 %v3336_v8  ;;  %v616_v7 = vcombine.high %v594_v60, %v608_v61  ;;  %v748_v8 = vcombine.high %v702_v62, %v716_v63 }
  0x6f   : > { %2340 = vmatprep.subr.bf16.mxu0 %v3339_v9  ;;  %v752_v9 = vcombine.high %v730_v0, %v744_v1 }
  0x71   : > { %2169 = vmatpush1.bf16.msra.mxu1 %v3334_v10  ;;  %v611_v10 = vcombine.low %v566_v57, %v580_v59  ;;  %v3435_v57 = vld [vmem:[%s3718_s27 + $0x664] ss:$8 sps:$4 sm:$0xff]   ;;  %v3433_v59 = vld [vmem:[%s3718_s27 + $0x660] ss:$8 sps:$4 sm:$0xff]  }
  0x72   : > { %2341 = vmatpush1.bf16.msra.mxu0 %v3337_v11  ;;  %2170 = vmatprep.subr.bf16.mxu1 %v3342_v12  ;;  %v615_v11 = vcombine.low %v594_v60, %v608_v61  ;;  %v3388_v12 = vld [vmem:[%s3718_s27 + $0x1f0] ss:$8 sps:$4 sm:$0xff]   ;;  %v3438_v60 = vld [vmem:[%s3718_s27 + $0x274] ss:$8 sps:$4 sm:$0xff]  }
  0x73   : > { %2342 = vmatprep.subr.bf16.mxu0 %v3345_v13  ;;  %v3391_v13 = vld [vmem:[%s3718_s27 + $0x5f0] ss:$8 sps:$4 sm:$0xff]   ;;  %v3441_v61 = vld [vmem:[%s3718_s27 + $0x674] ss:$8 sps:$4 sm:$0xff]  }
  0x75   : > { %2171 = vmatpush1.bf16.msra.mxu1 %v3340_v14  ;;  %v747_v14 = vcombine.low %v702_v62, %v716_v63  ;;  %v3436_v62 = vld [vmem:[%s3718_s27 + $0x270] ss:$8 sps:$4 sm:$0xff]  }
  0x76   : > { %2343 = vmatpush1.bf16.msra.mxu0 %v3343_v15  ;;  %2172 = vmatprep.subr.bf16.mxu1 %v3348_v16  ;;  %v751_v15 = vcombine.low %v730_v0, %v744_v1  ;;  %v3396_v16 = vld [vmem:[%s3718_s27 + $0x204] ss:$8 sps:$4 sm:$0xff]   ;;  %v3439_v63 = vld [vmem:[%s3718_s27 + $0x670] ss:$8 sps:$4 sm:$0xff]  }
  0x77   : > { %2344 = vmatprep.subr.bf16.mxu0 %v3351_v17  ;;  %v3399_v17 = vld [vmem:[%s3718_s27 + $0x604] ss:$8 sps:$4 sm:$0xff]  }
  0x78   : > { %v3444_v0 = vld [vmem:[%s3718_s27 + $0x284] ss:$8 sps:$4 sm:$0xff]  }
  0x79   : > { %2173 = vmatpush1.bf16.msra.mxu1 %v3346_v18  ;;  %v3924_v18 = vrot.slane %v612_v6, %v3780_v54  ;;  %v3447_v1 = vld [vmem:[%s3718_s27 + $0x684] ss:$8 sps:$4 sm:$0xff]   ;;  %v3448_v6 = vld [vmem:[%s3718_s27 + $0x290] ss:$8 sps:$4 sm:$0xff]  }
  0x7a   : > { %2345 = vmatpush1.bf16.msra.mxu0 %v3349_v19  ;;  %2174 = vmatprep.subr.bf16.mxu1 %v3354_v20  ;;  %v3927_v19 = vrot.slane %v616_v7, %v3780_v54  ;;  %v3930_v20 = vrot.slane %v748_v8, %v3780_v54  ;;  %v3451_v7 = vld [vmem:[%s3718_s27 + $0x690] ss:$8 sps:$4 sm:$0xff]   ;;  %v3456_v8 = vld [vmem:[%s3718_s27 + $0x2a4] ss:$8 sps:$4 sm:$0xff]  }
  0x7b   : > { %2346 = vmatprep.subr.bf16.mxu0 %v3357_v21  ;;  %v3933_v21 = vrot.slane %v752_v9, %v3780_v54  ;;  %v3459_v9 = vld [vmem:[%s3718_s27 + $0x6a4] ss:$8 sps:$4 sm:$0xff]  }
  0x7c   : > { %v679_v38 = vcombine.low %v3924_v18, %v3927_v19 }
  0x7d   : > { %2175 = vmatpush1.bf16.msra.mxu1 %v3352_v22  ;;  %v3936_v22 = vrot.slane %v611_v10, %v3780_v54  ;;  %v815_v40 = vcombine.low %v3930_v20, %v3933_v21  ;;  %v3454_v10 = vld [vmem:[%s3718_s27 + $0x2a0] ss:$8 sps:$4 sm:$0xff]  }
  0x7e   : > { %2347 = vmatpush1.bf16.msra.mxu0 %v3355_v23  ;;  %2176 = vmatprep.subr.bf16.mxu1 %v3360_v26  ;;  %v3939_v23 = vrot.slane %v615_v11, %v3780_v54  ;;  %v3394_v26 = vld [vmem:[%s3718_s27 + $0x200] ss:$8 sps:$4 sm:$0xff]  }
  0x7f   : > { %2348 = vmatprep.subr.bf16.mxu0 %v3363_v27  ;;  %v3397_v27 = vld [vmem:[%s3718_s27 + $0x600] ss:$8 sps:$4 sm:$0xff]  }
  0x80   : > { %v3457_v11 = vld [vmem:[%s3718_s27 + $0x6a0] ss:$8 sps:$4 sm:$0xff]  }
  0x81   : > { %2177 = vmatpush1.bf16.msra.mxu1 %v3358_v28  ;;  %v3944_v28 = vrot.slane %v747_v14, %v3780_v54  ;;  %v3460_v14 = vld [vmem:[%s3718_s27 + $0x2b0] ss:$8 sps:$4 sm:$0xff]  }
  0x82   : > { %2349 = vmatpush1.bf16.msra.mxu0 %v3361_v29  ;;  %2178 = vmatprep.subr.bf16.mxu1 %v3366_v30  ;;  %v3947_v29 = vrot.slane %v751_v15, %v3780_v54  ;;  %v3402_v30 = vld [vmem:[%s3718_s27 + $0x214] ss:$8 sps:$4 sm:$0xff]   ;;  %v3463_v15 = vld [vmem:[%s3718_s27 + $0x6b0] ss:$8 sps:$4 sm:$0xff]  }
  0x83   : > { %2350 = vmatprep.subr.bf16.mxu0 %v3369_v32  ;;  %v680_v32 = vcombine.high %v3924_v18, %v3927_v19  ;;  %v3508_v18 = vld [vmem:[%s3718_s27 + $0x330] ss:$8 sps:$4 sm:$0xff]  }
  0x84   : > { %v3511_v19 = vld [vmem:[%s3718_s27 + $0x730] ss:$8 sps:$4 sm:$0xff]  }
  0x85   : > { %2179 = vmatpush1.bf16.msra.mxu1 %v3364_v33  ;;  %v816_v33 = vcombine.high %v3930_v20, %v3933_v21  ;;  %v3516_v20 = vld [vmem:[%s3718_s27 + $0x344] ss:$8 sps:$4 sm:$0xff]  }
  0x86   : > { %2351 = vmatpush1.bf16.msra.mxu0 %v3367_v34  ;;  %2180 = vmatprep.subr.bf16.mxu1 %v3372_v35  ;;  %v676_v34 = vcombine.high %v3936_v22, %v3939_v23  ;;  %v3405_v35 = vld [vmem:[%s3718_s27 + $0x614] ss:$8 sps:$4 sm:$0xff]   ;;  %v3519_v21 = vld [vmem:[%s3718_s27 + $0x744] ss:$8 sps:$4 sm:$0xff]  }
  0x87   : > { %2352 = vmatprep.subr.bf16.mxu0 %v3375_v37  ;;  %v812_v37 = vcombine.high %v3944_v28, %v3947_v29 }
  0x89   : > { %2181 = vmatpush1.bf16.msra.mxu1 %v3370_v44  ;;  %v3408_v44 = vld [vmem:[%s3718_s27 + $0x224] ss:$8 sps:$4 sm:$0xff]  }
  0x8a   : > { %2353 = vmatpush1.bf16.msra.mxu0 %v3373_v45  ;;  %2182 = vmatprep.subr.bf16.mxu1 %v3378_v49  ;;  %v3411_v45 = vld [vmem:[%s3718_s27 + $0x624] ss:$8 sps:$4 sm:$0xff]   ;;  %v3418_v49 = vld [vmem:[%s3718_s27 + $0x240] ss:$8 sps:$4 sm:$0xff]  }
  0x8b   : > { %2354 = vmatprep.subr.bf16.mxu0 %v3381_v50  ;;  %v3421_v50 = vld [vmem:[%s3718_s27 + $0x640] ss:$8 sps:$4 sm:$0xff]  }
  0x8d   : > { %2183 = vmatpush1.bf16.msra.mxu1 %v3376_v53  ;;  %v3424_v53 = vld [vmem:[%s3718_s27 + $0x250] ss:$8 sps:$4 sm:$0xff]  }
  0x8e   : > { %2355 = vmatpush1.bf16.msra.mxu0 %v3379_v55  ;;  %2184 = vmatprep.subr.bf16.mxu1 %v3384_v56  ;;  %v3427_v55 = vld [vmem:[%s3718_s27 + $0x650] ss:$8 sps:$4 sm:$0xff]   ;;  %v3432_v56 = vld [vmem:[%s3718_s27 + $0x264] ss:$8 sps:$4 sm:$0xff]  }
  0x8f   : > { %2356 = vmatprep.subr.bf16.mxu0 %v3387_v58  ;;  %v3430_v58 = vld [vmem:[%s3718_s27 + $0x260] ss:$8 sps:$4 sm:$0xff]  }
  0x91   : > { %2185 = vmatpush1.bf16.msra.mxu1 %v3382_v2  ;;  %v3442_v2 = vld [vmem:[%s3718_s27 + $0x280] ss:$8 sps:$4 sm:$0xff]  }
  0x92   : > { %2357 = vmatpush1.bf16.msra.mxu0 %v3385_v3  ;;  %2186 = vmatprep.subr.bf16.mxu1 %v3390_v4  ;;  %v3445_v3 = vld [vmem:[%s3718_s27 + $0x680] ss:$8 sps:$4 sm:$0xff]   ;;  %v3450_v4 = vld [vmem:[%s3718_s27 + $0x294] ss:$8 sps:$4 sm:$0xff]  }
  0x93   : > { %2358 = vmatprep.subr.bf16.mxu0 %v3393_v5  ;;  %v3453_v5 = vld [vmem:[%s3718_s27 + $0x694] ss:$8 sps:$4 sm:$0xff]  }
  0x95   : > { %2187 = vmatpush1.bf16.msra.mxu1 %v3388_v12  ;;  %v3462_v12 = vld [vmem:[%s3718_s27 + $0x2b4] ss:$8 sps:$4 sm:$0xff]  }
  0x96   : > { %2359 = vmatpush1.bf16.msra.mxu0 %v3391_v13  ;;  %2199 = vmatprep.subr.bf16.mxu1 %v3396_v16  ;;  %v3465_v13 = vld [vmem:[%s3718_s27 + $0x6b4] ss:$8 sps:$4 sm:$0xff]   ;;  %v3468_v16 = vld [vmem:[%s3718_s27 + $0x2c4] ss:$8 sps:$4 sm:$0xff]  }
  0x97   : > { %2371 = vmatprep.subr.bf16.mxu0 %v3399_v17  ;;  %v3471_v17 = vld [vmem:[%s3718_s27 + $0x6c4] ss:$8 sps:$4 sm:$0xff]  }
  0x98   : > { %2189 = vmatmul.mubr.bf16.vlgmr.msra.gmra.mrb[0].mxu1 %v674_v31  ;;  %v3414_v31 = vld [vmem:[%s3718_s27 + $0x234] ss:$8 sps:$4 sm:$0xff]  }
  0x99   : > { %2361 = vmatmul.mubr.bf16.vlgmr.msra.gmra.mrb[0].mxu0 %v810_v43  ;;  %2200 = vmatpush1.bf16.msra.mxu1 %v3394_v26  ;;  %v3415_v43 = vld [vmem:[%s3718_s27 + $0x630] ss:$8 sps:$4 sm:$0xff]   ;;  %v3466_v26 = vld [vmem:[%s3718_s27 + $0x2c0] ss:$8 sps:$4 sm:$0xff]  }
  0x9a   : > { %2372 = vmatpush1.bf16.msra.mxu0 %v3397_v27  ;;  %2201 = vmatprep.subr.bf16.mxu1 %v3402_v30  ;;  %v3469_v27 = vld [vmem:[%s3718_s27 + $0x6c0] ss:$8 sps:$4 sm:$0xff]   ;;  %v3474_v30 = vld [vmem:[%s3718_s27 + $0x2d4] ss:$8 sps:$4 sm:$0xff]  }
  0x9b   : > { %2373 = vmatprep.subr.bf16.mxu0 %v3405_v35  ;;  %2231 = vmatprep.mubr.bf16.mxu1 %v679_v38  ;;  %v3477_v35 = vld [vmem:[%s3718_s27 + $0x6d4] ss:$8 sps:$4 sm:$0xff]   ;;  %v3472_v38 = vld [vmem:[%s3718_s27 + $0x2d0] ss:$8 sps:$4 sm:$0xff]  }
  0x9c   : > { %2403 = vmatprep.mubr.bf16.mxu0 %v815_v40  ;;  %v3475_v40 = vld [vmem:[%s3718_s27 + $0x6d0] ss:$8 sps:$4 sm:$0xff]  }
  0x9d   : > { %2202 = vmatpush1.bf16.msra.mxu1 %v3400_v41  ;;  %v3480_v41 = vld [vmem:[%s3718_s27 + $0x2e4] ss:$8 sps:$4 sm:$0xff]  }
  0x9e   : > { %2374 = vmatpush1.bf16.msra.mxu0 %v3403_v42  ;;  %2203 = vmatprep.subr.bf16.mxu1 %v3408_v44  ;;  %v3483_v42 = vld [vmem:[%s3718_s27 + $0x6e4] ss:$8 sps:$4 sm:$0xff]   ;;  %v3478_v44 = vld [vmem:[%s3718_s27 + $0x2e0] ss:$8 sps:$4 sm:$0xff]  }
  0x9f   : > { %2375 = vmatprep.subr.bf16.mxu0 %v3411_v45  ;;  %v3481_v45 = vld [vmem:[%s3718_s27 + $0x6e0] ss:$8 sps:$4 sm:$0xff]  }
  0xa1   : > { %2204 = vmatpush1.bf16.msra.mxu1 %v3406_v24  ;;  %v3486_v24 = vld [vmem:[%s3718_s27 + $0x2f4] ss:$8 sps:$4 sm:$0xff]  }
  0xa2   : > { %2376 = vmatpush1.bf16.msra.mxu0 %v3409_v25  ;;  %2205 = vmatprep.subr.bf16.mxu1 %v3414_v31  ;;  %v3489_v25 = vld [vmem:[%s3718_s27 + $0x6f4] ss:$8 sps:$4 sm:$0xff]   ;;  %v3484_v31 = vld [vmem:[%s3718_s27 + $0x2f0] ss:$8 sps:$4 sm:$0xff]  }
  0xa3   : > { %2377 = vmatprep.subr.bf16.mxu0 %v3417_v36  ;;  %v3487_v36 = vld [vmem:[%s3718_s27 + $0x6f0] ss:$8 sps:$4 sm:$0xff]  }
  0xa5   : > { %2206 = vmatpush1.bf16.msra.mxu1 %v3412_v39  ;;  %v3492_v39 = vld [vmem:[%s3718_s27 + $0x304] ss:$8 sps:$4 sm:$0xff]  }
  0xa6   : > { %2378 = vmatpush1.bf16.msra.mxu0 %v3415_v43  ;;  %2207 = vmatprep.subr.bf16.mxu1 %v3420_v46  ;;  %v3495_v43 = vld [vmem:[%s3718_s27 + $0x704] ss:$8 sps:$4 sm:$0xff]   ;;  %v675_v46 = vcombine.low %v3936_v22, %v3939_v23 }
  0xa7   : > { %2379 = vmatprep.subr.bf16.mxu0 %v3423_v47  ;;  %v811_v47 = vcombine.low %v3944_v28, %v3947_v29 }
  0xa9   : > { %2208 = vmatpush1.bf16.msra.mxu1 %v3418_v49  ;;  %v3490_v49 = vld [vmem:[%s3718_s27 + $0x300] ss:$8 sps:$4 sm:$0xff]  }
  0xaa   : > { %2380 = vmatpush1.bf16.msra.mxu0 %v3421_v50  ;;  %2209 = vmatprep.subr.bf16.mxu1 %v3426_v51  ;;  %v3493_v50 = vld [vmem:[%s3718_s27 + $0x700] ss:$8 sps:$4 sm:$0xff]   ;;  %v3498_v51 = vld [vmem:[%s3718_s27 + $0x314] ss:$8 sps:$4 sm:$0xff]  }
  0xab   : > { %2381 = vmatprep.subr.bf16.mxu0 %v3429_v52  ;;  %v3501_v52 = vld [vmem:[%s3718_s27 + $0x714] ss:$8 sps:$4 sm:$0xff]  }
  0xad   : > { %2210 = vmatpush1.bf16.msra.mxu1 %v3424_v53  ;;  %v3496_v53 = vld [vmem:[%s3718_s27 + $0x310] ss:$8 sps:$4 sm:$0xff]  }
  0xae   : > { %2382 = vmatpush1.bf16.msra.mxu0 %v3427_v55  ;;  %2211 = vmatprep.subr.bf16.mxu1 %v3432_v56  ;;  %v3499_v55 = vld [vmem:[%s3718_s27 + $0x710] ss:$8 sps:$4 sm:$0xff]   ;;  %v3504_v56 = vld [vmem:[%s3718_s27 + $0x324] ss:$8 sps:$4 sm:$0xff]  }
  0xaf   : > { %2383 = vmatprep.subr.bf16.mxu0 %v3435_v57  ;;  %v3507_v57 = vld [vmem:[%s3718_s27 + $0x724] ss:$8 sps:$4 sm:$0xff]  }
  0xb1   : > { %2212 = vmatpush1.bf16.msra.mxu1 %v3430_v58  ;;  %v3502_v58 = vld [vmem:[%s3718_s27 + $0x320] ss:$8 sps:$4 sm:$0xff]  }
  0xb2   : > { %2384 = vmatpush1.bf16.msra.mxu0 %v3433_v59  ;;  %2213 = vmatprep.subr.bf16.mxu1 %v3438_v60  ;;  %v3505_v59 = vld [vmem:[%s3718_s27 + $0x720] ss:$8 sps:$4 sm:$0xff]   ;;  %v3510_v60 = vld [vmem:[%s3718_s27 + $0x334] ss:$8 sps:$4 sm:$0xff]  }
  0xb3   : > { %2385 = vmatprep.subr.bf16.mxu0 %v3441_v61  ;;  %v3513_v61 = vld [vmem:[%s3718_s27 + $0x734] ss:$8 sps:$4 sm:$0xff]  }
  0xb5   : > { %2214 = vmatpush1.bf16.msra.mxu1 %v3436_v62  ;;  %v3522_v62 = vld [vmem:[%s3718_s27 + $0x354] ss:$8 sps:$4 sm:$0xff]  }
  0xb6   : > { %2386 = vmatpush1.bf16.msra.mxu0 %v3439_v63  ;;  %2215 = vmatprep.subr.bf16.mxu1 %v3444_v0  ;;  %v3525_v63 = vld [vmem:[%s3718_s27 + $0x754] ss:$8 sps:$4 sm:$0xff]   ;;  %v3520_v0 = vld [vmem:[%s3718_s27 + $0x350] ss:$8 sps:$4 sm:$0xff]  }
  0xb7   : > { %2387 = vmatprep.subr.bf16.mxu0 %v3447_v1  ;;  %v3523_v1 = vld [vmem:[%s3718_s27 + $0x750] ss:$8 sps:$4 sm:$0xff]  }
  0xb9   : > { %2216 = vmatpush1.bf16.msra.mxu1 %v3442_v2  ;;  %v3528_v2 = vld [vmem:[%s3718_s27 + $0x364] ss:$8 sps:$4 sm:$0xff]  }
  0xba   : > { %2388 = vmatpush1.bf16.msra.mxu0 %v3445_v3  ;;  %2217 = vmatprep.subr.bf16.mxu1 %v3450_v4  ;;  %v3531_v3 = vld [vmem:[%s3718_s27 + $0x764] ss:$8 sps:$4 sm:$0xff]   ;;  %v3526_v4 = vld [vmem:[%s3718_s27 + $0x360] ss:$8 sps:$4 sm:$0xff]  }
  0xbb   : > { %2389 = vmatprep.subr.bf16.mxu0 %v3453_v5  ;;  %v3529_v5 = vld [vmem:[%s3718_s27 + $0x760] ss:$8 sps:$4 sm:$0xff]  }
  0xbd   : > { %2218 = vmatpush1.bf16.msra.mxu1 %v3448_v6  ;;  %v3534_v6 = vld [vmem:[%s3718_s27 + $0x374] ss:$8 sps:$4 sm:$0xff]  }
  0xbe   : > { %2390 = vmatpush1.bf16.msra.mxu0 %v3451_v7  ;;  %2219 = vmatprep.subr.bf16.mxu1 %v3456_v8  ;;  %v3537_v7 = vld [vmem:[%s3718_s27 + $0x774] ss:$8 sps:$4 sm:$0xff]   ;;  %v3532_v8 = vld [vmem:[%s3718_s27 + $0x370] ss:$8 sps:$4 sm:$0xff]  }
  0xbf   : > { %2391 = vmatprep.subr.bf16.mxu0 %v3459_v9  ;;  %v3535_v9 = vld [vmem:[%s3718_s27 + $0x770] ss:$8 sps:$4 sm:$0xff]  }
  0xc1   : > { %2220 = vmatpush1.bf16.msra.mxu1 %v3454_v10  ;;  %v3540_v10 = vld [vmem:[%s3718_s27 + $0x384] ss:$8 sps:$4 sm:$0xff]  }
  0xc2   : > { %2392 = vmatpush1.bf16.msra.mxu0 %v3457_v11  ;;  %2221 = vmatprep.subr.bf16.mxu1 %v3462_v12  ;;  %v3543_v11 = vld [vmem:[%s3718_s27 + $0x784] ss:$8 sps:$4 sm:$0xff]   ;;  %v3538_v12 = vld [vmem:[%s3718_s27 + $0x380] ss:$8 sps:$4 sm:$0xff]  }
  0xc3   : > { %2393 = vmatprep.subr.bf16.mxu0 %v3465_v13  ;;  %v3541_v13 = vld [vmem:[%s3718_s27 + $0x780] ss:$8 sps:$4 sm:$0xff]  }
  0xc5   : > { %2222 = vmatpush1.bf16.msra.mxu1 %v3460_v14  ;;  %v3546_v14 = vld [vmem:[%s3718_s27 + $0x394] ss:$8 sps:$4 sm:$0xff]  }
  0xc6   : > { %2394 = vmatpush1.bf16.msra.mxu0 %v3463_v15  ;;  %2223 = vmatprep.subr.bf16.mxu1 %v3468_v16  ;;  %v3549_v15 = vld [vmem:[%s3718_s27 + $0x794] ss:$8 sps:$4 sm:$0xff]   ;;  %v3544_v16 = vld [vmem:[%s3718_s27 + $0x390] ss:$8 sps:$4 sm:$0xff]  }
  0xc7   : > { %2395 = vmatprep.subr.bf16.mxu0 %v3471_v17  ;;  %v3547_v17 = vld [vmem:[%s3718_s27 + $0x790] ss:$8 sps:$4 sm:$0xff]  }
  0xc9   : > { %2224 = vmatpush1.bf16.msra.mxu1 %v3466_v26  ;;  %v3552_v26 = vld [vmem:[%s3718_s27 + $0x3a4] ss:$8 sps:$4 sm:$0xff]  }
  0xca   : > { %2396 = vmatpush1.bf16.msra.mxu0 %v3469_v27  ;;  %2225 = vmatprep.subr.bf16.mxu1 %v3474_v30  ;;  %v3555_v27 = vld [vmem:[%s3718_s27 + $0x7a4] ss:$8 sps:$4 sm:$0xff]   ;;  %v3550_v30 = vld [vmem:[%s3718_s27 + $0x3a0] ss:$8 sps:$4 sm:$0xff]  }
  0xcb   : > { %2397 = vmatprep.subr.bf16.mxu0 %v3477_v35  ;;  %v3553_v35 = vld [vmem:[%s3718_s27 + $0x7a0] ss:$8 sps:$4 sm:$0xff]  }
  0xcd   : > { %2226 = vmatpush1.bf16.msra.mxu1 %v3472_v38  ;;  %v3558_v38 = vld [vmem:[%s3718_s27 + $0x3b4] ss:$8 sps:$4 sm:$0xff]  }
  0xce   : > { %2398 = vmatpush1.bf16.msra.mxu0 %v3475_v40  ;;  %2227 = vmatprep.subr.bf16.mxu1 %v3480_v41  ;;  %v3561_v40 = vld [vmem:[%s3718_s27 + $0x7b4] ss:$8 sps:$4 sm:$0xff]   ;;  %v3556_v41 = vld [vmem:[%s3718_s27 + $0x3b0] ss:$8 sps:$4 sm:$0xff]  }
  0xcf   : > { %2399 = vmatprep.subr.bf16.mxu0 %v3483_v42  ;;  %v3559_v42 = vld [vmem:[%s3718_s27 + $0x7b0] ss:$8 sps:$4 sm:$0xff]  }
  0xd1   : > { %2228 = vmatpush1.bf16.msra.mxu1 %v3478_v44  ;;  %v3564_v44 = vld [vmem:[%s3718_s27 + $0x3c4] ss:$8 sps:$4 sm:$0xff]  }
  0xd2   : > { %2400 = vmatpush1.bf16.msra.mxu0 %v3481_v45  ;;  %2229 = vmatprep.subr.bf16.mxu1 %v3486_v24  ;;  %v3567_v45 = vld [vmem:[%s3718_s27 + $0x7c4] ss:$8 sps:$4 sm:$0xff]   ;;  %v3562_v24 = vld [vmem:[%s3718_s27 + $0x3c0] ss:$8 sps:$4 sm:$0xff]  }
  0xd3   : > { %2401 = vmatprep.subr.bf16.mxu0 %v3489_v25  ;;  %v3565_v25 = vld [vmem:[%s3718_s27 + $0x7c0] ss:$8 sps:$4 sm:$0xff]  }
  0xd5   : > { %2230 = vmatpush1.bf16.msra.mxu1 %v3484_v31  ;;  %v3570_v31 = vld [vmem:[%s3718_s27 + $0x3d4] ss:$8 sps:$4 sm:$0xff]  }
  0xd6   : > { %2402 = vmatpush1.bf16.msra.mxu0 %v3487_v36  ;;  %2242 = vmatprep.subr.bf16.mxu1 %v3492_v39  ;;  %v3573_v36 = vld [vmem:[%s3718_s27 + $0x7d4] ss:$8 sps:$4 sm:$0xff]   ;;  %v3568_v39 = vld [vmem:[%s3718_s27 + $0x3d0] ss:$8 sps:$4 sm:$0xff]  }
  0xd7   : > { %2414 = vmatprep.subr.bf16.mxu0 %v3495_v43  ;;  %v3571_v43 = vld [vmem:[%s3718_s27 + $0x7d0] ss:$8 sps:$4 sm:$0xff]  }
  0xd8   : > { %2232 = vmatmul.mubr.bf16.vlgmr.msra.gmra.mrb[0].mxu1 %v675_v46  ;;  %v3576_v46 = vld [vmem:[%s3718_s27 + $0x3e4] ss:$8 sps:$4 sm:$0xff]  }
  0xd9   : > { %2404 = vmatmul.mubr.bf16.vlgmr.msra.gmra.mrb[0].mxu0 %v811_v47  ;;  %2243 = vmatpush1.bf16.msra.mxu1 %v3490_v49  ;;  %v3579_v47 = vld [vmem:[%s3718_s27 + $0x7e4] ss:$8 sps:$4 sm:$0xff]   ;;  %v3574_v49 = vld [vmem:[%s3718_s27 + $0x3e0] ss:$8 sps:$4 sm:$0xff]  }
  0xda   : > { %2415 = vmatpush1.bf16.msra.mxu0 %v3493_v50  ;;  %2244 = vmatprep.subr.bf16.mxu1 %v3498_v51  ;;  %v3577_v50 = vld [vmem:[%s3718_s27 + $0x7e0] ss:$8 sps:$4 sm:$0xff]   ;;  %v3582_v51 = vld [vmem:[%s3718_s27 + $0x3f4] ss:$8 sps:$4 sm:$0xff]  }
  0xdb   : > { %2416 = vmatprep.subr.bf16.mxu0 %v3501_v52  ;;  %2274 = vmatprep.mubr.bf16.mxu1 %v680_v32  ;;  %v3514_v32 = vld [vmem:[%s3718_s27 + $0x340] ss:$8 sps:$4 sm:$0xff]   ;;  %v3585_v52 = vld [vmem:[%s3718_s27 + $0x7f4] ss:$8 sps:$4 sm:$0xff]  }
  0xdc   : > { %2446 = vmatprep.mubr.bf16.mxu0 %v816_v33  ;;  %v3517_v33 = vld [vmem:[%s3718_s27 + $0x740] ss:$8 sps:$4 sm:$0xff]  }
  0xdd   : > { %2245 = vmatpush1.bf16.msra.mxu1 %v3496_v53  ;;  %v3580_v53 = vld [vmem:[%s3718_s27 + $0x3f0] ss:$8 sps:$4 sm:$0xff]  }
  0xde   : > { %2417 = vmatpush1.bf16.msra.mxu0 %v3499_v55  ;;  %2246 = vmatprep.subr.bf16.mxu1 %v3504_v56  ;;  %v3583_v55 = vld [vmem:[%s3718_s27 + $0x7f0] ss:$8 sps:$4 sm:$0xff]  }
  0xdf   : > { %2418 = vmatprep.subr.bf16.mxu0 %v3507_v57 }
  0xe1   : > { %2247 = vmatpush1.bf16.msra.mxu1 %v3502_v58 }
  0xe2   : > { %2419 = vmatpush1.bf16.msra.mxu0 %v3505_v59  ;;  %2248 = vmatprep.subr.bf16.mxu1 %v3510_v60 }
  0xe3   : > { %2420 = vmatprep.subr.bf16.mxu0 %v3513_v61 }
  0xe5   : > { %2249 = vmatpush1.bf16.msra.mxu1 %v3508_v18 }
  0xe6   : > { %2421 = vmatpush1.bf16.msra.mxu0 %v3511_v19  ;;  %2250 = vmatprep.subr.bf16.mxu1 %v3516_v20 }
  0xe7   : > { %2422 = vmatprep.subr.bf16.mxu0 %v3519_v21 }
  0xe9   : > { %2251 = vmatpush1.bf16.msra.mxu1 %v3514_v32 }
  0xea   : > { %2423 = vmatpush1.bf16.msra.mxu0 %v3517_v33  ;;  %2252 = vmatprep.subr.bf16.mxu1 %v3522_v62 }
  0xeb   : > { %2424 = vmatprep.subr.bf16.mxu0 %v3525_v63 }
  0xed   : > { %2253 = vmatpush1.bf16.msra.mxu1 %v3520_v0 }
  0xee   : > { %2425 = vmatpush1.bf16.msra.mxu0 %v3523_v1  ;;  %2254 = vmatprep.subr.bf16.mxu1 %v3528_v2 }
  0xef   : > { %2426 = vmatprep.subr.bf16.mxu0 %v3531_v3 }
  0xf1   : > { %2255 = vmatpush1.bf16.msra.mxu1 %v3526_v4 }
  0xf2   : > { %2427 = vmatpush1.bf16.msra.mxu0 %v3529_v5  ;;  %2256 = vmatprep.subr.bf16.mxu1 %v3534_v6 }
  0xf3   : > { %2428 = vmatprep.subr.bf16.mxu0 %v3537_v7 }
  0xf5   : > { %2257 = vmatpush1.bf16.msra.mxu1 %v3532_v8 }
  0xf6   : > { %2429 = vmatpush1.bf16.msra.mxu0 %v3535_v9  ;;  %2258 = vmatprep.subr.bf16.mxu1 %v3540_v10 }
  0xf7   : > { %2430 = vmatprep.subr.bf16.mxu0 %v3543_v11 }
  0xf9   : > { %2259 = vmatpush1.bf16.msra.mxu1 %v3538_v12 }
  0xfa   : > { %2431 = vmatpush1.bf16.msra.mxu0 %v3541_v13  ;;  %2260 = vmatprep.subr.bf16.mxu1 %v3546_v14 }
  0xfb   : > { %2432 = vmatprep.subr.bf16.mxu0 %v3549_v15 }
  0xfd   : > { %2261 = vmatpush1.bf16.msra.mxu1 %v3544_v16 }
  0xfe   : > { %2433 = vmatpush1.bf16.msra.mxu0 %v3547_v17  ;;  %2262 = vmatprep.subr.bf16.mxu1 %v3552_v26 }
  0xff   : > { %2434 = vmatprep.subr.bf16.mxu0 %v3555_v27 }
 0x101   : > { %2263 = vmatpush1.bf16.msra.mxu1 %v3550_v30 }
 0x102   : > { %2435 = vmatpush1.bf16.msra.mxu0 %v3553_v35  ;;  %2264 = vmatprep.subr.bf16.mxu1 %v3558_v38 }
 0x103   : > { %2436 = vmatprep.subr.bf16.mxu0 %v3561_v40 }
 0x105   : > { %2265 = vmatpush1.bf16.msra.mxu1 %v3556_v41 }
 0x106   : > { %2437 = vmatpush1.bf16.msra.mxu0 %v3559_v42  ;;  %2266 = vmatprep.subr.bf16.mxu1 %v3564_v44 }
 0x107   : > { %2438 = vmatprep.subr.bf16.mxu0 %v3567_v45 }
 0x109   : > { %2267 = vmatpush1.bf16.msra.mxu1 %v3562_v24 }
 0x10a   : > { %2439 = vmatpush1.bf16.msra.mxu0 %v3565_v25  ;;  %2268 = vmatprep.subr.bf16.mxu1 %v3570_v31 }
 0x10b   : > { %2440 = vmatprep.subr.bf16.mxu0 %v3573_v36 }
 0x10d   : > { %2269 = vmatpush1.bf16.msra.mxu1 %v3568_v39 }
 0x10e   : > { %2441 = vmatpush1.bf16.msra.mxu0 %v3571_v43  ;;  %2270 = vmatprep.subr.bf16.mxu1 %v3576_v46 }
 0x10f   : > { %2442 = vmatprep.subr.bf16.mxu0 %v3579_v47 }
 0x111   : > { %2271 = vmatpush1.bf16.msra.mxu1 %v3574_v49 }
 0x112   : > { %2443 = vmatpush1.bf16.msra.mxu0 %v3577_v50  ;;  %2272 = vmatprep.subr.bf16.mxu1 %v3582_v51 }
 0x113   : > { %2444 = vmatprep.subr.bf16.mxu0 %v3585_v52 }
 0x115   : > { %2273 = vmatpush1.bf16.msra.mxu1 %v3580_v53 }
 0x116   : > { %2445 = vmatpush1.bf16.msra.mxu0 %v3583_v55 }
 0x118   : > { %2275 = vmatmul.mubr.bf16.vlgmr.msra.gmra.mrb[0].mxu1 %v676_v34 }
 0x119   : > { %2447 = vmatmul.mubr.bf16.vlgmr.msra.gmra.mrb[0].mxu0 %v812_v37 }
 0x1eb   : > { %v2276_v56 = vpop.f32.mrb[0].mxu1 }
 0x1ec   : > { %v2448_v57 = vpop.f32.mrb[0].mxu0  ;;  %v2278_v59 = vpop.f32.mrb[1].mxu1 }
 0x1ed   : > { %v3077_v58 = vadd.f32 %v2448_v57, %v2276_v56  ;;  %v2450_v60 = vpop.f32.mrb[1].mxu0  ;;  %v2280_v18 = vpop.f32.mrb[2].mxu1 }
 0x1ee   : > { %v3078_v61 = vadd.f32 %v2450_v60, %v2278_v59  ;;  %v2452_v19 = vpop.f32.mrb[2].mxu0  ;;  %v2282_v22 = vpop.f32.mrb[3].mxu1 }
 0x1ef   : > { %v2536_v20 = vsel %vm2534_vm0, %v3077_v58, 0.0  ;;  %v2454_v23 = vpop.f32.mrb[3].mxu0 }
 0x1f0   : > { %v2541_v28 = vrot.slane %v2536_v20, 4  ;;  %v2554_v29 = vmul.f32 %v2536_v20, %v2536_v20  ;;  %v3063_v34 = vpack.c.bf16 %v3078_v61, %v3077_v58  ;;  %v2537_v37 = vsel %vm2534_vm0, %v3078_v61, 0.0 }
 0x1f1   : > { %v2548_v21 = vrot.slane %v2537_v37, 4  ;;  %v2555_v32 = vmul.f32 %v2537_v37, %v2537_v37 }
 0x1f2   : > { %v2542_v33 = vadd.f32 %v2541_v28, %v2536_v20  ;;  %v2559_v62 = vrot.slane %v2554_v29, 4  ;;  %v2469_v63 = vrot.slane %v3063_v34, %v3780_v54 }
 0x1f3   : > { %v2549_v0 = vadd.f32 %v2548_v21, %v2537_v37  ;;  %v2566_v1 = vrot.slane %v2555_v32, 4 }
 0x1f4   : > { %v2543_v2 = vrot.slane %v2542_v33, 2  ;;  %v2560_v3 = vadd.f32 %v2559_v62, %v2554_v29  ;;  %3065 = vst.sshfl [vmem:[%s211_s7] sm:$0x5 pattern:$0x73625140] %v2469_v63 }
 0x1f5   : > { %v2550_v4 = vrot.slane %v2549_v0, 2  ;;  %v2567_v5 = vadd.f32 %v2566_v1, %v2555_v32 }
 0x1f6   : > { %v2544_v6 = vadd.f32 %v2543_v2, %v2542_v33  ;;  %v2561_v7 = vrot.slane %v2560_v3, 2 }
 0x1f7   : > { %v2551_v8 = vadd.f32 %v2550_v4, %v2549_v0  ;;  %v2568_v9 = vrot.slane %v2567_v5, 2 }
 0x1f8   : > { %v2545_v10 = vrot.slane %v2544_v6, 1  ;;  %v2562_v11 = vadd.f32 %v2561_v7, %v2560_v3 }
 0x1f9   : > { %v2552_v12 = vrot.slane %v2551_v8, 1  ;;  %v2569_v13 = vadd.f32 %v2568_v9, %v2567_v5 }
 0x1fa   : > { %v2546_v14 = vadd.f32 %v2545_v10, %v2544_v6  ;;  %v2563_v54 = vrot.slane %v2562_v11, 1 }
 0x1fb   : > { %v2553_v15 = vadd.f32 %v2552_v12, %v2551_v8  ;;  %v2570_v16 = vrot.slane %v2569_v13, 1 }
 0x1fc   : > { %v2564_v17 = vadd.f32 %v2563_v54, %v2562_v11  ;;  %v2573_v27 = vsel %vm2572_vm1, %v2546_v14, 0.0  ;;  %2597 = sbr.rel (!%p3699_p3) target bundleno = 525 (0x20d), region = 32 }
 0x1fd   : > { %v2571_v26 = vadd.f32 %v2570_v16, %v2569_v13  ;;  %v2574_v38 = vsel %vm2572_vm1, %v2553_v15, 0.0 }
 0x1fe   : > { %v2576_v30 = vsel %vm2575_vm2, %v2564_v17, 0.0 }
 0x1ff   : > { %v2578_v35 = vadd.f32 %v2576_v30, %v2573_v27  ;;  %v2577_v40 = vsel %vm2575_vm2, %v2571_v26, 0.0 }
 0x200   : > { %v2579_v41 = vadd.f32 %v2577_v40, %v2574_v38 }
 0x201   : > { %2580 = vst [vmem:[%s256_s10] sm:$0xff] %v2578_v35 }
 0x202   : > { %2581 = vst [vmem:[%s256_s10 + $0x8] sm:$0xff] %v2579_v41 }
 0x203 LB: >> { %v2624_v48 = vld [vmem:[%s211_s7] sm:$0x3]  ;;  %s2618_s21 = sadd.s32 1, %s3644_s21   ;;  %s3644_s21 = sphi %s3642_s21, %s2618_s21  }
 0x204   : >> { %2625 = vst [vmem:[%s2606_s19] sm:$0x3] %v2624_v48  ;;  %p2617_p9 = scmp.ge.s32.totalorder %s2618_s21, 1 }
 0x206   : > { %2620 = sbr.rel (!%p2617_p9) target bundleno = 515 (0x203), region = 107 }
 0x20d PF: > { %s14_s16 = sadd.s32 1, %s3640_s16   ;;  %s4150_s12 = smov %s3628_s13 }
 0x20e   : > { %p11_p10 = scmp.ge.s32.totalorder %s14_s16, 6   ;;  %s4151_s13 = smov %s3708_s22 }
 0x20f   : > { %s4152_s14 = smov %s3636_s15  ;;  %s4153_s15 = smov %s4155_s18 }
 0x210   :  { %13 = sbr.rel (!%p11_p10) target bundleno = 3 (0x3), region = 118 }

// kernel: generator_forward.25
= control target key start
LH: loop header
LB: loop body
LE: loop exit
PB: predicated region body
PF: predicated region fallthrough
CT: control target
= control target key end

     0   :  { %s1630_s12 = smov 0   ;;  %s1632_s13 = smov 0   ;;  %s1794_s0 = inlined_call_operand.vmem [shape: bf16[4,8,1024], index: 0, kind: input, shape index: {}]   ;;  %s1795_s1 = inlined_call_operand.vmem [shape: bf16[4,1024,128], index: 1, kind: input, shape index: {}]   ;;  %s1796_s2 = inlined_call_operand.vmem [shape: bf16[4,8,128], index: 2, kind: output, shape index: {0}]   ;;  %s1797_s3 = inlined_call_operand.vmem [shape: f32[4,1,8,128], index: 3, kind: output, shape index: {1}]  }
   0x1   :  { %s1634_s14 = smov 0   ;;  %s1636_s15 = smov 0  }
   0x2   :  { %s1638_s16 = smov 0  }
   0x3 LB: > { %s1226_s17 = sadd.s32 4294967295, %s1604_s16   ;;  %s26_s18 = sadd.s32 1, %s1600_s15  ;;  %s1604_s16 = sphi %s1638_s16, %s14_s16   ;;  %s1600_s15 = sphi %s1636_s15, %s1802_s15   ;;  %s1596_s14 = sphi %s1634_s14, %s1801_s14   ;;  %s1592_s13 = sphi %s1632_s13, %s1800_s13   ;;  %s1588_s12 = sphi %s1630_s12, %s1799_s12  }
   0x4   : > { %p28_p0 = scmp.ge.s32.totalorder %s26_s18, 4  ;;  %s89_s19 = sadd.s32 1, %s1592_s13 }
   0x5   : > { %p99_p1 = scmp.ne.s32.totalorder %s1592_s13, %s1588_s12  ;;  %p100_p2 = scmp.eq.s32.totalorder %s1226_s17, 3 }
   0x6   : > { %s1804_s18 = smov (%p28_p0, %s26_s18), 0  ;;  %p1230_p4 = scmp.ge.s32.totalorder %s1604_s16, 1 }
   0x7   : > { %p1662_p3 = por %p100_p2, %p99_p1  ;;  %s84_s21 = ssub.s32 %s1600_s15, %s1804_s18 }
   0x8   : > { %p180_p5 = scmp.lt.s32.totalorder %s1604_s16, 5  ;;  %p87_p6 = scmp.eq.s32.totalorder %s84_s21, 0 }
   0xa   : > { %p181_p7 = pnand %p1230_p4, %p180_p5 }
   0xb   : > { %s1671_s22 = scalar_select %p87_p6, %s1592_s13, %s89_s19  }
   0xc   : > { %184 = sbr.rel (%p181_p7) target bundleno = 336 (0x150), region = 28  ;;  %p227_p8 = scmp.lt.s32.totalorder (!%p181_p7), %s1596_s14, 3 }
   0xd   : > { %s211_s5 = sand.u32 (!%p181_p7), 1, %s1588_s12  }
   0xe   : > { %s1762_s6 = sshll.u32 (!%p181_p7), %s211_s5, 3 }
   0xf   : > { %s213_s7 = scalar_lea.vmem (!%p181_p7), [#allocation2], %s1762_s6  }
  0x13   : > { %s1675_s23 = scalar_select %p227_p8, %s1596_s14, 3 }
  0x14   : > { %s1312_s12 = sshll.u32 (%p1662_p3), %s1596_s14, 2 }
  0x15   : > { %s1318_s24 = sshll.u32 %s1675_s23, 9  ;;  %s1317_s28 = sshll.u32 %s1675_s23, 5 }
  0x16   : > { %s1681_s27 = scalar_lea.vmem %s1795_s1, %s1318_s24  ;;  %s1717_s4 = scalar_lea.vmem %s1794_s0, %s1317_s28 }
  0x17   : > { %v1486_v0 = vld [vmem:[%s1681_s27 + $0x40] sm:$0xff]   ;;  %v1490_v4 = vld [vmem:[%s1681_s27 + $0x48] sm:$0xff]   ;;  %v1494_v8 = vld [vmem:[%s1681_s27 + $0x50] sm:$0xff]   ;;  %s1236_s8 = sshll.u32 %s1675_s23, 3  ;;  %s1043_s21 = scalar_lea.vmem (%p1662_p3), %s1796_s2, %s1312_s12  }
  0x18   : > { %v1487_v1 = vld [vmem:[%s1681_s27 + $0xc0] sm:$0xff]   ;;  %1326 = vmatprep.subr.bf16.mxu0 %v1486_v0  ;;  %v1491_v5 = vld [vmem:[%s1681_s27 + $0xc8] sm:$0xff]   ;;  %v1495_v9 = vld [vmem:[%s1681_s27 + $0xd0] sm:$0xff]   ;;  %s254_s11 = scalar_lea.vmem %s1797_s3, %s1236_s8  ;;  %s1606_s23 = smov (%p1662_p3), 0  }
  0x19   : > { %v1488_v2 = vld [vmem:[%s1681_s27] sm:$0xff]   ;;  %1348 = vmatprep.subr.bf16.mxu1 %v1487_v1  ;;  %v1492_v6 = vld [vmem:[%s1681_s27 + $0x8] sm:$0xff]   ;;  %v1496_v10 = vld [vmem:[%s1681_s27 + $0x10] sm:$0xff]  }
  0x1a   : > { %v1489_v3 = vld [vmem:[%s1681_s27 + $0x80] sm:$0xff]   ;;  %1327 = vmatpush3.bf16.msra.mxu0 %v1488_v2  ;;  %v1493_v7 = vld [vmem:[%s1681_s27 + $0x88] sm:$0xff]   ;;  %v1497_v11 = vld [vmem:[%s1681_s27 + $0x90] sm:$0xff]  }
  0x1b   : > { %1349 = vmatpush3.bf16.msra.mxu1 %v1489_v3  ;;  %1328 = vmatprep.subr.bf16.mxu0 %v1490_v4  ;;  %v1498_v12 = vld [vmem:[%s1681_s27 + $0x58] sm:$0xff]   ;;  %v1502_v16 = vld [vmem:[%s1681_s27 + $0x60] sm:$0xff]   ;;  %v1506_v20 = vld [vmem:[%s1681_s27 + $0x68] sm:$0xff]  }
  0x1c   : > { %1350 = vmatprep.subr.bf16.mxu1 %v1491_v5  ;;  %v1499_v13 = vld [vmem:[%s1681_s27 + $0xd8] sm:$0xff]   ;;  %v1503_v17 = vld [vmem:[%s1681_s27 + $0xe0] sm:$0xff]   ;;  %v1507_v21 = vld [vmem:[%s1681_s27 + $0xe8] sm:$0xff]  }
  0x1d   : > { %v1500_v14 = vld [vmem:[%s1681_s27 + $0x18] sm:$0xff]   ;;  %v1504_v18 = vld [vmem:[%s1681_s27 + $0x20] sm:$0xff]   ;;  %v1508_v22 = vld [vmem:[%s1681_s27 + $0x28] sm:$0xff]  }
  0x1e   : > { %1329 = vmatpush3.bf16.msra.mxu0 %v1492_v6  ;;  %v1501_v15 = vld [vmem:[%s1681_s27 + $0x98] sm:$0xff]   ;;  %v1505_v19 = vld [vmem:[%s1681_s27 + $0xa0] sm:$0xff]   ;;  %v1509_v23 = vld [vmem:[%s1681_s27 + $0xa8] sm:$0xff]  }
  0x1f   : > { %1351 = vmatpush3.bf16.msra.mxu1 %v1493_v7  ;;  %1330 = vmatprep.subr.bf16.mxu0 %v1494_v8  ;;  %v1510_v24 = vld [vmem:[%s1681_s27 + $0x70] sm:$0xff]   ;;  %v1514_v28 = vld [vmem:[%s1681_s27 + $0x78] sm:$0xff]   ;;  %v256_v32 = vld [vmem:[%s1717_s4] sm:$0xff] }
  0x20   : > { %1352 = vmatprep.subr.bf16.mxu1 %v1495_v9  ;;  %v1511_v25 = vld [vmem:[%s1681_s27 + $0xf0] sm:$0xff]   ;;  %v1515_v29 = vld [vmem:[%s1681_s27 + $0xf8] sm:$0xff]   ;;  %v260_v33 = vld [vmem:[%s1717_s4 + $0x20] sm:$0xff] }
  0x21   : > { %v1512_v26 = vld [vmem:[%s1681_s27 + $0x30] sm:$0xff]   ;;  %v1516_v30 = vld [vmem:[%s1681_s27 + $0x38] sm:$0xff]   ;;  %v257_v34 = vld [vmem:[%s1717_s4 + $0x8] sm:$0xff]  ;;  %v1237_v35 = vcombine.low %v256_v32, %v260_v33  ;;  %v1238_v36 = vcombine.high %v256_v32, %v260_v33 }
  0x22   : > { %1331 = vmatpush3.bf16.msra.mxu0 %v1496_v10  ;;  %v1513_v27 = vld [vmem:[%s1681_s27 + $0xb0] sm:$0xff]   ;;  %v1517_v31 = vld [vmem:[%s1681_s27 + $0xb8] sm:$0xff]   ;;  %v261_v37 = vld [vmem:[%s1717_s4 + $0x28] sm:$0xff] }
  0x23   : > { %1353 = vmatpush3.bf16.msra.mxu1 %v1497_v11  ;;  %1332 = vmatprep.subr.bf16.mxu0 %v1498_v12  ;;  %v1239_v38 = vcombine.low %v257_v34, %v261_v37  ;;  %v1240_v39 = vcombine.high %v257_v34, %v261_v37  ;;  %v1518_v40 = vld [vmem:[%s1681_s27 + $0x140] sm:$0xff]   ;;  %v1522_v44 = vld [vmem:[%s1681_s27 + $0x148] sm:$0xff]   ;;  %v1526_v48 = vld [vmem:[%s1681_s27 + $0x150] sm:$0xff]  }
  0x24   : > { %1354 = vmatprep.subr.bf16.mxu1 %v1499_v13  ;;  %848 = vmatprep.mubr.bf16.mxu0 %v1238_v36  ;;  %v1519_v41 = vld [vmem:[%s1681_s27 + $0x1c0] sm:$0xff]   ;;  %v1523_v45 = vld [vmem:[%s1681_s27 + $0x1c8] sm:$0xff]   ;;  %v1527_v49 = vld [vmem:[%s1681_s27 + $0x1d0] sm:$0xff]  }
  0x25   : > { %889 = vmatprep.mubr.bf16.mxu1 %v1240_v39  ;;  %v1520_v42 = vld [vmem:[%s1681_s27 + $0x100] sm:$0xff]   ;;  %v1524_v46 = vld [vmem:[%s1681_s27 + $0x108] sm:$0xff]   ;;  %v1528_v50 = vld [vmem:[%s1681_s27 + $0x110] sm:$0xff]  }
  0x26   : > { %1333 = vmatpush3.bf16.msra.mxu0 %v1500_v14  ;;  %v1521_v43 = vld [vmem:[%s1681_s27 + $0x180] sm:$0xff]   ;;  %v1525_v47 = vld [vmem:[%s1681_s27 + $0x188] sm:$0xff]   ;;  %v1529_v51 = vld [vmem:[%s1681_s27 + $0x190] sm:$0xff]  }
  0x27   : > { %1355 = vmatpush3.bf16.msra.mxu1 %v1501_v15  ;;  %1334 = vmatprep.subr.bf16.mxu0 %v1502_v16  ;;  %v1530_v52 = vld [vmem:[%s1681_s27 + $0x158] sm:$0xff]   ;;  %v1534_v56 = vld [vmem:[%s1681_s27 + $0x160] sm:$0xff]   ;;  %v1538_v60 = vld [vmem:[%s1681_s27 + $0x168] sm:$0xff]  }
  0x28   : > { %1356 = vmatprep.subr.bf16.mxu1 %v1503_v17  ;;  %v1531_v53 = vld [vmem:[%s1681_s27 + $0x1d8] sm:$0xff]   ;;  %v1535_v57 = vld [vmem:[%s1681_s27 + $0x1e0] sm:$0xff]   ;;  %v1539_v61 = vld [vmem:[%s1681_s27 + $0x1e8] sm:$0xff]  }
  0x29   : > { %v1532_v54 = vld [vmem:[%s1681_s27 + $0x118] sm:$0xff]   ;;  %v1536_v58 = vld [vmem:[%s1681_s27 + $0x120] sm:$0xff]   ;;  %v1540_v62 = vld [vmem:[%s1681_s27 + $0x128] sm:$0xff]  }
  0x2a   : > { %1335 = vmatpush3.bf16.msra.mxu0 %v1504_v18  ;;  %v1533_v55 = vld [vmem:[%s1681_s27 + $0x198] sm:$0xff]   ;;  %v1537_v59 = vld [vmem:[%s1681_s27 + $0x1a0] sm:$0xff]   ;;  %v1541_v63 = vld [vmem:[%s1681_s27 + $0x1a8] sm:$0xff]  }
  0x2b   : > { %1357 = vmatpush3.bf16.msra.mxu1 %v1505_v19  ;;  %1336 = vmatprep.subr.bf16.mxu0 %v1506_v20  ;;  %v1542_v0 = vld [vmem:[%s1681_s27 + $0x170] sm:$0xff]   ;;  %v1546_v4 = vld [vmem:[%s1681_s27 + $0x178] sm:$0xff]  }
  0x2c   : > { %1358 = vmatprep.subr.bf16.mxu1 %v1507_v21  ;;  %v1543_v1 = vld [vmem:[%s1681_s27 + $0x1f0] sm:$0xff]   ;;  %v1547_v5 = vld [vmem:[%s1681_s27 + $0x1f8] sm:$0xff]  }
  0x2d   : > { %v1544_v2 = vld [vmem:[%s1681_s27 + $0x130] sm:$0xff]   ;;  %v1548_v6 = vld [vmem:[%s1681_s27 + $0x138] sm:$0xff]  }
  0x2e   : > { %1337 = vmatpush3.bf16.msra.mxu0 %v1508_v22  ;;  %v1545_v3 = vld [vmem:[%s1681_s27 + $0x1b0] sm:$0xff]   ;;  %v1549_v7 = vld [vmem:[%s1681_s27 + $0x1b8] sm:$0xff]  }
  0x2f   : > { %1359 = vmatpush3.bf16.msra.mxu1 %v1509_v23  ;;  %1338 = vmatprep.subr.bf16.mxu0 %v1510_v24  ;;  %v258_v8 = vld [vmem:[%s1717_s4 + $0x10] sm:$0xff]  ;;  %v259_v12 = vld [vmem:[%s1717_s4 + $0x18] sm:$0xff] }
  0x30   : > { %1360 = vmatprep.subr.bf16.mxu1 %v1511_v25  ;;  %v262_v9 = vld [vmem:[%s1717_s4 + $0x30] sm:$0xff]  ;;  %v263_v13 = vld [vmem:[%s1717_s4 + $0x38] sm:$0xff] }
  0x31   : > { %v1241_v10 = vcombine.low %v258_v8, %v262_v9  ;;  %v1242_v11 = vcombine.high %v258_v8, %v262_v9  ;;  %v1243_v14 = vcombine.low %v259_v12, %v263_v13  ;;  %v1244_v15 = vcombine.high %v259_v12, %v263_v13 }
  0x32   : > { %1339 = vmatpush3.bf16.msra.mxu0 %v1512_v26 }
  0x33   : > { %1361 = vmatpush3.bf16.msra.mxu1 %v1513_v27  ;;  %1340 = vmatprep.subr.bf16.mxu0 %v1514_v28 }
  0x34   : > { %1362 = vmatprep.subr.bf16.mxu1 %v1515_v29 }
  0x36   : > { %1341 = vmatpush3.bf16.msra.mxu0 %v1516_v30 }
  0x37   : > { %1363 = vmatpush3.bf16.msra.mxu1 %v1517_v31  ;;  %1370 = vmatprep.subr.bf16.mxu0 %v1518_v40 }
  0x38   : > { %1392 = vmatprep.subr.bf16.mxu1 %v1519_v41 }
  0x39   : > { %849 = vmatmul.mubr.bf16.vlgmr.msra.gmra.mrb[0].mxu0 %v1237_v35 }
  0x3a   : > { %890 = vmatmul.mubr.bf16.vlgmr.msra.gmra.mrb[0].mxu1 %v1239_v38  ;;  %1371 = vmatpush3.bf16.msra.mxu0 %v1520_v42 }
  0x3b   : > { %1393 = vmatpush3.bf16.msra.mxu1 %v1521_v43  ;;  %1372 = vmatprep.subr.bf16.mxu0 %v1522_v44 }
  0x3c   : > { %1394 = vmatprep.subr.bf16.mxu1 %v1523_v45  ;;  %930 = vmatprep.mubr.bf16.mxu0 %v1242_v11 }
  0x3d   : > { %971 = vmatprep.mubr.bf16.mxu1 %v1244_v15 }
  0x3e   : > { %1373 = vmatpush3.bf16.msra.mxu0 %v1524_v46 }
  0x3f   : > { %1395 = vmatpush3.bf16.msra.mxu1 %v1525_v47  ;;  %1374 = vmatprep.subr.bf16.mxu0 %v1526_v48 }
  0x40   : > { %1396 = vmatprep.subr.bf16.mxu1 %v1527_v49 }
  0x42   : > { %1375 = vmatpush3.bf16.msra.mxu0 %v1528_v50 }
  0x43   : > { %1397 = vmatpush3.bf16.msra.mxu1 %v1529_v51  ;;  %1376 = vmatprep.subr.bf16.mxu0 %v1530_v52  ;;  %v990_v51 = vlaneseq }
  0x44   : > { %1398 = vmatprep.subr.bf16.mxu1 %v1531_v53 }
  0x46   : > { %1377 = vmatpush3.bf16.msra.mxu0 %v1532_v54 }
  0x47   : > { %1399 = vmatpush3.bf16.msra.mxu1 %v1533_v55  ;;  %1378 = vmatprep.subr.bf16.mxu0 %v1534_v56  ;;  %v991_v56 = vshrl.u32 %v990_v51, 7 }
  0x48   : > { %1400 = vmatprep.subr.bf16.mxu1 %v1535_v57 }
  0x49   : > { %vm1017_vm0 = vcmp.eq.s32.totalorder %v991_v56, 0  ;;  %vm1019_vm1 = vcmp.eq.s32.totalorder %v991_v56, 1 }
  0x4a   : > { %1379 = vmatpush3.bf16.msra.mxu0 %v1536_v58 }
  0x4b   : > { %1401 = vmatpush3.bf16.msra.mxu1 %v1537_v59  ;;  %1380 = vmatprep.subr.bf16.mxu0 %v1538_v60 }
  0x4c   : > { %1402 = vmatprep.subr.bf16.mxu1 %v1539_v61 }
  0x4e   : > { %1381 = vmatpush3.bf16.msra.mxu0 %v1540_v62 }
  0x4f   : > { %1403 = vmatpush3.bf16.msra.mxu1 %v1541_v63  ;;  %1382 = vmatprep.subr.bf16.mxu0 %v1542_v0 }
  0x50   : > { %1404 = vmatprep.subr.bf16.mxu1 %v1543_v1 }
  0x52   : > { %1383 = vmatpush3.bf16.msra.mxu0 %v1544_v2 }
  0x53   : > { %1405 = vmatpush3.bf16.msra.mxu1 %v1545_v3  ;;  %1384 = vmatprep.subr.bf16.mxu0 %v1546_v4 }
  0x54   : > { %1406 = vmatprep.subr.bf16.mxu1 %v1547_v5 }
  0x56   : > { %1385 = vmatpush3.bf16.msra.mxu0 %v1548_v6 }
  0x57   : > { %1407 = vmatpush3.bf16.msra.mxu1 %v1549_v7 }
  0x59   : > { %931 = vmatmul.mubr.bf16.vlgmr.msra.gmra.mrb[4].mxu0 %v1241_v10 }
  0x5a   : > { %972 = vmatmul.mubr.bf16.vlgmr.msra.gmra.mrb[4].mxu1 %v1243_v14 }
 0x10c   : > { %v1342_v16 = vpop.f32.mrb[0].mxu0 }
 0x10d   : > { %v1364_v17 = vpop.f32.mrb[0].mxu1  ;;  %v1343_v18 = vpop.f32.mrb[1].mxu0 }
 0x10e   : > { %v1344_v19 = vadd.f32 %v1343_v18, %v1342_v16  ;;  %v1365_v20 = vpop.f32.mrb[1].mxu1  ;;  %v1345_v21 = vpop.f32.mrb[2].mxu0 }
 0x10f   : > { %v1366_v22 = vadd.f32 %v1365_v20, %v1364_v17  ;;  %v1367_v23 = vpop.f32.mrb[2].mxu1  ;;  %v1346_v24 = vpop.f32.mrb[3].mxu0 }
 0x110   : > { %v1347_v25 = vadd.f32 %v1346_v24, %v1345_v21  ;;  %v1368_v26 = vpop.f32.mrb[3].mxu1 }
 0x111   : > { %v892_v27 = vadd.f32 %v1366_v22, %v1344_v19  ;;  %v1369_v28 = vadd.f32 %v1368_v26, %v1367_v23 }
 0x113   : > { %v895_v29 = vadd.f32 %v1369_v28, %v1347_v25 }
 0x12c   : > { %v1386_v30 = vpop.f32.mrb[4].mxu0 }
 0x12d   : > { %v1408_v31 = vpop.f32.mrb[4].mxu1  ;;  %v1387_v32 = vpop.f32.mrb[5].mxu0 }
 0x12e   : > { %v1388_v33 = vadd.f32 %v1387_v32, %v1386_v30  ;;  %v1409_v34 = vpop.f32.mrb[5].mxu1  ;;  %v1389_v35 = vpop.f32.mrb[6].mxu0 }
 0x12f   : > { %v1410_v36 = vadd.f32 %v1409_v34, %v1408_v31  ;;  %v1411_v37 = vpop.f32.mrb[6].mxu1  ;;  %v1390_v38 = vpop.f32.mrb[7].mxu0 }
 0x130   : > { %v933_v39 = vadd.f32 %v1388_v33, %v892_v27  ;;  %v1391_v40 = vadd.f32 %v1390_v38, %v1389_v35  ;;  %v1412_v41 = vpop.f32.mrb[7].mxu1 }
 0x131   : > { %v1413_v42 = vadd.f32 %v1412_v41, %v1411_v37 }
 0x132   : > { %v974_v43 = vadd.f32 %v1410_v36, %v933_v39  ;;  %v936_v44 = vadd.f32 %v1391_v40, %v895_v29 }
 0x134   : > { %v1002_v45 = vrot.slane %v974_v43, 4  ;;  %v1008_v46 = vmul.f32 %v974_v43, %v974_v43  ;;  %v977_v47 = vadd.f32 %v1413_v42, %v936_v44 }
 0x136   : > { %v1003_v48 = vadd.f32 %v1002_v45, %v974_v43  ;;  %v1011_v49 = vrot.slane %v1008_v46, 4  ;;  %v1324_v50 = vpack.c.bf16 %v977_v47, %v974_v43 }
 0x138   : > { %v1004_v52 = vrot.slane %v1003_v48, 2  ;;  %v1012_v53 = vadd.f32 %v1011_v49, %v1008_v46  ;;  %1325 = vst [vmem:[%s213_s7] sm:$0xff] %v1324_v50  }
 0x13a   : > { %v1005_v54 = vadd.f32 %v1004_v52, %v1003_v48  ;;  %v1013_v55 = vrot.slane %v1012_v53, 2 }
 0x13c   : > { %v1006_v57 = vrot.slane %v1005_v54, 1  ;;  %v1014_v58 = vadd.f32 %v1013_v55, %v1012_v53 }
 0x13e   : > { %v1007_v59 = vadd.f32 %v1006_v57, %v1005_v54  ;;  %v1015_v60 = vrot.slane %v1014_v58, 1 }
 0x13f   : > { %1036 = sbr.rel (!%p1662_p3) target bundleno = 336 (0x150), region = 32 }
 0x140   : > { %v1016_v61 = vadd.f32 %v1015_v60, %v1014_v58  ;;  %v1018_v62 = vsel %vm1017_vm0, %v1007_v59, 0.0 }
 0x142   : > { %v1020_v63 = vsel %vm1019_vm1, %v1016_v61, 0.0 }
 0x143   : > { %v1021_v0 = vadd.f32 %v1020_v63, %v1018_v62 }
 0x145   : > { %1022 = vst [vmem:[%s254_s11] sm:$0xff] %v1021_v0 }
 0x146 LB: >> { %v1061_v1 = vld [vmem:[%s213_s7] sm:$0xf]  ;;  %s1055_s23 = sadd.s32 1, %s1608_s23   ;;  %s1608_s23 = sphi %s1606_s23, %s1055_s23  }
 0x147   : >> { %1062 = vst [vmem:[%s1043_s21] sm:$0xf] %v1061_v1  ;;  %p1054_p9 = scmp.ge.s32.totalorder %s1055_s23, 1 }
 0x149   : > { %1057 = sbr.rel (!%p1054_p9) target bundleno = 326 (0x146), region = 107 }
 0x150 PF: > { %s14_s16 = sadd.s32 1, %s1604_s16   ;;  %s1799_s12 = smov %s1592_s13 }
 0x151   : > { %p11_p10 = scmp.ge.s32.totalorder %s14_s16, 6   ;;  %s1800_s13 = smov %s1671_s22 }
 0x152   : > { %s1801_s14 = smov %s1600_s15  ;;  %s1802_s15 = smov %s1804_s18 }
 0x153   :  { %13 = sbr.rel (!%p11_p10) target bundleno = 3 (0x3), region = 118 }

// kernel: generator_forward.26
= control target key start
LH: loop header
LB: loop body
LE: loop exit
PB: predicated region body
PF: predicated region fallthrough
CT: control target
= control target key end

     0   :  { %s563_s12 = smov 0   ;;  %s565_s13 = smov 0   ;;  %s639_s0 = inlined_call_operand.vmem [shape: bf16[4,8,128], index: 0, kind: input, shape index: {}]   ;;  %s640_s1 = inlined_call_operand.vmem [shape: f32[1,128], index: 1, kind: input, shape index: {}]   ;;  %s641_s2 = inlined_call_operand.vmem [shape: f32[1,128], index: 2, kind: input, shape index: {}]   ;;  %s642_s3 = inlined_call_operand.vmem [shape: bf16[4,8,128], index: 3, kind: output, shape index: {}]  }
   0x1   :  { %s567_s14 = smov 0   ;;  %s569_s15 = smov 0  }
   0x2   :  { %s571_s16 = smov 0  }
   0x3 LB: > { %s383_s17 = sadd.s32 4294967295, %s537_s16   ;;  %s25_s18 = sadd.s32 1, %s533_s15  ;;  %s537_s16 = sphi %s571_s16, %s13_s16   ;;  %s533_s15 = sphi %s569_s15, %s647_s15   ;;  %s529_s14 = sphi %s567_s14, %s646_s14   ;;  %s525_s13 = sphi %s565_s13, %s645_s13   ;;  %s521_s12 = sphi %s563_s12, %s644_s12  }
   0x4   : > { %p27_p0 = scmp.ge.s32.totalorder %s25_s18, 4  ;;  %s104_s19 = sadd.s32 1, %s525_s13 }
   0x5   : > { %p114_p1 = scmp.ne.s32.totalorder %s525_s13, %s521_s12  ;;  %p115_p2 = scmp.eq.s32.totalorder %s383_s17, 3 }
   0x6   : > { %s649_s18 = smov (%p27_p0, %s25_s18), 0  ;;  %p387_p4 = scmp.ge.s32.totalorder %s537_s16, 1 }
   0x7   : > { %p595_p3 = por %p115_p2, %p114_p1  ;;  %s99_s21 = ssub.s32 %s533_s15, %s649_s18 }
   0x8   : > { %p161_p5 = scmp.lt.s32.totalorder %s537_s16, 5  ;;  %p102_p6 = scmp.eq.s32.totalorder %s99_s21, 0 }
   0xa   : > { %p162_p7 = pnand %p387_p4, %p161_p5 }
   0xb   : > { %s604_s22 = scalar_select %p102_p6, %s525_s13, %s104_s19  }
   0xc   : > { %165 = sbr.rel (%p162_p7) target bundleno = 45 (0x2d), region = 32  ;;  %p192_p8 = scmp.lt.s32.totalorder (!%p162_p7), %s529_s14, 3  ;;  %v390_v1 = vld [vmem:[%s640_s1] ss:$0 sm:$0xff] (!%p162_p7) }
   0xd   : > { %s186_s30 = sand.u32 (!%p162_p7), 1, %s521_s12   ;;  %v391_v4 = vld [vmem:[%s641_s2] ss:$0 sm:$0xff] (!%p162_p7) }
   0xe   : > { %s388_s6 = sshll.u32 (!%p162_p7), %s186_s30, 3 }
   0xf   : > { %s188_s7 = scalar_lea.vmem (!%p162_p7), [#allocation2], %s388_s6  }
  0x13   : > { %s193_s23 = scalar_select %p192_p8, %s529_s14, 3 }
  0x14   : > { %s395_s8 = sshll.u32 (%p595_p3), %s529_s14, 2  ;;  %s539_s12 = smov (%p595_p3), 0  }
  0x15   : > { %s389_s24 = sshll.u32 %s193_s23, 2  ;;  %s252_s11 = scalar_lea.vmem (%p595_p3), %s642_s3, %s395_s8  }
  0x16   : > { %s198_s27 = scalar_lea.vmem %s639_s0, %s389_s24 }
  0x17   : > { %v403_v0 = vld [vmem:[%s198_s27] sm:$0xff]  }
  0x18   : > { %v404_v2 = vunpack.c.l.bf16 %v403_v0  ;;  %v405_v3 = vunpack.c.h.bf16 %v403_v0 }
  0x1a   : > { %v216_v5 = vmul.f32 %v404_v2, %v390_v1  ;;  %v217_v6 = vmul.f32 %v405_v3, %v390_v1 }
  0x1c   : > { %v225_v7 = vadd.f32 %v391_v4, %v216_v5  ;;  %v226_v8 = vadd.f32 %v391_v4, %v217_v6  ;;  %245 = sbr.rel (!%p595_p3) target bundleno = 45 (0x2d), region = 36 }
  0x1e   : > { %v227_v9 = vmax.f32 %v225_v7, 0.0  ;;  %v228_v10 = vmax.f32 %v226_v8, 0.0 }
  0x20   : > { %v409_v11 = vpack.c.bf16 %v228_v10, %v227_v9 }
  0x22   : > { %410 = vst [vmem:[%s188_s7] sm:$0xff] %v409_v11  }
  0x23 LB: >> { %s264_s12 = sadd.s32 1, %s541_s12   ;;  %s541_s12 = sphi %s539_s12, %s264_s12  }
  0x24   : >> { %p263_p9 = scmp.ge.s32.totalorder %s264_s12, 1 }
  0x26   : > { %266 = sbr.rel (!%p263_p9) target bundleno = 35 (0x23), region = 96 }
  0x29   : >> { %v270_v12 = vld [vmem:[%s188_s7] sm:$0xf] }
  0x2a   : >> { %271 = vst [vmem:[%s252_s11] sm:$0xf] %v270_v12 }
  0x2d PF: > { %s13_s16 = sadd.s32 1, %s537_s16   ;;  %s644_s12 = smov %s525_s13 }
  0x2e   : > { %p10_p10 = scmp.ge.s32.totalorder %s13_s16, 6   ;;  %s645_s13 = smov %s604_s22 }
  0x2f   : > { %s646_s14 = smov %s533_s15  ;;  %s647_s15 = smov %s649_s18 }
  0x30   :  { %12 = sbr.rel (!%p10_p10) target bundleno = 3 (0x3), region = 107 }

// kernel: generator_forward.28
= control target key start
LH: loop header
LB: loop body
LE: loop exit
PB: predicated region body
PF: predicated region fallthrough
CT: control target
= control target key end

     0   :  { %s462_s12 = smov 0   ;;  %s464_s13 = smov 0   ;;  %s501_s0 = inlined_call_operand.vmem [shape: bf16[4,32,128], index: 0, kind: input, shape index: {}]   ;;  %s502_s1 = inlined_call_operand.vmem [shape: f32[1,128], index: 1, kind: input, shape index: {}]   ;;  %s503_s2 = inlined_call_operand.vmem [shape: f32[1,128], index: 2, kind: input, shape index: {}]   ;;  %s504_s3 = inlined_call_operand.vmem [shape: bf16[4,32,128], index: 3, kind: output, shape index: {}]  }
   0x1   :  { %s466_s14 = smov 0  }
   0x2 LB: > { %s25_s15 = sadd.s32 1, %s436_s13  ;;  %p355_p0 = scmp.ge.s32.totalorder %s440_s14, 1  ;;  %s440_s14 = sphi %s466_s14, %s13_s14   ;;  %s436_s13 = sphi %s464_s13, %s506_s13   ;;  %s432_s12 = sphi %s462_s12, %s505_s12  }
   0x3   : > { %p27_p1 = scmp.ge.s32.totalorder %s25_s15, 4  ;;  %p158_p2 = scmp.lt.s32.totalorder %s440_s14, 5 }
   0x5   : > { %s508_s15 = smov (%p27_p1, %s25_s15), 0  ;;  %p159_p3 = pnand %p355_p0, %p158_p2 }
   0x6   : > { %p191_p4 = scmp.lt.s32.totalorder (!%p159_p3), %s432_s12, 3  ;;  %v360_v2 = vld [vmem:[%s502_s1] ss:$0 sm:$0xff] (!%p159_p3) }
   0x7   : > { %162 = sbr.rel (%p159_p3) target bundleno = 29 (0x1d), region = 32  ;;  %v361_v7 = vld [vmem:[%s503_s2] ss:$0 sm:$0xff] (!%p159_p3) }
   0xe   : > { %s510_s12 = smov (!%p191_p4, %s432_s12), 3 }
   0xf   : > { %s368_s16 = sshll.u32 %s510_s12, 4 }
  0x10   : > { %s198_s19 = scalar_lea.vmem %s501_s0, %s368_s16  ;;  %s208_s26 = scalar_lea.vmem %s504_s3, %s368_s16 }
  0x11   : > { %v375_v0 = vld [vmem:[%s198_s19] sm:$0xff]   ;;  %v392_v1 = vld [vmem:[%s198_s19 + $0x8] sm:$0xff]  }
  0x12   : > { %v376_v3 = vunpack.c.l.bf16 %v375_v0  ;;  %v377_v4 = vunpack.c.h.bf16 %v375_v0  ;;  %v380_v5 = vunpack.c.l.bf16 %v392_v1  ;;  %v381_v6 = vunpack.c.h.bf16 %v392_v1 }
  0x14   : > { %v225_v8 = vmul.f32 %v376_v3, %v360_v2  ;;  %v226_v9 = vmul.f32 %v377_v4, %v360_v2  ;;  %v227_v10 = vmul.f32 %v380_v5, %v360_v2  ;;  %v228_v11 = vmul.f32 %v381_v6, %v360_v2 }
  0x16   : > { %v236_v12 = vadd.f32 %v361_v7, %v225_v8  ;;  %v237_v13 = vadd.f32 %v361_v7, %v226_v9  ;;  %v238_v14 = vadd.f32 %v361_v7, %v227_v10  ;;  %v239_v15 = vadd.f32 %v361_v7, %v228_v11 }
  0x18   : > { %v240_v16 = vmax.f32 %v236_v12, 0.0  ;;  %v241_v17 = vmax.f32 %v237_v13, 0.0  ;;  %v242_v18 = vmax.f32 %v238_v14, 0.0  ;;  %v243_v19 = vmax.f32 %v239_v15, 0.0 }
  0x1a   : > { %v385_v20 = vpack.c.bf16 %v241_v17, %v240_v16  ;;  %v390_v21 = vpack.c.bf16 %v243_v19, %v242_v18 }
  0x1c   : > { %386 = vst [vmem:[%s208_s26] sm:$0xff] %v385_v20   ;;  %393 = vst [vmem:[%s208_s26 + $0x8] sm:$0xff] %v390_v21  }
  0x1d PF: > { %s13_s14 = sadd.s32 1, %s440_s14   ;;  %s505_s12 = smov %s436_s13 }
  0x1e   : > { %p10_p5 = scmp.ge.s32.totalorder %s13_s14, 6   ;;  %s506_s13 = smov %s508_s15 }
  0x20   :  { %12 = sbr.rel (!%p10_p5) target bundleno = 2 (0x2), region = 62 }

// kernel: generator_forward.27
= control target key start
LH: loop header
LB: loop body
LE: loop exit
PB: predicated region body
PF: predicated region fallthrough
CT: control target
= control target key end

     0   :  { %s1109_s12 = smov 0   ;;  %s1111_s13 = smov 0   ;;  %s1188_s0 = inlined_call_operand.vmem [shape: bf16[4,32,512], index: 0, kind: input, shape index: {}]   ;;  %s1189_s1 = inlined_call_operand.vmem [shape: bf16[4,512,128], index: 1, kind: input, shape index: {}]   ;;  %s1190_s2 = inlined_call_operand.vmem [shape: bf16[4,32,128], index: 2, kind: output, shape index: {0}]   ;;  %s1191_s3 = inlined_call_operand.vmem [shape: f32[4,1,8,128], index: 3, kind: output, shape index: {1}]  }
   0x1   :  { %s1113_s14 = smov 0  }
   0x2 LB: > { %s26_s15 = sadd.s32 1, %s1083_s13  ;;  %p869_p0 = scmp.ge.s32.totalorder %s1087_s14, 1  ;;  %s1087_s14 = sphi %s1113_s14, %s14_s14   ;;  %s1083_s13 = sphi %s1111_s13, %s1193_s13   ;;  %s1079_s12 = sphi %s1109_s12, %s1192_s12  }
   0x3   : > { %p28_p1 = scmp.ge.s32.totalorder %s26_s15, 4  ;;  %p174_p2 = scmp.lt.s32.totalorder %s1087_s14, 5 }
   0x5   : > { %s1195_s15 = smov (%p28_p1, %s26_s15), 0  ;;  %p175_p3 = pnand %p869_p0, %p174_p2 }
   0x6   : > { %p220_p4 = scmp.lt.s32.totalorder (!%p175_p3), %s1079_s12, 3 }
   0x7   : > { %178 = sbr.rel (%p175_p3) target bundleno = 299 (0x12b), region = 28 }
   0xe   : > { %s1197_s12 = smov (!%p220_p4, %s1079_s12), 3 }
   0xf   : > { %s924_s16 = sshll.u32 %s1197_s12, 8  ;;  %s923_s20 = sshll.u32 %s1197_s12, 6 }
  0x10   : > { %s1133_s19 = scalar_lea.vmem %s1189_s1, %s924_s16  ;;  %s228_s23 = scalar_lea.vmem %s1188_s0, %s923_s20 }
  0x11   : > { %v1021_v0 = vld [vmem:[%s1133_s19 + $0x40] sm:$0xff]   ;;  %v1025_v4 = vld [vmem:[%s1133_s19 + $0x48] sm:$0xff]   ;;  %v1029_v8 = vld [vmem:[%s1133_s19 + $0x50] sm:$0xff]   ;;  %s925_s24 = sshll.u32 %s1197_s12, 4  ;;  %s876_s28 = sshll.u32 %s1197_s12, 3 }
  0x12   : > { %v1022_v1 = vld [vmem:[%s1133_s19 + $0xc0] sm:$0xff]   ;;  %941 = vmatprep.subr.bf16.mxu0 %v1021_v0  ;;  %v1026_v5 = vld [vmem:[%s1133_s19 + $0xc8] sm:$0xff]   ;;  %v1030_v9 = vld [vmem:[%s1133_s19 + $0xd0] sm:$0xff]   ;;  %s243_s27 = scalar_lea.vmem %s1190_s2, %s925_s24  ;;  %s251_s4 = scalar_lea.vmem %s1191_s3, %s876_s28 }
  0x13   : > { %v1023_v2 = vld [vmem:[%s1133_s19] sm:$0xff]   ;;  %969 = vmatprep.subr.bf16.mxu1 %v1022_v1  ;;  %v1027_v6 = vld [vmem:[%s1133_s19 + $0x8] sm:$0xff]   ;;  %v1031_v10 = vld [vmem:[%s1133_s19 + $0x10] sm:$0xff]  }
  0x14   : > { %v1024_v3 = vld [vmem:[%s1133_s19 + $0x80] sm:$0xff]   ;;  %942 = vmatpush3.bf16.msra.mxu0 %v1023_v2  ;;  %v1028_v7 = vld [vmem:[%s1133_s19 + $0x88] sm:$0xff]   ;;  %v1032_v11 = vld [vmem:[%s1133_s19 + $0x90] sm:$0xff]  }
  0x15   : > { %970 = vmatpush3.bf16.msra.mxu1 %v1024_v3  ;;  %943 = vmatprep.subr.bf16.mxu0 %v1025_v4  ;;  %v1033_v12 = vld [vmem:[%s1133_s19 + $0x58] sm:$0xff]   ;;  %v1037_v16 = vld [vmem:[%s1133_s19 + $0x60] sm:$0xff]   ;;  %v1041_v20 = vld [vmem:[%s1133_s19 + $0x68] sm:$0xff]  }
  0x16   : > { %971 = vmatprep.subr.bf16.mxu1 %v1026_v5  ;;  %v1034_v13 = vld [vmem:[%s1133_s19 + $0xd8] sm:$0xff]   ;;  %v1038_v17 = vld [vmem:[%s1133_s19 + $0xe0] sm:$0xff]   ;;  %v1042_v21 = vld [vmem:[%s1133_s19 + $0xe8] sm:$0xff]  }
  0x17   : > { %v1035_v14 = vld [vmem:[%s1133_s19 + $0x18] sm:$0xff]   ;;  %v1039_v18 = vld [vmem:[%s1133_s19 + $0x20] sm:$0xff]   ;;  %v1043_v22 = vld [vmem:[%s1133_s19 + $0x28] sm:$0xff]  }
  0x18   : > { %944 = vmatpush3.bf16.msra.mxu0 %v1027_v6  ;;  %v1036_v15 = vld [vmem:[%s1133_s19 + $0x98] sm:$0xff]   ;;  %v1040_v19 = vld [vmem:[%s1133_s19 + $0xa0] sm:$0xff]   ;;  %v1044_v23 = vld [vmem:[%s1133_s19 + $0xa8] sm:$0xff]  }
  0x19   : > { %972 = vmatpush3.bf16.msra.mxu1 %v1028_v7  ;;  %945 = vmatprep.subr.bf16.mxu0 %v1029_v8  ;;  %v1045_v24 = vld [vmem:[%s1133_s19 + $0x70] sm:$0xff]   ;;  %v1049_v28 = vld [vmem:[%s1133_s19 + $0x78] sm:$0xff]  }
  0x1a   : > { %973 = vmatprep.subr.bf16.mxu1 %v1030_v9  ;;  %v1046_v25 = vld [vmem:[%s1133_s19 + $0xf0] sm:$0xff]   ;;  %v1050_v29 = vld [vmem:[%s1133_s19 + $0xf8] sm:$0xff]  }
  0x1b   : > { %v1047_v26 = vld [vmem:[%s1133_s19 + $0x30] sm:$0xff]   ;;  %v1051_v30 = vld [vmem:[%s1133_s19 + $0x38] sm:$0xff]  }
  0x1c   : > { %946 = vmatpush3.bf16.msra.mxu0 %v1031_v10  ;;  %v1048_v27 = vld [vmem:[%s1133_s19 + $0xb0] sm:$0xff]   ;;  %v1052_v31 = vld [vmem:[%s1133_s19 + $0xb8] sm:$0xff]  }
  0x1d   : > { %974 = vmatpush3.bf16.msra.mxu1 %v1032_v11  ;;  %947 = vmatprep.subr.bf16.mxu0 %v1033_v12  ;;  %v1053_v32 = vld [vmem:[%s228_s23] ss:$16 sps:$4 sm:$0xff]   ;;  %v1055_v33 = vld [vmem:[%s228_s23 + $0x4] ss:$16 sps:$4 sm:$0xff]   ;;  %v1056_v34 = vld [vmem:[%s228_s23 + $0x8] ss:$16 sps:$4 sm:$0xff]  }
  0x1e   : > { %975 = vmatprep.subr.bf16.mxu1 %v1034_v13  ;;  %v1058_v35 = vld [vmem:[%s228_s23 + $0xc] ss:$16 sps:$4 sm:$0xff]   ;;  %589 = vmatprep.mubr.bf16.mxu0 %v1055_v33  ;;  %v1059_v36 = vld [vmem:[%s228_s23 + $0x24] ss:$16 sps:$4 sm:$0xff]   ;;  %v1063_v38 = vld [vmem:[%s228_s23 + $0x20] ss:$16 sps:$4 sm:$0xff]  }
  0x1f   : > { %638 = vmatprep.mubr.bf16.mxu1 %v1058_v35  ;;  %v1061_v37 = vld [vmem:[%s228_s23 + $0x2c] ss:$16 sps:$4 sm:$0xff]   ;;  %v1064_v39 = vld [vmem:[%s228_s23 + $0x28] ss:$16 sps:$4 sm:$0xff]  }
  0x20   : > { %948 = vmatpush3.bf16.msra.mxu0 %v1035_v14 }
  0x21   : > { %976 = vmatpush3.bf16.msra.mxu1 %v1036_v15  ;;  %949 = vmatprep.subr.bf16.mxu0 %v1037_v16 }
  0x22   : > { %977 = vmatprep.subr.bf16.mxu1 %v1038_v17 }
  0x24   : > { %950 = vmatpush3.bf16.msra.mxu0 %v1039_v18 }
  0x25   : > { %978 = vmatpush3.bf16.msra.mxu1 %v1040_v19  ;;  %951 = vmatprep.subr.bf16.mxu0 %v1041_v20  ;;  %v675_v19 = vlaneseq }
  0x26   : > { %979 = vmatprep.subr.bf16.mxu1 %v1042_v21 }
  0x28   : > { %952 = vmatpush3.bf16.msra.mxu0 %v1043_v22 }
  0x29   : > { %980 = vmatpush3.bf16.msra.mxu1 %v1044_v23  ;;  %953 = vmatprep.subr.bf16.mxu0 %v1045_v24  ;;  %v676_v24 = vshrl.u32 %v675_v19, 7 }
  0x2a   : > { %981 = vmatprep.subr.bf16.mxu1 %v1046_v25 }
  0x2b   : > { %vm716_vm0 = vcmp.eq.s32.totalorder %v676_v24, 0  ;;  %vm718_vm1 = vcmp.eq.s32.totalorder %v676_v24, 1 }
  0x2c   : > { %954 = vmatpush3.bf16.msra.mxu0 %v1047_v26 }
  0x2d   : > { %982 = vmatpush3.bf16.msra.mxu1 %v1048_v27  ;;  %955 = vmatprep.subr.bf16.mxu0 %v1049_v28 }
  0x2e   : > { %983 = vmatprep.subr.bf16.mxu1 %v1050_v29 }
  0x30   : > { %956 = vmatpush3.bf16.msra.mxu0 %v1051_v30 }
  0x31   : > { %984 = vmatpush3.bf16.msra.mxu1 %v1052_v31 }
  0x33   : > { %590 = vmatmul.mubr.bf16.vlgmr.msra.gmra.mrb[0].mxu0 %v1053_v32 }
  0x34   : > { %639 = vmatmul.mubr.bf16.vlgmr.msra.gmra.mrb[0].mxu1 %v1056_v34  ;;  %597 = vmatprep.mubr.bf16.mxu0 %v1059_v36 }
  0x35   : > { %646 = vmatprep.mubr.bf16.mxu1 %v1061_v37 }
  0x3b   : > { %598 = vmatmul.mubr.bf16.gmra.mrb[4].mxu0 %v1063_v38 }
  0x3c   : > { %647 = vmatmul.mubr.bf16.gmra.mrb[4].mxu1 %v1064_v39 }
 0x106   : > { %v957_v40 = vpop.f32.mrb[0].mxu0 }
 0x107   : > { %v985_v41 = vpop.f32.mrb[0].mxu1  ;;  %v958_v42 = vpop.f32.mrb[1].mxu0 }
 0x108   : > { %v959_v43 = vadd.f32 %v958_v42, %v957_v40  ;;  %v986_v44 = vpop.f32.mrb[1].mxu1  ;;  %v960_v45 = vpop.f32.mrb[2].mxu0 }
 0x109   : > { %v987_v46 = vadd.f32 %v986_v44, %v985_v41  ;;  %v988_v47 = vpop.f32.mrb[2].mxu1  ;;  %v961_v48 = vpop.f32.mrb[3].mxu0 }
 0x10a   : > { %v962_v49 = vadd.f32 %v961_v48, %v960_v45  ;;  %v989_v50 = vpop.f32.mrb[3].mxu1 }
 0x10b   : > { %v641_v51 = vadd.f32 %v987_v46, %v959_v43  ;;  %v990_v52 = vadd.f32 %v989_v50, %v988_v47 }
 0x10d   : > { %v644_v53 = vadd.f32 %v990_v52, %v962_v49  ;;  %v703_v55 = vmul.f32 %v641_v51, %v641_v51 }
 0x10e   : > { %v963_v54 = vpop.f32.mrb[4].mxu0 }
 0x10f   : > { %v933_v56 = vpack.c.bf16 %v644_v53, %v641_v51  ;;  %v694_v57 = vadd.f32 %v644_v53, %v641_v51  ;;  %v704_v58 = vmul.f32 %v644_v53, %v644_v53  ;;  %v991_v59 = vpop.f32.mrb[4].mxu1  ;;  %v964_v60 = vpop.f32.mrb[5].mxu0 }
 0x110   : > { %v965_v61 = vadd.f32 %v964_v60, %v963_v54  ;;  %v992_v62 = vpop.f32.mrb[5].mxu1  ;;  %v966_v63 = vpop.f32.mrb[6].mxu0 }
 0x111   : > { %934 = vst [vmem:[%s243_s27] sm:$0xff] %v933_v56   ;;  %v707_v0 = vadd.f32 %v704_v58, %v703_v55  ;;  %v993_v1 = vadd.f32 %v992_v62, %v991_v59  ;;  %v994_v2 = vpop.f32.mrb[6].mxu1  ;;  %v967_v3 = vpop.f32.mrb[7].mxu0 }
 0x112   : > { %v968_v4 = vadd.f32 %v967_v3, %v966_v63  ;;  %v995_v5 = vpop.f32.mrb[7].mxu1 }
 0x113   : > { %v649_v6 = vadd.f32 %v993_v1, %v965_v61  ;;  %v996_v7 = vadd.f32 %v995_v5, %v994_v2 }
 0x115   : > { %v695_v8 = vadd.f32 %v694_v57, %v649_v6  ;;  %v705_v9 = vmul.f32 %v649_v6, %v649_v6  ;;  %v652_v10 = vadd.f32 %v996_v7, %v968_v4 }
 0x117   : > { %v708_v11 = vadd.f32 %v707_v0, %v705_v9  ;;  %v938_v12 = vpack.c.bf16 %v652_v10, %v649_v6  ;;  %v696_v13 = vadd.f32 %v695_v8, %v652_v10  ;;  %v706_v14 = vmul.f32 %v652_v10, %v652_v10 }
 0x119   : > { %940 = vst [vmem:[%s243_s27 + $0x8] sm:$0xff] %v938_v12   ;;  %v697_v15 = vrot.slane %v696_v13, 4  ;;  %v709_v16 = vadd.f32 %v708_v11, %v706_v14 }
 0x11b   : > { %v698_v17 = vadd.f32 %v697_v15, %v696_v13  ;;  %v710_v18 = vrot.slane %v709_v16, 4 }
 0x11d   : > { %v699_v20 = vrot.slane %v698_v17, 2  ;;  %v711_v21 = vadd.f32 %v710_v18, %v709_v16 }
 0x11f   : > { %v700_v22 = vadd.f32 %v699_v20, %v698_v17  ;;  %v712_v23 = vrot.slane %v711_v21, 2 }
 0x121   : > { %v701_v25 = vrot.slane %v700_v22, 1  ;;  %v713_v26 = vadd.f32 %v712_v23, %v711_v21 }
 0x123   : > { %v702_v27 = vadd.f32 %v701_v25, %v700_v22  ;;  %v714_v28 = vrot.slane %v713_v26, 1 }
 0x125   : > { %v715_v29 = vadd.f32 %v714_v28, %v713_v26  ;;  %v717_v30 = vsel %vm716_vm0, %v702_v27, 0.0 }
 0x127   : > { %v719_v31 = vsel %vm718_vm1, %v715_v29, 0.0 }
 0x128   : > { %v720_v32 = vadd.f32 %v719_v31, %v717_v30 }
 0x12a   : > { %721 = vst [vmem:[%s251_s4] sm:$0xff] %v720_v32 }
 0x12b PF: > { %s14_s14 = sadd.s32 1, %s1087_s14   ;;  %s1192_s12 = smov %s1083_s13 }
 0x12c   : > { %p11_p5 = scmp.ge.s32.totalorder %s14_s14, 6   ;;  %s1193_s13 = smov %s1195_s15 }
 0x12e   :  { %13 = sbr.rel (!%p11_p5) target bundleno = 2 (0x2), region = 73 }

// kernel: generator_forward.29
= control target key start
LH: loop header
LB: loop body
LE: loop exit
PB: predicated region body
PF: predicated region fallthrough
CT: control target
= control target key end

     0   :  { %s1108_s12 = smov 0   ;;  %s1110_s13 = smov 0   ;;  %s1215_s0 = inlined_call_operand.vmem [shape: bf16[4,128,256], index: 0, kind: input, shape index: {}]   ;;  %s1216_s1 = inlined_call_operand.vmem [shape: bf16[4,256,128], index: 1, kind: input, shape index: {}]   ;;  %s1217_s2 = inlined_call_operand.vmem [shape: f32[1,128], index: 2, kind: input, shape index: {}]   ;;  %s1218_s3 = inlined_call_operand.vmem [shape: bf16[4,128,128], index: 3, kind: output, shape index: {}]  }
   0x1   :  { %s1112_s14 = smov 0  }
   0x2 LB: > { %s25_s15 = sadd.s32 1, %s1082_s13  ;;  %p764_p0 = scmp.ge.s32.totalorder %s1086_s14, 1  ;;  %s1086_s14 = sphi %s1112_s14, %s13_s14   ;;  %s1082_s13 = sphi %s1110_s13, %s1220_s13   ;;  %s1078_s12 = sphi %s1108_s12, %s1219_s12  }
   0x3   : > { %p27_p1 = scmp.ge.s32.totalorder %s25_s15, 4  ;;  %p169_p2 = scmp.lt.s32.totalorder %s1086_s14, 5 }
   0x5   : > { %s1222_s15 = smov (%p27_p1, %s25_s15), 0  ;;  %p170_p3 = pnand %p764_p0, %p169_p2 }
   0x6   : > { %p208_p4 = scmp.lt.s32.totalorder (!%p170_p3), %s1078_s12, 3  ;;  %v1174_v34 = vld [vmem:[%s1217_s2] ss:$0 sm:$0xff] (!%p170_p3) }
   0x7   : > { %173 = sbr.rel (%p170_p3) target bundleno = 310 (0x136), region = 32 }
   0xe   : > { %s1224_s12 = smov (!%p208_p4, %s1078_s12), 3 }
   0xf   : > { %s822_s16 = sshll.u32 %s1224_s12, 7  ;;  %s824_s25 = sshll.u32 %s1224_s12, 6 }
  0x10   : > { %s1132_s19 = scalar_lea.vmem %s1216_s1, %s822_s16  ;;  %s1146_s22 = scalar_lea.vmem %s1215_s0, %s822_s16 }
  0x11   : > { %v992_v0 = vld [vmem:[%s1132_s19 + $0x40] sm:$0xff]   ;;  %v994_v2 = vld [vmem:[%s1132_s19 + $0x48] sm:$0xff]   ;;  %v996_v4 = vld [vmem:[%s1132_s19 + $0x50] sm:$0xff]   ;;  %s1188_s28 = scalar_lea.vmem %s1218_s3, %s824_s25 }
  0x12   : > { %v993_v1 = vld [vmem:[%s1132_s19] sm:$0xff]   ;;  %888 = vmatprep.subr.bf16.mxu0 %v992_v0  ;;  %952 = vmatprep.subr.bf16.mxu1 %v992_v0  ;;  %v995_v3 = vld [vmem:[%s1132_s19 + $0x8] sm:$0xff]   ;;  %v997_v5 = vld [vmem:[%s1132_s19 + $0x10] sm:$0xff]  }
  0x13   : > { %889 = vmatpush3.bf16.msra.mxu0 %v993_v1  ;;  %960 = vmatpush3.bf16.msra.mxu1 %v993_v1  ;;  %v998_v6 = vld [vmem:[%s1132_s19 + $0x58] sm:$0xff]   ;;  %v1000_v8 = vld [vmem:[%s1132_s19 + $0x60] sm:$0xff]   ;;  %v1002_v10 = vld [vmem:[%s1132_s19 + $0x68] sm:$0xff]  }
  0x14   : > { %890 = vmatprep.subr.bf16.mxu0 %v994_v2  ;;  %953 = vmatprep.subr.bf16.mxu1 %v994_v2  ;;  %v999_v7 = vld [vmem:[%s1132_s19 + $0x18] sm:$0xff]   ;;  %v1001_v9 = vld [vmem:[%s1132_s19 + $0x20] sm:$0xff]   ;;  %v1003_v13 = vld [vmem:[%s1132_s19 + $0x28] sm:$0xff]  }
  0x15   : > { %v1010_v11 = vld [vmem:[%s1146_s22 + $0x4] ss:$8 sps:$4 sm:$0xff]   ;;  %v1004_v14 = vld [vmem:[%s1132_s19 + $0x70] sm:$0xff]   ;;  %v1006_v16 = vld [vmem:[%s1132_s19 + $0x78] sm:$0xff]  }
  0x16   : > { %v1013_v12 = vld [vmem:[%s1146_s22 + $0x44] ss:$8 sps:$4 sm:$0xff]   ;;  %497 = vmatprep.mubr.bf16.mxu0 %v1010_v11  ;;  %v1005_v15 = vld [vmem:[%s1132_s19 + $0x30] sm:$0xff]   ;;  %v1007_v17 = vld [vmem:[%s1132_s19 + $0x38] sm:$0xff]  }
  0x17   : > { %891 = vmatpush3.bf16.msra.mxu0 %v995_v3  ;;  %961 = vmatpush3.bf16.msra.mxu1 %v995_v3  ;;  %v1008_v18 = vld [vmem:[%s1146_s22] ss:$8 sps:$4 sm:$0xff]   ;;  %v1014_v20 = vld [vmem:[%s1146_s22 + $0x14] ss:$8 sps:$4 sm:$0xff]   ;;  %v1018_v22 = vld [vmem:[%s1146_s22 + $0x10] ss:$8 sps:$4 sm:$0xff]  }
  0x18   : > { %892 = vmatprep.subr.bf16.mxu0 %v996_v4  ;;  %954 = vmatprep.subr.bf16.mxu1 %v996_v4  ;;  %v1011_v19 = vld [vmem:[%s1146_s22 + $0x40] ss:$8 sps:$4 sm:$0xff]   ;;  %v1016_v21 = vld [vmem:[%s1146_s22 + $0x54] ss:$8 sps:$4 sm:$0xff]   ;;  %v1019_v23 = vld [vmem:[%s1146_s22 + $0x50] ss:$8 sps:$4 sm:$0xff]  }
  0x19   : > { %529 = vmatprep.mubr.bf16.mxu1 %v1013_v12  ;;  %v1020_v24 = vld [vmem:[%s1146_s22 + $0x24] ss:$8 sps:$4 sm:$0xff]   ;;  %v1024_v26 = vld [vmem:[%s1146_s22 + $0x20] ss:$8 sps:$4 sm:$0xff]   ;;  %v1026_v28 = vld [vmem:[%s1146_s22 + $0x34] ss:$8 sps:$4 sm:$0xff]  }
  0x1a   : > { %v1022_v25 = vld [vmem:[%s1146_s22 + $0x64] ss:$8 sps:$4 sm:$0xff]   ;;  %v1025_v27 = vld [vmem:[%s1146_s22 + $0x60] ss:$8 sps:$4 sm:$0xff]   ;;  %v1028_v29 = vld [vmem:[%s1146_s22 + $0x74] ss:$8 sps:$4 sm:$0xff]  }
  0x1b   : > { %893 = vmatpush3.bf16.msra.mxu0 %v997_v5  ;;  %962 = vmatpush3.bf16.msra.mxu1 %v997_v5  ;;  %v1030_v30 = vld [vmem:[%s1146_s22 + $0x30] ss:$8 sps:$4 sm:$0xff]  }
  0x1c   : > { %894 = vmatprep.subr.bf16.mxu0 %v998_v6  ;;  %955 = vmatprep.subr.bf16.mxu1 %v998_v6  ;;  %v1031_v31 = vld [vmem:[%s1146_s22 + $0x70] ss:$8 sps:$4 sm:$0xff]  }
  0x1f   : > { %895 = vmatpush3.bf16.msra.mxu0 %v999_v7  ;;  %963 = vmatpush3.bf16.msra.mxu1 %v999_v7 }
  0x20   : > { %896 = vmatprep.subr.bf16.mxu0 %v1000_v8  ;;  %956 = vmatprep.subr.bf16.mxu1 %v1000_v8 }
  0x23   : > { %897 = vmatpush3.bf16.msra.mxu0 %v1001_v9  ;;  %964 = vmatpush3.bf16.msra.mxu1 %v1001_v9 }
  0x24   : > { %898 = vmatprep.subr.bf16.mxu0 %v1002_v10  ;;  %957 = vmatprep.subr.bf16.mxu1 %v1002_v10 }
  0x27   : > { %899 = vmatpush3.bf16.msra.mxu0 %v1003_v13  ;;  %965 = vmatpush3.bf16.msra.mxu1 %v1003_v13 }
  0x28   : > { %900 = vmatprep.subr.bf16.mxu0 %v1004_v14  ;;  %958 = vmatprep.subr.bf16.mxu1 %v1004_v14 }
  0x2b   : > { %901 = vmatpush3.bf16.msra.mxu0 %v1005_v15  ;;  %966 = vmatpush3.bf16.msra.mxu1 %v1005_v15 }
  0x2c   : > { %902 = vmatprep.subr.bf16.mxu0 %v1006_v16  ;;  %959 = vmatprep.subr.bf16.mxu1 %v1006_v16 }
  0x2f   : > { %903 = vmatpush3.bf16.msra.mxu0 %v1007_v17  ;;  %967 = vmatpush3.bf16.msra.mxu1 %v1007_v17 }
  0x32   : > { %498 = vmatmul.mubr.bf16.vlgmr.msra.gmra.mrb[0].mxu0 %v1008_v18  ;;  %530 = vmatmul.mubr.bf16.vlgmr.msra.gmra.mrb[0].mxu1 %v1011_v19 }
  0x33   : > { %505 = vmatprep.mubr.bf16.mxu0 %v1014_v20  ;;  %537 = vmatprep.mubr.bf16.mxu1 %v1016_v21 }
  0x3a   : > { %506 = vmatmul.mubr.bf16.gmra.mrb[4].mxu0 %v1018_v22  ;;  %538 = vmatmul.mubr.bf16.gmra.mrb[4].mxu1 %v1019_v23 }
  0x3b   : > { %513 = vmatprep.mubr.bf16.mxu0 %v1020_v24  ;;  %545 = vmatprep.mubr.bf16.mxu1 %v1022_v25 }
  0x42   : > { %514 = vmatmul.mubr.bf16.gmra.mrb[8].mxu0 %v1024_v26  ;;  %546 = vmatmul.mubr.bf16.gmra.mrb[8].mxu1 %v1025_v27 }
  0x43   : > { %521 = vmatprep.mubr.bf16.mxu0 %v1026_v28  ;;  %553 = vmatprep.mubr.bf16.mxu1 %v1028_v29 }
  0x4a   : > { %522 = vmatmul.mubr.bf16.gmra.mrb[12].mxu0 %v1030_v30  ;;  %554 = vmatmul.mubr.bf16.gmra.mrb[12].mxu1 %v1031_v31 }
 0x105   : > { %v904_v32 = vpop.f32.mrb[0].mxu0  ;;  %v928_v33 = vpop.f32.mrb[0].mxu1 }
 0x106   : > { %v905_v35 = vpop.f32.mrb[1].mxu0  ;;  %v929_v36 = vpop.f32.mrb[1].mxu1 }
 0x107   : > { %v906_v37 = vadd.f32 %v905_v35, %v904_v32  ;;  %v930_v38 = vadd.f32 %v929_v36, %v928_v33  ;;  %v907_v39 = vpop.f32.mrb[2].mxu0  ;;  %v931_v40 = vpop.f32.mrb[2].mxu1 }
 0x108   : > { %v908_v41 = vpop.f32.mrb[3].mxu0  ;;  %v932_v42 = vpop.f32.mrb[3].mxu1 }
 0x109   : > { %v500_v43 = vadd.f32 %v906_v37, %v1174_v34  ;;  %v532_v44 = vadd.f32 %v930_v38, %v1174_v34  ;;  %v909_v45 = vadd.f32 %v908_v41, %v907_v39  ;;  %v933_v46 = vadd.f32 %v932_v42, %v931_v40 }
 0x10b   : > { %1032 = vtanh.f32 %v500_v43  ;;  %v503_v47 = vadd.f32 %v909_v45, %v1174_v34  ;;  %v535_v48 = vadd.f32 %v933_v46, %v1174_v34 }
 0x10c   : > { %1034 = vtanh.f32 %v532_v44 }
 0x10d   : > { %1036 = vtanh.f32 %v503_v47  ;;  %v910_v49 = vpop.f32.mrb[4].mxu0  ;;  %v934_v50 = vpop.f32.mrb[4].mxu1 }
 0x10e   : > { %1038 = vtanh.f32 %v535_v48  ;;  %v911_v51 = vpop.f32.mrb[5].mxu0  ;;  %v935_v52 = vpop.f32.mrb[5].mxu1 }
 0x10f   : > { %v912_v53 = vadd.f32 %v911_v51, %v910_v49  ;;  %v936_v54 = vadd.f32 %v935_v52, %v934_v50  ;;  %v913_v55 = vpop.f32.mrb[6].mxu0  ;;  %v937_v56 = vpop.f32.mrb[6].mxu1 }
 0x110   : > { %v914_v57 = vpop.f32.mrb[7].mxu0  ;;  %v938_v58 = vpop.f32.mrb[7].mxu1 }
 0x111   : > { %v508_v59 = vadd.f32 %v912_v53, %v1174_v34  ;;  %v540_v60 = vadd.f32 %v936_v54, %v1174_v34  ;;  %v915_v61 = vadd.f32 %v914_v57, %v913_v55  ;;  %v939_v62 = vadd.f32 %v938_v58, %v937_v56 }
 0x113   : > { %1040 = vtanh.f32 %v508_v59  ;;  %v511_v63 = vadd.f32 %v915_v61, %v1174_v34  ;;  %v543_v0 = vadd.f32 %v939_v62, %v1174_v34 }
 0x114   : > { %1042 = vtanh.f32 %v540_v60 }
 0x115   : > { %v1033_v1 = vpop.eup %1032  ;;  %1044 = vtanh.f32 %v511_v63  ;;  %v916_v2 = vpop.f32.mrb[8].mxu0 }
 0x116   : > { %v940_v3 = vpop.f32.mrb[8].mxu1  ;;  %v1035_v4 = vpop.eup %1034  ;;  %1046 = vtanh.f32 %v543_v0 }
 0x117   : > { %v917_v5 = vpop.f32.mrb[9].mxu0  ;;  %v941_v6 = vpop.f32.mrb[9].mxu1 }
 0x118   : > { %v1037_v7 = vpop.eup %1036  ;;  %v918_v8 = vadd.f32 %v917_v5, %v916_v2  ;;  %v942_v9 = vadd.f32 %v941_v6, %v940_v3  ;;  %v919_v10 = vpop.f32.mrb[10].mxu0 }
 0x119   : > { %v943_v11 = vpop.f32.mrb[10].mxu1  ;;  %v1039_v12 = vpop.eup %1038  ;;  %v844_v13 = vpack.c.bf16 %v1037_v7, %v1033_v1 }
 0x11a   : > { %v920_v14 = vpop.f32.mrb[11].mxu0  ;;  %v944_v15 = vpop.f32.mrb[11].mxu1  ;;  %v864_v16 = vpack.c.bf16 %v1039_v12, %v1035_v4  ;;  %v516_v17 = vadd.f32 %v918_v8, %v1174_v34  ;;  %v548_v18 = vadd.f32 %v942_v9, %v1174_v34 }
 0x11b   : > { %v921_v19 = vadd.f32 %v920_v14, %v919_v10  ;;  %845 = vst [vmem:[%s1188_s28] sm:$0xff] %v844_v13   ;;  %v945_v20 = vadd.f32 %v944_v15, %v943_v11 }
 0x11c   : > { %884 = vst [vmem:[%s1188_s28 + $0x20] sm:$0xff] %v864_v16   ;;  %1048 = vtanh.f32 %v516_v17 }
 0x11d   : > { %v519_v21 = vadd.f32 %v921_v19, %v1174_v34  ;;  %1050 = vtanh.f32 %v548_v18  ;;  %v551_v22 = vadd.f32 %v945_v20, %v1174_v34  ;;  %v1041_v23 = vpop.eup %1040  ;;  %v922_v24 = vpop.f32.mrb[12].mxu0 }
 0x11e   : > { %v946_v25 = vpop.f32.mrb[12].mxu1  ;;  %v1043_v26 = vpop.eup %1042 }
 0x11f   : > { %1052 = vtanh.f32 %v519_v21  ;;  %v923_v27 = vpop.f32.mrb[13].mxu0  ;;  %v947_v28 = vpop.f32.mrb[13].mxu1 }
 0x120   : > { %1054 = vtanh.f32 %v551_v22  ;;  %v1045_v29 = vpop.eup %1044  ;;  %v924_v30 = vadd.f32 %v923_v27, %v922_v24  ;;  %v948_v31 = vadd.f32 %v947_v28, %v946_v25  ;;  %v925_v32 = vpop.f32.mrb[14].mxu0 }
 0x121   : > { %v949_v33 = vpop.f32.mrb[14].mxu1  ;;  %v1047_v35 = vpop.eup %1046  ;;  %v849_v36 = vpack.c.bf16 %v1045_v29, %v1041_v23 }
 0x122   : > { %v926_v37 = vpop.f32.mrb[15].mxu0  ;;  %v950_v38 = vpop.f32.mrb[15].mxu1  ;;  %v869_v39 = vpack.c.bf16 %v1047_v35, %v1043_v26  ;;  %v524_v40 = vadd.f32 %v924_v30, %v1174_v34  ;;  %v556_v41 = vadd.f32 %v948_v31, %v1174_v34 }
 0x123   : > { %v927_v42 = vadd.f32 %v926_v37, %v925_v32  ;;  %881 = vst [vmem:[%s1188_s28 + $0x8] sm:$0xff] %v849_v36   ;;  %v951_v43 = vadd.f32 %v950_v38, %v949_v33 }
 0x124   : > { %885 = vst [vmem:[%s1188_s28 + $0x28] sm:$0xff] %v869_v39   ;;  %1056 = vtanh.f32 %v524_v40 }
 0x125   : > { %v527_v44 = vadd.f32 %v927_v42, %v1174_v34  ;;  %1058 = vtanh.f32 %v556_v41  ;;  %v559_v45 = vadd.f32 %v951_v43, %v1174_v34 }
 0x126   : > { %v1049_v46 = vpop.eup %1048 }
 0x127   : > { %1060 = vtanh.f32 %v527_v44  ;;  %v1051_v47 = vpop.eup %1050 }
 0x128   : > { %1062 = vtanh.f32 %v559_v45 }
 0x129   : > { %v1053_v48 = vpop.eup %1052 }
 0x12a   : > { %v1055_v49 = vpop.eup %1054  ;;  %v854_v50 = vpack.c.bf16 %v1053_v48, %v1049_v46 }
 0x12b   : > { %v874_v51 = vpack.c.bf16 %v1055_v49, %v1051_v47 }
 0x12c   : > { %882 = vst [vmem:[%s1188_s28 + $0x10] sm:$0xff] %v854_v50  }
 0x12d   : > { %886 = vst [vmem:[%s1188_s28 + $0x30] sm:$0xff] %v874_v51  }
 0x12e   : > { %v1057_v52 = vpop.eup %1056 }
 0x12f   : > { %v1059_v53 = vpop.eup %1058 }
 0x131   : > { %v1061_v54 = vpop.eup %1060 }
 0x132   : > { %v1063_v55 = vpop.eup %1062  ;;  %v859_v56 = vpack.c.bf16 %v1061_v54, %v1057_v52 }
 0x133   : > { %v879_v57 = vpack.c.bf16 %v1063_v55, %v1059_v53 }
 0x134   : > { %883 = vst [vmem:[%s1188_s28 + $0x18] sm:$0xff] %v859_v56  }
 0x135   : > { %887 = vst [vmem:[%s1188_s28 + $0x38] sm:$0xff] %v879_v57  }
 0x136 PF: > { %s13_s14 = sadd.s32 1, %s1086_s14   ;;  %s1219_s12 = smov %s1082_s13 }
 0x137   : > { %p10_p5 = scmp.ge.s32.totalorder %s13_s14, 6   ;;  %s1220_s13 = smov %s1222_s15 }
 0x139   :  { %12 = sbr.rel (!%p10_p5) target bundleno = 2 (0x2), region = 65 }

</bundles_post_ra>
